<compile_context>
chip_gen: v7x
topology: tpu7x:2x2x1
jax: 0.10.0
libtpu: 0.0.40
codegen_flags: <defaults>
</compile_context>

<pallas_src>
import functools

import jax
import jax.numpy as jnp
from jax import lax
from jax.experimental import pallas as pl
from jax.experimental.pallas import tpu as pltpu

HIDDEN = 128   # first conv always produces 128 channels (per the module)
CPAD = 128     # lane-padded channel count used inside the kernel


def _residual_block_kernel(x_ref, mask_ref, w1_ref, b1_ref, w2_ref, b2_ref,
                           o_ref, *, wp):
    """One batch-tile per grid step.

    x_ref    : (M, 128)      bf16  spatially + lane padded input, flattened
    mask_ref : (M, 1)        f32   1.0 on interior pixels, 0.0 on border/pad rows
    w1_ref   : (3, 384, 128) bf16  conv1 weights, grouped per dy (K = dx-major x cin)
    b1_ref   : (1, 128)      f32
    w2_ref   : (3, 384, 128) bf16  conv2 weights, grouped per dy
    b2_ref   : (1, 128)      f32
    o_ref    : (M, 128)      bf16
    wp       : padded image width (W + 2), static
    """
    m = o_ref.shape[0]

    # Upcast once: f32 copy reused for conv1's taps and the residual add.
    a = x_ref[...].astype(jnp.float32)              # (M, 128)
    interior = mask_ref[...] > 0.5                  # (M, 1) bool

    def conv3x3(act, w_ref, b_ref):
        # shifted[p] = act[p + off].  Roll wrap-around only ever lands in
        # border / pad rows: |off| <= wp+1, interior pixels sit at least
        # wp+1 rows away from each image's Ppad block boundary (requires
        # Ppad >= Pp, true by construction), and border/pad rows are masked
        # (hidden layer) or discarded (output), so interior pixels are exact.
        acc = None
        for dy in range(3):
            parts = []
            for dx in range(3):
                off = (dy - 1) * wp + (dx - 1)
                shifted = act if off == 0 else pltpu.roll(act, (-off) % m, axis=0)
                parts.append(shifted)
            # (M, 384) bf16 operand: K = 3 dx-taps x 128 channels -> one
            # MXU-filling matmul per dy instead of three K=128 matmuls.
            k_slab = jnp.concatenate(parts, axis=-1).astype(jnp.bfloat16)
            part = jnp.dot(k_slab, w_ref[dy], preferred_element_type=jnp.float32)
            acc = part if acc is None else acc + part
        return jnp.maximum(acc + b_ref[...], 0.0)

    # conv1 + ReLU; zero the 1-px border so conv2 sees true zero padding.
    # jnp.where (not a multiply) so a non-finite wrapped border value can
    # never become NaN via 0 * Inf.
    h = jnp.where(interior, conv3x3(a, w1_ref, b1_ref), 0.0)
    # conv2 + ReLU, residual add (f32), final ReLU, bf16 store.
    y = conv3x3(h, w2_ref, b2_ref)
    o_ref[...] = jnp.maximum(y + a, 0.0).astype(o_ref.dtype)


def _round_up(v, m):
    return (v + m - 1) // m * m


def _pick_bt(n, ppad):
    """Images per grid step: the largest divisor of n that (a) leaves >= 2
    grid steps whenever n >= 2 (so both v7x TensorCores get work) and
    (b) keeps the per-step slabs inside a conservative VMEM budget."""
    # Per M-row bytes: double-buffered bf16 in + bf16 out slabs (2*(2+2)*128)
    # plus ~5 live f32-sized temporaries (a, h, acc, concat slab, shifted).
    bytes_per_row = 2 * (2 + 2) * CPAD + 5 * 4 * CPAD
    budget = 20 << 20            # headroom under the 32 MiB scoped limit
    max_rows = max(budget // bytes_per_row, ppad)
    for cand in (16, 8, 4, 2):
        if n % cand == 0 and n // cand >= 2 and cand * ppad <= max_rows:
            return cand
    return 1


@jax.jit
def residual_block(x_nchw, w1, b1, w2, b2):
    """x_nchw: (N, C, H, W) f32.  w1: (3,3,Cin,128) HWIO.  w2: (3,3,128,Cout)."""
    N, Cin, H, W = x_nchw.shape
    Cout = w2.shape[-1]
    assert Cin == Cout, "shortcut=None requires ch_in == ch_out"
    assert Cin <= CPAD and Cout <= CPAD

    Hp, Wp = H + 2, W + 2
    Pp = Hp * Wp
    Ppad = _round_up(Pp, 16)                # bf16-native sublane multiple
    Bt = _pick_bt(N, Ppad)
    M = Bt * Ppad
    # TODO(synk): for very large images (Ppad alone over the VMEM budget) add
    # a second grid axis over row tiles with a 1-row halo; not needed here.

    # --- input: NCHW -> NHWC, +1 px spatial zero pad, lane pad, flatten, bf16.
    x = jnp.transpose(x_nchw, (0, 2, 3, 1)).astype(jnp.float32)
    xp = jnp.pad(x, ((0, 0), (1, 1), (1, 1), (0, CPAD - Cin)))
    x_flat = jnp.pad(xp.reshape(N, Pp, CPAD), ((0, 0), (0, Ppad - Pp), (0, 0)))
    x_flat = x_flat.reshape(N * Ppad, CPAD).astype(jnp.bfloat16)

    # --- interior mask (1.0 where the pixel is a real, unpadded location).
    yy = jnp.arange(Hp)[:, None]
    xx = jnp.arange(Wp)[None, :]
    interior = ((yy >= 1) & (yy <= H) & (xx >= 1) & (xx <= W)).astype(jnp.float32)
    mask = jnp.pad(interior.reshape(Pp), (0, Ppad - Pp))
    mask = jnp.tile(mask, (Bt,)).reshape(M, 1)

    # --- weights: channel-pad to 128 lanes, group per dy with K = (dx, cin),
    #     bf16 MXU operands (f32 accumulation via preferred_element_type).
    w1p = jnp.pad(w1.astype(jnp.float32),
                  ((0, 0), (0, 0), (0, CPAD - Cin), (0, 0)))
    w1p = w1p.reshape(3, 3 * CPAD, HIDDEN).astype(jnp.bfloat16)
    b1p = b1.astype(jnp.float32).reshape(1, HIDDEN)
    w2p = jnp.pad(w2.astype(jnp.float32),
                  ((0, 0), (0, 0), (0, 0), (0, CPAD - Cout)))
    w2p = w2p.reshape(3, 3 * HIDDEN, CPAD).astype(jnp.bfloat16)
    b2p = jnp.pad(b2.astype(jnp.float32), ((0, CPAD - Cout),)).reshape(1, CPAD)

    kernel = functools.partial(_residual_block_kernel, wp=Wp)

    out_flat = pl.pallas_call(
        kernel,
        out_shape=jax.ShapeDtypeStruct((N * Ppad, CPAD), jnp.bfloat16),
        grid_spec=pltpu.PrefetchScalarGridSpec(
            num_scalar_prefetch=0,
            grid=(N // Bt,),
            in_specs=[
                pl.BlockSpec((M, CPAD), lambda n: (n, 0)),                 # x slab
                pl.BlockSpec((M, 1), lambda n: (0, 0)),                    # mask
                pl.BlockSpec((3, 3 * CPAD, HIDDEN), lambda n: (0, 0, 0)),  # w1
                pl.BlockSpec((1, HIDDEN), lambda n: (0, 0)),               # b1
                pl.BlockSpec((3, 3 * HIDDEN, CPAD), lambda n: (0, 0, 0)),  # w2
                pl.BlockSpec((1, CPAD), lambda n: (0, 0)),                 # b2
            ],
            out_specs=pl.BlockSpec((M, CPAD), lambda n: (n, 0)),
        ),
        compiler_params=pltpu.CompilerParams(
            dimension_semantics=("parallel",),
            vmem_limit_bytes=32 * 1024 * 1024),
    )(x_flat, mask, w1p, b1p, w2p, b2p)

    # slice interior pixels / valid channels back out and return NCHW f32.
    out = out_flat.reshape(N, Ppad, CPAD)[:, :Pp, :]
    out = out.reshape(N, Hp, Wp, CPAD)[:, 1:H + 1, 1:W + 1, :Cout]
    return jnp.transpose(out.astype(jnp.float32), (0, 3, 1, 2))


def reference_forward(x_nchw, w1, b1, w2, b2):
    """Pure-JAX f32 reference (same math as the PyTorch module)."""
    x = jnp.transpose(x_nchw, (0, 2, 3, 1))
    dn = ("NHWC", "HWIO", "NHWC")
    h = lax.conv_general_dilated(x, w1, (1, 1), "SAME", dimension_numbers=dn) + b1
    h = jnp.maximum(h, 0.0)
    y = lax.conv_general_dilated(h, w2, (1, 1), "SAME", dimension_numbers=dn) + b2
    y = jnp.maximum(y, 0.0)
    y = jnp.maximum(y + x, 0.0)
    return jnp.transpose(y, (0, 3, 1, 2))


if __name__ == "__main__":
    # Small deterministic example: batch=2, ch_in=ch_out=4, spatial=16.
    N, C, H, W = 2, 4, 16, 16
    key = jax.random.PRNGKey(0)
    kx, k1, k2, k3, k4 = jax.random.split(key, 5)

    x = jax.random.normal(kx, (N, C, H, W), dtype=jnp.float32)
    # Conv weights in HWIO (equivalent to nn.Conv2d's OIHW, just transposed).
    w1 = jax.random.normal(k1, (3, 3, C, HIDDEN), dtype=jnp.float32) * 0.1
    b1 = jax.random.normal(k2, (HIDDEN,), dtype=jnp.float32) * 0.1
    w2 = jax.random.normal(k3, (3, 3, HIDDEN, C), dtype=jnp.float32) * 0.1
    b2 = jax.random.normal(k4, (C,), dtype=jnp.float32) * 0.1

    out = jax.block_until_ready(residual_block(x, w1, b1, w2, b2))
    ref = reference_forward(x, w1, b1, w2, b2)

    assert out.shape == (N, C, H, W)
    max_err = float(jnp.max(jnp.abs(out - ref)))
    # bf16 matmul operands / bf16 input & output slabs (f32 accumulation)
    # -> looser tolerance than pure f32.
    assert jnp.allclose(out, ref, rtol=5e-2, atol=5e-2), max_err

    print("KERNEL_OK")
</pallas_src>

<mosaic_0001>
module attributes {stable_mosaic.version = 11 : i64} {
  func.func @_residual_block_kernel(%arg0: i32, %arg1: memref<336x128xbf16, #tpu.memory_space<vmem>>, %arg2: memref<336x1xf32, #tpu.memory_space<vmem>>, %arg3: memref<3x384x128xbf16, #tpu.memory_space<vmem>>, %arg4: memref<1x128xf32, #tpu.memory_space<vmem>>, %arg5: memref<3x384x128xbf16, #tpu.memory_space<vmem>>, %arg6: memref<1x128xf32, #tpu.memory_space<vmem>>, %arg7: memref<336x128xbf16, #tpu.memory_space<vmem>>) attributes {dimension_semantics = [#tpu.dimension_semantics<parallel>], iteration_bounds = array<i64: 2>, scalar_prefetch = 0 : i64, scratch_operands = 0 : i64, tpu.core_type = #tpu.core_type<tc>, window_params = [{transform_indices = @transform_0, window_bounds = array<i64: 336, 128>}, {pipeline_mode = #tpu.pipeline_mode<synchronous>, transform_indices = @transform_1, window_bounds = array<i64: 336, 1>}, {pipeline_mode = #tpu.pipeline_mode<synchronous>, transform_indices = @transform_2, window_bounds = array<i64: 3, 384, 128>}, {pipeline_mode = #tpu.pipeline_mode<synchronous>, transform_indices = @transform_3, window_bounds = array<i64: 1, 128>}, {pipeline_mode = #tpu.pipeline_mode<synchronous>, transform_indices = @transform_4, window_bounds = array<i64: 3, 384, 128>}, {pipeline_mode = #tpu.pipeline_mode<synchronous>, transform_indices = @transform_5, window_bounds = array<i64: 1, 128>}, {transform_indices = @transform_6, window_bounds = array<i64: 336, 128>}]} {
    %c0 = arith.constant 0 : index
    %c0_0 = arith.constant 0 : index
    %0 = vector.load %arg1[%c0, %c0_0] : memref<336x128xbf16, #tpu.memory_space<vmem>>, vector<336x128xbf16>
    %1 = arith.extf %0 : vector<336x128xbf16> to vector<336x128xf32>
    %c0_1 = arith.constant 0 : index
    %c0_2 = arith.constant 0 : index
    %2 = vector.load %arg2[%c0_1, %c0_2] : memref<336x1xf32, #tpu.memory_space<vmem>>, vector<336x1xf32>
    %cst = arith.constant 5.000000e-01 : f32
    %3 = vector.broadcast %cst : f32 to vector<336x1xf32>
    %4 = arith.cmpf ogt, %2, %3 : vector<336x1xf32>
    %c19_i32 = arith.constant 19 : i32
    %5 = tpu.dynamic_rotate %1 by %c19_i32 dim 0 : vector<336x128xf32>, i32 -> vector<336x128xf32>
    %c18_i32 = arith.constant 18 : i32
    %6 = tpu.dynamic_rotate %1 by %c18_i32 dim 0 : vector<336x128xf32>, i32 -> vector<336x128xf32>
    %c17_i32 = arith.constant 17 : i32
    %7 = tpu.dynamic_rotate %1 by %c17_i32 dim 0 : vector<336x128xf32>, i32 -> vector<336x128xf32>
    %8 = tpu.concatenate %5, %6, %7 in 1 : vector<336x128xf32>, vector<336x128xf32>, vector<336x128xf32> -> vector<336x384xf32>
    %9 = arith.truncf %8 : vector<336x384xf32> to vector<336x384xbf16>
    %c0_3 = arith.constant 0 : index
    %c0_4 = arith.constant 0 : index
    %c0_5 = arith.constant 0 : index
    %10 = vector.load %arg3[%c0_3, %c0_4, %c0_5] : memref<3x384x128xbf16, #tpu.memory_space<vmem>>, vector<1x384x128xbf16>
    %11 = vector.shape_cast %10 : vector<1x384x128xbf16> to vector<384x128xbf16>
    %cst_6 = arith.constant dense<0.000000e+00> : vector<336x128xf32>
    %12 = tpu.matmul %9, %11, %cst_6 {dimension_numbers = #tpu.dot_dimension_numbers<[1], [0], [0], [1], [0, 0, 1, 1], [], []>} : vector<336x384xbf16>, vector<384x128xbf16>, vector<336x128xf32> -> vector<336x128xf32>
    %c1_i32 = arith.constant 1 : i32
    %13 = tpu.dynamic_rotate %1 by %c1_i32 dim 0 : vector<336x128xf32>, i32 -> vector<336x128xf32>
    %c335_i32 = arith.constant 335 : i32
    %14 = tpu.dynamic_rotate %1 by %c335_i32 dim 0 : vector<336x128xf32>, i32 -> vector<336x128xf32>
    %15 = tpu.concatenate %13, %1, %14 in 1 : vector<336x128xf32>, vector<336x128xf32>, vector<336x128xf32> -> vector<336x384xf32>
    %16 = arith.truncf %15 : vector<336x384xf32> to vector<336x384xbf16>
    %c1 = arith.constant 1 : index
    %c0_7 = arith.constant 0 : index
    %c0_8 = arith.constant 0 : index
    %17 = vector.load %arg3[%c1, %c0_7, %c0_8] : memref<3x384x128xbf16, #tpu.memory_space<vmem>>, vector<1x384x128xbf16>
    %18 = vector.shape_cast %17 : vector<1x384x128xbf16> to vector<384x128xbf16>
    %cst_9 = arith.constant dense<0.000000e+00> : vector<336x128xf32>
    %19 = tpu.matmul %16, %18, %cst_9 {dimension_numbers = #tpu.dot_dimension_numbers<[1], [0], [0], [1], [0, 0, 1, 1], [], []>} : vector<336x384xbf16>, vector<384x128xbf16>, vector<336x128xf32> -> vector<336x128xf32>
    %20 = arith.addf %12, %19 : vector<336x128xf32>
    %c319_i32 = arith.constant 319 : i32
    %21 = tpu.dynamic_rotate %1 by %c319_i32 dim 0 : vector<336x128xf32>, i32 -> vector<336x128xf32>
    %c318_i32 = arith.constant 318 : i32
    %22 = tpu.dynamic_rotate %1 by %c318_i32 dim 0 : vector<336x128xf32>, i32 -> vector<336x128xf32>
    %c317_i32 = arith.constant 317 : i32
    %23 = tpu.dynamic_rotate %1 by %c317_i32 dim 0 : vector<336x128xf32>, i32 -> vector<336x128xf32>
    %24 = tpu.concatenate %21, %22, %23 in 1 : vector<336x128xf32>, vector<336x128xf32>, vector<336x128xf32> -> vector<336x384xf32>
    %25 = arith.truncf %24 : vector<336x384xf32> to vector<336x384xbf16>
    %c2 = arith.constant 2 : index
    %c0_10 = arith.constant 0 : index
    %c0_11 = arith.constant 0 : index
    %26 = vector.load %arg3[%c2, %c0_10, %c0_11] : memref<3x384x128xbf16, #tpu.memory_space<vmem>>, vector<1x384x128xbf16>
    %27 = vector.shape_cast %26 : vector<1x384x128xbf16> to vector<384x128xbf16>
    %cst_12 = arith.constant dense<0.000000e+00> : vector<336x128xf32>
    %28 = tpu.matmul %25, %27, %cst_12 {dimension_numbers = #tpu.dot_dimension_numbers<[1], [0], [0], [1], [0, 0, 1, 1], [], []>} : vector<336x384xbf16>, vector<384x128xbf16>, vector<336x128xf32> -> vector<336x128xf32>
    %29 = arith.addf %20, %28 : vector<336x128xf32>
    %c0_13 = arith.constant 0 : index
    %c0_14 = arith.constant 0 : index
    %30 = vector.load %arg4[%c0_13, %c0_14] : memref<1x128xf32, #tpu.memory_space<vmem>>, vector<1x128xf32>
    %31 = vector.broadcast %30 : vector<1x128xf32> to vector<336x128xf32>
    %32 = arith.addf %29, %31 : vector<336x128xf32>
    %cst_15 = arith.constant 0.000000e+00 : f32
    %33 = vector.broadcast %cst_15 : f32 to vector<336x128xf32>
    %34 = arith.maximumf %32, %33 : vector<336x128xf32>
    %cst_16 = arith.constant 0.000000e+00 : f32
    %35 = vector.shape_cast %4 : vector<336x1xi1> to vector<336x1xi1>
    %36 = vector.broadcast %35 : vector<336x1xi1> to vector<336x128xi1>
    %37 = vector.broadcast %cst_16 : f32 to vector<336x128xf32>
    %38 = arith.select %36, %34, %37 : vector<336x128xi1>, vector<336x128xf32>
    %c19_i32_17 = arith.constant 19 : i32
    %39 = tpu.dynamic_rotate %38 by %c19_i32_17 dim 0 : vector<336x128xf32>, i32 -> vector<336x128xf32>
    %c18_i32_18 = arith.constant 18 : i32
    %40 = tpu.dynamic_rotate %38 by %c18_i32_18 dim 0 : vector<336x128xf32>, i32 -> vector<336x128xf32>
    %c17_i32_19 = arith.constant 17 : i32
    %41 = tpu.dynamic_rotate %38 by %c17_i32_19 dim 0 : vector<336x128xf32>, i32 -> vector<336x128xf32>
    %42 = tpu.concatenate %39, %40, %41 in 1 : vector<336x128xf32>, vector<336x128xf32>, vector<336x128xf32> -> vector<336x384xf32>
    %43 = arith.truncf %42 : vector<336x384xf32> to vector<336x384xbf16>
    %c0_20 = arith.constant 0 : index
    %c0_21 = arith.constant 0 : index
    %c0_22 = arith.constant 0 : index
    %44 = vector.load %arg5[%c0_20, %c0_21, %c0_22] : memref<3x384x128xbf16, #tpu.memory_space<vmem>>, vector<1x384x128xbf16>
    %45 = vector.shape_cast %44 : vector<1x384x128xbf16> to vector<384x128xbf16>
    %cst_23 = arith.constant dense<0.000000e+00> : vector<336x128xf32>
    %46 = tpu.matmul %43, %45, %cst_23 {dimension_numbers = #tpu.dot_dimension_numbers<[1], [0], [0], [1], [0, 0, 1, 1], [], []>} : vector<336x384xbf16>, vector<384x128xbf16>, vector<336x128xf32> -> vector<336x128xf32>
    %c1_i32_24 = arith.constant 1 : i32
    %47 = tpu.dynamic_rotate %38 by %c1_i32_24 dim 0 : vector<336x128xf32>, i32 -> vector<336x128xf32>
    %c335_i32_25 = arith.constant 335 : i32
    %48 = tpu.dynamic_rotate %38 by %c335_i32_25 dim 0 : vector<336x128xf32>, i32 -> vector<336x128xf32>
    %49 = tpu.concatenate %47, %38, %48 in 1 : vector<336x128xf32>, vector<336x128xf32>, vector<336x128xf32> -> vector<336x384xf32>
    %50 = arith.truncf %49 : vector<336x384xf32> to vector<336x384xbf16>
    %c1_26 = arith.constant 1 : index
    %c0_27 = arith.constant 0 : index
    %c0_28 = arith.constant 0 : index
    %51 = vector.load %arg5[%c1_26, %c0_27, %c0_28] : memref<3x384x128xbf16, #tpu.memory_space<vmem>>, vector<1x384x128xbf16>
    %52 = vector.shape_cast %51 : vector<1x384x128xbf16> to vector<384x128xbf16>
    %cst_29 = arith.constant dense<0.000000e+00> : vector<336x128xf32>
    %53 = tpu.matmul %50, %52, %cst_29 {dimension_numbers = #tpu.dot_dimension_numbers<[1], [0], [0], [1], [0, 0, 1, 1], [], []>} : vector<336x384xbf16>, vector<384x128xbf16>, vector<336x128xf32> -> vector<336x128xf32>
    %54 = arith.addf %46, %53 : vector<336x128xf32>
    %c319_i32_30 = arith.constant 319 : i32
    %55 = tpu.dynamic_rotate %38 by %c319_i32_30 dim 0 : vector<336x128xf32>, i32 -> vector<336x128xf32>
    %c318_i32_31 = arith.constant 318 : i32
    %56 = tpu.dynamic_rotate %38 by %c318_i32_31 dim 0 : vector<336x128xf32>, i32 -> vector<336x128xf32>
    %c317_i32_32 = arith.constant 317 : i32
    %57 = tpu.dynamic_rotate %38 by %c317_i32_32 dim 0 : vector<336x128xf32>, i32 -> vector<336x128xf32>
    %58 = tpu.concatenate %55, %56, %57 in 1 : vector<336x128xf32>, vector<336x128xf32>, vector<336x128xf32> -> vector<336x384xf32>
    %59 = arith.truncf %58 : vector<336x384xf32> to vector<336x384xbf16>
    %c2_33 = arith.constant 2 : index
    %c0_34 = arith.constant 0 : index
    %c0_35 = arith.constant 0 : index
    %60 = vector.load %arg5[%c2_33, %c0_34, %c0_35] : memref<3x384x128xbf16, #tpu.memory_space<vmem>>, vector<1x384x128xbf16>
    %61 = vector.shape_cast %60 : vector<1x384x128xbf16> to vector<384x128xbf16>
    %cst_36 = arith.constant dense<0.000000e+00> : vector<336x128xf32>
    %62 = tpu.matmul %59, %61, %cst_36 {dimension_numbers = #tpu.dot_dimension_numbers<[1], [0], [0], [1], [0, 0, 1, 1], [], []>} : vector<336x384xbf16>, vector<384x128xbf16>, vector<336x128xf32> -> vector<336x128xf32>
    %63 = arith.addf %54, %62 : vector<336x128xf32>
    %c0_37 = arith.constant 0 : index
    %c0_38 = arith.constant 0 : index
    %64 = vector.load %arg6[%c0_37, %c0_38] : memref<1x128xf32, #tpu.memory_space<vmem>>, vector<1x128xf32>
    %65 = vector.broadcast %64 : vector<1x128xf32> to vector<336x128xf32>
    %66 = arith.addf %63, %65 : vector<336x128xf32>
    %cst_39 = arith.constant 0.000000e+00 : f32
    %67 = vector.broadcast %cst_39 : f32 to vector<336x128xf32>
    %68 = arith.maximumf %66, %67 : vector<336x128xf32>
    %69 = arith.addf %68, %1 : vector<336x128xf32>
    %cst_40 = arith.constant 0.000000e+00 : f32
    %70 = vector.broadcast %cst_40 : f32 to vector<336x128xf32>
    %71 = arith.maximumf %69, %70 : vector<336x128xf32>
    %72 = arith.truncf %71 : vector<336x128xf32> to vector<336x128xbf16>
    %c0_41 = arith.constant 0 : index
    %c0_42 = arith.constant 0 : index
    %73 = vector.load %arg7[%c0_41, %c0_42] : memref<336x128xbf16, #tpu.memory_space<vmem>>, vector<336x128xbf16>
    tpu.vector_store %arg7[%c0_41, %c0_42], %72 {strides = array<i32>} : memref<336x128xbf16, #tpu.memory_space<vmem>>, vector<336x128xbf16>,
    return
  }
  func.func @transform_0(%arg0: i32) -> (i32, i32) {
    %c0_i32 = arith.constant 0 : i32
    %c0_i32_0 = arith.constant 0 : i32
    return %arg0, %c0_i32 : i32, i32
  }
  func.func @transform_1(%arg0: i32) -> (i32, i32) {
    %c0_i32 = arith.constant 0 : i32
    %c0_i32_0 = arith.constant 0 : i32
    %c0_i32_1 = arith.constant 0 : i32
    return %c0_i32, %c0_i32_0 : i32, i32
  }
  func.func @transform_2(%arg0: i32) -> (i32, i32, i32) {
    %c0_i32 = arith.constant 0 : i32
    %c0_i32_0 = arith.constant 0 : i32
    %c0_i32_1 = arith.constant 0 : i32
    %c0_i32_2 = arith.constant 0 : i32
    return %c0_i32, %c0_i32_0, %c0_i32_1 : i32, i32, i32
  }
  func.func @transform_3(%arg0: i32) -> (i32, i32) {
    %c0_i32 = arith.constant 0 : i32
    %c0_i32_0 = arith.constant 0 : i32
    %c0_i32_1 = arith.constant 0 : i32
    return %c0_i32, %c0_i32_0 : i32, i32
  }
  func.func @transform_4(%arg0: i32) -> (i32, i32, i32) {
    %c0_i32 = arith.constant 0 : i32
    %c0_i32_0 = arith.constant 0 : i32
    %c0_i32_1 = arith.constant 0 : i32
    %c0_i32_2 = arith.constant 0 : i32
    return %c0_i32, %c0_i32_0, %c0_i32_1 : i32, i32, i32
  }
  func.func @transform_5(%arg0: i32) -> (i32, i32) {
    %c0_i32 = arith.constant 0 : i32
    %c0_i32_0 = arith.constant 0 : i32
    %c0_i32_1 = arith.constant 0 : i32
    return %c0_i32, %c0_i32_0 : i32, i32
  }
  func.func @transform_6(%arg0: i32) -> (i32, i32) {
    %c0_i32 = arith.constant 0 : i32
    %c0_i32_0 = arith.constant 0 : i32
    return %arg0, %c0_i32 : i32, i32
  }
}

</mosaic_0001>

<bundles_post_ra>
// kernel: residual_block.1
= control target key start
LH: loop header
LB: loop body
LE: loop exit
PB: predicated region body
PF: predicated region fallthrough
CT: control target
= control target key end

     0   :  { %s7853_s21 = smov 0   ;;  %s12904_s0 = inlined_call_operand.vmem [shape: bf16[672,128], index: 0, kind: input, shape index: {}]   ;;  %s12905_s1 = inlined_call_operand.vmem [shape: f32[336,1], index: 1, kind: input, shape index: {}]   ;;  %s12906_s2 = inlined_call_operand.vmem [shape: bf16[3,384,128], index: 2, kind: input, shape index: {}]   ;;  %s12907_s3 = inlined_call_operand.vmem [shape: f32[1,128], index: 3, kind: input, shape index: {}]   ;;  %s12908_s4 = inlined_call_operand.vmem [shape: bf16[3,384,128], index: 4, kind: input, shape index: {}]   ;;  %s12909_s5 = inlined_call_operand.vmem [shape: f32[1,128], index: 5, kind: input, shape index: {}]   ;;  %s12910_s6 = inlined_call_operand.vmem [shape: bf16[672,128], index: 6, kind: output, shape index: {}]  }
   0x1 LB: > { %s6170_s22 = sadd.s32 4294967295, %s7813_s21   ;;  %p6174_p0 = scmp.ge.s32.totalorder %s7813_s21, 1  ;;  %s7813_s21 = sphi %s7853_s21, %s16_s21  }
   0x2   : > { %p213_p1 = scmp.lt.s32.totalorder %s7813_s21, 3 }
   0x4   : > { %p214_p2 = pnand %p6174_p0, %p213_p1 }
   0x6   : > { %217 = sbr.rel (%p214_p2) target bundleno = 1546 (0x60a), region = 44 }
   0xd   : > { %v12912_v0 = vmov 0   ;;  %v12915_v1 = vmov 0.0   ;;  %v7613_v2 = vld [vmem:[%s12906_s2 + $0xc0] sm:$0xff]   ;;  %vm7817_vm0 = vmmov 0   ;;  %s243_s27 = smul.u32 42, %s6170_s22  ;;  %v7615_v4 = vld [vmem:[%s12906_s2 + $0xc8] sm:$0xff]   ;;  %v466_v14 = vlaneseq }
   0xe   : > { %1112 = vmatprep.subr.bf16.mxu0 %v12912_v0  ;;  %6984 = vmatprep.subr.bf16.mxu1 %v12915_v1  ;;  %v7614_v3 = vld [vmem:[%s12906_s2 + $0x140] sm:$0xff]   ;;  %v7616_v5 = vld [vmem:[%s12906_s2 + $0x148] sm:$0xff]   ;;  %v7617_v6 = vld [vmem:[%s12906_s2 + $0xd0] sm:$0xff]  }
   0xf   : > { %7000 = vmatprep.mubr.msk.bf16.mxu1 %vm7817_vm0, %v12915_v1  ;;  %7611 = vset.pattern.permute.xlu0 %v12912_v0  ;;  %p244_p3 = scmp.lt.s32.totalorder %s243_s27, 83  ;;  %v7618_v7 = vld [vmem:[%s12906_s2 + $0x150] sm:$0xff]   ;;  %v7619_v8 = vld [vmem:[%s12906_s2 + $0xd8] sm:$0xff]   ;;  %v7621_v10 = vld [vmem:[%s12906_s2 + $0xe0] sm:$0xff]   ;;  %v7934_v20 = vshrl.u32 %v466_v14, 7 }
  0x10   : > { %1113 = vmatpush1.bf16.msra.mxu0 %v7613_v2  ;;  %7612 = vset.pattern.permute.xlu1 %v12912_v0  ;;  %v7620_v9 = vld [vmem:[%s12906_s2 + $0x158] sm:$0xff]   ;;  %v7622_v11 = vld [vmem:[%s12906_s2 + $0x160] sm:$0xff]   ;;  %v7623_v15 = vld [vmem:[%s12906_s2 + $0xe8] sm:$0xff]  }
  0x11   : > { %6985 = vmatpush3.bf16.msra.mxu1 %v7614_v3  ;;  %1114 = vmatprep.subr.bf16.mxu0 %v12912_v0  ;;  %s14070_s27 = smov (!%p244_p3, %s243_s27), 83  ;;  %v7624_v16 = vld [vmem:[%s12906_s2 + $0x168] sm:$0xff]   ;;  %v7625_v21 = vld [vmem:[%s12906_s2 + $0xf0] sm:$0xff]   ;;  %vm834_vm1 = vcmp.lt.s32.totalorder %v7934_v20, 7  ;;  %v7627_v27 = vld [vmem:[%s12906_s2 + $0xf8] sm:$0xff]   ;;  %vm638_vm2 = vcmp.lt.s32.totalorder %v7934_v20, 1 }
  0x12   : > { %6986 = vmatprep.subr.bf16.mxu1 %v12915_v1  ;;  %s6175_s12 = sshll.u32 %s14070_s27, 2  ;;  %v7626_v22 = vld [vmem:[%s12906_s2 + $0x170] sm:$0xff]   ;;  %v7628_v28 = vld [vmem:[%s12906_s2 + $0x178] sm:$0xff]   ;;  %v7629_v34 = vld [vmem:[%s12906_s2 + $0x100] sm:$0xff]   ;;  %vm553_vm3 = vcmp.lt.s32.totalorder %v7934_v20, 2  ;;  %vm468_vm4 = vcmp.lt.s32.totalorder %v7934_v20, 3 }
  0x13   : > { %s7905_s19 = scalar_lea.vmem %s12904_s0, %s6175_s12  ;;  %v7638_v38 = vld [vmem:[%s12906_s2] sm:$0xff]   ;;  %v7630_v39 = vld [vmem:[%s12906_s2 + $0x108] sm:$0xff]   ;;  %v7631_v46 = vld [vmem:[%s12906_s2 + $0x110] sm:$0xff]   ;;  %vm13068_vm5 = vcmp.lt.s32.totalorder %v7934_v20, 6  ;;  %vm13173_vm15 = vcmp.lt.s32.totalorder %v7934_v20, 5  ;;  %s12727_s26 = scalar_lea.vmem %s12910_s6, %s6175_s12 }
  0x14   : > { %1115 = vmatpush1.bf16.msra.mxu0 %v7615_v4  ;;  %v256_v12 = vld [vmem:[%s7905_s19] sm:$0xff]   ;;  %v7917_v13 = vld [vmem:[%s7905_s19 + $0x8] sm:$0xff]   ;;  %v7949_v26 = vld [vmem:[%s7905_s19 + $0x10] sm:$0xff]  }
  0x15   : > { %6987 = vmatpush3.bf16.msra.mxu1 %v7616_v5  ;;  %1116 = vmatprep.subr.bf16.mxu0 %v12912_v0  ;;  %v7926_v17 = vunpack.c.l.bf16 %v256_v12  ;;  %v7928_v18 = vunpack.c.h.bf16 %v256_v12  ;;  %v7931_v19 = vunpack.c.l.bf16 %v7917_v13  ;;  %v7965_v31 = vunpack.c.h.bf16 %v7917_v13  ;;  %v7980_v37 = vld [vmem:[%s7905_s19 + $0x18] sm:$0xff]   ;;  %v7641_v44 = vld [vmem:[%s12906_s2 + $0x8] sm:$0xff]   ;;  %v8016_v49 = vld [vmem:[%s7905_s19 + $0x20] sm:$0xff]  }
  0x16   : > { %6988 = vmatprep.subr.bf16.mxu1 %v12915_v1  ;;  %1144 = vmatprep.mubr.bf16.mxu0 %v256_v12  ;;  %v7968_v32 = vunpack.c.l.bf16 %v7949_v26  ;;  %v7991_v40 = vunpack.c.h.bf16 %v7949_v26  ;;  %v8001_v43 = vunpack.c.l.bf16 %v7980_v37  ;;  %v7643_v50 = vld [vmem:[%s12906_s2 + $0x10] sm:$0xff]   ;;  %v7632_v51 = vld [vmem:[%s12906_s2 + $0x118] sm:$0xff]   ;;  %v8027_v52 = vunpack.c.h.bf16 %v7980_v37  ;;  %v7633_v58 = vld [vmem:[%s12906_s2 + $0x120] sm:$0xff]  }
  0x17   : > { %13229 = vst [vmem:[#allocation2_spill] sm:$0xff] %v7926_v17  ;;  %13230 = vst [vmem:[#allocation3_spill] sm:$0xff] %v7928_v18  ;;  %v12914_v23 = vrot.slane %v7926_v17, 1  ;;  %v793_v24 = vrot.slane %v7928_v18, 1  ;;  %v794_v25 = vrot.slane %v7931_v19, 1  ;;  %v795_v35 = vrot.slane %v7965_v31, 1 }
  0x18   : > { %1117 = vmatpush1.bf16.msra.mxu0 %v7617_v6  ;;  %13231 = vst [vmem:[#allocation4_spill] sm:$0xff] %v7931_v19  ;;  %13232 = vst [vmem:[#allocation5_spill] sm:$0xff] %v7965_v31  ;;  %v796_v36 = vrot.slane %v7968_v32, 1  ;;  %v797_v47 = vrot.slane %v7991_v40, 1  ;;  %v798_v48 = vrot.slane %v8001_v43, 1  ;;  %v8037_v55 = vunpack.c.l.bf16 %v8016_v49  ;;  %v7647_v56 = vld [vmem:[%s12906_s2 + $0x18] sm:$0xff]  }
  0x19   : > { %6989 = vmatpush3.bf16.msra.mxu1 %v7618_v7  ;;  %1118 = vmatprep.subr.bf16.mxu0 %v12912_v0  ;;  %v874_v29 = vsel %vm834_vm1, %v793_v24, %v794_v25  ;;  %v875_v30 = vsel %vm834_vm1, %v12914_v23, %v793_v24  ;;  %13233 = vst [vmem:[#allocation6_spill] sm:$0xff] %v7968_v32  ;;  %13235 = vst [vmem:[#allocation8_spill] sm:$0xff] %v7991_v40  ;;  %v799_v59 = vrot.slane %v8027_v52, 1  ;;  %v8052_v61 = vld [vmem:[%s7905_s19 + $0xa4] sm:$0xf]  ;;  %v8055_v62 = vld [vmem:[%s7905_s19 + $0x28] sm:$0xff]  }
  0x1a   : > { %6990 = vmatprep.subr.bf16.mxu1 %v12915_v1  ;;  %v7971_v33 = vpack.c.bf16 %v874_v29, %v875_v30  ;;  %v872_v41 = vsel %vm834_vm1, %v795_v35, %v796_v36  ;;  %v873_v42 = vsel %vm834_vm1, %v794_v25, %v795_v35  ;;  %13236 = vst [vmem:[#allocation9_spill] sm:$0xff] %v8001_v43  ;;  %13238 = vst [vmem:[#allocation11_spill] sm:$0xff] %v8027_v52  ;;  %v7649_v63 = vld [vmem:[%s12906_s2 + $0x20] sm:$0xff]   ;;  %v7634_v2 = vld [vmem:[%s12906_s2 + $0x128] sm:$0xff]  }
  0x1b   : > { %v8007_v45 = vpack.c.bf16 %v872_v41, %v873_v42  ;;  %v870_v53 = vsel %vm834_vm1, %v797_v47, %v798_v48  ;;  %v871_v54 = vsel %vm834_vm1, %v796_v36, %v797_v47  ;;  %13239 = vst [vmem:[#allocation12_spill] sm:$0xff] %v8037_v55  ;;  %v800_v60 = vrot.slane %v8037_v55, 1  ;;  %v7636_v24 = vld [vmem:[%s12906_s2 + $0x138] sm:$0xff]   ;;  %v7639_v36 = vld [vmem:[%s12906_s2 + $0x80] sm:$0xff]  }
  0x1c   : > { %1119 = vmatpush1.bf16.msra.mxu0 %v7619_v8  ;;  %13234 = vst [vmem:[#allocation7_spill] sm:$0xff] %v7971_v33  ;;  %v8043_v57 = vpack.c.bf16 %v870_v53, %v871_v54  ;;  %v8066_v3 = vunpack.c.l.bf16 %v8052_v61  ;;  %v8069_v4 = vunpack.c.h.bf16 %v8016_v49  ;;  %v869_v6 = vsel %vm834_vm1, %v798_v48, %v799_v59  ;;  %v7660_v48 = vld [vmem:[%s12906_s2 + $0x40] sm:$0xff]  }
  0x1d   : > { %6991 = vmatpush3.bf16.msra.mxu1 %v7620_v9  ;;  %1120 = vmatprep.subr.bf16.mxu0 %v12912_v0  ;;  %13237 = vst [vmem:[#allocation10_spill] sm:$0xff] %v8007_v45  ;;  %v868_v5 = vsel %vm834_vm1, %v799_v59, %v800_v60  ;;  %v8080_v7 = vunpack.c.l.bf16 %v8055_v62  ;;  %v596_v8 = vrot.slane %v7926_v17, 7  ;;  %v7652_v9 = vld [vmem:[%s12906_s2 + $0x28] sm:$0xff]  }
  0x1e   : > { %6992 = vmatprep.subr.bf16.mxu1 %v12915_v1  ;;  %13240 = vst [vmem:[#allocation13_spill] sm:$0xff] %v8043_v57  ;;  %13241 = vst [vmem:[#allocation14_spill] sm:$0xff] %v8066_v3  ;;  %v8091_v12 = vpack.c.bf16 %v868_v5, %v869_v6  ;;  %v12911_v14 = vrot.slane %v8066_v3, 7  ;;  %v8182_v6 = vld [vmem:[%s7905_s19 + $0x40] sm:$0xff]  }
  0x1f   : > { %13242 = vst [vmem:[#allocation15_spill] sm:$0xff] %v8069_v4  ;;  %13243 = vst [vmem:[#allocation16_spill] sm:$0xff] %v8080_v7 }
  0x20   : > { %1121 = vmatpush1.bf16.msra.mxu0 %v7621_v10  ;;  %v7635_v10 = vld [vmem:[%s12906_s2 + $0x130] sm:$0xff]   ;;  %13244 = vst [vmem:[#allocation17_spill] sm:$0xff] %v8091_v12 }
  0x21   : > { %6993 = vmatpush3.bf16.msra.mxu1 %v7622_v11  ;;  %1122 = vmatprep.subr.bf16.mxu0 %v12912_v0  ;;  %v597_v11 = vrot.slane %v7928_v18, 7 }
  0x22   : > { %6994 = vmatprep.subr.bf16.mxu1 %v12915_v1 }
  0x23   : > { %v679_v25 = vsel %vm638_vm2, %v596_v8, %v597_v11 }
  0x24   : > { %1123 = vmatpush1.bf16.msra.mxu0 %v7623_v15  ;;  %v801_v15 = vrot.slane %v8069_v4, 1 }
  0x25   : > { %6995 = vmatpush3.bf16.msra.mxu1 %v7624_v16  ;;  %1124 = vmatprep.subr.bf16.mxu0 %v12912_v0  ;;  %v802_v16 = vrot.slane %v8080_v7, 1 }
  0x26   : > { %6996 = vmatprep.subr.bf16.mxu1 %v12915_v1  ;;  %v867_v30 = vsel %vm834_vm1, %v800_v60, %v801_v15  ;;  %v600_v60 = vrot.slane %v7968_v32, 7 }
  0x27   : > { %v866_v29 = vsel %vm834_vm1, %v801_v15, %v802_v16 }
  0x28   : > { %1125 = vmatpush1.bf16.msra.mxu0 %v7625_v21  ;;  %v8098_v21 = vld [vmem:[%s7905_s19 + $0x30] sm:$0xff]   ;;  %v8138_v42 = vpack.c.bf16 %v866_v29, %v867_v30  ;;  %v602_v29 = vrot.slane %v8001_v43, 7  ;;  %v7669_v30 = vld [vmem:[%s12906_s2 + $0x58] sm:$0xff]  }
  0x29   : > { %6997 = vmatpush3.bf16.msra.mxu1 %v7626_v22  ;;  %1126 = vmatprep.subr.bf16.mxu0 %v12912_v0  ;;  %v7655_v22 = vld [vmem:[%s12906_s2 + $0x30] sm:$0xff]   ;;  %v8126_v35 = vunpack.c.l.bf16 %v8098_v21 }
  0x2a   : > { %6998 = vmatprep.subr.bf16.mxu1 %v12915_v1  ;;  %13247 = vst [vmem:[#allocation20_spill] sm:$0xff] %v8138_v42 }
  0x2b   : > { %13246 = vst [vmem:[#allocation19_spill] sm:$0xff] %v8126_v35  ;;  %v804_v47 = vrot.slane %v8126_v35, 1 }
  0x2c   : > { %1127 = vmatpush1.bf16.msra.mxu0 %v7627_v27  ;;  %v680_v27 = vsel %vm638_vm2, %v12911_v14, %v596_v8 }
  0x2d   : > { %6999 = vmatpush3.bf16.msra.mxu1 %v7628_v28  ;;  %1128 = vmatprep.subr.bf16.mxu0 %v12912_v0  ;;  %v8115_v28 = vunpack.c.h.bf16 %v8055_v62  ;;  %v8135_v41 = vpack.c.bf16 %v679_v25, %v680_v27 }
  0x2e   : > { %1658 = vmatprep.subr.bf16.mxu1 %v12912_v0 }
  0x2f   : > { %13245 = vst [vmem:[#allocation18_spill] sm:$0xff] %v8115_v28 }
  0x30   : > { %7001 = vmatmul.mubr.bf16.vlgmr.msra.gmra.mrb[0].mxu1 %v7971_v33  ;;  %1129 = vmatpush1.bf16.msra.mxu0 %v7629_v34  ;;  %v598_v34 = vrot.slane %v7931_v19, 7 }
  0x31   : > { %1130 = vmatprep.subr.bf16.mxu0 %v12912_v0  ;;  %7004 = vmatprep.mubr.msk.bf16.mxu1 %vm7817_vm0, %v12915_v1 }
  0x32   : > { %1659 = vmatpush1.bf16.msra.mxu1 %v7638_v38  ;;  %v599_v38 = vrot.slane %v7965_v31, 7  ;;  %v678_v53 = vsel %vm638_vm2, %v597_v11, %v598_v34  ;;  %v7666_v11 = vld [vmem:[%s12906_s2 + $0x50] sm:$0xff]  }
  0x33   : > { %1660 = vmatprep.subr.bf16.mxu1 %v12912_v0 }
  0x34   : > { %1131 = vmatpush1.bf16.msra.mxu0 %v7630_v39  ;;  %v7658_v39 = vld [vmem:[%s12906_s2 + $0x38] sm:$0xff]  }
  0x35   : > { %1132 = vmatprep.subr.bf16.mxu0 %v12912_v0 }
  0x36   : > { %1661 = vmatpush1.bf16.msra.mxu1 %v7641_v44  ;;  %v803_v44 = vrot.slane %v8115_v28, 1 }
  0x37   : > { %1662 = vmatprep.subr.bf16.mxu1 %v12912_v0 }
  0x38   : > { %7005 = vmatmul.mubr.bf16.gmra.mrb[4].mxu1 %v8007_v45  ;;  %1133 = vmatpush1.bf16.msra.mxu0 %v7631_v46  ;;  %v8142_v46 = vld [vmem:[%s7905_s19 + $0x38] sm:$0xff]   ;;  %v865_v59 = vsel %vm834_vm1, %v802_v16, %v803_v44 }
  0x39   : > { %1134 = vmatprep.subr.bf16.mxu0 %v12912_v0  ;;  %7008 = vmatprep.mubr.msk.bf16.mxu1 %vm7817_vm0, %v12915_v1  ;;  %v8160_v54 = vunpack.c.l.bf16 %v8142_v46  ;;  %v8197_v15 = vunpack.c.h.bf16 %v8142_v46 }
  0x3a   : > { %1663 = vmatpush1.bf16.msra.mxu1 %v7643_v50  ;;  %v8151_v50 = vunpack.c.h.bf16 %v8098_v21 }
  0x3b   : > { %1664 = vmatprep.subr.bf16.mxu1 %v12912_v0  ;;  %13249 = vst [vmem:[#allocation22_spill] sm:$0xff] %v8160_v54  ;;  %13251 = vst [vmem:[#allocation24_spill] sm:$0xff] %v8197_v15 }
  0x3c   : > { %1135 = vmatpush1.bf16.msra.mxu0 %v7632_v51  ;;  %13248 = vst [vmem:[#allocation21_spill] sm:$0xff] %v8151_v50  ;;  %v677_v51 = vsel %vm638_vm2, %v598_v34, %v599_v38  ;;  %v805_v5 = vrot.slane %v8151_v50, 1 }
  0x3d   : > { %1136 = vmatprep.subr.bf16.mxu0 %v12912_v0 }
  0x3e   : > { %1665 = vmatpush1.bf16.msra.mxu1 %v7647_v56  ;;  %v7644_v56 = vld [vmem:[%s12906_s2 + $0x88] sm:$0xff]   ;;  %v863_v27 = vsel %vm834_vm1, %v804_v47, %v805_v5 }
  0x3f   : > { %1666 = vmatprep.subr.bf16.mxu1 %v12912_v0 }
  0x40   : > { %7009 = vmatmul.mubr.bf16.gmra.mrb[8].mxu1 %v8043_v57  ;;  %1137 = vmatpush1.bf16.msra.mxu0 %v7633_v58  ;;  %v864_v58 = vsel %vm834_vm1, %v803_v44, %v804_v47 }
  0x41   : > { %1138 = vmatprep.subr.bf16.mxu0 %v12912_v0  ;;  %7012 = vmatprep.mubr.msk.bf16.mxu1 %vm7817_vm0, %v12915_v1  ;;  %v8185_v8 = vpack.c.bf16 %v864_v58, %v865_v59 }
  0x42   : > { %1667 = vmatpush1.bf16.msra.mxu1 %v7649_v63  ;;  %v601_v63 = vrot.slane %v7991_v40, 7 }
  0x43   : > { %1668 = vmatprep.subr.bf16.mxu1 %v12912_v0  ;;  %13250 = vst [vmem:[#allocation23_spill] sm:$0xff] %v8185_v8 }
  0x44   : > { %1139 = vmatpush1.bf16.msra.mxu0 %v7634_v2  ;;  %v8178_v2 = vpack.c.bf16 %v677_v51, %v678_v53  ;;  %v675_v16 = vsel %vm638_vm2, %v600_v60, %v601_v63  ;;  %v7671_v51 = vld [vmem:[%s12906_s2 + $0x60] sm:$0xff]   ;;  %v8243_v53 = vunpack.c.h.bf16 %v8182_v6  ;;  %v674_v58 = vsel %vm638_vm2, %v601_v63, %v602_v29  ;;  %v7672_v63 = vld [vmem:[%s12906_s2 + $0x68] sm:$0xff]  }
  0x45   : > { %1140 = vmatprep.subr.bf16.mxu0 %v12912_v0 }
  0x46   : > { %1669 = vmatpush1.bf16.msra.mxu1 %v7652_v9  ;;  %v806_v9 = vrot.slane %v8160_v54, 1  ;;  %13254 = vst [vmem:[#allocation27_spill] sm:$0xff] %v8243_v53 }
  0x47   : > { %1670 = vmatprep.subr.bf16.mxu1 %v12912_v0 }
  0x48   : > { %7013 = vmatmul.mubr.bf16.gmra.mrb[12].mxu1 %v8091_v12  ;;  %1141 = vmatpush1.bf16.msra.mxu0 %v7635_v10  ;;  %v7650_v10 = vld [vmem:[%s12906_s2 + $0x90] sm:$0xff]   ;;  %v862_v25 = vsel %vm834_vm1, %v805_v5, %v806_v9 }
  0x49   : > { %1142 = vmatprep.subr.bf16.mxu0 %v12912_v0  ;;  %7016 = vmatprep.mubr.msk.bf16.mxu1 %vm7817_vm0, %v12915_v1  ;;  %v8231_v44 = vpack.c.bf16 %v862_v25, %v863_v27  ;;  %v7674_v27 = vld [vmem:[%s12906_s2 + $0xb0] sm:$0xff]  }
  0x4a   : > { %1671 = vmatpush1.bf16.msra.mxu1 %v7655_v22  ;;  %v676_v22 = vsel %vm638_vm2, %v599_v38, %v600_v60  ;;  %v807_v38 = vrot.slane %v8197_v15, 1  ;;  %v7667_v60 = vld [vmem:[%s12906_s2 + $0xa8] sm:$0xff]  }
  0x4b   : > { %1672 = vmatprep.subr.bf16.mxu1 %v12912_v0  ;;  %v8223_v34 = vpack.c.bf16 %v675_v16, %v676_v22  ;;  %13253 = vst [vmem:[#allocation26_spill] sm:$0xff] %v8231_v44  ;;  %v809_v16 = vrot.slane %v8243_v53, 1  ;;  %v8274_v22 = vld [vmem:[%s7905_s19 + $0x50] sm:$0xff]  }
  0x4c   : > { %1143 = vmatpush1.bf16.msra.mxu0 %v7636_v24  ;;  %v8207_v24 = vunpack.c.l.bf16 %v8182_v6 }
  0x4d   : > { %7084 = vmatprep.subr.bf16.mxu0 %v12915_v1 }
  0x4e   : > { %1673 = vmatpush1.bf16.msra.mxu1 %v7658_v39  ;;  %13252 = vst [vmem:[#allocation25_spill] sm:$0xff] %v8207_v24  ;;  %v8228_v39 = vld [vmem:[%s7905_s19 + $0x48] sm:$0xff]   ;;  %v808_v47 = vrot.slane %v8207_v24, 1 }
  0x4f   : > { %1145 = vmatmul.mubr.bf16.vlgmr.msra.gmra.mrb[0].mxu0 %v8135_v41  ;;  %1674 = vmatprep.subr.bf16.mxu1 %v12912_v0  ;;  %v8253_v59 = vunpack.c.l.bf16 %v8228_v39 }
  0x50   : > { %7017 = vmatmul.mubr.bf16.gmra.mrb[16].mxu1 %v8138_v42  ;;  %7085 = vmatpush3.bf16.msra.mxu0 %v7639_v36  ;;  %v603_v36 = vrot.slane %v8027_v52, 7 }
  0x51   : > { %1152 = vmatprep.mubr.bf16.mxu0 %v7917_v13  ;;  %7020 = vmatprep.mubr.msk.bf16.mxu1 %vm7817_vm0, %v12915_v1  ;;  %v7664_v13 = vld [vmem:[%s12906_s2 + $0x48] sm:$0xff]   ;;  %13255 = vst [vmem:[#allocation28_spill] sm:$0xff] %v8253_v59  ;;  %v810_v25 = vrot.slane %v8253_v59, 1 }
  0x52   : > { %7086 = vmatprep.subr.bf16.mxu0 %v12915_v1  ;;  %1675 = vmatpush1.bf16.msra.mxu1 %v7660_v48  ;;  %v7661_v48 = vld [vmem:[%s12906_s2 + $0xa0] sm:$0xff]  }
  0x53   : > { %1676 = vmatprep.subr.bf16.mxu1 %v12912_v0 }
  0x54   : > { %7087 = vmatpush3.bf16.msra.mxu0 %v7644_v56  ;;  %v673_v56 = vsel %vm638_vm2, %v602_v29, %v603_v36 }
  0x55   : > { %7088 = vmatprep.subr.bf16.mxu0 %v12915_v1  ;;  %v8268_v5 = vpack.c.bf16 %v673_v56, %v674_v58  ;;  %v8305_v56 = vld [vmem:[%s7905_s19 + $0x58] sm:$0xff]   ;;  %v859_v58 = vsel %vm834_vm1, %v808_v47, %v809_v16 }
  0x56   : > { %1677 = vmatpush1.bf16.msra.mxu1 %v7664_v13  ;;  %v861_v13 = vsel %vm834_vm1, %v806_v9, %v807_v38  ;;  %v8335_v14 = vunpack.c.l.bf16 %v8305_v56  ;;  %v8364_v23 = vunpack.c.h.bf16 %v8305_v56 }
  0x57   : > { %1153 = vmatmul.mubr.bf16.gmra.mrb[4].mxu0 %v8178_v2  ;;  %1678 = vmatprep.subr.bf16.mxu1 %v12912_v0 }
  0x58   : > { %7021 = vmatmul.mubr.bf16.gmra.mrb[20].mxu1 %v8185_v8  ;;  %1160 = vmatprep.mubr.bf16.mxu0 %v7949_v26  ;;  %v7656_v26 = vld [vmem:[%s12906_s2 + $0x98] sm:$0xff]   ;;  %13261 = vst [vmem:[#allocation34_spill] sm:$0xff] %v8335_v14  ;;  %13264 = vst [vmem:[#allocation37_spill] sm:$0xff] %v8364_v23 }
  0x59   : > { %7024 = vmatprep.mubr.msk.bf16.mxu1 %vm7817_vm0, %v12915_v1  ;;  %7089 = vmatpush3.bf16.msra.mxu0 %v7650_v10  ;;  %v604_v10 = vrot.slane %v8037_v55, 7 }
  0x5a   : > { %7090 = vmatprep.subr.bf16.mxu0 %v12915_v1  ;;  %1679 = vmatpush1.bf16.msra.mxu1 %v7666_v11  ;;  %v605_v11 = vrot.slane %v8069_v4, 7 }
  0x5b   : > { %1680 = vmatprep.subr.bf16.mxu1 %v12912_v0  ;;  %v672_v29 = vsel %vm638_vm2, %v603_v36, %v604_v10 }
  0x5d   : > { %7091 = vmatpush3.bf16.msra.mxu0 %v7656_v26  ;;  %v7675_v26 = vld [vmem:[%s12906_s2 + $0x70] sm:$0xff]  }
  0x5e   : > { %7092 = vmatprep.subr.bf16.mxu0 %v12915_v1  ;;  %1681 = vmatpush1.bf16.msra.mxu1 %v7669_v30  ;;  %v8291_v30 = vld [vmem:[%s7905_s19 + $0xa0] sm:$0xf] }
  0x5f   : > { %1161 = vmatmul.mubr.bf16.gmra.mrb[8].mxu0 %v8223_v34  ;;  %1682 = vmatprep.subr.bf16.mxu1 %v12912_v0 }
  0x60   : > { %7025 = vmatmul.mubr.bf16.gmra.mrb[24].mxu1 %v8231_v44  ;;  %1168 = vmatprep.mubr.bf16.mxu0 %v7980_v37  ;;  %v860_v37 = vsel %vm834_vm1, %v807_v38, %v808_v47  ;;  %v671_v38 = vsel %vm638_vm2, %v604_v10, %v605_v11  ;;  %v607_v10 = vrot.slane %v8115_v28, 7 }
  0x61   : > { %7028 = vmatprep.mubr.msk.bf16.mxu1 %vm7817_vm0, %v12915_v1  ;;  %7093 = vmatpush3.bf16.msra.mxu0 %v7661_v48  ;;  %v8277_v9 = vpack.c.bf16 %v860_v37, %v861_v13  ;;  %v8299_v48 = vunpack.c.h.bf16 %v8228_v39  ;;  %v7676_v37 = vld [vmem:[%s12906_s2 + $0x78] sm:$0xff]   ;;  %v8322_v13 = vpack.c.bf16 %v671_v38, %v672_v29 }
  0x62   : > { %7094 = vmatprep.subr.bf16.mxu0 %v12915_v1  ;;  %1683 = vmatpush1.bf16.msra.mxu1 %v7671_v51  ;;  %v8302_v51 = vunpack.c.l.bf16 %v8274_v22 }
  0x63   : > { %1684 = vmatprep.subr.bf16.mxu1 %v12912_v0  ;;  %13256 = vst [vmem:[#allocation29_spill] sm:$0xff] %v8277_v9  ;;  %13257 = vst [vmem:[#allocation30_spill] sm:$0xff] %v8299_v48 }
  0x64   : > { %13258 = vst [vmem:[#allocation31_spill] sm:$0xff] %v8302_v51 }
  0x65   : > { %7095 = vmatpush3.bf16.msra.mxu0 %v7667_v60  ;;  %v7679_v60 = vld [vmem:[%s12906_s2 + $0xb8] sm:$0xff]  }
  0x66   : > { %1685 = vmatpush1.bf16.msra.mxu1 %v7672_v63  ;;  %7096 = vmatprep.subr.bf16.mxu0 %v12915_v1  ;;  %v606_v63 = vrot.slane %v8080_v7, 7 }
  0x67   : > { %1169 = vmatmul.mubr.bf16.gmra.mrb[12].mxu0 %v8268_v5  ;;  %1686 = vmatprep.subr.bf16.mxu1 %v12912_v0 }
  0x68   : > { %7029 = vmatmul.mubr.bf16.gmra.mrb[28].mxu1 %v8277_v9  ;;  %1176 = vmatprep.mubr.bf16.mxu0 %v8016_v49  ;;  %v858_v49 = vsel %vm834_vm1, %v809_v16, %v810_v25  ;;  %v811_v16 = vrot.slane %v8299_v48, 1  ;;  %v669_v29 = vsel %vm638_vm2, %v606_v63, %v607_v10  ;;  %v670_v38 = vsel %vm638_vm2, %v605_v11, %v606_v63 }
  0x69   : > { %7032 = vmatprep.mubr.msk.bf16.mxu1 %vm7817_vm0, %v12915_v1  ;;  %7097 = vmatpush3.bf16.msra.mxu0 %v7674_v27  ;;  %v8327_v47 = vpack.c.bf16 %v858_v49, %v859_v58  ;;  %v812_v27 = vrot.slane %v8302_v51, 1  ;;  %v608_v49 = vrot.slane %v8126_v35, 7  ;;  %v609_v58 = vrot.slane %v8151_v50, 7 }
  0x6a   : > { %1687 = vmatpush1.bf16.msra.mxu1 %v7675_v26  ;;  %7098 = vmatprep.subr.bf16.mxu0 %v12915_v1  ;;  %v8332_v26 = vunpack.c.h.bf16 %v8274_v22  ;;  %v814_v11 = vrot.slane %v8335_v14, 1  ;;  %v8359_v63 = vpack.c.bf16 %v669_v29, %v670_v38  ;;  %v610_v29 = vrot.slane %v8160_v54, 7 }
  0x6b   : > { %1688 = vmatprep.subr.bf16.mxu1 %v12912_v0  ;;  %13259 = vst [vmem:[#allocation32_spill] sm:$0xff] %v8327_v47  ;;  %v611_v38 = vrot.slane %v8197_v15, 7 }
  0x6c   : > { %13260 = vst [vmem:[#allocation33_spill] sm:$0xff] %v8332_v26  ;;  %v813_v36 = vrot.slane %v8332_v26, 1  ;;  %13262 = vst [vmem:[#allocation35_spill] sm:$0xff] %v8359_v63 }
  0x6d   : > { %7099 = vmatpush3.bf16.msra.mxu0 %v7679_v60  ;;  %v8349_v60 = vld [vmem:[%s7905_s19 + $0x60] sm:$0xff]  }
  0x6e   : > { %1689 = vmatpush1.bf16.msra.mxu1 %v7676_v37  ;;  %7184 = vmatprep.subr.bf16.mxu0 %v12915_v1  ;;  %v856_v37 = vsel %vm834_vm1, %v811_v16, %v812_v27  ;;  %v854_v33 = vsel %vm834_vm1, %v813_v36, %v814_v11  ;;  %v8394_v9 = vunpack.c.h.bf16 %v8349_v60 }
  0x6f   : > { %1177 = vmatmul.mubr.bf16.gmra.mrb[16].mxu0 %v8322_v13  ;;  %2465 = vmatprep.subr.bf16.mxu1 %v12912_v0 }
  0x70   : > { %7033 = vmatmul.mubr.bf16.gmra.mrb[32].mxu1 %v8327_v47  ;;  %1184 = vmatprep.mubr.bf16.mxu0 %v8055_v62  ;;  %v857_v62 = vsel %vm834_vm1, %v810_v25, %v811_v16  ;;  %v667_v25 = vsel %vm638_vm2, %v608_v49, %v609_v58  ;;  %v668_v16 = vsel %vm638_vm2, %v607_v10, %v608_v49 }
  0x71   : > { %7036 = vmatprep.mubr.msk.bf16.mxu1 %vm7817_vm0, %v12915_v1  ;;  %v8361_v0 = vpack.c.bf16 %v856_v37, %v857_v62  ;;  %v8367_v1 = vunpack.c.l.bf16 %v8349_v60  ;;  %v8379_v37 = vld [vmem:[%s7905_s19 + $0x68] sm:$0xff]   ;;  %v13266_v62 = vmov 0.0   ;;  %v8389_v49 = vpack.c.bf16 %v667_v25, %v668_v16  ;;  %13269 = vst [vmem:[#allocation41_spill] sm:$0xff] %v8394_v9  ;;  %v8409_v16 = vld [vmem:[%s7905_s19 + $0x70] sm:$0xff]  }
  0x72   : > { %v8397_v44 = vunpack.c.l.bf16 %v8379_v37  ;;  %v613_v25 = vrot.slane %v8243_v53, 7  ;;  %v8424_v42 = vunpack.c.h.bf16 %v8379_v37  ;;  %v8427_v12 = vunpack.c.l.bf16 %v8409_v16 }
  0x73   : > { %13263 = vst [vmem:[#allocation36_spill] sm:$0xff] %v8361_v0  ;;  %13265 = vst [vmem:[#allocation38_spill] sm:$0xff] %v8367_v1  ;;  %v816_v10 = vrot.slane %v8367_v1, 1  ;;  %v8454_v45 = vunpack.c.h.bf16 %v8409_v16 }
  0x74   : > { %13267 = vst [vmem:[#allocation39_spill] sm:$0xff] %v8389_v49  ;;  %13270 = vst [vmem:[#allocation42_spill] sm:$0xff] %v8397_v44  ;;  %v820_v57 = vrot.slane %v8427_v12, 1 }
  0x75   : > { %13273 = vst [vmem:[#allocation45_spill] sm:$0xff] %v8424_v42  ;;  %13274 = vst [vmem:[#allocation46_spill] sm:$0xff] %v8427_v12 }
  0x76   : > { %13277 = vst [vmem:[#allocation49_spill] sm:$0xff] %v8454_v45 }
  0x77   : > { %1185 = vmatmul.mubr.bf16.gmra.mrb[20].mxu0 %v8359_v63  ;;  %v8511_v63 = vld [vmem:[%s7905_s19 + $0x88] sm:$0xff]  }
  0x78   : > { %7037 = vmatmul.mubr.bf16.gmra.mrb[36].mxu1 %v8361_v0  ;;  %1192 = vmatprep.mubr.bf16.mxu0 %v8098_v21  ;;  %v855_v21 = vsel %vm834_vm1, %v812_v27, %v813_v36  ;;  %v815_v0 = vrot.slane %v8364_v23, 1  ;;  %v665_v36 = vsel %vm638_vm2, %v610_v29, %v611_v38  ;;  %v666_v27 = vsel %vm638_vm2, %v609_v58, %v610_v29 }
  0x79   : > { %7040 = vmatprep.mubr.msk.bf16.mxu1 %vm7817_vm0, %v13266_v62  ;;  %v8391_v47 = vpack.c.bf16 %v854_v33, %v855_v21  ;;  %v612_v33 = vrot.slane %v8207_v24, 7  ;;  %v818_v58 = vrot.slane %v8397_v44, 1  ;;  %v8419_v29 = vpack.c.bf16 %v665_v36, %v666_v27 }
  0x7a   : > { %v852_v21 = vsel %vm834_vm1, %v815_v0, %v816_v10  ;;  %v614_v36 = vrot.slane %v8253_v59, 7  ;;  %v615_v27 = vrot.slane %v8299_v48, 7 }
  0x7b   : > { %13268 = vst [vmem:[#allocation40_spill] sm:$0xff] %v8391_v47  ;;  %13271 = vst [vmem:[#allocation43_spill] sm:$0xff] %v8419_v29 }
  0x7f   : > { %1193 = vmatmul.mubr.bf16.gmra.mrb[24].mxu0 %v8389_v49 }
  0x80   : > { %7041 = vmatmul.mubr.bf16.gmra.mrb[40].mxu1 %v8391_v47  ;;  %1200 = vmatprep.mubr.bf16.mxu0 %v8142_v46  ;;  %v853_v46 = vsel %vm834_vm1, %v814_v11, %v815_v0  ;;  %v817_v47 = vrot.slane %v8394_v9, 1  ;;  %v663_v0 = vsel %vm638_vm2, %v612_v33, %v613_v25  ;;  %v664_v11 = vsel %vm638_vm2, %v611_v38, %v612_v33 }
  0x81   : > { %7044 = vmatprep.mubr.msk.bf16.mxu1 %vm7817_vm0, %v13266_v62  ;;  %v8421_v8 = vpack.c.bf16 %v852_v21, %v853_v46  ;;  %v8439_v21 = vld [vmem:[%s7905_s19 + $0x78] sm:$0xff]   ;;  %v8449_v38 = vpack.c.bf16 %v663_v0, %v664_v11  ;;  %v616_v0 = vrot.slane %v8302_v51, 7  ;;  %v617_v11 = vrot.slane %v8332_v26, 7 }
  0x82   : > { %v850_v46 = vsel %vm834_vm1, %v817_v47, %v818_v58 }
  0x83   : > { %13272 = vst [vmem:[#allocation44_spill] sm:$0xff] %v8421_v8  ;;  %13275 = vst [vmem:[#allocation47_spill] sm:$0xff] %v8449_v38 }
  0x87   : > { %1201 = vmatmul.mubr.bf16.gmra.mrb[28].mxu0 %v8419_v29  ;;  %v8457_v29 = vunpack.c.l.bf16 %v8439_v21 }
  0x88   : > { %7045 = vmatmul.mubr.bf16.gmra.mrb[44].mxu1 %v8421_v8  ;;  %1208 = vmatprep.mubr.bf16.mxu0 %v8182_v6  ;;  %v851_v6 = vsel %vm834_vm1, %v816_v10, %v817_v47  ;;  %v819_v8 = vrot.slane %v8424_v42, 1  ;;  %v661_v47 = vsel %vm638_vm2, %v614_v36, %v615_v27  ;;  %v662_v10 = vsel %vm638_vm2, %v613_v25, %v614_v36  ;;  %v8481_v36 = vld [vmem:[%s7905_s19 + $0x80] sm:$0xff]  }
  0x89   : > { %7048 = vmatprep.mubr.msk.bf16.mxu1 %vm7817_vm0, %v13266_v62  ;;  %v8451_v33 = vpack.c.bf16 %v850_v46, %v851_v6  ;;  %13278 = vst [vmem:[#allocation50_spill] sm:$0xff] %v8457_v29 }
  0x8a   : > { %v848_v46 = vsel %vm834_vm1, %v819_v8, %v820_v57  ;;  %v849_v6 = vsel %vm834_vm1, %v818_v58, %v819_v8  ;;  %v659_v8 = vsel %vm638_vm2, %v616_v0, %v617_v11  ;;  %v660_v58 = vsel %vm638_vm2, %v615_v27, %v616_v0 }
  0x8b   : > { %13276 = vst [vmem:[#allocation48_spill] sm:$0xff] %v8451_v33  ;;  %v8478_v25 = vpack.c.bf16 %v848_v46, %v849_v6  ;;  %v8497_v46 = vunpack.c.h.bf16 %v8439_v21  ;;  %v8502_v6 = vpack.c.bf16 %v659_v8, %v660_v58  ;;  %v618_v27 = vrot.slane %v8335_v14, 7  ;;  %v8541_v14 = vld [vmem:[%s7905_s19 + $0x90] sm:$0xff]  }
  0x8c   : > { %v619_v0 = vrot.slane %v8364_v23, 7 }
  0x8d   : > { %13280 = vst [vmem:[#allocation52_spill] sm:$0xff] %v8478_v25  ;;  %13281 = vst [vmem:[#allocation53_spill] sm:$0xff] %v8497_v46 }
  0x8e   : > { %13283 = vst [vmem:[#allocation55_spill] sm:$0xff] %v8502_v6 }
  0x8f   : > { %1209 = vmatmul.mubr.bf16.gmra.mrb[32].mxu0 %v8449_v38  ;;  %v8476_v38 = vpack.c.bf16 %v661_v47, %v662_v10 }
  0x90   : > { %7049 = vmatmul.mubr.bf16.gmra.mrb[48].mxu1 %v8451_v33  ;;  %1216 = vmatprep.mubr.bf16.mxu0 %v8228_v39  ;;  %v821_v39 = vrot.slane %v8454_v45, 1  ;;  %v822_v33 = vrot.slane %v8457_v29, 1 }
  0x91   : > { %7052 = vmatprep.mubr.msk.bf16.mxu1 %vm7817_vm0, %v13266_v62  ;;  %13279 = vst [vmem:[#allocation51_spill] sm:$0xff] %v8476_v38 }
  0x92   : > { %v846_v47 = vsel %vm834_vm1, %v821_v39, %v822_v33  ;;  %v847_v10 = vsel %vm834_vm1, %v820_v57, %v821_v39  ;;  %v657_v57 = vsel %vm638_vm2, %v618_v27, %v619_v0  ;;  %v658_v39 = vsel %vm638_vm2, %v617_v11, %v618_v27 }
  0x93   : > { %v620_v11 = vrot.slane %v8367_v1, 7  ;;  %v621_v27 = vrot.slane %v8394_v9, 7  ;;  %v8571_v1 = vld [vmem:[%s7905_s19 + $0x98] sm:$0xff]  }
  0x97   : > { %1217 = vmatmul.mubr.bf16.gmra.mrb[36].mxu0 %v8476_v38  ;;  %v823_v38 = vrot.slane %v8497_v46, 1 }
  0x98   : > { %7053 = vmatmul.mubr.bf16.gmra.mrb[52].mxu1 %v8478_v25  ;;  %1224 = vmatprep.mubr.bf16.mxu0 %v8274_v22  ;;  %v8500_v22 = vunpack.c.l.bf16 %v8481_v36  ;;  %v8504_v25 = vpack.c.bf16 %v846_v47, %v847_v10  ;;  %v8527_v47 = vunpack.c.h.bf16 %v8481_v36  ;;  %v8532_v10 = vpack.c.bf16 %v657_v57, %v658_v39 }
  0x99   : > { %7056 = vmatprep.mubr.msk.bf16.mxu1 %vm7817_vm0, %v13266_v62  ;;  %v845_v58 = vsel %vm834_vm1, %v822_v33, %v823_v38  ;;  %v656_v33 = vsel %vm638_vm2, %v619_v0, %v620_v11  ;;  %v622_v0 = vrot.slane %v8397_v44, 7 }
  0x9a   : > { %13282 = vst [vmem:[#allocation54_spill] sm:$0xff] %v8500_v22  ;;  %13284 = vst [vmem:[#allocation56_spill] sm:$0xff] %v8504_v25  ;;  %v824_v49 = vrot.slane %v8500_v22, 1 }
  0x9b   : > { %13285 = vst [vmem:[#allocation57_spill] sm:$0xff] %v8527_v47  ;;  %13287 = vst [vmem:[#allocation59_spill] sm:$0xff] %v8532_v10 }
  0x9c   : > { %v844_v8 = vsel %vm834_vm1, %v823_v38, %v824_v49  ;;  %v655_v38 = vsel %vm638_vm2, %v620_v11, %v621_v27  ;;  %v623_v11 = vrot.slane %v8424_v42, 7 }
  0x9f   : > { %1225 = vmatmul.mubr.bf16.gmra.mrb[40].mxu0 %v8502_v6  ;;  %v825_v6 = vrot.slane %v8527_v47, 1 }
  0xa0   : > { %7057 = vmatmul.mubr.bf16.gmra.mrb[56].mxu1 %v8504_v25  ;;  %1232 = vmatprep.mubr.bf16.mxu0 %v8305_v56  ;;  %v8530_v56 = vunpack.c.l.bf16 %v8511_v63  ;;  %v8534_v25 = vpack.c.bf16 %v844_v8, %v845_v58  ;;  %v8557_v8 = vunpack.c.h.bf16 %v8511_v63  ;;  %v8562_v58 = vpack.c.bf16 %v655_v38, %v656_v33 }
  0xa1   : > { %7060 = vmatprep.mubr.msk.bf16.mxu1 %vm7817_vm0, %v13266_v62  ;;  %v843_v39 = vsel %vm834_vm1, %v824_v49, %v825_v6  ;;  %v653_v49 = vsel %vm638_vm2, %v622_v0, %v623_v11 }
  0xa2   : > { %13286 = vst [vmem:[#allocation58_spill] sm:$0xff] %v8530_v56  ;;  %13288 = vst [vmem:[#allocation60_spill] sm:$0xff] %v8534_v25  ;;  %v826_v23 = vrot.slane %v8530_v56, 1 }
  0xa3   : > { %13289 = vst [vmem:[#allocation61_spill] sm:$0xff] %v8557_v8  ;;  %13291 = vst [vmem:[#allocation63_spill] sm:$0xff] %v8562_v58 }
  0xa4   : > { %v842_v57 = vsel %vm834_vm1, %v825_v6, %v826_v23  ;;  %v654_v6 = vsel %vm638_vm2, %v621_v27, %v622_v0  ;;  %v624_v27 = vrot.slane %v8427_v12, 7  ;;  %v625_v0 = vrot.slane %v8454_v45, 7 }
  0xa7   : > { %1233 = vmatmul.mubr.bf16.gmra.mrb[44].mxu0 %v8532_v10  ;;  %v827_v10 = vrot.slane %v8557_v8, 1 }
  0xa8   : > { %7061 = vmatmul.mubr.bf16.gmra.mrb[60].mxu1 %v8534_v25  ;;  %1240 = vmatprep.mubr.bf16.mxu0 %v8349_v60  ;;  %v8560_v60 = vunpack.c.l.bf16 %v8541_v14  ;;  %v8564_v25 = vpack.c.bf16 %v842_v57, %v843_v39  ;;  %v8587_v57 = vunpack.c.h.bf16 %v8541_v14  ;;  %v8592_v39 = vpack.c.bf16 %v653_v49, %v654_v6 }
  0xa9   : > { %7064 = vmatprep.mubr.msk.bf16.mxu1 %vm7817_vm0, %v13266_v62  ;;  %v841_v33 = vsel %vm834_vm1, %v826_v23, %v827_v10  ;;  %v651_v23 = vsel %vm638_vm2, %v624_v27, %v625_v0 }
  0xaa   : > { %13290 = vst [vmem:[#allocation62_spill] sm:$0xff] %v8560_v60  ;;  %13292 = vst [vmem:[#allocation64_spill] sm:$0xff] %v8564_v25  ;;  %v828_v9 = vrot.slane %v8560_v60, 1 }
  0xab   : > { %13293 = vst [vmem:[#allocation65_spill] sm:$0xff] %v8587_v57  ;;  %13295 = vst [vmem:[#allocation67_spill] sm:$0xff] %v8592_v39 }
  0xac   : > { %v840_v38 = vsel %vm834_vm1, %v827_v10, %v828_v9  ;;  %v652_v10 = vsel %vm638_vm2, %v623_v11, %v624_v27  ;;  %v626_v11 = vrot.slane %v8457_v29, 7  ;;  %v627_v27 = vrot.slane %v8497_v46, 7 }
  0xad   : > { %v552_v46 = vrot.slane %v8066_v3, 6 }
  0xaf   : > { %1241 = vmatmul.mubr.bf16.gmra.mrb[48].mxu0 %v8562_v58  ;;  %v829_v58 = vrot.slane %v8587_v57, 1 }
  0xb0   : > { %7065 = vmatmul.mubr.bf16.gmra.mrb[64].mxu1 %v8564_v25  ;;  %1248 = vmatprep.mubr.bf16.mxu0 %v8379_v37  ;;  %v8590_v37 = vunpack.c.l.bf16 %v8571_v1  ;;  %v8594_v25 = vpack.c.bf16 %v840_v38, %v841_v33  ;;  %v8614_v38 = vunpack.c.h.bf16 %v8571_v1  ;;  %v8619_v33 = vpack.c.bf16 %v651_v23, %v652_v10 }
  0xb1   : > { %7068 = vmatprep.mubr.msk.bf16.mxu1 %vm7817_vm0, %v13266_v62  ;;  %v839_v6 = vsel %vm834_vm1, %v828_v9, %v829_v58  ;;  %v649_v9 = vsel %vm638_vm2, %v626_v11, %v627_v27 }
  0xb2   : > { %13294 = vst [vmem:[#allocation66_spill] sm:$0xff] %v8590_v37  ;;  %13296 = vst [vmem:[#allocation68_spill] sm:$0xff] %v8594_v25  ;;  %v830_v42 = vrot.slane %v8590_v37, 1 }
  0xb3   : > { %13297 = vst [vmem:[#allocation69_spill] sm:$0xff] %v8614_v38  ;;  %13299 = vst [vmem:[#allocation71_spill] sm:$0xff] %v8619_v33 }
  0xb4   : > { %v838_v49 = vsel %vm834_vm1, %v829_v58, %v830_v42  ;;  %v650_v58 = vsel %vm638_vm2, %v625_v0, %v626_v11  ;;  %v12966_v0 = vrot.slane %v8614_v38, 6 }
  0xb7   : > { %1249 = vmatmul.mubr.bf16.gmra.mrb[52].mxu0 %v8592_v39  ;;  %v831_v39 = vrot.slane %v8614_v38, 1 }
  0xb8   : > { %7069 = vmatmul.mubr.bf16.gmra.mrb[68].mxu1 %v8594_v25  ;;  %1256 = vmatprep.mubr.bf16.mxu0 %v8409_v16  ;;  %v8617_v16 = vunpack.c.l.bf16 %v8291_v30  ;;  %v8621_v25 = vpack.c.bf16 %v838_v49, %v839_v6  ;;  %v8640_v49 = vpack.c.bf16 %v649_v9, %v650_v58  ;;  %v13303_v58 = vrot.slane %v7926_v17, 1 }
  0xb9   : > { %7072 = vmatprep.mubr.msk.bf16.mxu1 %vm7817_vm0, %v13266_v62  ;;  %v837_v10 = vsel %vm834_vm1, %v830_v42, %v831_v39 }
  0xba   : > { %13298 = vst [vmem:[#allocation70_spill] sm:$0xff] %v8617_v16  ;;  %13300 = vst [vmem:[#allocation72_spill] sm:$0xff] %v8621_v25  ;;  %v832_v45 = vrot.slane %v8617_v16, 1  ;;  %v551_v11 = vrot.slane %v8617_v16, 6 }
  0xbb   : > { %13301 = vst [vmem:[#allocation73_spill] sm:$0xff] %v8640_v49 }
  0xbc   : > { %v836_v23 = vsel %vm834_vm1, %v831_v39, %v832_v45 }
  0xbd   : > { %v8642_v6 = vpack.c.bf16 %v836_v23, %v837_v10  ;;  %v555_v10 = vsel %vm553_vm3, %v12966_v0, %v551_v11 }
  0xbf   : > { %1257 = vmatmul.mubr.bf16.gmra.mrb[56].mxu0 %v8619_v33  ;;  %13302 = vst [vmem:[#allocation74_spill] sm:$0xff] %v8642_v6  ;;  %v833_v33 = vrot.slane %v8066_v3, 1 }
  0xc0   : > { %7073 = vmatmul.mubr.bf16.gmra.mrb[72].mxu1 %v8621_v25  ;;  %1264 = vmatprep.mubr.bf16.mxu0 %v8439_v21  ;;  %v628_v21 = vrot.slane %v8500_v22, 7  ;;  %v629_v25 = vrot.slane %v8527_v47, 7  ;;  %v12969_v47 = vrot.slane %v8614_v38, 5  ;;  %v511_v22 = vrot.slane %v7926_v17, 6 }
  0xc1   : > { %7076 = vmatprep.mubr.msk.bf16.mxu1 %vm7817_vm0, %v13266_v62  ;;  %v835_v9 = vsel %vm834_vm1, %v832_v45, %v833_v33  ;;  %v876_v23 = vsel %vm834_vm1, %v833_v33, %v13303_v58  ;;  %v631_v45 = vrot.slane %v8557_v8, 7  ;;  %v464_v33 = vrot.slane %v8617_v16, 5 }
  0xc2   : > { %v647_v42 = vsel %vm638_vm2, %v628_v21, %v629_v25  ;;  %v648_v39 = vsel %vm638_vm2, %v627_v27, %v628_v21  ;;  %v8674_v21 = vpack.c.bf16 %v876_v23, %v835_v9  ;;  %v465_v58 = vrot.slane %v8066_v3, 5 }
  0xc3   : > { %v8672_v27 = vpack.c.bf16 %v647_v42, %v648_v39  ;;  %v470_v23 = vsel %vm468_vm4, %v12969_v47, %v464_v33  ;;  %v513_v47 = vrot.slane %v7931_v19, 6 }
  0xc4   : > { %13305 = vst [vmem:[#allocation76_spill] sm:$0xff] %v8674_v21  ;;  %v469_v9 = vsel %vm468_vm4, %v464_v33, %v465_v58  ;;  %v7682_v33 = vld [vmem:[%s12906_s2 + $0x180] sm:$0xff]  }
  0xc5   : > { %13304 = vst [vmem:[#allocation75_spill] sm:$0xff] %v8672_v27  ;;  %v681_v0 = vpack.c.bf16 %v469_v9, %v470_v23 }
  0xc7   : > { %1265 = vmatmul.mubr.bf16.gmra.mrb[60].mxu0 %v8640_v49 }
  0xc8   : > { %7077 = vmatmul.mubr.bf16.gmra.mrb[76].mxu1 %v8642_v6  ;;  %1272 = vmatprep.mubr.bf16.mxu0 %v8481_v36  ;;  %v554_v36 = vsel %vm553_vm3, %v551_v11, %v552_v46  ;;  %v630_v6 = vrot.slane %v8530_v56, 7  ;;  %v512_v11 = vrot.slane %v7928_v18, 6 }
  0xc9   : > { %7080 = vmatprep.mubr.msk.bf16.mxu1 %vm7817_vm0, %v13266_v62  ;;  %v682_v49 = vpack.c.bf16 %v554_v36, %v555_v10 }
  0xca   : > { %v645_v42 = vsel %vm638_vm2, %v630_v6, %v631_v45  ;;  %v646_v39 = vsel %vm638_vm2, %v629_v25, %v630_v6  ;;  %v594_v36 = vsel %vm553_vm3, %v511_v22, %v512_v11  ;;  %v632_v25 = vrot.slane %v8560_v60, 7 }
  0xcb   : > { %v8701_v10 = vpack.c.bf16 %v645_v42, %v646_v39  ;;  %v593_v23 = vsel %vm553_vm3, %v512_v11, %v513_v47  ;;  %v516_v11 = vrot.slane %v7991_v40, 6 }
  0xcc   : > { %v644_v42 = vsel %vm638_vm2, %v631_v45, %v632_v25 }
  0xcf   : > { %1273 = vmatmul.mubr.bf16.gmra.mrb[64].mxu0 %v8672_v27  ;;  %v425_v27 = vrot.slane %v7928_v18, 5  ;;  %v7685_v18 = vld [vmem:[%s12906_s2 + $0x190] sm:$0xff]  }
  0xd0   : > { %7081 = vmatmul.mubr.bf16.gmra.mrb[80].mxu1 %v8674_v21  ;;  %1280 = vmatprep.mubr.bf16.mxu0 %v8511_v63  ;;  %v595_v63 = vsel %vm553_vm3, %v552_v46, %v511_v22  ;;  %v424_v21 = vrot.slane %v7926_v17, 5  ;;  %v514_v46 = vrot.slane %v7965_v31, 6  ;;  %v445_v17 = vrot.slane %v8332_v26, 5 }
  0xd1   : > { %1690 = vmatprep.mubr.bf16.mxu1 %v682_v49  ;;  %v633_v49 = vrot.slane %v8587_v57, 7  ;;  %v685_v6 = vpack.c.bf16 %v594_v36, %v595_v63  ;;  %v13306_v36 = vmov 0  }
  0xd2   : > { %v509_v39 = vsel %vm468_vm4, %v424_v21, %v425_v27  ;;  %v510_v9 = vsel %vm468_vm4, %v465_v58, %v424_v21  ;;  %v635_v21 = vrot.slane %v8614_v38, 7 }
  0xd3   : > { %v643_v22 = vsel %vm638_vm2, %v632_v25, %v633_v49  ;;  %v684_v63 = vpack.c.bf16 %v509_v39, %v510_v9  ;;  %v634_v25 = vrot.slane %v8590_v37, 7 }
  0xd4   : > { %v8730_v45 = vpack.c.bf16 %v643_v22, %v644_v42 }
  0xd5   : > { %v641_v22 = vsel %vm638_vm2, %v634_v25, %v635_v21  ;;  %v642_v42 = vsel %vm638_vm2, %v633_v49, %v634_v25 }
  0xd6   : > { %v8760_v49 = vpack.c.bf16 %v641_v22, %v642_v42  ;;  %v13308_v22 = vrot.slane %v8066_v3, 7  ;;  %v444_v3 = vrot.slane %v8302_v51, 5 }
  0xd7   : > { %1281 = vmatmul.mubr.bf16.gmra.mrb[68].mxu0 %v8701_v10 }
  0xd8   : > { %1691 = vmatmul.mubr.bf16.vlgmr.msra.gmra.mrb[84].mxu1 %v681_v0  ;;  %1288 = vmatprep.mubr.bf16.mxu0 %v8541_v14  ;;  %v7684_v0 = vld [vmem:[%s12906_s2 + $0x188] sm:$0xff]   ;;  %v592_v14 = vsel %vm553_vm3, %v513_v47, %v514_v46  ;;  %v515_v47 = vrot.slane %v7968_v32, 6 }
  0xd9   : > { %1698 = vmatprep.mubr.bf16.mxu1 %v685_v6  ;;  %2466 = vmatpush1.bf16.msra.mxu1 %v7682_v33  ;;  %v688_v58 = vpack.c.bf16 %v592_v14, %v593_v23  ;;  %v426_v6 = vrot.slane %v7931_v19, 5  ;;  %v427_v33 = vrot.slane %v7965_v31, 5 }
  0xda   : > { %2467 = vmatprep.subr.bf16.mxu1 %v13306_v36  ;;  %v591_v14 = vsel %vm553_vm3, %v514_v46, %v515_v47  ;;  %v518_v46 = vrot.slane %v8027_v52, 6 }
  0xdb   : > { %v507_v39 = vsel %vm468_vm4, %v426_v6, %v427_v33  ;;  %v508_v9 = vsel %vm468_vm4, %v425_v27, %v426_v6  ;;  %v429_v27 = vrot.slane %v7991_v40, 5  ;;  %v517_v6 = vrot.slane %v8001_v43, 6 }
  0xdc   : > { %v687_v23 = vpack.c.bf16 %v507_v39, %v508_v9 }
  0xdd   : > { %2468 = vmatpush1.bf16.msra.mxu1 %v7684_v0  ;;  %v7687_v0 = vld [vmem:[%s12906_s2 + $0x198] sm:$0xff]  }
  0xde   : > { %2469 = vmatprep.subr.bf16.mxu1 %v13306_v36 }
  0xdf   : > { %1289 = vmatmul.mubr.bf16.gmra.mrb[72].mxu0 %v8730_v45 }
  0xe0   : > { %1699 = vmatmul.mubr.bf16.gmra.mrb[88].mxu1 %v684_v63  ;;  %1296 = vmatprep.mubr.bf16.mxu0 %v8571_v1  ;;  %v590_v1 = vsel %vm553_vm3, %v515_v47, %v516_v11  ;;  %v636_v63 = vrot.slane %v8617_v16, 7  ;;  %v13307_v47 = vcombine.low %v8291_v30, %v8052_v61  ;;  %v7690_v61 = vld [vmem:[%s12906_s2 + $0x1a8] sm:$0xff]   ;;  %v588_v30 = vsel %vm553_vm3, %v517_v6, %v518_v46 }
  0xe1   : > { %1706 = vmatprep.mubr.bf16.mxu1 %v688_v58  ;;  %2470 = vmatpush1.bf16.msra.mxu1 %v7685_v18  ;;  %v691_v25 = vpack.c.bf16 %v590_v1, %v591_v14  ;;  %v428_v18 = vrot.slane %v7968_v32, 5  ;;  %v7688_v58 = vld [vmem:[%s12906_s2 + $0x1a0] sm:$0xff]   ;;  %v589_v1 = vsel %vm553_vm3, %v516_v11, %v517_v6 }
  0xe2   : > { %2471 = vmatprep.subr.bf16.mxu1 %v13306_v36  ;;  %v639_v42 = vsel %vm638_vm2, %v636_v63, %v13308_v22  ;;  %v640_v39 = vsel %vm638_vm2, %v635_v21, %v636_v63  ;;  %v430_v63 = vrot.slane %v8001_v43, 5 }
  0xe3   : > { %v505_v9 = vsel %vm468_vm4, %v428_v18, %v429_v27  ;;  %v683_v21 = vpack.c.bf16 %v639_v42, %v640_v39 }
  0xe4   : > { %v504_v6 = vsel %vm468_vm4, %v429_v27, %v430_v63  ;;  %v432_v27 = vrot.slane %v8037_v55, 5 }
  0xe5   : > { %2472 = vmatpush1.bf16.msra.mxu1 %v7687_v0  ;;  %v506_v0 = vsel %vm468_vm4, %v427_v33, %v428_v18  ;;  %v431_v33 = vrot.slane %v8027_v52, 5  ;;  %v519_v18 = vrot.slane %v8037_v55, 6 }
  0xe6   : > { %2473 = vmatprep.subr.bf16.mxu1 %v13306_v36  ;;  %v690_v14 = vpack.c.bf16 %v505_v9, %v506_v0  ;;  %v7683_v9 = vld [vmem:[%s12906_s2 + $0x200] sm:$0xff]  }
  0xe7   : > { %1297 = vmatmul.mubr.bf16.gmra.mrb[76].mxu0 %v8760_v49  ;;  %v503_v11 = vsel %vm468_vm4, %v430_v63, %v431_v33  ;;  %v587_v42 = vsel %vm553_vm3, %v518_v46, %v519_v18  ;;  %v7694_v46 = vld [vmem:[%s12906_s2 + $0x1c0] sm:$0xff]   ;;  %v502_v63 = vsel %vm468_vm4, %v431_v33, %v432_v27  ;;  %v434_v33 = vrot.slane %v8080_v7, 5 }
  0xe8   : > { %1707 = vmatmul.mubr.bf16.gmra.mrb[92].mxu1 %v687_v23  ;;  %1304 = vmatprep.mubr.bf16.mxu0 %v13307_v47  ;;  %v694_v23 = vpack.c.bf16 %v588_v30, %v589_v1  ;;  %v7693_v47 = vld [vmem:[%s12906_s2 + $0x1b8] sm:$0xff]   ;;  %v693_v39 = vpack.c.bf16 %v503_v11, %v504_v6  ;;  %v521_v30 = vrot.slane %v8080_v7, 6  ;;  %v522_v1 = vrot.slane %v8115_v28, 6 }
  0xe9   : > { %1714 = vmatprep.mubr.bf16.mxu1 %v691_v25  ;;  %2474 = vmatpush1.bf16.msra.mxu1 %v7688_v58  ;;  %v7691_v25 = vld [vmem:[%s12906_s2 + $0x1b0] sm:$0xff]   ;;  %v520_v58 = vrot.slane %v8069_v4, 6 }
  0xea   : > { %2475 = vmatprep.subr.bf16.mxu1 %v13306_v36 }
  0xeb   : > { %v586_v22 = vsel %vm553_vm3, %v519_v18, %v520_v58  ;;  %v7696_v18 = vld [vmem:[%s12906_s2 + $0x1c8] sm:$0xff]  }
  0xec   : > { %v697_v0 = vpack.c.bf16 %v586_v22, %v587_v42  ;;  %v523_v22 = vrot.slane %v8126_v35, 6  ;;  %v524_v42 = vrot.slane %v8151_v50, 6 }
  0xed   : > { %2476 = vmatpush1.bf16.msra.mxu1 %v7690_v61  ;;  %v433_v61 = vrot.slane %v8069_v4, 5 }
  0xee   : > { %2477 = vmatprep.subr.bf16.mxu1 %v13306_v36 }
  0xef   : > { %1305 = vmatmul.mubr.bf16.gmra.mrb[80].mxu0 %v683_v21 }
  0xf0   : > { %1715 = vmatmul.mubr.bf16.gmra.mrb[96].mxu1 %v690_v14  ;;  %7100 = vmatprep.mubr.msk.bf16.mxu0 %vm7817_vm0, %v13266_v62  ;;  %v7686_v14 = vld [vmem:[%s12906_s2 + $0x208] sm:$0xff]  }
  0xf1   : > { %1722 = vmatprep.mubr.bf16.mxu1 %v694_v23  ;;  %2478 = vmatpush1.bf16.msra.mxu1 %v7691_v25  ;;  %v501_v23 = vsel %vm468_vm4, %v432_v27, %v433_v61  ;;  %v584_v25 = vsel %vm553_vm3, %v521_v30, %v522_v1  ;;  %v7692_v27 = vld [vmem:[%s12906_s2 + $0x218] sm:$0xff]  }
  0xf2   : > { %2479 = vmatprep.subr.bf16.mxu1 %v13306_v36  ;;  %v696_v11 = vpack.c.bf16 %v501_v23, %v502_v63 }
  0xf5   : > { %2480 = vmatpush1.bf16.msra.mxu1 %v7693_v47  ;;  %v435_v47 = vrot.slane %v8115_v28, 5 }
  0xf6   : > { %2481 = vmatprep.subr.bf16.mxu1 %v13306_v36 }
  0xf7   : > { %7101 = vmatmul.mubr.bf16.vlgmr.msra.gmra.mrb[84].mxu0 %v683_v21  ;;  %v585_v21 = vsel %vm553_vm3, %v520_v58, %v521_v30  ;;  %v7689_v58 = vld [vmem:[%s12906_s2 + $0x210] sm:$0xff]   ;;  %v583_v30 = vsel %vm553_vm3, %v522_v1, %v523_v22  ;;  %v7695_v1 = vld [vmem:[%s12906_s2 + $0x220] sm:$0xff]  }
  0xf8   : > { %1723 = vmatmul.mubr.bf16.gmra.mrb[100].mxu1 %v693_v39  ;;  %7185 = vmatpush3.bf16.msra.mxu0 %v7683_v9  ;;  %v700_v6 = vpack.c.bf16 %v584_v25, %v585_v21  ;;  %v7697_v39 = vld [vmem:[%s12906_s2 + $0x1d0] sm:$0xff]   ;;  %v499_v9 = vsel %vm468_vm4, %v434_v33, %v435_v47  ;;  %v436_v25 = vrot.slane %v8126_v35, 5  ;;  %v437_v21 = vrot.slane %v8151_v50, 5 }
  0xf9   : > { %1730 = vmatprep.mubr.bf16.mxu1 %v697_v0  ;;  %7104 = vmatprep.mubr.msk.bf16.mxu0 %vm7817_vm0, %v13266_v62  ;;  %v500_v0 = vsel %vm468_vm4, %v433_v61, %v434_v33 }
  0xfa   : > { %7186 = vmatprep.subr.bf16.mxu0 %v13266_v62  ;;  %2482 = vmatpush1.bf16.msra.mxu1 %v7694_v46  ;;  %v7699_v46 = vld [vmem:[%s12906_s2 + $0x1d8] sm:$0xff]   ;;  %v699_v61 = vpack.c.bf16 %v499_v9, %v500_v0  ;;  %v7698_v9 = vld [vmem:[%s12906_s2 + $0x228] sm:$0xff]  }
  0xfb   : > { %2483 = vmatprep.subr.bf16.mxu1 %v13306_v36 }
  0xfc   : > { %7187 = vmatpush3.bf16.msra.mxu0 %v7686_v14 }
  0xfd   : > { %7188 = vmatprep.subr.bf16.mxu0 %v13266_v62 }
  0xfe   : > { %2484 = vmatpush1.bf16.msra.mxu1 %v7696_v18 }
  0xff   : > { %7105 = vmatmul.mubr.bf16.gmra.mrb[88].mxu0 %v8135_v41  ;;  %2485 = vmatprep.subr.bf16.mxu1 %v13306_v36  ;;  %v582_v41 = vsel %vm553_vm3, %v523_v22, %v524_v42  ;;  %v497_v22 = vsel %vm468_vm4, %v436_v25, %v437_v21 }
 0x100   : > { %1731 = vmatmul.mubr.bf16.gmra.mrb[104].mxu1 %v696_v11  ;;  %7108 = vmatprep.mubr.msk.bf16.mxu0 %vm7817_vm0, %v13266_v62  ;;  %v703_v63 = vpack.c.bf16 %v582_v41, %v583_v30  ;;  %v525_v11 = vrot.slane %v8160_v54, 6 }
 0x101   : > { %1738 = vmatprep.mubr.bf16.mxu1 %v700_v6  ;;  %7189 = vmatpush3.bf16.msra.mxu0 %v7689_v58  ;;  %v526_v6 = vrot.slane %v8197_v15, 6  ;;  %v7700_v58 = vld [vmem:[%s12906_s2 + $0x1e0] sm:$0xff]  }
 0x102   : > { %7190 = vmatprep.subr.bf16.mxu0 %v13266_v62  ;;  %2486 = vmatpush1.bf16.msra.mxu1 %v7697_v39  ;;  %v498_v39 = vsel %vm468_vm4, %v435_v47, %v436_v25  ;;  %v581_v0 = vsel %vm553_vm3, %v524_v42, %v525_v11  ;;  %v7701_v42 = vld [vmem:[%s12906_s2 + $0x230] sm:$0xff]   ;;  %v527_v25 = vrot.slane %v8207_v24, 6 }
 0x103   : > { %v8874_v14 = vpop.f32.mrb[0].mxu1  ;;  %2487 = vmatprep.subr.bf16.mxu1 %v13306_v36  ;;  %v702_v47 = vpack.c.bf16 %v497_v22, %v498_v39  ;;  %v7704_v39 = vld [vmem:[%s12906_s2 + $0x238] sm:$0xff]  }
 0x104   : > { %v7002_v23 = vpop.f32.mrb[1].mxu1 }
 0x105   : > { %v8879_v18 = vpop.f32.mrb[2].mxu1  ;;  %7191 = vmatpush3.bf16.msra.mxu0 %v7692_v27  ;;  %v7702_v27 = vld [vmem:[%s12906_s2 + $0x1e8] sm:$0xff]   ;;  %v439_v23 = vrot.slane %v8197_v15, 5 }
 0x106   : > { %v7003_v33 = vpop.f32.mrb[3].mxu1  ;;  %7192 = vmatprep.subr.bf16.mxu0 %v13266_v62  ;;  %2488 = vmatpush1.bf16.msra.mxu1 %v7699_v46 }
 0x107   : > { %7109 = vmatmul.mubr.bf16.gmra.mrb[92].mxu0 %v8178_v2  ;;  %2489 = vmatprep.subr.bf16.mxu1 %v13306_v36  ;;  %v580_v2 = vsel %vm553_vm3, %v525_v11, %v526_v6  ;;  %v7703_v33 = vld [vmem:[%s12906_s2 + $0x1f0] sm:$0xff]  }
 0x108   : > { %1739 = vmatmul.mubr.bf16.gmra.mrb[108].mxu1 %v699_v61  ;;  %7112 = vmatprep.mubr.msk.bf16.mxu0 %vm7817_vm0, %v13266_v62  ;;  %v706_v46 = vpack.c.bf16 %v580_v2, %v581_v0  ;;  %v438_v61 = vrot.slane %v8160_v54, 5 }
 0x109   : > { %1746 = vmatprep.mubr.bf16.mxu1 %v703_v63  ;;  %7193 = vmatpush3.bf16.msra.mxu0 %v7695_v1  ;;  %v528_v1 = vrot.slane %v8243_v53, 6 }
 0x10a   : > { %7194 = vmatprep.subr.bf16.mxu0 %v13266_v62  ;;  %2490 = vmatpush1.bf16.msra.mxu1 %v7700_v58  ;;  %v495_v58 = vsel %vm468_vm4, %v438_v61, %v439_v23  ;;  %v496_v22 = vsel %vm468_vm4, %v437_v21, %v438_v61  ;;  %v529_v61 = vrot.slane %v8253_v59, 6 }
 0x10b   : > { %v8909_v41 = vpop.f32.mrb[4].mxu1  ;;  %2491 = vmatprep.subr.bf16.mxu1 %v13306_v36  ;;  %v705_v0 = vpack.c.bf16 %v495_v58, %v496_v22 }
 0x10c   : > { %v7006_v30 = vpop.f32.mrb[5].mxu1 }
 0x10d   : > { %v8914_v63 = vpop.f32.mrb[6].mxu1  ;;  %7195 = vmatpush3.bf16.msra.mxu0 %v7698_v9  ;;  %v579_v9 = vsel %vm553_vm3, %v526_v6, %v527_v25  ;;  %v441_v30 = vrot.slane %v8243_v53, 5  ;;  %v7705_v6 = vld [vmem:[%s12906_s2 + $0x1f8] sm:$0xff]  }
 0x10e   : > { %v7007_v11 = vpop.f32.mrb[7].mxu1  ;;  %7196 = vmatprep.subr.bf16.mxu0 %v13266_v62  ;;  %2492 = vmatpush1.bf16.msra.mxu1 %v7702_v27 }
 0x10f   : > { %7113 = vmatmul.mubr.bf16.gmra.mrb[96].mxu0 %v8223_v34  ;;  %2493 = vmatprep.subr.bf16.mxu1 %v13306_v36  ;;  %v578_v34 = vsel %vm553_vm3, %v527_v25, %v528_v1 }
 0x110   : > { %1747 = vmatmul.mubr.bf16.gmra.mrb[112].mxu1 %v702_v47  ;;  %7116 = vmatprep.mubr.msk.bf16.mxu0 %vm7817_vm0, %v13266_v62  ;;  %v709_v27 = vpack.c.bf16 %v578_v34, %v579_v9  ;;  %v440_v47 = vrot.slane %v8207_v24, 5 }
 0x111   : > { %1754 = vmatprep.mubr.bf16.mxu1 %v706_v46  ;;  %7197 = vmatpush3.bf16.msra.mxu0 %v7701_v42  ;;  %v530_v42 = vrot.slane %v8299_v48, 6 }
 0x112   : > { %7198 = vmatprep.subr.bf16.mxu0 %v13266_v62  ;;  %2494 = vmatpush1.bf16.msra.mxu1 %v7703_v33  ;;  %v493_v11 = vsel %vm468_vm4, %v440_v47, %v441_v30  ;;  %v494_v33 = vsel %vm468_vm4, %v439_v23, %v440_v47  ;;  %v531_v23 = vrot.slane %v8302_v51, 6  ;;  %v532_v47 = vrot.slane %v8332_v26, 6 }
 0x113   : > { %v8941_v2 = vpop.f32.mrb[8].mxu1  ;;  %2495 = vmatprep.subr.bf16.mxu1 %v13306_v36  ;;  %v576_v58 = vsel %vm553_vm3, %v529_v61, %v530_v42 }
 0x114   : > { %v7010_v21 = vpop.f32.mrb[9].mxu1 }
 0x115   : > { %v8946_v46 = vpop.f32.mrb[10].mxu1  ;;  %7199 = vmatpush3.bf16.msra.mxu0 %v7704_v39  ;;  %v708_v39 = vpack.c.bf16 %v493_v11, %v494_v33  ;;  %v443_v21 = vrot.slane %v8299_v48, 5  ;;  %v574_v11 = vsel %vm553_vm3, %v531_v23, %v532_v47  ;;  %v575_v33 = vsel %vm553_vm3, %v530_v42, %v531_v23  ;;  %v13310_v42 = vld [vmem:[#allocation34_spill] sm:$0xff]  ;;  %v13311_v23 = vld [vmem:[#allocation37_spill] sm:$0xff]  ;;  %v13312_v48 = vld [vmem:[#allocation35_spill] sm:$0xff] }
 0x116   : > { %v7011_v25 = vpop.f32.mrb[11].mxu1  ;;  %7284 = vmatprep.subr.bf16.mxu0 %v13266_v62  ;;  %2496 = vmatpush1.bf16.msra.mxu1 %v7705_v6  ;;  %v446_v26 = vrot.slane %v13310_v42, 5  ;;  %v447_v51 = vrot.slane %v13311_v23, 5 }
 0x117   : > { %7117 = vmatmul.mubr.bf16.gmra.mrb[100].mxu0 %v8268_v5  ;;  %3934 = vmatprep.subr.bf16.mxu1 %v13306_v36  ;;  %v577_v5 = vsel %vm553_vm3, %v528_v1, %v529_v61 }
 0x118   : > { %1755 = vmatmul.mubr.bf16.gmra.mrb[116].mxu1 %v705_v0  ;;  %7120 = vmatprep.mubr.msk.bf16.mxu0 %vm7817_vm0, %v13266_v62  ;;  %v712_v9 = vpack.c.bf16 %v576_v58, %v577_v5  ;;  %v442_v0 = vrot.slane %v8253_v59, 5 }
 0x119   : > { %1762 = vmatprep.mubr.bf16.mxu1 %v709_v27 }
 0x11a   : > { %v491_v1 = vsel %vm468_vm4, %v442_v0, %v443_v21  ;;  %v492_v61 = vsel %vm468_vm4, %v441_v30, %v442_v0  ;;  %v715_v0 = vpack.c.bf16 %v574_v11, %v575_v33 }
 0x11b   : > { %v8966_v22 = vpop.f32.mrb[12].mxu1 }
 0x11c   : > { %v7014_v34 = vpop.f32.mrb[13].mxu1 }
 0x11d   : > { %v8970_v27 = vpop.f32.mrb[14].mxu1  ;;  %v711_v34 = vpack.c.bf16 %v491_v1, %v492_v61  ;;  %v490_v1 = vsel %vm468_vm4, %v443_v21, %v444_v3 }
 0x11e   : > { %v7015_v6 = vpop.f32.mrb[15].mxu1 }
 0x11f   : > { %7121 = vmatmul.mubr.bf16.gmra.mrb[104].mxu0 %v8322_v13 }
 0x120   : > { %1763 = vmatmul.mubr.bf16.gmra.mrb[120].mxu1 %v708_v39  ;;  %7124 = vmatprep.mubr.msk.bf16.mxu0 %vm7817_vm0, %v13266_v62 }
 0x121   : > { %1770 = vmatprep.mubr.bf16.mxu1 %v712_v9 }
 0x122   : > { %v1146_v25 = vpop.f32.mrb[0].mxu0 }
 0x123   : > { %v8986_v13 = vadd.f32 %v8874_v14, %v1146_v25  ;;  %v1148_v58 = vpop.f32.mrb[1].mxu0  ;;  %v8988_v5 = vpop.f32.mrb[16].mxu1  ;;  %v533_v14 = vrot.slane %v13310_v42, 6  ;;  %v534_v25 = vrot.slane %v13311_v23, 6 }
 0x124   : > { %v1149_v39 = vpop.f32.mrb[2].mxu0  ;;  %v7018_v9 = vpop.f32.mrb[17].mxu1 }
 0x125   : > { %v8991_v6 = vadd.f32 %v8879_v18, %v1149_v39  ;;  %v1151_v30 = vpop.f32.mrb[3].mxu0  ;;  %v8995_v16 = vpop.f32.mrb[18].mxu1  ;;  %v489_v18 = vsel %vm468_vm4, %v444_v3, %v445_v17  ;;  %v572_v11 = vsel %vm553_vm3, %v533_v14, %v534_v25  ;;  %v573_v33 = vsel %vm553_vm3, %v532_v47, %v533_v14  ;;  %v13315_v47 = vld [vmem:[#allocation38_spill] sm:$0xff]  ;;  %v13316_v14 = vld [vmem:[#allocation41_spill] sm:$0xff] }
 0x126   : > { %v7019_v58 = vpop.f32.mrb[19].mxu1  ;;  %v714_v30 = vpack.c.bf16 %v489_v18, %v490_v1  ;;  %v718_v21 = vpack.c.bf16 %v572_v11, %v573_v33  ;;  %v488_v18 = vsel %vm468_vm4, %v445_v17, %v446_v26  ;;  %v448_v23 = vrot.slane %v13315_v47, 5 }
 0x127   : > { %13309 = vst [vmem:[#allocation77_spill] sm:$0xff] %v8991_v6  ;;  %7125 = vmatmul.mubr.bf16.gmra.mrb[108].mxu0 %v13312_v48  ;;  %v449_v42 = vrot.slane %v13316_v14, 5 }
 0x128   : > { %1771 = vmatmul.mubr.bf16.gmra.mrb[124].mxu1 %v711_v34  ;;  %7128 = vmatprep.mubr.msk.bf16.mxu0 %vm7817_vm0, %v13266_v62 }
 0x129   : > { %1778 = vmatprep.mubr.bf16.mxu1 %v715_v0 }
 0x12a   : > { %v1154_v61 = vpop.f32.mrb[4].mxu0 }
 0x12b   : > { %v9011_v48 = vadd.f32 %v8909_v41, %v1154_v61  ;;  %v1156_v39 = vpop.f32.mrb[5].mxu0  ;;  %v9013_v34 = vpop.f32.mrb[20].mxu1  ;;  %v535_v41 = vrot.slane %v13315_v47, 6  ;;  %v536_v61 = vrot.slane %v13316_v14, 6  ;;  %v450_v14 = vrot.slane %v8397_v44, 5 }
 0x12c   : > { %v1157_v9 = vpop.f32.mrb[6].mxu0  ;;  %v7022_v0 = vpop.f32.mrb[21].mxu1 }
 0x12d   : > { %13313 = vst [vmem:[#allocation35_spill] sm:$0xff] %v9011_v48  ;;  %v9016_v58 = vadd.f32 %v8914_v63, %v1157_v9  ;;  %v1159_v3 = vpop.f32.mrb[7].mxu0  ;;  %v9020_v6 = vpop.f32.mrb[22].mxu1  ;;  %v13317_v48 = vld [vmem:[#allocation39_spill] sm:$0xff]  ;;  %v487_v63 = vsel %vm468_vm4, %v446_v26, %v447_v51  ;;  %v570_v11 = vsel %vm553_vm3, %v535_v41, %v536_v61  ;;  %v571_v33 = vsel %vm553_vm3, %v534_v25, %v535_v41  ;;  %v13319_v25 = vld [vmem:[#allocation45_spill] sm:$0xff] }
 0x12e   : > { %v7023_v39 = vpop.f32.mrb[23].mxu1  ;;  %v717_v3 = vpack.c.bf16 %v487_v63, %v488_v18  ;;  %v721_v26 = vpack.c.bf16 %v570_v11, %v571_v33  ;;  %v538_v41 = vrot.slane %v13319_v25, 6  ;;  %v486_v63 = vsel %vm468_vm4, %v447_v51, %v448_v23 }
 0x12f   : > { %13314 = vst [vmem:[#allocation78_spill] sm:$0xff] %v9016_v58  ;;  %7129 = vmatmul.mubr.bf16.gmra.mrb[112].mxu0 %v13317_v48  ;;  %v451_v47 = vrot.slane %v13319_v25, 5  ;;  %v452_v25 = vrot.slane %v8427_v12, 5 }
 0x130   : > { %1779 = vmatmul.mubr.bf16.gmra.mrb[128].mxu1 %v714_v30  ;;  %7132 = vmatprep.mubr.msk.bf16.mxu0 %vm7817_vm0, %v13266_v62 }
 0x131   : > { %1786 = vmatprep.mubr.bf16.mxu1 %v718_v21 }
 0x132   : > { %v1162_v1 = vpop.f32.mrb[8].mxu0 }
 0x133   : > { %v9036_v48 = vadd.f32 %v8941_v2, %v1162_v1  ;;  %v1164_v9 = vpop.f32.mrb[9].mxu0  ;;  %v9038_v30 = vpop.f32.mrb[24].mxu1  ;;  %v537_v2 = vrot.slane %v8397_v44, 6 }
 0x134   : > { %v1165_v0 = vpop.f32.mrb[10].mxu0  ;;  %v7026_v21 = vpop.f32.mrb[25].mxu1  ;;  %v13320_v9 = vld [vmem:[#allocation43_spill] sm:$0xff] }
 0x135   : > { %v9041_v39 = vadd.f32 %v8946_v46, %v1165_v0  ;;  %v1167_v17 = vpop.f32.mrb[11].mxu0  ;;  %v9045_v58 = vpop.f32.mrb[26].mxu1  ;;  %v485_v46 = vsel %vm468_vm4, %v448_v23, %v449_v42  ;;  %v568_v11 = vsel %vm553_vm3, %v537_v2, %v538_v41  ;;  %v569_v33 = vsel %vm553_vm3, %v536_v61, %v537_v2  ;;  %v13322_v61 = vld [vmem:[#allocation49_spill] sm:$0xff] }
 0x136   : > { %v7027_v1 = vpop.f32.mrb[27].mxu1  ;;  %v724_v23 = vpack.c.bf16 %v568_v11, %v569_v33  ;;  %v540_v2 = vrot.slane %v13322_v61, 6  ;;  %v453_v44 = vrot.slane %v13322_v61, 5  ;;  %v454_v61 = vrot.slane %v8457_v29, 5 }
 0x137   : > { %13318 = vst [vmem:[#allocation39_spill] sm:$0xff] %v9041_v39  ;;  %7133 = vmatmul.mubr.bf16.gmra.mrb[116].mxu0 %v13320_v9 }
 0x138   : > { %1787 = vmatmul.mubr.bf16.gmra.mrb[132].mxu1 %v717_v3  ;;  %7136 = vmatprep.mubr.msk.bf16.mxu0 %vm7817_vm0, %v13266_v62 }
 0x139   : > { %1794 = vmatprep.mubr.bf16.mxu1 %v721_v26  ;;  %v720_v26 = vpack.c.bf16 %v485_v46, %v486_v63  ;;  %v484_v46 = vsel %vm468_vm4, %v449_v42, %v450_v14 }
 0x13a   : > { %v1170_v18 = vpop.f32.mrb[12].mxu0 }
 0x13b   : > { %v9061_v0 = vadd.f32 %v8966_v22, %v1170_v18  ;;  %v1172_v3 = vpop.f32.mrb[13].mxu0  ;;  %v9063_v21 = vpop.f32.mrb[28].mxu1  ;;  %v539_v22 = vrot.slane %v8427_v12, 6 }
 0x13c   : > { %v1173_v17 = vpop.f32.mrb[14].mxu0  ;;  %v7030_v1 = vpop.f32.mrb[29].mxu1  ;;  %v13323_v3 = vld [vmem:[#allocation47_spill] sm:$0xff] }
 0x13d   : > { %v9066_v9 = vadd.f32 %v8970_v27, %v1173_v17  ;;  %v1175_v51 = vpop.f32.mrb[15].mxu0  ;;  %v9070_v39 = vpop.f32.mrb[30].mxu1  ;;  %v483_v27 = vsel %vm468_vm4, %v450_v14, %v451_v47  ;;  %v566_v11 = vsel %vm553_vm3, %v539_v22, %v540_v2  ;;  %v567_v33 = vsel %vm553_vm3, %v538_v41, %v539_v22  ;;  %v13325_v41 = vld [vmem:[#allocation53_spill] sm:$0xff] }
 0x13e   : > { %v7031_v18 = vpop.f32.mrb[31].mxu1  ;;  %v727_v14 = vpack.c.bf16 %v566_v11, %v567_v33  ;;  %v542_v22 = vrot.slane %v13325_v41, 6  ;;  %v455_v12 = vrot.slane %v13325_v41, 5 }
 0x13f   : > { %13321 = vst [vmem:[#allocation43_spill] sm:$0xff] %v9066_v9  ;;  %7137 = vmatmul.mubr.bf16.gmra.mrb[120].mxu0 %v13323_v3 }
 0x140   : > { %1795 = vmatmul.mubr.bf16.gmra.mrb[136].mxu1 %v720_v26  ;;  %7140 = vmatprep.mubr.msk.bf16.mxu0 %vm7817_vm0, %v13266_v62 }
 0x141   : > { %1802 = vmatprep.mubr.bf16.mxu1 %v724_v23  ;;  %v723_v23 = vpack.c.bf16 %v483_v27, %v484_v46  ;;  %v482_v27 = vsel %vm468_vm4, %v451_v47, %v452_v25 }
 0x142   : > { %v1178_v63 = vpop.f32.mrb[16].mxu0 }
 0x143   : > { %v9086_v17 = vadd.f32 %v8988_v5, %v1178_v63  ;;  %v1180_v26 = vpop.f32.mrb[17].mxu0  ;;  %v9088_v1 = vpop.f32.mrb[32].mxu1  ;;  %v541_v5 = vrot.slane %v8457_v29, 6 }
 0x144   : > { %v1181_v51 = vpop.f32.mrb[18].mxu0  ;;  %v7034_v18 = vpop.f32.mrb[33].mxu1  ;;  %v13326_v26 = vld [vmem:[#allocation51_spill] sm:$0xff] }
 0x145   : > { %v9091_v3 = vadd.f32 %v8995_v16, %v1181_v51  ;;  %v1183_v42 = vpop.f32.mrb[19].mxu0  ;;  %v9095_v9 = vpop.f32.mrb[34].mxu1  ;;  %v481_v16 = vsel %vm468_vm4, %v452_v25, %v453_v44  ;;  %v564_v11 = vsel %vm553_vm3, %v541_v5, %v542_v22  ;;  %v565_v33 = vsel %vm553_vm3, %v540_v2, %v541_v5  ;;  %v13329_v2 = vld [vmem:[#allocation54_spill] sm:$0xff]  ;;  %v13330_v5 = vld [vmem:[#allocation57_spill] sm:$0xff] }
 0x146   : > { %v7035_v63 = vpop.f32.mrb[35].mxu1  ;;  %v730_v25 = vpack.c.bf16 %v564_v11, %v565_v33  ;;  %v456_v41 = vrot.slane %v13329_v2, 5  ;;  %v457_v29 = vrot.slane %v13330_v5, 5 }
 0x147   : > { %13324 = vst [vmem:[#allocation47_spill] sm:$0xff] %v9091_v3  ;;  %7141 = vmatmul.mubr.bf16.gmra.mrb[124].mxu0 %v13326_v26 }
 0x148   : > { %1803 = vmatmul.mubr.bf16.gmra.mrb[140].mxu1 %v723_v23  ;;  %7144 = vmatprep.mubr.msk.bf16.mxu0 %vm7817_vm0, %v13266_v62 }
 0x149   : > { %1810 = vmatprep.mubr.bf16.mxu1 %v727_v14  ;;  %v726_v14 = vpack.c.bf16 %v481_v16, %v482_v27  ;;  %v480_v16 = vsel %vm468_vm4, %v453_v44, %v454_v61 }
 0x14a   : > { %v1186_v46 = vpop.f32.mrb[20].mxu0 }
 0x14b   : > { %v9111_v51 = vadd.f32 %v9013_v34, %v1186_v46  ;;  %v1188_v23 = vpop.f32.mrb[21].mxu0  ;;  %v9113_v18 = vpop.f32.mrb[36].mxu1  ;;  %v543_v34 = vrot.slane %v13329_v2, 6  ;;  %v544_v46 = vrot.slane %v13330_v5, 6  ;;  %v459_v5 = vrot.slane %v8557_v8, 5 }
 0x14c   : > { %v1189_v42 = vpop.f32.mrb[22].mxu0  ;;  %v7038_v63 = vpop.f32.mrb[37].mxu1 }
 0x14d   : > { %13327 = vst [vmem:[#allocation51_spill] sm:$0xff] %v9111_v51  ;;  %v9116_v26 = vadd.f32 %v9020_v6, %v1189_v42  ;;  %v1191_v47 = vpop.f32.mrb[23].mxu0  ;;  %v9120_v3 = vpop.f32.mrb[38].mxu1  ;;  %v13331_v51 = vld [vmem:[#allocation55_spill] sm:$0xff]  ;;  %v479_v6 = vsel %vm468_vm4, %v454_v61, %v455_v12  ;;  %v562_v11 = vsel %vm553_vm3, %v543_v34, %v544_v46  ;;  %v563_v33 = vsel %vm553_vm3, %v542_v22, %v543_v34 }
 0x14e   : > { %v7039_v23 = vpop.f32.mrb[39].mxu1  ;;  %v729_v47 = vpack.c.bf16 %v479_v6, %v480_v16  ;;  %v733_v61 = vpack.c.bf16 %v562_v11, %v563_v33  ;;  %v546_v22 = vrot.slane %v8557_v8, 6  ;;  %v478_v6 = vsel %vm468_vm4, %v455_v12, %v456_v41 }
 0x14f   : > { %13328 = vst [vmem:[#allocation79_spill] sm:$0xff] %v9116_v26  ;;  %7145 = vmatmul.mubr.bf16.gmra.mrb[128].mxu0 %v13331_v51  ;;  %v461_v8 = vrot.slane %v8587_v57, 5 }
 0x150   : > { %1811 = vmatmul.mubr.bf16.gmra.mrb[144].mxu1 %v726_v14  ;;  %7148 = vmatprep.mubr.msk.bf16.mxu0 %vm7817_vm0, %v13266_v62 }
 0x151   : > { %1818 = vmatprep.mubr.bf16.mxu1 %v730_v25 }
 0x152   : > { %v1194_v27 = vpop.f32.mrb[24].mxu0 }
 0x153   : > { %v9136_v51 = vadd.f32 %v9038_v30, %v1194_v27  ;;  %v1196_v42 = vpop.f32.mrb[25].mxu0  ;;  %v9138_v14 = vpop.f32.mrb[40].mxu1  ;;  %v545_v30 = vrot.slane %v8530_v56, 6  ;;  %v13332_v27 = vld [vmem:[#allocation59_spill] sm:$0xff] }
 0x154   : > { %v1197_v63 = vpop.f32.mrb[26].mxu0  ;;  %v7042_v25 = vpop.f32.mrb[41].mxu1 }
 0x155   : > { %v9141_v23 = vadd.f32 %v9045_v58, %v1197_v63  ;;  %v1199_v44 = vpop.f32.mrb[27].mxu0  ;;  %v9145_v26 = vpop.f32.mrb[42].mxu1  ;;  %v477_v58 = vsel %vm468_vm4, %v456_v41, %v457_v29  ;;  %v560_v11 = vsel %vm553_vm3, %v545_v30, %v546_v22  ;;  %v561_v33 = vsel %vm553_vm3, %v544_v46, %v545_v30 }
 0x156   : > { %v7043_v34 = vpop.f32.mrb[43].mxu1  ;;  %v732_v44 = vpack.c.bf16 %v477_v58, %v478_v6  ;;  %v736_v41 = vpack.c.bf16 %v560_v11, %v561_v33  ;;  %v548_v46 = vrot.slane %v8587_v57, 6 }
 0x157   : > { %7149 = vmatmul.mubr.bf16.gmra.mrb[132].mxu0 %v13332_v27  ;;  %v458_v27 = vrot.slane %v8530_v56, 5 }
 0x158   : > { %1819 = vmatmul.mubr.bf16.gmra.mrb[148].mxu1 %v729_v47  ;;  %7152 = vmatprep.mubr.msk.bf16.mxu0 %vm7817_vm0, %v13266_v62 }
 0x159   : > { %1826 = vmatprep.mubr.bf16.mxu1 %v733_v61  ;;  %v476_v58 = vsel %vm468_vm4, %v457_v29, %v458_v27 }
 0x15a   : > { %v1202_v16 = vpop.f32.mrb[28].mxu0 }
 0x15b   : > { %v9161_v42 = vadd.f32 %v9063_v21, %v1202_v16  ;;  %v1204_v63 = vpop.f32.mrb[29].mxu0  ;;  %v9163_v47 = vpop.f32.mrb[44].mxu1  ;;  %v547_v21 = vrot.slane %v8560_v60, 6  ;;  %v13333_v16 = vld [vmem:[#allocation63_spill] sm:$0xff] }
 0x15c   : > { %v1205_v25 = vpop.f32.mrb[30].mxu0  ;;  %v7046_v61 = vpop.f32.mrb[45].mxu1 }
 0x15d   : > { %v9166_v34 = vadd.f32 %v9070_v39, %v1205_v25  ;;  %v1207_v12 = vpop.f32.mrb[31].mxu0  ;;  %v9170_v2 = vpop.f32.mrb[46].mxu1  ;;  %v475_v39 = vsel %vm468_vm4, %v458_v27, %v459_v5  ;;  %v558_v11 = vsel %vm553_vm3, %v547_v21, %v548_v46  ;;  %v559_v33 = vsel %vm553_vm3, %v546_v22, %v547_v21  ;;  %v13334_v21 = vld [vmem:[#allocation67_spill] sm:$0xff] }
 0x15e   : > { %v7047_v30 = vpop.f32.mrb[47].mxu1  ;;  %v735_v12 = vpack.c.bf16 %v475_v39, %v476_v58  ;;  %v739_v27 = vpack.c.bf16 %v558_v11, %v559_v33 }
 0x15f   : > { %7153 = vmatmul.mubr.bf16.gmra.mrb[136].mxu0 %v13333_v16  ;;  %v460_v16 = vrot.slane %v8560_v60, 5 }
 0x160   : > { %1827 = vmatmul.mubr.bf16.gmra.mrb[152].mxu1 %v732_v44  ;;  %7156 = vmatprep.mubr.msk.bf16.mxu0 %vm7817_vm0, %v13266_v62 }
 0x161   : > { %1834 = vmatprep.mubr.bf16.mxu1 %v736_v41  ;;  %v474_v39 = vsel %vm468_vm4, %v459_v5, %v460_v16 }
 0x162   : > { %v1210_v6 = vpop.f32.mrb[32].mxu0 }
 0x163   : > { %v9186_v63 = vadd.f32 %v9088_v1, %v1210_v6  ;;  %v1212_v25 = vpop.f32.mrb[33].mxu0  ;;  %v9188_v44 = vpop.f32.mrb[48].mxu1  ;;  %v549_v1 = vrot.slane %v8590_v37, 6  ;;  %v13335_v6 = vrot.slane %v8614_v38, 6 }
 0x164   : > { %v1213_v61 = vpop.f32.mrb[34].mxu0  ;;  %v7050_v41 = vpop.f32.mrb[49].mxu1 }
 0x165   : > { %v9191_v30 = vadd.f32 %v9095_v9, %v1213_v61  ;;  %v1215_v29 = vpop.f32.mrb[35].mxu0  ;;  %v9195_v56 = vpop.f32.mrb[50].mxu1  ;;  %v473_v9 = vsel %vm468_vm4, %v460_v16, %v461_v8  ;;  %v556_v11 = vsel %vm553_vm3, %v549_v1, %v13335_v6  ;;  %v557_v33 = vsel %vm553_vm3, %v548_v46, %v549_v1 }
 0x166   : > { %v7051_v22 = vpop.f32.mrb[51].mxu1  ;;  %v738_v29 = vpack.c.bf16 %v473_v9, %v474_v39  ;;  %v13009_v46 = vrot.slane %v7931_v19, 2  ;;  %v2064_v1 = vrot.slane %v7968_v32, 2 }
 0x167   : > { %7157 = vmatmul.mubr.bf16.gmra.mrb[140].mxu0 %v13334_v21  ;;  %v742_v22 = vpack.c.bf16 %v556_v11, %v557_v33  ;;  %v462_v21 = vrot.slane %v8590_v37, 5  ;;  %v2065_v37 = vrot.slane %v7991_v40, 2 }
 0x168   : > { %1835 = vmatmul.mubr.bf16.gmra.mrb[156].mxu1 %v735_v12  ;;  %7160 = vmatprep.mubr.msk.bf16.mxu0 %vm7817_vm0, %v13266_v62 }
 0x169   : > { %1842 = vmatprep.mubr.bf16.mxu1 %v739_v27  ;;  %v472_v9 = vsel %vm468_vm4, %v461_v8, %v462_v21 }
 0x16a   : > { %v1218_v58 = vpop.f32.mrb[36].mxu0 }
 0x16b   : > { %v9212_v25 = vadd.f32 %v9113_v18, %v1218_v58  ;;  %v1220_v61 = vpop.f32.mrb[37].mxu0  ;;  %v9214_v12 = vpop.f32.mrb[52].mxu1  ;;  %v2063_v18 = vrot.slane %v7965_v31, 2  ;;  %v13336_v58 = vld [vmem:[#allocation71_spill] sm:$0xff] }
 0x16c   : > { %v1221_v41 = vpop.f32.mrb[38].mxu0  ;;  %v7054_v27 = vpop.f32.mrb[53].mxu1 }
 0x16d   : > { %v9217_v5 = vadd.f32 %v9120_v3, %v1221_v41  ;;  %v1223_v16 = vpop.f32.mrb[39].mxu0  ;;  %v9220_v6 = vpop.f32.mrb[54].mxu1  ;;  %v13337_v3 = vrot.slane %v8614_v38, 5  ;;  %v2140_v11 = vsel %vm13068_vm5, %v2063_v18, %v2064_v1  ;;  %v2141_v33 = vsel %vm13068_vm5, %v13009_v46, %v2063_v18 }
 0x16e   : > { %v7055_v57 = vpop.f32.mrb[55].mxu1  ;;  %v2066_v18 = vrot.slane %v8001_v43, 2 }
 0x16f   : > { %7161 = vmatmul.mubr.bf16.gmra.mrb[144].mxu0 %v13336_v58  ;;  %v471_v57 = vsel %vm468_vm4, %v462_v21, %v13337_v3  ;;  %v2230_v3 = vpack.c.bf16 %v2140_v11, %v2141_v33  ;;  %v341_v11 = vld [vmem:[%s12905_s1 + $0x8] sm:$0xff] }
 0x170   : > { %1843 = vmatmul.mubr.bf16.gmra.mrb[160].mxu1 %v738_v29  ;;  %7164 = vmatprep.mubr.msk.bf16.mxu0 %vm7817_vm0, %v13266_v62  ;;  %v741_v16 = vpack.c.bf16 %v471_v57, %v472_v9  ;;  %v2138_v57 = vsel %vm13068_vm5, %v2065_v37, %v2066_v18  ;;  %v2139_v9 = vsel %vm13068_vm5, %v2064_v1, %v2065_v37  ;;  %vm383_vm7 = vcmp.gt.f32.partialorder %v341_v11, 0.5 }
 0x171   : > { %1850 = vmatprep.mubr.bf16.mxu1 %v742_v22 }
 0x172   : > { %v1226_v39 = vpop.f32.mrb[40].mxu0 }
 0x173   : > { %v9242_v61 = vadd.f32 %v9138_v14, %v1226_v39  ;;  %v1228_v41 = vpop.f32.mrb[41].mxu0  ;;  %v9244_v29 = vpop.f32.mrb[56].mxu1  ;;  %v340_v14 = vld [vmem:[%s12905_s1] sm:$0xff]  ;;  %v13338_v39 = vld [vmem:[#allocation73_spill] sm:$0xff] }
 0x174   : > { %v1229_v27 = vpop.f32.mrb[42].mxu0  ;;  %v7058_v22 = vpop.f32.mrb[57].mxu1  ;;  %vm382_vm6 = vcmp.gt.f32.partialorder %v340_v14, 0.5 }
 0x175   : > { %v9247_v8 = vadd.f32 %v9145_v26, %v1229_v27  ;;  %v1231_v21 = vpop.f32.mrb[43].mxu0  ;;  %v9249_v58 = vpop.f32.mrb[58].mxu1  ;;  %v3000_v26 = vsel %vm382_vm6, 1, %v13306_v36 }
 0x176   : > { %v7059_v38 = vpop.f32.mrb[59].mxu1  ;;  %3043 = vperm.xlu0 %7611, %v3000_v26   ;;  %v3001_v21 = vsel %vm383_vm7, 1, %v13306_v36  ;;  %v2067_v26 = vrot.slane %v8027_v52, 2 }
 0x177   : > { %7165 = vmatmul.mubr.bf16.gmra.mrb[148].mxu0 %v13338_v39 }
 0x178   : > { %1851 = vmatmul.mubr.bf16.gmra.mrb[164].mxu1 %v741_v16  ;;  %7168 = vmatprep.mubr.msk.bf16.mxu0 %vm7817_vm0, %v13266_v62 }
 0x179   : > { %2497 = vmatprep.mubr.bf16.mxu1 %v2230_v3  ;;  %v381_v3 = vld [vmem:[%s12905_s1 + $0x148] sm:$0xff] }
 0x17a   : > { %v1234_v38 = vpop.f32.mrb[44].mxu0  ;;  %3046 = vperm.xlu0 %7611, %v3001_v21   ;;  %vm423_vm8 = vcmp.gt.f32.partialorder %v381_v3, 0.5  ;;  %v2137_v21 = vsel %vm13068_vm5, %v2066_v18, %v2067_v26  ;;  %v343_v3 = vld [vmem:[%s12905_s1 + $0x18] sm:$0xff] }
 0x17b   : > { %v9268_v33 = vadd.f32 %v9163_v47, %v1234_v38  ;;  %v1236_v41 = vpop.f32.mrb[45].mxu0  ;;  %v9270_v27 = vpop.f32.mrb[60].mxu1  ;;  %v2232_v47 = vpack.c.bf16 %v2138_v57, %v2139_v9  ;;  %v2068_v38 = vrot.slane %v8037_v55, 2  ;;  %v3041_v11 = vsel %vm423_vm8, 1, %v13306_v36  ;;  %v13341_v57 = vld [vmem:[#allocation10_spill] sm:$0xff] }
 0x17c   : > { %v1237_v16 = vpop.f32.mrb[46].mxu0  ;;  %v7062_v22 = vpop.f32.mrb[61].mxu1  ;;  %v13340_v41 = vld [vmem:[#allocation75_spill] sm:$0xff]  ;;  %3166 = vperm.xlu1 %7612, %v3041_v11   ;;  %vm385_vm10 = vcmp.gt.f32.partialorder %v343_v3, 0.5 }
 0x17d   : > { %v9277_v37 = vadd.f32 %v9170_v2, %v1237_v16  ;;  %v1239_v1 = vpop.f32.mrb[47].mxu0  ;;  %v9279_v14 = vpop.f32.mrb[62].mxu1  ;;  %v342_v2 = vld [vmem:[%s12905_s1 + $0x10] sm:$0xff]  ;;  %v2136_v22 = vsel %vm13068_vm5, %v2067_v26, %v2068_v38  ;;  %v345_v3 = vld [vmem:[%s12905_s1 + $0x28] sm:$0xff] }
 0x17e   : > { %v7063_v39 = vpop.f32.mrb[63].mxu1  ;;  %vm384_vm9 = vcmp.gt.f32.partialorder %v342_v2, 0.5  ;;  %v3003_v2 = vsel %vm385_vm10, 1, %v13306_v36  ;;  %v2234_v46 = vpack.c.bf16 %v2136_v22, %v2137_v21  ;;  %vm387_vm12 = vcmp.gt.f32.partialorder %v345_v3, 0.5  ;;  %v346_v3 = vld [vmem:[%s12905_s1 + $0x30] sm:$0xff] }
 0x17f   : > { %13339 = vst [vmem:[#allocation55_spill] sm:$0xff] %v9277_v37  ;;  %7169 = vmatmul.mubr.bf16.gmra.mrb[152].mxu0 %v13340_v41  ;;  %v3002_v9 = vsel %vm384_vm9, 1, %v13306_v36  ;;  %3052 = vperm.xlu0 %7611, %v3003_v2   ;;  %vm388_vm13 = vcmp.gt.f32.partialorder %v346_v3, 0.5  ;;  %v348_v3 = vld [vmem:[%s12905_s1 + $0x40] sm:$0xff] }
 0x180   : > { %7172 = vmatprep.mubr.msk.bf16.mxu0 %vm7817_vm0, %v13266_v62  ;;  %2498 = vmatmul.mubr.bf16.vlgmr.msra.gmra.mrb[168].mxu1 %v13341_v57  ;;  %vm390_vm6 = vcmp.gt.f32.partialorder %v348_v3, 0.5 }
 0x181   : > { %2505 = vmatprep.mubr.bf16.mxu1 %v2232_v47  ;;  %3049 = vperm.xlu1 %7612, %v3002_v9   ;;  %v344_v9 = vld [vmem:[%s12905_s1 + $0x20] sm:$0xff] }
 0x182   : > { %v1242_v16 = vpop.f32.mrb[48].mxu0  ;;  %vm386_vm11 = vcmp.gt.f32.partialorder %v344_v9, 0.5 }
 0x183   : > { %v9300_v1 = vadd.f32 %v9188_v44, %v1242_v16  ;;  %v1244_v39 = vpop.f32.mrb[49].mxu0  ;;  %v9302_v11 = vpop.f32.mrb[64].mxu1  ;;  %v2069_v44 = vrot.slane %v8069_v4, 2  ;;  %v2070_v16 = vrot.slane %v8080_v7, 2  ;;  %v3004_v22 = vsel %vm386_vm11, 1, %v13306_v36 }
 0x184   : > { %v1245_v47 = vpop.f32.mrb[50].mxu0  ;;  %v7066_v41 = vpop.f32.mrb[65].mxu1 }
 0x185   : > { %v9306_v57 = vadd.f32 %v9195_v56, %v1245_v47  ;;  %v1247_v18 = vpop.f32.mrb[51].mxu0  ;;  %v9308_v26 = vpop.f32.mrb[66].mxu1  ;;  %v13342_v56 = vld [vmem:[#allocation13_spill] sm:$0xff]  ;;  %v2134_v21 = vsel %vm13068_vm5, %v2069_v44, %v2070_v16  ;;  %3055 = vperm.xlu1 %7612, %v3004_v22  }
 0x186   : > { %v7067_v37 = vpop.f32.mrb[67].mxu1  ;;  %v3005_v18 = vsel %vm387_vm12, 1, %v13306_v36 }
 0x187   : > { %7173 = vmatmul.mubr.bf16.gmra.mrb[156].mxu0 %v8701_v10  ;;  %v2135_v10 = vsel %vm13068_vm5, %v2068_v38, %v2069_v44  ;;  %3058 = vperm.xlu0 %7611, %v3005_v18  }
 0x188   : > { %7176 = vmatprep.mubr.msk.bf16.mxu0 %vm7817_vm0, %v13266_v62  ;;  %2506 = vmatmul.mubr.bf16.gmra.mrb[172].mxu1 %v13342_v56  ;;  %v2236_v56 = vpack.c.bf16 %v2134_v21, %v2135_v10  ;;  %v3006_v21 = vsel %vm388_vm13, 1, %v13306_v36 }
 0x189   : > { %2513 = vmatprep.mubr.bf16.mxu1 %v2234_v46  ;;  %3061 = vperm.xlu1 %7612, %v3006_v21  }
 0x18a   : > { %v1250_v37 = vpop.f32.mrb[52].mxu0 }
 0x18b   : > { %v9328_v39 = vadd.f32 %v9214_v12, %v1250_v37  ;;  %v1252_v47 = vpop.f32.mrb[53].mxu0  ;;  %v9330_v41 = vpop.f32.mrb[68].mxu1  ;;  %v2071_v12 = vrot.slane %v8115_v28, 2  ;;  %v2072_v37 = vrot.slane %v8126_v35, 2 }
 0x18c   : > { %v1253_v46 = vpop.f32.mrb[54].mxu0  ;;  %v7070_v2 = vpop.f32.mrb[69].mxu1 }
 0x18d   : > { %13343 = vst [vmem:[#allocation59_spill] sm:$0xff] %v9328_v39  ;;  %v9334_v9 = vadd.f32 %v9220_v6, %v1253_v46  ;;  %v1255_v38 = vpop.f32.mrb[55].mxu0  ;;  %v9336_v44 = vpop.f32.mrb[70].mxu1  ;;  %v13345_v6 = vld [vmem:[#allocation17_spill] sm:$0xff]  ;;  %v2132_v47 = vsel %vm13068_vm5, %v2071_v12, %v2072_v37 }
 0x18e   : > { %v7071_v22 = vpop.f32.mrb[71].mxu1  ;;  %v347_v46 = vld [vmem:[%s12905_s1 + $0x38] sm:$0xff] }
 0x18f   : > { %13344 = vst [vmem:[#allocation63_spill] sm:$0xff] %v9334_v9  ;;  %7177 = vmatmul.mubr.bf16.gmra.mrb[160].mxu0 %v8730_v45  ;;  %v2133_v45 = vsel %vm13068_vm5, %v2070_v16, %v2071_v12  ;;  %vm389_vm14 = vcmp.gt.f32.partialorder %v347_v46, 0.5  ;;  %v2149_v16 = vrot.slane %v7968_v32, 3  ;;  %v349_v32 = vld [vmem:[%s12905_s1 + $0x48] sm:$0xff] }
 0x190   : > { %7180 = vmatprep.mubr.msk.bf16.mxu0 %vm7817_vm0, %v13266_v62  ;;  %2514 = vmatmul.mubr.bf16.gmra.mrb[176].mxu1 %v13345_v6  ;;  %v2148_v6 = vrot.slane %v7965_v31, 3  ;;  %v3007_v12 = vsel %vm389_vm14, 1, %v13306_v36  ;;  %vm391_vm7 = vcmp.gt.f32.partialorder %v349_v32, 0.5  ;;  %v2076_v32 = vrot.slane %v8207_v24, 2 }
 0x191   : > { %2521 = vmatprep.mubr.bf16.mxu1 %v2236_v56  ;;  %3064 = vperm.xlu0 %7611, %v3007_v12  }
 0x192   : > { %v1258_v10 = vpop.f32.mrb[56].mxu0 }
 0x193   : > { %v9356_v2 = vadd.f32 %v9244_v29, %v1258_v10  ;;  %v1260_v18 = vpop.f32.mrb[57].mxu0  ;;  %v9358_v38 = vpop.f32.mrb[72].mxu1  ;;  %v2238_v10 = vpack.c.bf16 %v2132_v47, %v2133_v45  ;;  %v13349_v45 = vld [vmem:[#allocation20_spill] sm:$0xff] }
 0x194   : > { %v1261_v56 = vpop.f32.mrb[58].mxu0  ;;  %v7074_v22 = vpop.f32.mrb[73].mxu1  ;;  %v2073_v18 = vrot.slane %v8151_v50, 2 }
 0x195   : > { %13346 = vst [vmem:[#allocation67_spill] sm:$0xff] %v9356_v2  ;;  %v9365_v21 = vadd.f32 %v9249_v58, %v1261_v56  ;;  %v1263_v9 = vpop.f32.mrb[59].mxu0  ;;  %v9368_v29 = vpop.f32.mrb[74].mxu1  ;;  %v2074_v22 = vrot.slane %v8160_v54, 2  ;;  %v2225_v58 = vsel %vm13173_vm15, %v2148_v6, %v2149_v16  ;;  %v2151_v2 = vrot.slane %v8001_v43, 3 }
 0x196   : > { %v7075_v46 = vpop.f32.mrb[75].mxu1  ;;  %v13348_v9 = vrot.slane %v7931_v19, 3  ;;  %v2153_v43 = vrot.slane %v8037_v55, 3  ;;  %v2154_v55 = vrot.slane %v8069_v4, 3 }
 0x197   : > { %13347 = vst [vmem:[#allocation71_spill] sm:$0xff] %v9365_v21  ;;  %7181 = vmatmul.mubr.bf16.gmra.mrb[164].mxu0 %v8760_v49  ;;  %v3008_v49 = vsel %vm390_vm6, 1, %v13306_v36  ;;  %v2130_v12 = vsel %vm13068_vm5, %v2073_v18, %v2074_v22  ;;  %v2131_v46 = vsel %vm13068_vm5, %v2072_v37, %v2073_v18  ;;  %v2150_v21 = vrot.slane %v7991_v40, 3 }
 0x198   : > { %7200 = vmatprep.mubr.msk.bf16.mxu0 %vm7817_vm0, %v13266_v62  ;;  %v2226_v47 = vsel %vm13173_vm15, %v13348_v9, %v2148_v6  ;;  %2522 = vmatmul.mubr.bf16.gmra.mrb[180].mxu1 %v13349_v45  ;;  %v3009_v37 = vsel %vm391_vm7, 1, %v13306_v36 }
 0x199   : > { %2529 = vmatprep.mubr.bf16.mxu1 %v2238_v10  ;;  %3067 = vperm.xlu1 %7612, %v3008_v49   ;;  %v2231_v3 = vpack.c.bf16 %v2225_v58, %v2226_v47  ;;  %v2075_v47 = vrot.slane %v8197_v15, 2 }
 0x19a   : > { %v1266_v56 = vpop.f32.mrb[60].mxu0  ;;  %3070 = vperm.xlu0 %7611, %v3009_v37   ;;  %v351_v37 = vld [vmem:[%s12905_s1 + $0x58] sm:$0xff] }
 0x19b   : > { %v9394_v6 = vadd.f32 %v9270_v27, %v1266_v56  ;;  %v1268_v9 = vpop.f32.mrb[61].mxu0  ;;  %v9396_v10 = vpop.f32.mrb[76].mxu1  ;;  %v2240_v27 = vpack.c.bf16 %v2130_v12, %v2131_v46  ;;  %v2224_v56 = vsel %vm13173_vm15, %v2149_v16, %v2150_v21  ;;  %v13350_v12 = vld [vmem:[#allocation23_spill] sm:$0xff]  ;;  %vm393_vm9 = vcmp.gt.f32.partialorder %v351_v37, 0.5  ;;  %v352_v37 = vld [vmem:[%s12905_s1 + $0x60] sm:$0xff] }
 0x19c   : > { %v1269_v45 = vpop.f32.mrb[62].mxu0  ;;  %v7078_v31 = vpop.f32.mrb[77].mxu1  ;;  %vm394_vm10 = vcmp.gt.f32.partialorder %v352_v37, 0.5 }
 0x19d   : > { %v9402_v18 = vadd.f32 %v9279_v14, %v1269_v45  ;;  %v1271_v49 = vpop.f32.mrb[63].mxu0  ;;  %v9404_v39 = vpop.f32.mrb[78].mxu1  ;;  %v350_v31 = vld [vmem:[%s12905_s1 + $0x50] sm:$0xff]  ;;  %v2223_v14 = vsel %vm13173_vm15, %v2150_v21, %v2151_v2  ;;  %v2129_v45 = vsel %vm13068_vm5, %v2074_v22, %v2075_v47  ;;  %v3011_v22 = vsel %vm393_vm9, 1, %v13306_v36 }
 0x19e   : > { %v7079_v58 = vpop.f32.mrb[79].mxu1  ;;  %vm392_vm8 = vcmp.gt.f32.partialorder %v350_v31, 0.5  ;;  %3076 = vperm.xlu0 %7611, %v3011_v22   ;;  %v353_v22 = vld [vmem:[%s12905_s1 + $0x68] sm:$0xff] }
 0x19f   : > { %7201 = vmatmul.mubr.bf16.vlgmr.msra.gmra.mrb[168].mxu0 %v2231_v3  ;;  %v3010_v46 = vsel %vm392_vm8, 1, %v13306_v36  ;;  %v2128_v3 = vsel %vm13068_vm5, %v2075_v47, %v2076_v32  ;;  %vm395_vm11 = vcmp.gt.f32.partialorder %v353_v22, 0.5  ;;  %v13354_v22 = vld [vmem:[#allocation30_spill] sm:$0xff] }
 0x1a0   : > { %7204 = vmatprep.mubr.msk.bf16.mxu0 %vm7817_vm0, %v13266_v62  ;;  %2530 = vmatmul.mubr.bf16.gmra.mrb[184].mxu1 %v13350_v12  ;;  %v2152_v12 = vrot.slane %v8027_v52, 3 }
 0x1a1   : > { %2537 = vmatprep.mubr.bf16.mxu1 %v2240_v27  ;;  %3073 = vperm.xlu1 %7612, %v3010_v46   ;;  %v2233_v27 = vpack.c.bf16 %v2223_v14, %v2224_v56  ;;  %v2077_v14 = vrot.slane %v8243_v53, 2  ;;  %v2078_v56 = vrot.slane %v8253_v59, 2 }
 0x1a2   : > { %v1274_v9 = vpop.f32.mrb[64].mxu0 }
 0x1a3   : > { %v9427_v16 = vadd.f32 %v9302_v11, %v1274_v9  ;;  %v1276_v21 = vpop.f32.mrb[65].mxu0  ;;  %v9429_v49 = vpop.f32.mrb[80].mxu1  ;;  %v2242_v11 = vpack.c.bf16 %v2128_v3, %v2129_v45  ;;  %v2222_v3 = vsel %vm13173_vm15, %v2151_v2, %v2152_v12  ;;  %v13351_v45 = vld [vmem:[#allocation26_spill] sm:$0xff] }
 0x1a4   : > { %v1277_v58 = vpop.f32.mrb[66].mxu0  ;;  %v7082_v31 = vpop.f32.mrb[81].mxu1  ;;  %v3012_v21 = vsel %vm394_vm10, 1, %v13306_v36 }
 0x1a5   : > { %v9435_v47 = vadd.f32 %v9308_v26, %v1277_v58  ;;  %v1279_v46 = vpop.f32.mrb[67].mxu0  ;;  %v9437_v40 = vpop.f32.mrb[82].mxu1  ;;  %v2221_v26 = vsel %vm13173_vm15, %v2152_v12, %v2153_v43  ;;  %v2126_v58 = vsel %vm13068_vm5, %v2077_v14, %v2078_v56  ;;  %v2127_v31 = vsel %vm13068_vm5, %v2076_v32, %v2077_v14  ;;  %3079 = vperm.xlu1 %7612, %v3012_v21  }
 0x1a6   : > { %v7083_v9 = vpop.f32.mrb[83].mxu1  ;;  %v2155_v32 = vrot.slane %v8080_v7, 3  ;;  %v3013_v14 = vsel %vm395_vm11, 1, %v13306_v36  ;;  %v2244_v52 = vpack.c.bf16 %v2126_v58, %v2127_v31  ;;  %v354_v7 = vld [vmem:[%s12905_s1 + $0x70] sm:$0xff]  ;;  %v2220_v58 = vsel %vm13173_vm15, %v2153_v43, %v2154_v55  ;;  %v13356_v31 = vld [vmem:[#allocation29_spill] sm:$0xff] }
 0x1a7   : > { %7205 = vmatmul.mubr.bf16.gmra.mrb[172].mxu0 %v2233_v27  ;;  %3082 = vperm.xlu0 %7611, %v3013_v14   ;;  %vm396_vm12 = vcmp.gt.f32.partialorder %v354_v7, 0.5 }
 0x1a8   : > { %7208 = vmatprep.mubr.msk.bf16.mxu0 %vm7817_vm0, %v13266_v62  ;;  %2538 = vmatmul.mubr.bf16.gmra.mrb[188].mxu1 %v13351_v45 }
 0x1a9   : > { %2545 = vmatprep.mubr.bf16.mxu1 %v2242_v11  ;;  %v2235_v11 = vpack.c.bf16 %v2221_v26, %v2222_v3  ;;  %v13353_v26 = vld [vmem:[#allocation77_spill] sm:$0xff] }
 0x1aa   : > { %v1282_v27 = vpop.f32.mrb[68].mxu0 }
 0x1ab   : > { %v9460_v2 = vadd.f32 %v9330_v41, %v1282_v27  ;;  %v1692_v12 = vpop.f32.mrb[84].mxu1  ;;  %v1284_v46 = vpop.f32.mrb[69].mxu0 }
 0x1ac   : > { %v9463_v9 = vadd.f32 %v1692_v12, %v8986_v13  ;;  %v1694_v37 = vpop.f32.mrb[85].mxu1  ;;  %v1285_v45 = vpop.f32.mrb[70].mxu0  ;;  %v2079_v12 = vrot.slane %v13354_v22, 2  ;;  %v13355_v46 = vld [vmem:[#allocation31_spill] sm:$0xff] }
 0x1ad   : > { %v9469_v21 = vadd.f32 %v9336_v44, %v1285_v45  ;;  %v1695_v41 = vpop.f32.mrb[86].mxu1  ;;  %v1287_v27 = vpop.f32.mrb[71].mxu0  ;;  %v2080_v37 = vrot.slane %v13355_v46, 2  ;;  %v2219_v44 = vsel %vm13173_vm15, %v2154_v55, %v2155_v32  ;;  %v3014_v45 = vsel %vm396_vm12, 1, %v13306_v36 }
 0x1ae   : > { %v9472_v3 = vadd.f32 %v1695_v41, %v13353_v26  ;;  %v1697_v13 = vpop.f32.mrb[87].mxu1  ;;  %v2125_v41 = vsel %vm13068_vm5, %v2078_v56, %v2079_v12  ;;  %3085 = vperm.xlu1 %7612, %v3014_v45   ;;  %v355_v27 = vld [vmem:[%s12905_s1 + $0x78] sm:$0xff]  ;;  %v13358_v26 = vld [vmem:[#allocation35_spill] sm:$0xff]  ;;  %v2157_v56 = vrot.slane %v8126_v35, 3  ;;  %v356_v35 = vld [vmem:[%s12905_s1 + $0x80] sm:$0xff] }
 0x1af   : > { %13352 = vst [vmem:[#allocation73_spill] sm:$0xff] %v9469_v21  ;;  %7209 = vmatmul.mubr.bf16.gmra.mrb[176].mxu0 %v2235_v11  ;;  %v2124_v14 = vsel %vm13068_vm5, %v2079_v12, %v2080_v37  ;;  %vm397_vm13 = vcmp.gt.f32.partialorder %v355_v27, 0.5  ;;  %v2156_v21 = vrot.slane %v8115_v28, 3  ;;  %vm398_vm14 = vcmp.gt.f32.partialorder %v356_v35, 0.5 }
 0x1b0   : > { %7212 = vmatprep.mubr.msk.bf16.mxu0 %vm7817_vm0, %v13266_v62  ;;  %2546 = vmatmul.mubr.bf16.gmra.mrb[192].mxu1 %v13356_v31  ;;  %v3015_v12 = vsel %vm397_vm13, 1, %v13306_v36  ;;  %v2158_v28 = vrot.slane %v8151_v50, 3  ;;  %v2160_v50 = vrot.slane %v8197_v15, 3 }
 0x1b1   : > { %2553 = vmatprep.mubr.bf16.mxu1 %v2244_v52  ;;  %v2237_v52 = vpack.c.bf16 %v2219_v44, %v2220_v58  ;;  %3088 = vperm.xlu0 %7611, %v3015_v12   ;;  %v13359_v44 = vld [vmem:[#allocation78_spill] sm:$0xff] }
 0x1b2   : > { %v1290_v11 = vpop.f32.mrb[72].mxu0 }
 0x1b3   : > { %v9495_v43 = vadd.f32 %v9358_v38, %v1290_v11  ;;  %v1700_v55 = vpop.f32.mrb[88].mxu1  ;;  %v1292_v7 = vpop.f32.mrb[73].mxu0 }
 0x1b4   : > { %v9498_v13 = vadd.f32 %v1700_v55, %v13358_v26  ;;  %v1702_v31 = vpop.f32.mrb[89].mxu1  ;;  %v1293_v4 = vpop.f32.mrb[74].mxu0  ;;  %v13360_v55 = vld [vmem:[#allocation33_spill] sm:$0xff]  ;;  %v13361_v26 = vld [vmem:[#allocation34_spill] sm:$0xff] }
 0x1b5   : > { %13357 = vst [vmem:[#allocation75_spill] sm:$0xff] %v9495_v43  ;;  %v9504_v45 = vadd.f32 %v9368_v29, %v1293_v4  ;;  %v1703_v38 = vpop.f32.mrb[90].mxu1  ;;  %v1295_v11 = vpop.f32.mrb[75].mxu0  ;;  %v2246_v43 = vpack.c.bf16 %v2124_v14, %v2125_v41  ;;  %v2081_v7 = vrot.slane %v13360_v55, 2  ;;  %v2082_v31 = vrot.slane %v13361_v26, 2  ;;  %v13362_v14 = vld [vmem:[#allocation32_spill] sm:$0xff] }
 0x1b6   : > { %v9507_v58 = vadd.f32 %v1703_v38, %v13359_v44  ;;  %v1705_v27 = vpop.f32.mrb[91].mxu1  ;;  %v2217_v4 = vsel %vm13173_vm15, %v2156_v21, %v2157_v56  ;;  %v2218_v29 = vsel %vm13173_vm15, %v2155_v32, %v2156_v21  ;;  %v3016_v41 = vsel %vm398_vm14, 1, %v13306_v36  ;;  %v357_v11 = vld [vmem:[%s12905_s1 + $0x88] sm:$0xff] }
 0x1b7   : > { %7213 = vmatmul.mubr.bf16.gmra.mrb[180].mxu0 %v2237_v52  ;;  %v2122_v12 = vsel %vm13068_vm5, %v2081_v7, %v2082_v31  ;;  %v2123_v38 = vsel %vm13068_vm5, %v2080_v37, %v2081_v7  ;;  %3091 = vperm.xlu1 %7612, %v3016_v41   ;;  %vm399_vm6 = vcmp.gt.f32.partialorder %v357_v11, 0.5  ;;  %v2159_v37 = vrot.slane %v8160_v54, 3  ;;  %v13365_v11 = vld [vmem:[#allocation37_spill] sm:$0xff]  ;;  %v358_v54 = vld [vmem:[%s12905_s1 + $0x90] sm:$0xff] }
 0x1b8   : > { %7216 = vmatprep.mubr.msk.bf16.mxu0 %vm7817_vm0, %v13266_v62  ;;  %2554 = vmatmul.mubr.bf16.gmra.mrb[196].mxu1 %v13362_v14  ;;  %v3017_v7 = vsel %vm399_vm6, 1, %v13306_v36  ;;  %vm400_vm7 = vcmp.gt.f32.partialorder %v358_v54, 0.5 }
 0x1b9   : > { %2561 = vmatprep.mubr.bf16.mxu1 %v2246_v43  ;;  %v2239_v43 = vpack.c.bf16 %v2217_v4, %v2218_v29  ;;  %3094 = vperm.xlu0 %7611, %v3017_v7   ;;  %v13364_v4 = vld [vmem:[#allocation39_spill] sm:$0xff] }
 0x1ba   : > { %v1298_v52 = vpop.f32.mrb[76].mxu0 }
 0x1bb   : > { %v9530_v32 = vadd.f32 %v9396_v10, %v1298_v52  ;;  %v1708_v21 = vpop.f32.mrb[92].mxu1  ;;  %v1300_v35 = vpop.f32.mrb[77].mxu0 }
 0x1bc   : > { %v9533_v44 = vadd.f32 %v1708_v21, %v9036_v48  ;;  %v1710_v27 = vpop.f32.mrb[93].mxu1  ;;  %v1301_v14 = vpop.f32.mrb[78].mxu0  ;;  %v2083_v21 = vrot.slane %v13365_v11, 2  ;;  %v13366_v35 = vld [vmem:[#allocation38_spill] sm:$0xff] }
 0x1bd   : > { %13363 = vst [vmem:[#allocation10_spill] sm:$0xff] %v9530_v32  ;;  %v9539_v41 = vadd.f32 %v9404_v39, %v1301_v14  ;;  %v1711_v10 = vpop.f32.mrb[94].mxu1  ;;  %v1303_v52 = vpop.f32.mrb[79].mxu0  ;;  %v2248_v32 = vpack.c.bf16 %v2122_v12, %v2123_v38  ;;  %v2084_v27 = vrot.slane %v13366_v35, 2  ;;  %v2215_v39 = vsel %vm13173_vm15, %v2158_v28, %v2159_v37  ;;  %v13367_v38 = vld [vmem:[#allocation36_spill] sm:$0xff] }
 0x1be   : > { %v9542_v29 = vadd.f32 %v1711_v10, %v13364_v4  ;;  %v1713_v48 = vpop.f32.mrb[95].mxu1  ;;  %v2216_v12 = vsel %vm13173_vm15, %v2157_v56, %v2158_v28  ;;  %v3018_v14 = vsel %vm400_vm7, 1, %v13306_v36  ;;  %v2121_v10 = vsel %vm13068_vm5, %v2082_v31, %v2083_v21  ;;  %v359_v52 = vld [vmem:[%s12905_s1 + $0x98] sm:$0xff] }
 0x1bf   : > { %7217 = vmatmul.mubr.bf16.gmra.mrb[184].mxu0 %v2239_v43  ;;  %v2120_v7 = vsel %vm13068_vm5, %v2083_v21, %v2084_v27  ;;  %3097 = vperm.xlu1 %7612, %v3018_v14   ;;  %vm401_vm8 = vcmp.gt.f32.partialorder %v359_v52, 0.5  ;;  %v2161_v31 = vrot.slane %v8207_v24, 3  ;;  %v13371_v52 = vld [vmem:[#allocation41_spill] sm:$0xff]  ;;  %v360_v24 = vld [vmem:[%s12905_s1 + $0xa0] sm:$0xff] }
 0x1c0   : > { %7220 = vmatprep.mubr.msk.bf16.mxu0 %vm7817_vm0, %v13266_v62  ;;  %2562 = vmatmul.mubr.bf16.gmra.mrb[200].mxu1 %v13367_v38  ;;  %v3019_v21 = vsel %vm401_vm8, 1, %v13306_v36  ;;  %vm402_vm9 = vcmp.gt.f32.partialorder %v360_v24, 0.5 }
 0x1c1   : > { %2569 = vmatprep.mubr.bf16.mxu1 %v2248_v32  ;;  %v2241_v32 = vpack.c.bf16 %v2215_v39, %v2216_v12  ;;  %3100 = vperm.xlu0 %7611, %v3019_v21   ;;  %v13370_v39 = vld [vmem:[#allocation43_spill] sm:$0xff] }
 0x1c2   : > { %v1306_v43 = vpop.f32.mrb[80].mxu0 }
 0x1c3   : > { %v9565_v28 = vadd.f32 %v9429_v49, %v1306_v43  ;;  %v1716_v56 = vpop.f32.mrb[96].mxu1  ;;  %v1308_v54 = vpop.f32.mrb[81].mxu0 }
 0x1c4   : > { %v9568_v4 = vadd.f32 %v1716_v56, %v9061_v0  ;;  %v1718_v48 = vpop.f32.mrb[97].mxu1  ;;  %v1309_v38 = vpop.f32.mrb[82].mxu0  ;;  %v2085_v56 = vrot.slane %v13371_v52, 2  ;;  %v13372_v54 = vld [vmem:[#allocation42_spill] sm:$0xff] }
 0x1c5   : > { %13368 = vst [vmem:[#allocation13_spill] sm:$0xff] %v9565_v28  ;;  %v9574_v14 = vadd.f32 %v9437_v40, %v1309_v38  ;;  %v1719_v49 = vpop.f32.mrb[98].mxu1  ;;  %v1311_v43 = vpop.f32.mrb[83].mxu0  ;;  %v2250_v28 = vpack.c.bf16 %v2120_v7, %v2121_v10  ;;  %v2086_v48 = vrot.slane %v13372_v54, 2  ;;  %v2213_v40 = vsel %vm13173_vm15, %v2160_v50, %v2161_v31  ;;  %v13373_v10 = vld [vmem:[#allocation40_spill] sm:$0xff] }
 0x1c6   : > { %v9577_v12 = vadd.f32 %v1719_v49, %v13370_v39  ;;  %v1721_v0 = vpop.f32.mrb[99].mxu1  ;;  %v2214_v7 = vsel %vm13173_vm15, %v2159_v37, %v2160_v50  ;;  %v3020_v38 = vsel %vm402_vm9, 1, %v13306_v36  ;;  %v2119_v24 = vsel %vm13068_vm5, %v2084_v27, %v2085_v56  ;;  %v361_v49 = vld [vmem:[%s12905_s1 + $0xa8] sm:$0xff] }
 0x1c7   : > { %13369 = vst [vmem:[#allocation17_spill] sm:$0xff] %v9574_v14  ;;  %7221 = vmatmul.mubr.bf16.gmra.mrb[188].mxu0 %v2241_v32  ;;  %3103 = vperm.xlu1 %7612, %v3020_v38   ;;  %v2118_v32 = vsel %vm13068_vm5, %v2085_v56, %v2086_v48  ;;  %v2243_v39 = vpack.c.bf16 %v2213_v40, %v2214_v7  ;;  %vm403_vm10 = vcmp.gt.f32.partialorder %v361_v49, 0.5  ;;  %v2162_v38 = vrot.slane %v8243_v53, 3  ;;  %v13376_v40 = vld [vmem:[#allocation47_spill] sm:$0xff]  ;;  %v13377_v49 = vld [vmem:[#allocation45_spill] sm:$0xff] }
 0x1c8   : > { %7224 = vmatprep.mubr.msk.bf16.mxu0 %vm7817_vm0, %v13266_v62  ;;  %2570 = vmatmul.mubr.bf16.gmra.mrb[204].mxu1 %v13373_v10  ;;  %v2163_v27 = vrot.slane %v8253_v59, 3  ;;  %v3021_v56 = vsel %vm403_vm10, 1, %v13306_v36  ;;  %v362_v59 = vld [vmem:[%s12905_s1 + $0xb0] sm:$0xff]  ;;  %v2164_v53 = vrot.slane %v13354_v22, 3 }
 0x1c9   : > { %2577 = vmatprep.mubr.bf16.mxu1 %v2250_v28  ;;  %3106 = vperm.xlu0 %7611, %v3021_v56   ;;  %vm404_vm11 = vcmp.gt.f32.partialorder %v362_v59, 0.5  ;;  %v363_v56 = vld [vmem:[%s12905_s1 + $0xb8] sm:$0xff] }
 0x1ca   : > { %v1893_v21 = vpop.f32.mrb[84].mxu0  ;;  %vm405_vm12 = vcmp.gt.f32.partialorder %v363_v56, 0.5 }
 0x1cb   : > { %v1724_v43 = vpop.f32.mrb[100].mxu1  ;;  %v9600_v50 = vadd.f32 %v1893_v21, %v9463_v9  ;;  %v7102_v37 = vpop.f32.mrb[85].mxu0  ;;  %v2252_v21 = vpack.c.bf16 %v2118_v32, %v2119_v24  ;;  %v13379_v32 = vld [vmem:[#allocation44_spill] sm:$0xff]  ;;  %v3022_v24 = vsel %vm404_vm11, 1, %v13306_v36 }
 0x1cc   : > { %v9603_v28 = vadd.f32 %v1724_v43, %v9086_v17  ;;  %v1726_v0 = vpop.f32.mrb[101].mxu1  ;;  %v1896_v10 = vpop.f32.mrb[86].mxu0  ;;  %v2087_v43 = vrot.slane %v13377_v49, 2  ;;  %v13378_v37 = vld [vmem:[#allocation46_spill] sm:$0xff]  ;;  %3109 = vperm.xlu1 %7612, %v3022_v24  }
 0x1cd   : > { %13374 = vst [vmem:[#allocation20_spill] sm:$0xff] %v9600_v50  ;;  %v1727_v15 = vpop.f32.mrb[102].mxu1  ;;  %v9609_v14 = vadd.f32 %v1896_v10, %v9472_v3  ;;  %v7103_v9 = vpop.f32.mrb[87].mxu0  ;;  %v2088_v0 = vrot.slane %v13378_v37, 2  ;;  %v2211_v3 = vsel %vm13173_vm15, %v2162_v38, %v2163_v27 }
 0x1ce   : > { %v9612_v7 = vadd.f32 %v1727_v15, %v13376_v40  ;;  %v1729_v17 = vpop.f32.mrb[103].mxu1  ;;  %v2212_v15 = vsel %vm13173_vm15, %v2161_v31, %v2162_v38  ;;  %v2117_v59 = vsel %vm13068_vm5, %v2086_v48, %v2087_v43  ;;  %v2165_v48 = vrot.slane %v13355_v46, 3 }
 0x1cf   : > { %13375 = vst [vmem:[#allocation23_spill] sm:$0xff] %v9609_v14  ;;  %7225 = vmatmul.mubr.bf16.gmra.mrb[192].mxu0 %v2243_v39  ;;  %v2116_v39 = vsel %vm13068_vm5, %v2087_v43, %v2088_v0  ;;  %v2245_v40 = vpack.c.bf16 %v2211_v3, %v2212_v15  ;;  %v3023_v43 = vsel %vm405_vm12, 1, %v13306_v36  ;;  %v364_v3 = vld [vmem:[%s12905_s1 + $0xc0] sm:$0xff]  ;;  %v13382_v15 = vld [vmem:[#allocation79_spill] sm:$0xff] }
 0x1d0   : > { %7228 = vmatprep.mubr.msk.bf16.mxu0 %vm7817_vm0, %v13266_v62  ;;  %2578 = vmatmul.mubr.bf16.gmra.mrb[208].mxu1 %v13379_v32  ;;  %vm406_vm13 = vcmp.gt.f32.partialorder %v364_v3, 0.5 }
 0x1d1   : > { %2585 = vmatprep.mubr.bf16.mxu1 %v2252_v21  ;;  %v13380_v21 = vld [vmem:[#allocation51_spill] sm:$0xff]  ;;  %3112 = vperm.xlu0 %7611, %v3023_v43  }
 0x1d2   : > { %v1901_v10 = vpop.f32.mrb[88].mxu0 }
 0x1d3   : > { %v1732_v9 = vpop.f32.mrb[104].mxu1  ;;  %v9635_v31 = vadd.f32 %v1901_v10, %v9498_v13  ;;  %v7106_v38 = vpop.f32.mrb[89].mxu0  ;;  %v2254_v10 = vpack.c.bf16 %v2116_v39, %v2117_v59  ;;  %v2209_v39 = vsel %vm13173_vm15, %v2164_v53, %v2165_v48  ;;  %v2210_v59 = vsel %vm13173_vm15, %v2163_v27, %v2164_v53 }
 0x1d4   : > { %v9638_v17 = vadd.f32 %v1732_v9, %v13380_v21  ;;  %v1734_v32 = vpop.f32.mrb[105].mxu1  ;;  %v1904_v24 = vpop.f32.mrb[90].mxu0  ;;  %v13383_v38 = vld [vmem:[#allocation49_spill] sm:$0xff]  ;;  %v2247_v27 = vpack.c.bf16 %v2209_v39, %v2210_v59 }
 0x1d5   : > { %v1735_v14 = vpop.f32.mrb[106].mxu1  ;;  %v9644_v50 = vadd.f32 %v1904_v24, %v9507_v58  ;;  %v7107_v13 = vpop.f32.mrb[91].mxu0  ;;  %v2089_v21 = vrot.slane %v13383_v38, 2  ;;  %v13384_v32 = vld [vmem:[#allocation50_spill] sm:$0xff]  ;;  %v3024_v58 = vsel %vm406_vm13, 1, %v13306_v36 }
 0x1d6   : > { %v9650_v56 = vadd.f32 %v1735_v14, %v13382_v15  ;;  %v1737_v9 = vpop.f32.mrb[107].mxu1  ;;  %v2090_v46 = vrot.slane %v13384_v32, 2  ;;  %v13385_v14 = vld [vmem:[#allocation48_spill] sm:$0xff]  ;;  %3115 = vperm.xlu1 %7612, %v3024_v58   ;;  %v365_v13 = vld [vmem:[%s12905_s1 + $0xc8] sm:$0xff] }
 0x1d7   : > { %13381 = vst [vmem:[#allocation26_spill] sm:$0xff] %v9644_v50  ;;  %7229 = vmatmul.mubr.bf16.gmra.mrb[196].mxu0 %v2245_v40  ;;  %v2115_v40 = vsel %vm13068_vm5, %v2088_v0, %v2089_v21  ;;  %vm407_vm14 = vcmp.gt.f32.partialorder %v365_v13, 0.5  ;;  %v2167_v0 = vrot.slane %v13361_v26, 3  ;;  %v13386_v13 = vld [vmem:[#allocation53_spill] sm:$0xff] }
 0x1d8   : > { %7232 = vmatprep.mubr.msk.bf16.mxu0 %vm7817_vm0, %v13266_v62  ;;  %2586 = vmatmul.mubr.bf16.gmra.mrb[212].mxu1 %v13385_v14  ;;  %v2114_v43 = vsel %vm13068_vm5, %v2089_v21, %v2090_v46  ;;  %v2166_v14 = vrot.slane %v13360_v55, 3  ;;  %v3025_v21 = vsel %vm407_vm14, 1, %v13306_v36 }
 0x1d9   : > { %2593 = vmatprep.mubr.bf16.mxu1 %v2254_v10  ;;  %3118 = vperm.xlu0 %7611, %v3025_v21   ;;  %v367_v21 = vld [vmem:[%s12905_s1 + $0xd8] sm:$0xff] }
 0x1da   : > { %v1909_v24 = vpop.f32.mrb[92].mxu0  ;;  %vm409_vm7 = vcmp.gt.f32.partialorder %v367_v21, 0.5  ;;  %v13389_v21 = vld [vmem:[#allocation57_spill] sm:$0xff] }
 0x1db   : > { %v1740_v3 = vpop.f32.mrb[108].mxu1  ;;  %v9670_v15 = vadd.f32 %v1909_v24, %v9533_v44  ;;  %v7110_v53 = vpop.f32.mrb[93].mxu0  ;;  %v2256_v24 = vpack.c.bf16 %v2114_v43, %v2115_v40  ;;  %v2207_v43 = vsel %vm13173_vm15, %v2166_v14, %v2167_v0  ;;  %v2208_v40 = vsel %vm13173_vm15, %v2165_v48, %v2166_v14 }
 0x1dc   : > { %v9673_v10 = vadd.f32 %v1740_v3, %v9136_v51  ;;  %v1742_v9 = vpop.f32.mrb[109].mxu1  ;;  %v1912_v58 = vpop.f32.mrb[94].mxu0  ;;  %v366_v51 = vld [vmem:[%s12905_s1 + $0xd0] sm:$0xff]  ;;  %v2091_v3 = vrot.slane %v13386_v13, 2  ;;  %v13387_v53 = vld [vmem:[#allocation54_spill] sm:$0xff]  ;;  %v2249_v14 = vpack.c.bf16 %v2207_v43, %v2208_v40 }
 0x1dd   : > { %v1743_v22 = vpop.f32.mrb[110].mxu1  ;;  %v9679_v50 = vadd.f32 %v1912_v58, %v9542_v29  ;;  %v7111_v44 = vpop.f32.mrb[95].mxu0  ;;  %v2092_v9 = vrot.slane %v13387_v53, 2  ;;  %vm408_vm6 = vcmp.gt.f32.partialorder %v366_v51, 0.5 }
 0x1de   : > { %v9685_v39 = vadd.f32 %v1743_v22, %v9141_v23  ;;  %v1745_v59 = vpop.f32.mrb[111].mxu1  ;;  %v3026_v29 = vsel %vm408_vm6, 1, %v13306_v36  ;;  %v13388_v23 = vld [vmem:[#allocation52_spill] sm:$0xff] }
 0x1df   : > { %7233 = vmatmul.mubr.bf16.gmra.mrb[200].mxu0 %v2247_v27  ;;  %3121 = vperm.xlu1 %7612, %v3026_v29   ;;  %v2112_v58 = vsel %vm13068_vm5, %v2091_v3, %v2092_v9  ;;  %v2113_v27 = vsel %vm13068_vm5, %v2090_v46, %v2091_v3  ;;  %v2169_v46 = vrot.slane %v13366_v35, 3  ;;  %v3027_v3 = vsel %vm409_vm7, 1, %v13306_v36 }
 0x1e0   : > { %7236 = vmatprep.mubr.msk.bf16.mxu0 %vm7817_vm0, %v13266_v62  ;;  %2594 = vmatmul.mubr.bf16.gmra.mrb[216].mxu1 %v13388_v23  ;;  %v2168_v23 = vrot.slane %v13365_v11, 3  ;;  %v2170_v35 = vrot.slane %v13371_v52, 3 }
 0x1e1   : > { %2601 = vmatprep.mubr.bf16.mxu1 %v2256_v24  ;;  %3124 = vperm.xlu0 %7611, %v3027_v3  }
 0x1e2   : > { %v1917_v22 = vpop.f32.mrb[96].mxu0 }
 0x1e3   : > { %v1748_v44 = vpop.f32.mrb[112].mxu1  ;;  %v9705_v51 = vadd.f32 %v1917_v22, %v9568_v4  ;;  %v7114_v48 = vpop.f32.mrb[97].mxu0  ;;  %v2258_v22 = vpack.c.bf16 %v2112_v58, %v2113_v27  ;;  %v2205_v58 = vsel %vm13173_vm15, %v2168_v23, %v2169_v46  ;;  %v2206_v27 = vsel %vm13173_vm15, %v2167_v0, %v2168_v23 }
 0x1e4   : > { %v9708_v24 = vadd.f32 %v1748_v44, %v9161_v42  ;;  %v1750_v59 = vpop.f32.mrb[113].mxu1  ;;  %v1920_v29 = vpop.f32.mrb[98].mxu0  ;;  %v368_v42 = vld [vmem:[%s12905_s1 + $0xe0] sm:$0xff]  ;;  %v2093_v44 = vrot.slane %v13389_v21, 2 }
 0x1e5   : > { %v1751_v26 = vpop.f32.mrb[114].mxu1  ;;  %v9714_v55 = vadd.f32 %v1920_v29, %v9577_v12  ;;  %v7115_v4 = vpop.f32.mrb[99].mxu0  ;;  %v13390_v48 = vld [vmem:[#allocation58_spill] sm:$0xff]  ;;  %vm410_vm8 = vcmp.gt.f32.partialorder %v368_v42, 0.5  ;;  %v2251_v42 = vpack.c.bf16 %v2205_v58, %v2206_v27 }
 0x1e6   : > { %v9720_v43 = vadd.f32 %v1751_v26, %v9166_v34  ;;  %v1753_v40 = vpop.f32.mrb[115].mxu1  ;;  %v2094_v59 = vrot.slane %v13390_v48, 2  ;;  %v3028_v12 = vsel %vm410_vm8, 1, %v13306_v36  ;;  %v13391_v34 = vld [vmem:[#allocation56_spill] sm:$0xff]  ;;  %v7706_v26 = vld [vmem:[%s12908_s4 + $0x140] sm:$0xff]   ;;  %v2111_v3 = vsel %vm13068_vm5, %v2092_v9, %v2093_v44  ;;  %v369_v4 = vld [vmem:[%s12905_s1 + $0xe8] sm:$0xff] }
 0x1e7   : > { %7237 = vmatmul.mubr.bf16.gmra.mrb[204].mxu0 %v2249_v14  ;;  %3127 = vperm.xlu1 %7612, %v3028_v12   ;;  %vm411_vm9 = vcmp.gt.f32.partialorder %v369_v4, 0.5  ;;  %v2171_v9 = vrot.slane %v13372_v54, 3 }
 0x1e8   : > { %7240 = vmatprep.mubr.msk.bf16.mxu0 %vm7817_vm0, %v13266_v62  ;;  %2602 = vmatmul.mubr.bf16.gmra.mrb[220].mxu1 %v13391_v34  ;;  %v2110_v29 = vsel %vm13068_vm5, %v2093_v44, %v2094_v59  ;;  %v3029_v44 = vsel %vm411_vm9, 1, %v13306_v36 }
 0x1e9   : > { %2609 = vmatprep.mubr.bf16.mxu1 %v2258_v22  ;;  %7285 = vmatpush3.bf16.msra.mxu0 %v7706_v26  ;;  %v2260_v27 = vpack.c.bf16 %v2110_v29, %v2111_v3  ;;  %v370_v26 = vld [vmem:[%s12905_s1 + $0xf0] sm:$0xff]  ;;  %v2203_v3 = vsel %vm13173_vm15, %v2170_v35, %v2171_v9 }
 0x1ea   : > { %v1925_v14 = vpop.f32.mrb[100].mxu0  ;;  %7286 = vmatprep.subr.bf16.mxu0 %v13266_v62  ;;  %3130 = vperm.xlu0 %7611, %v3029_v44   ;;  %vm412_vm10 = vcmp.gt.f32.partialorder %v370_v26, 0.5 }
 0x1eb   : > { %v1756_v0 = vpop.f32.mrb[116].mxu1  ;;  %v9743_v23 = vadd.f32 %v1925_v14, %v9603_v28  ;;  %v7118_v22 = vpop.f32.mrb[101].mxu0  ;;  %v3030_v29 = vsel %vm412_vm10, 1, %v13306_v36 }
 0x1ec   : > { %v9746_v40 = vadd.f32 %v1756_v0, %v9186_v63  ;;  %v1758_v12 = vpop.f32.mrb[117].mxu1  ;;  %v1928_v34 = vpop.f32.mrb[102].mxu0  ;;  %v7707_v63 = vld [vmem:[%s12908_s4 + $0x148] sm:$0xff]   ;;  %v13392_v0 = vld [vmem:[#allocation61_spill] sm:$0xff]  ;;  %3133 = vperm.xlu1 %7612, %v3030_v29  }
 0x1ed   : > { %v1759_v11 = vpop.f32.mrb[118].mxu1  ;;  %v9753_v28 = vadd.f32 %v1928_v34, %v9612_v7  ;;  %v7119_v58 = vpop.f32.mrb[103].mxu0  ;;  %v2095_v22 = vrot.slane %v13392_v0, 2  ;;  %v2096_v7 = vrot.slane %v8560_v60, 2  ;;  %v2204_v12 = vsel %vm13173_vm15, %v2169_v46, %v2170_v35  ;;  %7287 = vmatpush3.bf16.msra.mxu0 %v7707_v63  ;;  %v371_v35 = vld [vmem:[%s12905_s1 + $0xf8] sm:$0xff] }
 0x1ee   : > { %v9762_v14 = vadd.f32 %v1759_v11, %v9191_v30  ;;  %v1761_v4 = vpop.f32.mrb[119].mxu1  ;;  %v13393_v30 = vld [vmem:[#allocation60_spill] sm:$0xff]  ;;  %7288 = vmatprep.subr.bf16.mxu0 %v13266_v62  ;;  %v2253_v63 = vpack.c.bf16 %v2203_v3, %v2204_v12  ;;  %vm413_vm11 = vcmp.gt.f32.partialorder %v371_v35, 0.5  ;;  %v13395_v35 = vld [vmem:[#allocation65_spill] sm:$0xff] }
 0x1ef   : > { %7241 = vmatmul.mubr.bf16.gmra.mrb[208].mxu0 %v2251_v42  ;;  %v7708_v11 = vld [vmem:[%s12908_s4 + $0x150] sm:$0xff]   ;;  %v2108_v34 = vsel %vm13068_vm5, %v2095_v22, %v2096_v7  ;;  %v2109_v44 = vsel %vm13068_vm5, %v2094_v59, %v2095_v22  ;;  %v2172_v59 = vrot.slane %v13377_v49, 3  ;;  %v2173_v22 = vrot.slane %v13378_v37, 3 }
 0x1f0   : > { %7244 = vmatprep.mubr.msk.bf16.mxu0 %vm7817_vm0, %v13266_v62  ;;  %2610 = vmatmul.mubr.bf16.gmra.mrb[224].mxu1 %v13393_v30  ;;  %v3031_v29 = vsel %vm413_vm11, 1, %v13306_v36 }
 0x1f1   : > { %2617 = vmatprep.mubr.bf16.mxu1 %v2260_v27  ;;  %7289 = vmatpush3.bf16.msra.mxu0 %v7708_v11  ;;  %v2202_v11 = vsel %vm13173_vm15, %v2171_v9, %v2172_v59 }
 0x1f2   : > { %v1933_v42 = vpop.f32.mrb[104].mxu0  ;;  %3136 = vperm.xlu0 %7611, %v3031_v29   ;;  %7290 = vmatprep.subr.bf16.mxu0 %v13266_v62 }
 0x1f3   : > { %v1764_v46 = vpop.f32.mrb[120].mxu1  ;;  %v9786_v58 = vadd.f32 %v1933_v42, %v9638_v17  ;;  %v7122_v27 = vpop.f32.mrb[105].mxu0  ;;  %v2262_v42 = vpack.c.bf16 %v2108_v34, %v2109_v44  ;;  %v13397_v34 = vld [vmem:[#allocation64_spill] sm:$0xff] }
 0x1f4   : > { %v9789_v26 = vadd.f32 %v1764_v46, %v9212_v25  ;;  %v1766_v4 = vpop.f32.mrb[121].mxu1  ;;  %v1936_v30 = vpop.f32.mrb[106].mxu0  ;;  %v7709_v25 = vld [vmem:[%s12908_s4 + $0x158] sm:$0xff]   ;;  %v2097_v46 = vrot.slane %v13395_v35, 2  ;;  %v13396_v27 = vld [vmem:[#allocation66_spill] sm:$0xff] }
 0x1f5   : > { %v1767_v54 = vpop.f32.mrb[122].mxu1  ;;  %v9795_v52 = vadd.f32 %v1936_v30, %v9650_v56  ;;  %v7123_v17 = vpop.f32.mrb[107].mxu0  ;;  %v2098_v4 = vrot.slane %v13396_v27, 2  ;;  %v2201_v56 = vsel %vm13173_vm15, %v2172_v59, %v2173_v22  ;;  %7291 = vmatpush3.bf16.msra.mxu0 %v7709_v25  ;;  %v373_v59 = vld [vmem:[%s12905_s1 + $0x108] sm:$0xff] }
 0x1f6   : > { %v9801_v3 = vadd.f32 %v1767_v54, %v9217_v5  ;;  %v1769_v12 = vpop.f32.mrb[123].mxu1  ;;  %v372_v5 = vld [vmem:[%s12905_s1 + $0x100] sm:$0xff]  ;;  %v2107_v9 = vsel %vm13068_vm5, %v2096_v7, %v2097_v46  ;;  %7292 = vmatprep.subr.bf16.mxu0 %v13266_v62  ;;  %v2255_v25 = vpack.c.bf16 %v2201_v56, %v2202_v11  ;;  %vm415_vm13 = vcmp.gt.f32.partialorder %v373_v59, 0.5 }
 0x1f7   : > { %13394 = vst [vmem:[#allocation77_spill] sm:$0xff] %v9795_v52  ;;  %7245 = vmatmul.mubr.bf16.gmra.mrb[212].mxu0 %v2253_v63  ;;  %vm414_vm12 = vcmp.gt.f32.partialorder %v372_v5, 0.5  ;;  %v7710_v54 = vld [vmem:[%s12908_s4 + $0x160] sm:$0xff]   ;;  %v2106_v63 = vsel %vm13068_vm5, %v2097_v46, %v2098_v4  ;;  %v2175_v5 = vrot.slane %v13384_v32, 3  ;;  %v3033_v37 = vsel %vm415_vm13, 1, %v13306_v36 }
 0x1f8   : > { %7248 = vmatprep.mubr.msk.bf16.mxu0 %vm7817_vm0, %v13266_v62  ;;  %2618 = vmatmul.mubr.bf16.gmra.mrb[228].mxu1 %v13397_v34  ;;  %v3032_v30 = vsel %vm414_vm12, 1, %v13306_v36  ;;  %v2174_v34 = vrot.slane %v13383_v38, 3  ;;  %v13426_v38 = vld [vmem:[#allocation20_spill] sm:$0xff] }
 0x1f9   : > { %2625 = vmatprep.mubr.bf16.mxu1 %v2262_v42  ;;  %3139 = vperm.xlu1 %7612, %v3032_v30   ;;  %v13398_v30 = vld [vmem:[#allocation69_spill] sm:$0xff] }
 0x1fa   : > { %v1941_v44 = vpop.f32.mrb[108].mxu0  ;;  %7293 = vmatpush3.bf16.msra.mxu0 %v7710_v54  ;;  %3142 = vperm.xlu0 %7611, %v3033_v37   ;;  %v2099_v59 = vrot.slane %v13398_v30, 2  ;;  %v2199_v37 = vsel %vm13173_vm15, %v2174_v34, %v2175_v5  ;;  %v13400_v54 = vld [vmem:[#allocation68_spill] sm:$0xff] }
 0x1fb   : > { %v1772_v29 = vpop.f32.mrb[124].mxu1  ;;  %v9829_v17 = vadd.f32 %v1941_v44, %v9673_v10  ;;  %v7126_v42 = vpop.f32.mrb[109].mxu0  ;;  %v2264_v44 = vpack.c.bf16 %v2106_v63, %v2107_v9  ;;  %7294 = vmatprep.subr.bf16.mxu0 %v13266_v62  ;;  %v7713_v63 = vld [vmem:[%s12908_s4 + $0x170] sm:$0xff]  }
 0x1fc   : > { %v9832_v12 = vadd.f32 %v1772_v29, %v9242_v61  ;;  %v1774_v7 = vpop.f32.mrb[125].mxu1  ;;  %v1944_v46 = vpop.f32.mrb[110].mxu0  ;;  %v7712_v61 = vld [vmem:[%s12908_s4 + $0x168] sm:$0xff]   ;;  %v13399_v29 = vld [vmem:[#allocation70_spill] sm:$0xff] }
 0x1fd   : > { %v1775_v49 = vpop.f32.mrb[126].mxu1  ;;  %v9838_v52 = vadd.f32 %v1944_v46, %v9685_v39  ;;  %v7127_v10 = vpop.f32.mrb[111].mxu0  ;;  %v2100_v42 = vrot.slane %v13399_v29, 2  ;;  %v2200_v39 = vsel %vm13173_vm15, %v2173_v22, %v2174_v34  ;;  %v375_v46 = vld [vmem:[%s12905_s1 + $0x118] sm:$0xff] }
 0x1fe   : > { %v9844_v56 = vadd.f32 %v1775_v49, %v9247_v8  ;;  %v1777_v11 = vpop.f32.mrb[127].mxu1  ;;  %v7711_v8 = vld [vmem:[%s12908_s4 + $0xc0] sm:$0xff]   ;;  %v374_v49 = vld [vmem:[%s12905_s1 + $0x110] sm:$0xff]  ;;  %7295 = vmatpush3.bf16.msra.mxu0 %v7712_v61  ;;  %v2257_v61 = vpack.c.bf16 %v2199_v37, %v2200_v39  ;;  %vm417_vm6 = vcmp.gt.f32.partialorder %v375_v46, 0.5 }
 0x1ff   : > { %7249 = vmatmul.mubr.bf16.gmra.mrb[216].mxu0 %v2255_v25  ;;  %vm416_vm14 = vcmp.gt.f32.partialorder %v374_v49, 0.5  ;;  %v2104_v22 = vsel %vm13068_vm5, %v2099_v59, %v2100_v42  ;;  %v2105_v25 = vsel %vm13068_vm5, %v2098_v4, %v2099_v59  ;;  %3935 = vmatpush1.bf16.msra.mxu1 %v7711_v8  ;;  %v2177_v8 = vrot.slane %v13387_v53, 3 }
 0x200   : > { %7252 = vmatprep.mubr.msk.bf16.mxu0 %vm7817_vm0, %v13266_v62  ;;  %2626 = vmatmul.mubr.bf16.gmra.mrb[232].mxu1 %v13400_v54  ;;  %v3034_v7 = vsel %vm416_vm14, 1, %v13306_v36  ;;  %v2176_v54 = vrot.slane %v13386_v13, 3  ;;  %v3035_v49 = vsel %vm417_vm6, 1, %v13306_v36  ;;  %v2266_v39 = vpack.c.bf16 %v2104_v22, %v2105_v25  ;;  %v13404_v22 = vld [vmem:[#allocation72_spill] sm:$0xff] }
 0x201   : > { %2633 = vmatprep.mubr.bf16.mxu1 %v2264_v44  ;;  %7296 = vmatprep.subr.bf16.mxu0 %v13266_v62 }
 0x202   : > { %v1949_v9 = vpop.f32.mrb[112].mxu0  ;;  %3145 = vperm.xlu1 %7612, %v3034_v7   ;;  %3936 = vmatprep.subr.bf16.mxu1 %v13306_v36 }
 0x203   : > { %v1780_v34 = vpop.f32.mrb[128].mxu1  ;;  %v9875_v10 = vadd.f32 %v1949_v9, %v9708_v24  ;;  %v7130_v44 = vpop.f32.mrb[113].mxu0  ;;  %7297 = vmatpush3.bf16.msra.mxu0 %v7713_v63  ;;  %3148 = vperm.xlu0 %7611, %v3035_v49   ;;  %v13401_v9 = vld [vmem:[#allocation55_spill] sm:$0xff]  ;;  %v2198_v63 = vsel %vm13173_vm15, %v2175_v5, %v2176_v54  ;;  %v376_v49 = vld [vmem:[%s12905_s1 + $0x120] sm:$0xff] }
 0x204   : > { %v9879_v4 = vadd.f32 %v1780_v34, %v9268_v33  ;;  %v1782_v11 = vpop.f32.mrb[129].mxu1  ;;  %v1952_v59 = vpop.f32.mrb[114].mxu0  ;;  %v7714_v33 = vld [vmem:[%s12908_s4 + $0x178] sm:$0xff]   ;;  %v13402_v34 = vld [vmem:[#allocation2_spill] sm:$0xff]  ;;  %7298 = vmatprep.subr.bf16.mxu0 %v13266_v62  ;;  %vm418_vm7 = vcmp.gt.f32.partialorder %v376_v49, 0.5 }
 0x205   : > { %v1783_v32 = vpop.f32.mrb[130].mxu1  ;;  %v9885_v24 = vadd.f32 %v1952_v59, %v9720_v43  ;;  %v7131_v37 = vpop.f32.mrb[115].mxu0  ;;  %v2060_v44 = vrot.slane %v13402_v34, 2  ;;  %v13403_v11 = vld [vmem:[#allocation14_spill] sm:$0xff]  ;;  %v2197_v43 = vsel %vm13173_vm15, %v2176_v54, %v2177_v8  ;;  %v7715_v59 = vld [vmem:[%s12908_s4 + $0xc8] sm:$0xff]  }
 0x206   : > { %v9891_v7 = vadd.f32 %v1783_v32, %v13401_v9  ;;  %v1785_v46 = vpop.f32.mrb[131].mxu1  ;;  %v2101_v53 = vrot.slane %v13403_v11, 2  ;;  %v2178_v9 = vrot.slane %v13389_v21, 3  ;;  %3937 = vmatpush1.bf16.msra.mxu1 %v7715_v59 }
 0x207   : > { %7253 = vmatmul.mubr.bf16.gmra.mrb[220].mxu0 %v2257_v61  ;;  %v2179_v46 = vrot.slane %v13390_v48, 3  ;;  %3938 = vmatprep.subr.bf16.mxu1 %v13306_v36 }
 0x208   : > { %7256 = vmatprep.mubr.msk.bf16.mxu0 %vm7817_vm0, %v13266_v62  ;;  %2634 = vmatmul.mubr.bf16.gmra.mrb[236].mxu1 %v13404_v22  ;;  %v2103_v25 = vsel %vm13068_vm5, %v2100_v42, %v2101_v53  ;;  %v2144_v61 = vsel %vm13068_vm5, %v2101_v53, %v2060_v44  ;;  %v3036_v22 = vsel %vm418_vm7, 1, %v13306_v36 }
 0x209   : > { %2641 = vmatprep.mubr.bf16.mxu1 %v2266_v39  ;;  %7299 = vmatpush3.bf16.msra.mxu0 %v7714_v33  ;;  %v2259_v39 = vpack.c.bf16 %v2197_v43, %v2198_v63 }
 0x20a   : > { %v1957_v32 = vpop.f32.mrb[116].mxu0  ;;  %7384 = vmatprep.subr.bf16.mxu0 %v13266_v62  ;;  %3151 = vperm.xlu1 %7612, %v3036_v22  }
 0x20b   : > { %v1788_v5 = vpop.f32.mrb[132].mxu1  ;;  %v9915_v54 = vadd.f32 %v1957_v32, %v9746_v40  ;;  %v7134_v37 = vpop.f32.mrb[117].mxu0  ;;  %v377_v40 = vld [vmem:[%s12905_s1 + $0x128] sm:$0xff] }
 0x20c   : > { %v9918_v42 = vadd.f32 %v1788_v5, %v9300_v1  ;;  %v1790_v53 = vpop.f32.mrb[133].mxu1  ;;  %v1960_v33 = vpop.f32.mrb[118].mxu0  ;;  %v2268_v1 = vpack.c.bf16 %v2144_v61, %v2103_v25  ;;  %vm419_vm8 = vcmp.gt.f32.partialorder %v377_v40, 0.5  ;;  %v13405_v5 = vld [vmem:[#allocation3_spill] sm:$0xff]  ;;  %v2196_v25 = vsel %vm13173_vm15, %v2177_v8, %v2178_v9  ;;  %v13406_v61 = vld [vmem:[#allocation74_spill] sm:$0xff]  ;;  %v378_v40 = vld [vmem:[%s12905_s1 + $0x130] sm:$0xff] }
 0x20d   : > { %v1791_v32 = vpop.f32.mrb[134].mxu1  ;;  %v9927_v43 = vadd.f32 %v1960_v33, %v9762_v14  ;;  %v7135_v63 = vpop.f32.mrb[119].mxu0  ;;  %v2061_v37 = vrot.slane %v13405_v5, 2  ;;  %v3037_v53 = vsel %vm419_vm8, 1, %v13306_v36  ;;  %v2195_v14 = vsel %vm13173_vm15, %v2178_v9, %v2179_v46 }
 0x20e   : > { %v9931_v49 = vadd.f32 %v1791_v32, %v9306_v57  ;;  %v1793_v59 = vpop.f32.mrb[135].mxu1  ;;  %3154 = vperm.xlu0 %7611, %v3037_v53   ;;  %v13407_v33 = vrot.slane %v7931_v19, 2  ;;  %v2261_v9 = vpack.c.bf16 %v2195_v14, %v2196_v25  ;;  %vm420_vm9 = vcmp.gt.f32.partialorder %v378_v40, 0.5  ;;  %v13409_v14 = vld [vmem:[#allocation63_spill] sm:$0xff] }
 0x20f   : > { %7257 = vmatmul.mubr.bf16.gmra.mrb[224].mxu0 %v2259_v39  ;;  %v2143_v39 = vsel %vm13068_vm5, %v2060_v44, %v2061_v37  ;;  %v2181_v44 = vrot.slane %v8560_v60, 3 }
 0x210   : > { %7260 = vmatprep.mubr.msk.bf16.mxu0 %vm7817_vm0, %v13266_v62  ;;  %2642 = vmatmul.mubr.bf16.gmra.mrb[240].mxu1 %v13406_v61  ;;  %v2142_v22 = vsel %vm13068_vm5, %v2061_v37, %v13407_v33  ;;  %v2180_v33 = vrot.slane %v13392_v0, 3  ;;  %v3038_v37 = vsel %vm420_vm9, 1, %v13306_v36 }
 0x211   : > { %2649 = vmatprep.mubr.bf16.mxu1 %v2268_v1  ;;  %v13408_v1 = vld [vmem:[#allocation59_spill] sm:$0xff]  ;;  %3157 = vperm.xlu1 %7612, %v3038_v37  }
 0x212   : > { %v1965_v57 = vpop.f32.mrb[120].mxu0 }
 0x213   : > { %v1796_v32 = vpop.f32.mrb[136].mxu1  ;;  %v9952_v63 = vadd.f32 %v1965_v57, %v9789_v26  ;;  %v7138_v8 = vpop.f32.mrb[121].mxu0  ;;  %v2270_v57 = vpack.c.bf16 %v2142_v22, %v2143_v39  ;;  %v2194_v22 = vsel %vm13173_vm15, %v2179_v46, %v2180_v33  ;;  %v13410_v39 = vld [vmem:[#allocation76_spill] sm:$0xff] }
 0x214   : > { %v9955_v59 = vadd.f32 %v1796_v32, %v13408_v1  ;;  %v1798_v53 = vpop.f32.mrb[137].mxu1  ;;  %v1968_v61 = vpop.f32.mrb[122].mxu0  ;;  %v379_v32 = vld [vmem:[%s12905_s1 + $0x138] sm:$0xff] }
 0x215   : > { %v1799_v48 = vpop.f32.mrb[138].mxu1  ;;  %v9961_v21 = vadd.f32 %v1968_v61, %v9801_v3  ;;  %v7139_v26 = vpop.f32.mrb[123].mxu0  ;;  %vm421_vm10 = vcmp.gt.f32.partialorder %v379_v32, 0.5  ;;  %v2193_v3 = vsel %vm13173_vm15, %v2180_v33, %v2181_v44  ;;  %v380_v32 = vld [vmem:[%s12905_s1 + $0x140] sm:$0xff] }
 0x216   : > { %v9964_v25 = vadd.f32 %v1799_v48, %v13409_v14  ;;  %v1801_v40 = vpop.f32.mrb[139].mxu1  ;;  %v3039_v48 = vsel %vm421_vm10, 1, %v13306_v36  ;;  %v2263_v37 = vpack.c.bf16 %v2193_v3, %v2194_v22  ;;  %v13411_v26 = vld [vmem:[#allocation67_spill] sm:$0xff]  ;;  %vm422_vm11 = vcmp.gt.f32.partialorder %v380_v32, 0.5 }
 0x217   : > { %7261 = vmatmul.mubr.bf16.gmra.mrb[228].mxu0 %v2261_v9  ;;  %3160 = vperm.xlu0 %7611, %v3039_v48   ;;  %v7716_v9 = vld [vmem:[%s12908_s4 + $0xd0] sm:$0xff]   ;;  %v2182_v40 = vrot.slane %v13395_v35, 3  ;;  %v13412_v3 = vld [vmem:[#allocation71_spill] sm:$0xff] }
 0x218   : > { %7264 = vmatprep.mubr.msk.bf16.mxu0 %vm7817_vm0, %v13266_v62  ;;  %2650 = vmatmul.mubr.bf16.gmra.mrb[244].mxu1 %v13410_v39 }
 0x219   : > { %2657 = vmatprep.mubr.bf16.mxu1 %v2270_v57  ;;  %v2183_v57 = vrot.slane %v13396_v27, 3  ;;  %3939 = vmatpush1.bf16.msra.mxu1 %v7716_v9 }
 0x21a   : > { %v1973_v8 = vpop.f32.mrb[124].mxu0  ;;  %3940 = vmatprep.subr.bf16.mxu1 %v13306_v36 }
 0x21b   : > { %v1804_v1 = vpop.f32.mrb[140].mxu1  ;;  %v9981_v53 = vadd.f32 %v1973_v8, %v9832_v12  ;;  %v7142_v61 = vpop.f32.mrb[125].mxu0  ;;  %v2191_v9 = vsel %vm13173_vm15, %v2182_v40, %v2183_v57 }
 0x21c   : > { %v9984_v14 = vadd.f32 %v1804_v1, %v13411_v26  ;;  %v1806_v46 = vpop.f32.mrb[141].mxu1  ;;  %v1976_v33 = vpop.f32.mrb[126].mxu0  ;;  %v3040_v1 = vsel %vm422_vm11, 1, %v13306_v36  ;;  %v13413_v61 = vld [vmem:[#allocation7_spill] sm:$0xff] }
 0x21d   : > { %v1807_v39 = vpop.f32.mrb[142].mxu1  ;;  %v9992_v12 = vadd.f32 %v1976_v33, %v9844_v56  ;;  %v7143_v48 = vpop.f32.mrb[127].mxu0  ;;  %3163 = vperm.xlu1 %7612, %v3040_v1   ;;  %v2192_v56 = vsel %vm13173_vm15, %v2181_v44, %v2182_v40  ;;  %v2185_v1 = vrot.slane %v13399_v29, 3  ;;  %v7722_v29 = vld [vmem:[%s12908_s4 + $0x100] sm:$0xff]  }
 0x21e   : > { %v9996_v22 = vadd.f32 %v1807_v39, %v13412_v3  ;;  %v1809_v8 = vpop.f32.mrb[143].mxu1  ;;  %v2265_v39 = vpack.c.bf16 %v2191_v9, %v2192_v56 }
 0x21f   : > { %7265 = vmatmul.mubr.bf16.gmra.mrb[232].mxu0 %v2263_v37  ;;  %v2184_v8 = vrot.slane %v13398_v30, 3 }
 0x220   : > { %7268 = vmatprep.mubr.msk.bf16.mxu0 %vm7817_vm0, %v13266_v62  ;;  %2658 = vmatmul.mubr.bf16.gmra.mrb[248].mxu1 %v13413_v61 }
 0x221   : > { %v2189_v56 = vsel %vm13173_vm15, %v2184_v8, %v2185_v1 }
 0x222   : > { %v1981_v26 = vpop.f32.mrb[128].mxu0 }
 0x223   : > { %v1812_v46 = vpop.f32.mrb[144].mxu1  ;;  %v10007_v33 = vadd.f32 %v1981_v26, %v9879_v4  ;;  %v7146_v32 = vpop.f32.mrb[129].mxu0  ;;  %v7717_v4 = vld [vmem:[%s12908_s4 + $0xd8] sm:$0xff]  }
 0x224   : > { %v10010_v37 = vadd.f32 %v1812_v46, %v9394_v6  ;;  %v1814_v48 = vpop.f32.mrb[145].mxu1  ;;  %v1984_v3 = vpop.f32.mrb[130].mxu0  ;;  %3941 = vmatpush1.bf16.msra.mxu1 %v7717_v4 }
 0x225   : > { %v1815_v27 = vpop.f32.mrb[146].mxu1  ;;  %v10015_v44 = vadd.f32 %v1984_v3, %v9891_v7  ;;  %v7147_v40 = vpop.f32.mrb[131].mxu0  ;;  %v2190_v7 = vsel %vm13173_vm15, %v2183_v57, %v2184_v8  ;;  %3942 = vmatprep.subr.bf16.mxu1 %v13306_v36  ;;  %v2145_v3 = vrot.slane %v13402_v34, 3  ;;  %v13427_v34 = vld [vmem:[#allocation23_spill] sm:$0xff] }
 0x226   : > { %v10021_v9 = vadd.f32 %v1815_v27, %v9402_v18  ;;  %v1817_v6 = vpop.f32.mrb[147].mxu1  ;;  %v2267_v27 = vpack.c.bf16 %v2189_v56, %v2190_v7  ;;  %v2186_v40 = vrot.slane %v13403_v11, 3 }
 0x227   : > { %7269 = vmatmul.mubr.bf16.gmra.mrb[236].mxu0 %v2265_v39 }
 0x228   : > { %7272 = vmatprep.mubr.msk.bf16.mxu0 %vm7817_vm0, %v13266_v62  ;;  %v2188_v56 = vsel %vm13173_vm15, %v2185_v1, %v2186_v40 }
 0x22a   : > { %v1989_v61 = vpop.f32.mrb[132].mxu0 }
 0x22b   : > { %v1820_v26 = vpop.f32.mrb[148].mxu1  ;;  %v10031_v46 = vadd.f32 %v1989_v61, %v9918_v42  ;;  %v7150_v18 = vpop.f32.mrb[133].mxu0  ;;  %v7718_v42 = vld [vmem:[%s12908_s4 + $0xe0] sm:$0xff]  }
 0x22c   : > { %v10034_v32 = vadd.f32 %v1820_v26, %v9427_v16  ;;  %v1822_v39 = vpop.f32.mrb[149].mxu1  ;;  %v1992_v48 = vpop.f32.mrb[134].mxu0  ;;  %3943 = vmatpush1.bf16.msra.mxu1 %v7718_v42  ;;  %v13414_v42 = vld [vmem:[#allocation73_spill] sm:$0xff] }
 0x22d   : > { %v1823_v4 = vpop.f32.mrb[150].mxu1  ;;  %v10039_v57 = vadd.f32 %v1992_v48, %v9931_v49  ;;  %v7151_v8 = vpop.f32.mrb[135].mxu0  ;;  %v2229_v49 = vsel %vm13173_vm15, %v2186_v40, %v2145_v3  ;;  %3944 = vmatprep.subr.bf16.mxu1 %v13306_v36 }
 0x22e   : > { %v10045_v6 = vadd.f32 %v1823_v4, %v9435_v47  ;;  %v1825_v16 = vpop.f32.mrb[151].mxu1  ;;  %v2269_v18 = vpack.c.bf16 %v2229_v49, %v2188_v56  ;;  %v2146_v4 = vrot.slane %v13405_v5, 3 }
 0x22f   : > { %7273 = vmatmul.mubr.bf16.gmra.mrb[240].mxu0 %v2267_v27 }
 0x230   : > { %7276 = vmatprep.mubr.msk.bf16.mxu0 %vm7817_vm0, %v13266_v62  ;;  %v2228_v56 = vsel %vm13173_vm15, %v2145_v3, %v2146_v4 }
 0x232   : > { %v1997_v7 = vpop.f32.mrb[136].mxu0 }
 0x233   : > { %v1828_v61 = vpop.f32.mrb[152].mxu1  ;;  %v10055_v26 = vadd.f32 %v1997_v7, %v9955_v59  ;;  %v7154_v47 = vpop.f32.mrb[137].mxu0  ;;  %v13415_v59 = vrot.slane %v7931_v19, 3 }
 0x234   : > { %v1829_v27 = vadd.f32 %v1828_v61, %v9460_v2  ;;  %v1830_v39 = vpop.f32.mrb[153].mxu1  ;;  %v2000_v48 = vpop.f32.mrb[138].mxu0 }
 0x235   : > { %v1831_v8 = vpop.f32.mrb[154].mxu1  ;;  %v10060_v1 = vadd.f32 %v2000_v48, %v9964_v25  ;;  %v7155_v40 = vpop.f32.mrb[139].mxu0  ;;  %v2227_v2 = vsel %vm13173_vm15, %v2146_v4, %v13415_v59  ;;  %v7719_v25 = vld [vmem:[%s12908_s4 + $0xe8] sm:$0xff]  }
 0x236   : > { %v1832_v16 = vadd.f32 %v1831_v8, %v13414_v42  ;;  %v1833_v11 = vpop.f32.mrb[155].mxu1  ;;  %v2271_v47 = vpack.c.bf16 %v2227_v2, %v2228_v56  ;;  %3945 = vmatpush1.bf16.msra.mxu1 %v7719_v25  ;;  %v13417_v25 = vld [vmem:[#allocation10_spill] sm:$0xff] }
 0x237   : > { %7277 = vmatmul.mubr.bf16.gmra.mrb[244].mxu0 %v2269_v18  ;;  %v13416_v18 = vld [vmem:[#allocation75_spill] sm:$0xff]  ;;  %3946 = vmatprep.subr.bf16.mxu1 %v13306_v36 }
 0x238   : > { %7280 = vmatprep.mubr.msk.bf16.mxu0 %vm7817_vm0, %v13266_v62 }
 0x23a   : > { %v2005_v49 = vpop.f32.mrb[140].mxu0 }
 0x23b   : > { %v1836_v7 = vpop.f32.mrb[156].mxu1  ;;  %v10075_v11 = vadd.f32 %v2005_v49, %v9984_v14  ;;  %v7158_v61 = vpop.f32.mrb[141].mxu0 }
 0x23c   : > { %v1837_v39 = vadd.f32 %v1836_v7, %v13416_v18  ;;  %v1838_v48 = vpop.f32.mrb[157].mxu1  ;;  %v2008_v8 = vpop.f32.mrb[142].mxu0 }
 0x23d   : > { %v1839_v40 = vpop.f32.mrb[158].mxu1  ;;  %v10079_v42 = vadd.f32 %v2008_v8, %v9996_v22  ;;  %v7159_v3 = vpop.f32.mrb[143].mxu0 }
 0x23e   : > { %v1840_v4 = vadd.f32 %v1839_v40, %v9504_v45  ;;  %v1841_v59 = vpop.f32.mrb[159].mxu1 }
 0x23f   : > { %7281 = vmatmul.mubr.bf16.gmra.mrb[248].mxu0 %v2271_v47  ;;  %v7720_v47 = vld [vmem:[%s12908_s4 + $0xf0] sm:$0xff]  }
 0x240   : > { %7300 = vmatprep.mubr.msk.bf16.mxu0 %vm7817_vm0, %v13266_v62  ;;  %3947 = vmatpush1.bf16.msra.mxu1 %v7720_v47 }
 0x241   : > { %3948 = vmatprep.subr.bf16.mxu1 %v13306_v36 }
 0x242   : > { %v2013_v14 = vpop.f32.mrb[144].mxu0 }
 0x243   : > { %v1844_v2 = vpop.f32.mrb[160].mxu1  ;;  %v10086_v56 = vadd.f32 %v2013_v14, %v10010_v37  ;;  %v7162_v49 = vpop.f32.mrb[145].mxu0 }
 0x244   : > { %v1845_v7 = vadd.f32 %v1844_v2, %v13417_v25  ;;  %v1846_v22 = vpop.f32.mrb[161].mxu1  ;;  %v2016_v61 = vpop.f32.mrb[146].mxu0  ;;  %v13418_v2 = vld [vmem:[#allocation13_spill] sm:$0xff] }
 0x245   : > { %v1847_v18 = vpop.f32.mrb[162].mxu1  ;;  %v10090_v48 = vadd.f32 %v2016_v61, %v10021_v9  ;;  %v7163_v45 = vpop.f32.mrb[147].mxu0 }
 0x246   : > { %v1848_v8 = vadd.f32 %v1847_v18, %v9539_v41  ;;  %v1849_v40 = vpop.f32.mrb[163].mxu1  ;;  %v7721_v41 = vld [vmem:[%s12908_s4 + $0xf8] sm:$0xff]  }
 0x247   : > { %v13419_v18 = vld [vmem:[#allocation17_spill] sm:$0xff]  ;;  %3949 = vmatpush1.bf16.msra.mxu1 %v7721_v41 }
 0x248   : > { %3950 = vmatprep.subr.bf16.mxu1 %v13306_v36 }
 0x24a   : > { %v2021_v37 = vpop.f32.mrb[148].mxu0 }
 0x24b   : > { %v1852_v3 = vpop.f32.mrb[164].mxu1  ;;  %v10098_v59 = vadd.f32 %v2021_v37, %v10034_v32  ;;  %v7166_v14 = vpop.f32.mrb[149].mxu0  ;;  %3951 = vmatpush1.bf16.msra.mxu1 %v7722_v29 }
 0x24c   : > { %v1853_v9 = vadd.f32 %v1852_v3, %v13418_v2  ;;  %v1854_v49 = vpop.f32.mrb[165].mxu1  ;;  %v2024_v25 = vpop.f32.mrb[150].mxu0  ;;  %3952 = vmatprep.subr.bf16.mxu1 %v13306_v36 }
 0x24d   : > { %v1855_v22 = vpop.f32.mrb[166].mxu1  ;;  %v10102_v61 = vadd.f32 %v2024_v25, %v10045_v6  ;;  %v7167_v45 = vpop.f32.mrb[151].mxu0 }
 0x24e   : > { %v1856_v47 = vadd.f32 %v1855_v22, %v13419_v18  ;;  %v1857_v40 = vpop.f32.mrb[167].mxu1 }
 0x252   : > { %v2029_v32 = vpop.f32.mrb[152].mxu0 }
 0x253   : > { %v10109_v37 = vadd.f32 %v2029_v32, %v1829_v27  ;;  %v7170_v3 = vpop.f32.mrb[153].mxu0  ;;  %v2499_v14 = vpop.f32.mrb[168].mxu1 }
 0x254   : > { %v2032_v2 = vpop.f32.mrb[154].mxu0  ;;  %v2501_v49 = vpop.f32.mrb[169].mxu1 }
 0x255   : > { %v10111_v6 = vadd.f32 %v2032_v2, %v1832_v16  ;;  %v7171_v25 = vpop.f32.mrb[155].mxu0  ;;  %v2502_v45 = vpop.f32.mrb[170].mxu1 }
 0x256   : > { %v2504_v22 = vpop.f32.mrb[171].mxu1 }
 0x25a   : > { %v2037_v41 = vpop.f32.mrb[156].mxu0 }
 0x25b   : > { %v10117_v18 = vadd.f32 %v2037_v41, %v1837_v39  ;;  %v7174_v27 = vpop.f32.mrb[157].mxu0  ;;  %v2507_v40 = vpop.f32.mrb[172].mxu1 }
 0x25c   : > { %v2040_v32 = vpop.f32.mrb[158].mxu0  ;;  %v2509_v3 = vpop.f32.mrb[173].mxu1 }
 0x25d   : > { %v10119_v49 = vadd.f32 %v2040_v32, %v1840_v4  ;;  %v7175_v16 = vpop.f32.mrb[159].mxu0  ;;  %v10121_v2 = vpop.f32.mrb[174].mxu1  ;;  %v7723_v4 = vld [vmem:[%s12908_s4 + $0x108] sm:$0xff]  }
 0x25e   : > { %v2512_v25 = vpop.f32.mrb[175].mxu1  ;;  %3953 = vmatpush1.bf16.msra.mxu1 %v7723_v4 }
 0x25f   : > { %13420 = vst [vmem:[#allocation29_spill] sm:$0xff] %v10119_v49  ;;  %3954 = vmatprep.subr.bf16.mxu1 %v13306_v36  ;;  %v13429_v49 = vld [vmem:[#allocation26_spill] sm:$0xff] }
 0x262   : > { %v2045_v30 = vpop.f32.mrb[160].mxu0 }
 0x263   : > { %v10123_v35 = vadd.f32 %v2045_v30, %v1845_v7  ;;  %v7178_v22 = vpop.f32.mrb[161].mxu0  ;;  %v10125_v29 = vpop.f32.mrb[176].mxu1 }
 0x264   : > { %v2048_v60 = vpop.f32.mrb[162].mxu0  ;;  %v2517_v0 = vpop.f32.mrb[177].mxu1 }
 0x265   : > { %13421 = vst [vmem:[#allocation35_spill] sm:$0xff] %v10123_v35  ;;  %v10127_v39 = vadd.f32 %v2048_v60, %v1848_v8  ;;  %v7179_v41 = vpop.f32.mrb[163].mxu0  ;;  %v10129_v27 = vpop.f32.mrb[178].mxu1 }
 0x266   : > { %v2520_v32 = vpop.f32.mrb[179].mxu1  ;;  %v7724_v41 = vld [vmem:[%s12908_s4 + $0x110] sm:$0xff]  }
 0x267   : > { %13422 = vst [vmem:[#allocation78_spill] sm:$0xff] %v10127_v39  ;;  %3955 = vmatpush1.bf16.msra.mxu1 %v7724_v41  ;;  %v3044_v32 = vpop.permute.xlu0 %3043 }
 0x268   : > { %3956 = vmatprep.subr.bf16.mxu1 %v13306_v36  ;;  %vm3168_vm13 = vcmp.eq.s32.totalorder %v3044_v32, 1 }
 0x26a   : > { %v2053_v30 = vpop.f32.mrb[164].mxu0 }
 0x26b   : > { %v10135_v7 = vadd.f32 %v2053_v30, %v1853_v9  ;;  %v7182_v3 = vpop.f32.mrb[165].mxu0  ;;  %v10137_v16 = vpop.f32.mrb[180].mxu1 }
 0x26c   : > { %v2056_v0 = vpop.f32.mrb[166].mxu0  ;;  %v2525_v60 = vpop.f32.mrb[181].mxu1 }
 0x26d   : > { %13423 = vst [vmem:[#allocation32_spill] sm:$0xff] %v10135_v7  ;;  %v10139_v8 = vadd.f32 %v2056_v0, %v1856_v47  ;;  %v7183_v25 = vpop.f32.mrb[167].mxu0  ;;  %v10141_v22 = vpop.f32.mrb[182].mxu1  ;;  %v10154_v0 = vld [vmem:[%s12907_s3] ss:$0 sm:$0xff] }
 0x26e   : > { %v2528_v4 = vpop.f32.mrb[183].mxu1  ;;  %v10147_v30 = vpop.permute.xlu1 %3166 }
 0x26f   : > { %13424 = vst [vmem:[#allocation39_spill] sm:$0xff] %v10139_v8  ;;  %13425 = vst [vmem:[#allocation36_spill] sm:$0xff] %v10147_v30 }
 0x272   : > { %v2700_v9 = vpop.f32.mrb[168].mxu0 }
 0x273   : > { %v2701_v3 = vadd.f32 %v2700_v9, %v2499_v14  ;;  %v7202_v13 = vpop.f32.mrb[169].mxu0  ;;  %v10149_v60 = vpop.f32.mrb[184].mxu1  ;;  %v7725_v14 = vld [vmem:[%s12908_s4 + $0x118] sm:$0xff]  }
 0x274   : > { %v2703_v47 = vpop.f32.mrb[170].mxu0  ;;  %v2533_v25 = vpop.f32.mrb[185].mxu1  ;;  %3957 = vmatpush1.bf16.msra.mxu1 %v7725_v14 }
 0x275   : > { %v2867_v4 = vadd.f32 %v2701_v3, %v13426_v38  ;;  %v2704_v41 = vadd.f32 %v2703_v47, %v2502_v45  ;;  %v7203_v19 = vpop.f32.mrb[171].mxu0  ;;  %v10157_v5 = vpop.f32.mrb[186].mxu1  ;;  %3958 = vmatprep.subr.bf16.mxu1 %v13306_v36 }
 0x276   : > { %v3047_v13 = vpop.permute.xlu0 %3046  ;;  %v2536_v9 = vpop.f32.mrb[187].mxu1 }
 0x277   : > { %v2868_v30 = vadd.f32 %v2704_v41, %v13427_v34  ;;  %v2916_v8 = vadd.f32 %v10154_v0, %v2867_v4  ;;  %vm3169_vm12 = vcmp.eq.s32.totalorder %v3047_v13, 1  ;;  %v10166_v19 = vpop.permute.xlu1 %3049 }
 0x278   : > { %13428 = vst [vmem:[#allocation43_spill] sm:$0xff] %v10166_v19  ;;  %vm6439_vm14 = vmpackc.low %vm3169_vm12, %vm3168_vm13  ;;  %vm3170_vm6 = vcmp.eq.s32.totalorder %v10166_v19, 1 }
 0x279   : > { %v2917_v25 = vadd.f32 %v10154_v0, %v2868_v30  ;;  %v2958_v45 = vmax.f32 %v2916_v8, 0.0 }
 0x27a   : > { %v2708_v38 = vpop.f32.mrb[172].mxu0 }
 0x27b   : > { %v2709_v3 = vadd.f32 %v2708_v38, %v2507_v40  ;;  %v2959_v47 = vmax.f32 %v2917_v25, 0.0  ;;  %v7206_v7 = vpop.f32.mrb[173].mxu0  ;;  %v10168_v39 = vpop.f32.mrb[188].mxu1 }
 0x27c   : > { %v2711_v34 = vpop.f32.mrb[174].mxu0  ;;  %v2541_v4 = vpop.f32.mrb[189].mxu1 }
 0x27d   : > { %v2869_v41 = vadd.f32 %v2709_v3, %v9635_v31  ;;  %v6440_v14 = vpack.c.bf16 %v2959_v47, %v2958_v45  ;;  %v2712_v30 = vadd.f32 %v2711_v34, %v10121_v2  ;;  %v7207_v9 = vpop.f32.mrb[175].mxu0  ;;  %v10174_v35 = vpop.f32.mrb[190].mxu1  ;;  %v10183_v31 = vsel %vm3169_vm12, %v2959_v47, 0.0  ;;  %v7726_v3 = vld [vmem:[%s12908_s4 + $0x120] sm:$0xff]  }
 0x27e   : > { %v2544_v8 = vpop.f32.mrb[191].mxu1  ;;  %v10179_v38 = vpop.permute.xlu0 %3052  ;;  %13430 = vst [vmem:[#allocation40_spill] sm:$0xff] %v10183_v31  ;;  %v10196_v9 = vsel %vm3168_vm13, %v2958_v45, 0.0  ;;  %3959 = vmatpush1.bf16.msra.mxu1 %v7726_v3 }
 0x27f   : > { %v2870_v40 = vadd.f32 %v2712_v30, %v13429_v49  ;;  %6441 = vmatprep.mubr.msk.bf16.mxu1 %vm6439_vm14, %v6440_v14  ;;  %v2918_v7 = vadd.f32 %v10154_v0, %v2869_v41  ;;  %13432 = vst [vmem:[#allocation44_spill] sm:$0xff] %v10196_v9  ;;  %vm3171_vm7 = vcmp.eq.s32.totalorder %v10179_v38, 1  ;;  %3960 = vmatprep.subr.bf16.mxu1 %v13306_v36  ;;  %v10208_v32 = vpop.permute.xlu1 %3055  ;;  %v7739_v38 = vld [vmem:[%s12908_s4 + $0x8] sm:$0xff]  }
 0x280   : > { %13434 = vst [vmem:[#allocation79_spill] sm:$0xff] %v10208_v32  ;;  %vm3172_vm8 = vcmp.eq.s32.totalorder %v10208_v32, 1 }
 0x281   : > { %v2960_v25 = vmax.f32 %v2918_v7, 0.0  ;;  %v2919_v4 = vadd.f32 %v10154_v0, %v2870_v40  ;;  %v3616_v40 = vrot.slane %v10183_v31, 1 }
 0x282   : > { %v2716_v2 = vpop.f32.mrb[176].mxu0 }
 0x283   : > { %v10190_v49 = vsel %vm3170_vm6, %v2960_v25, 0.0  ;;  %v2717_v34 = vadd.f32 %v2716_v2, %v10125_v29  ;;  %v2961_v41 = vmax.f32 %v2919_v4, 0.0  ;;  %v7210_v14 = vpop.f32.mrb[177].mxu0  ;;  %v10193_v30 = vpop.f32.mrb[192].mxu1 }
 0x284   : > { %13431 = vst [vmem:[#allocation47_spill] sm:$0xff] %v10190_v49  ;;  %v3617_v13 = vrot.slane %v10190_v49, 1  ;;  %v2719_v47 = vpop.f32.mrb[178].mxu0  ;;  %v2549_v8 = vpop.f32.mrb[193].mxu1  ;;  %v13056_v14 = vrot.slane %v10196_v9, 1 }
 0x285   : > { %v2871_v7 = vadd.f32 %v2717_v34, %v9670_v15  ;;  %v10202_v19 = vpack.c.bf16 %v2961_v41, %v2960_v25  ;;  %v2720_v29 = vadd.f32 %v2719_v47, %v10129_v27  ;;  %v7211_v4 = vpop.f32.mrb[179].mxu0  ;;  %v10205_v2 = vpop.f32.mrb[194].mxu1  ;;  %v10213_v3 = vsel %vm3171_vm7, %v2961_v41, 0.0 }
 0x286   : > { %v2552_v45 = vpop.f32.mrb[195].mxu1  ;;  %13435 = vst [vmem:[#allocation48_spill] sm:$0xff] %v10213_v3  ;;  %v3696_v27 = vsel %vm834_vm1, %v3616_v40, %v3617_v13  ;;  %v3697_v34 = vsel %vm834_vm1, %v13056_v14, %v3616_v40  ;;  %v10226_v41 = vpop.permute.xlu0 %3058 }
 0x287   : > { %13433 = vst [vmem:[#allocation51_spill] sm:$0xff] %v10202_v19  ;;  %v2872_v15 = vadd.f32 %v2720_v29, %v9679_v50  ;;  %v2920_v25 = vadd.f32 %v10154_v0, %v2871_v7  ;;  %v10224_v8 = vpack.c.bf16 %v3696_v27, %v3697_v34  ;;  %13437 = vst [vmem:[#allocation56_spill] sm:$0xff] %v10226_v41  ;;  %v3618_v7 = vrot.slane %v10213_v3, 1 }
 0x288   : > { %vm3173_vm9 = vcmp.eq.s32.totalorder %v10226_v41, 1 }
 0x289   : > { %v2962_v47 = vmax.f32 %v2920_v25, 0.0  ;;  %13436 = vst [vmem:[#allocation52_spill] sm:$0xff] %v10224_v8  ;;  %v2921_v50 = vadd.f32 %v10154_v0, %v2872_v15  ;;  %7301 = vmatmul.mubr.bf16.vlgmr.msra.gmra.mrb[252].mxu0 %v10224_v8 }
 0x28a   : > { %v2724_v4 = vpop.f32.mrb[180].mxu0  ;;  %7304 = vmatprep.mubr.msk.bf16.mxu0 %vm7817_vm0, %v13266_v62 }
 0x28b   : > { %v2725_v29 = vadd.f32 %v2724_v4, %v10137_v16  ;;  %v7214_v45 = vpop.f32.mrb[181].mxu0  ;;  %v10231_v19 = vpop.f32.mrb[196].mxu1  ;;  %v10235_v49 = vsel %vm3172_vm8, %v2962_v47, 0.0  ;;  %v2963_v40 = vmax.f32 %v2921_v50, 0.0  ;;  %v7727_v50 = vld [vmem:[%s12908_s4 + $0x128] sm:$0xff]  }
 0x28c   : > { %13438 = vst [vmem:[#allocation60_spill] sm:$0xff] %v10235_v49  ;;  %v2727_v25 = vpop.f32.mrb[182].mxu0  ;;  %v2557_v27 = vpop.f32.mrb[197].mxu1  ;;  %v3619_v34 = vrot.slane %v10235_v49, 1  ;;  %3961 = vmatpush1.bf16.msra.mxu1 %v7727_v50 }
 0x28d   : > { %v7215_v14 = vpop.f32.mrb[183].mxu0  ;;  %v10241_v15 = vpop.f32.mrb[198].mxu1  ;;  %v2873_v16 = vadd.f32 %v2725_v29, %v9705_v51  ;;  %v10244_v4 = vpack.c.bf16 %v2963_v40, %v2962_v47  ;;  %v2728_v45 = vadd.f32 %v2727_v25, %v10141_v22  ;;  %v3695_v27 = vsel %vm834_vm1, %v3617_v13, %v3618_v7  ;;  %3962 = vmatprep.subr.bf16.mxu1 %v13306_v36 }
 0x28e   : > { %v2560_v32 = vpop.f32.mrb[199].mxu1  ;;  %v3694_v14 = vsel %vm834_vm1, %v3618_v7, %v3619_v34  ;;  %v10257_v51 = vpop.permute.xlu1 %3061  ;;  %v10264_v47 = vsel %vm3173_vm9, %v2963_v40, 0.0 }
 0x28f   : > { %13439 = vst [vmem:[#allocation64_spill] sm:$0xff] %v10244_v4  ;;  %v10255_v8 = vpack.c.bf16 %v3694_v14, %v3695_v27  ;;  %13441 = vst [vmem:[#allocation55_spill] sm:$0xff] %v10257_v51  ;;  %v2874_v22 = vadd.f32 %v2728_v45, %v9714_v55  ;;  %v2922_v32 = vadd.f32 %v10154_v0, %v2873_v16  ;;  %v10266_v29 = vpop.permute.xlu0 %3064  ;;  %vm3174_vm10 = vcmp.eq.s32.totalorder %v10257_v51, 1 }
 0x290   : > { %13442 = vst [vmem:[#allocation72_spill] sm:$0xff] %v10264_v47  ;;  %13443 = vst [vmem:[#allocation74_spill] sm:$0xff] %v10266_v29  ;;  %v3620_v40 = vrot.slane %v10264_v47, 1  ;;  %vm3175_vm11 = vcmp.eq.s32.totalorder %v10266_v29, 1 }
 0x291   : > { %13440 = vst [vmem:[#allocation68_spill] sm:$0xff] %v10255_v8  ;;  %v2964_v27 = vmax.f32 %v2922_v32, 0.0  ;;  %7305 = vmatmul.mubr.bf16.gmra.mrb[0].mxu0 %v10255_v8  ;;  %v2923_v16 = vadd.f32 %v10154_v0, %v2874_v22  ;;  %v7728_v32 = vld [vmem:[%s12908_s4 + $0x130] sm:$0xff]  }
 0x292   : > { %v2732_v13 = vpop.f32.mrb[184].mxu0  ;;  %7308 = vmatprep.mubr.msk.bf16.mxu0 %vm7817_vm0, %v13266_v62  ;;  %3963 = vmatpush1.bf16.msra.mxu1 %v7728_v32  ;;  %v10296_v41 = vpop.permute.xlu1 %3067 }
 0x293   : > { %v7218_v7 = vpop.f32.mrb[185].mxu0  ;;  %v10269_v25 = vpop.f32.mrb[200].mxu1  ;;  %v2733_v55 = vadd.f32 %v2732_v13, %v10149_v60  ;;  %v7729_v60 = vld [vmem:[%s12908_s4 + $0x80] sm:$0xff]   ;;  %v10288_v22 = vsel %vm3174_vm10, %v2964_v27, 0.0  ;;  %13446 = vst [vmem:[#allocation76_spill] sm:$0xff] %v10296_v41  ;;  %3964 = vmatprep.subr.bf16.mxu1 %v13306_v36  ;;  %vm13144_vm12 = vcmp.eq.s32.totalorder %v10296_v41, 1 }
 0x294   : > { %v2735_v45 = vpop.f32.mrb[186].mxu0  ;;  %v2565_v50 = vpop.f32.mrb[201].mxu1  ;;  %13444 = vst [vmem:[#allocation59_spill] sm:$0xff] %v10288_v22  ;;  %7385 = vmatpush3.bf16.msra.mxu0 %v7729_v60 }
 0x295   : > { %v2736_v14 = vadd.f32 %v2735_v45, %v10157_v5  ;;  %v7219_v4 = vpop.f32.mrb[187].mxu0  ;;  %v10278_v7 = vpop.f32.mrb[202].mxu1  ;;  %v2875_v5 = vadd.f32 %v2733_v55, %v9743_v23  ;;  %v3621_v45 = vrot.slane %v10288_v22, 1  ;;  %7386 = vmatprep.subr.bf16.mxu0 %v13266_v62  ;;  %v3693_v23 = vsel %vm834_vm1, %v3619_v34, %v3620_v40  ;;  %v13451_v22 = vld [vmem:[#allocation77_spill] sm:$0xff] }
 0x296   : > { %v2965_v4 = vmax.f32 %v2923_v16, 0.0  ;;  %v2568_v13 = vpop.f32.mrb[203].mxu1  ;;  %v10314_v32 = vpop.permute.xlu0 %3070 }
 0x297   : > { %v2876_v8 = vadd.f32 %v2736_v14, %v9753_v28  ;;  %v2924_v51 = vadd.f32 %v10154_v0, %v2875_v5  ;;  %v3692_v55 = vsel %vm834_vm1, %v3620_v40, %v3621_v45  ;;  %vm13142_vm13 = vcmp.eq.s32.totalorder %v10314_v32, 1  ;;  %v10342_v29 = vpop.permute.xlu1 %3073 }
 0x298   : > { %v10293_v50 = vpack.c.bf16 %v2965_v4, %v2964_v27  ;;  %v7730_v27 = vld [vmem:[%s12908_s4 + $0x88] sm:$0xff]   ;;  %v10308_v16 = vpack.c.bf16 %v3692_v55, %v3693_v23  ;;  %v10312_v28 = vsel %vm3175_vm11, %v2965_v4, 0.0  ;;  %13452 = vst [vmem:[#allocation75_spill] sm:$0xff] %v10342_v29  ;;  %vm13072_vm14 = vcmp.eq.s32.totalorder %v10342_v29, 1  ;;  %v7734_v29 = vld [vmem:[%s12908_s4 + $0xa0] sm:$0xff]  }
 0x299   : > { %13448 = vst [vmem:[#allocation71_spill] sm:$0xff] %v10312_v28  ;;  %v2966_v60 = vmax.f32 %v2924_v51, 0.0  ;;  %7387 = vmatpush3.bf16.msra.mxu0 %v7730_v27  ;;  %v2925_v13 = vadd.f32 %v10154_v0, %v2876_v8  ;;  %v3622_v4 = vrot.slane %v10312_v28, 1 }
 0x29a   : > { %13445 = vst [vmem:[#allocation63_spill] sm:$0xff] %v10293_v50  ;;  %13447 = vst [vmem:[#allocation67_spill] sm:$0xff] %v10308_v16  ;;  %v2740_v14 = vpop.f32.mrb[188].mxu0  ;;  %7309 = vmatmul.mubr.bf16.gmra.mrb[4].mxu0 %v10308_v16  ;;  %7388 = vmatprep.subr.bf16.mxu0 %v13266_v62 }
 0x29b   : > { %v2741_v34 = vadd.f32 %v2740_v14, %v10168_v39  ;;  %v7222_v5 = vpop.f32.mrb[189].mxu0  ;;  %v10318_v40 = vpop.f32.mrb[204].mxu1  ;;  %7312 = vmatprep.mubr.msk.bf16.mxu0 %vm7817_vm0, %v13266_v62  ;;  %v10330_v39 = vsel %vm13144_vm12, %v2966_v60, 0.0  ;;  %v2967_v14 = vmax.f32 %v2925_v13, 0.0 }
 0x29c   : > { %v2743_v23 = vpop.f32.mrb[190].mxu0  ;;  %v2573_v55 = vpop.f32.mrb[205].mxu1  ;;  %13449 = vst [vmem:[#allocation7_spill] sm:$0xff] %v10330_v39 }
 0x29d   : > { %v7223_v50 = vpop.f32.mrb[191].mxu0  ;;  %v10326_v51 = vpop.f32.mrb[206].mxu1  ;;  %v2877_v27 = vadd.f32 %v2741_v34, %v9786_v58  ;;  %v2744_v8 = vadd.f32 %v2743_v23, %v10174_v35  ;;  %v3623_v55 = vrot.slane %v10330_v39, 1  ;;  %v10339_v16 = vpack.c.bf16 %v2967_v14, %v2966_v60 }
 0x29e   : > { %v2576_v5 = vpop.f32.mrb[207].mxu1  ;;  %v7732_v50 = vld [vmem:[%s12908_s4 + $0x90] sm:$0xff]   ;;  %v3691_v35 = vsel %vm834_vm1, %v3621_v45, %v3622_v4  ;;  %v10353_v23 = vsel %vm13142_vm13, %v2967_v14, 0.0 }
 0x29f   : > { %13450 = vst [vmem:[#allocation73_spill] sm:$0xff] %v10339_v16  ;;  %v2878_v41 = vadd.f32 %v2744_v8, %v13451_v22  ;;  %v2926_v58 = vadd.f32 %v10154_v0, %v2877_v27  ;;  %v3690_v34 = vsel %vm834_vm1, %v3622_v4, %v3623_v55  ;;  %7389 = vmatpush3.bf16.msra.mxu0 %v7732_v50  ;;  %13454 = vst [vmem:[#allocation13_spill] sm:$0xff] %v10353_v23  ;;  %v10355_v5 = vpop.permute.xlu0 %3076  ;;  %v7733_v4 = vld [vmem:[%s12908_s4 + $0x98] sm:$0xff]  }
 0x2a0   : > { %v10349_v13 = vpack.c.bf16 %v3690_v34, %v3691_v35  ;;  %7390 = vmatprep.subr.bf16.mxu0 %v13266_v62  ;;  %v3624_v34 = vrot.slane %v10353_v23, 1  ;;  %vm13074_vm5 = vcmp.eq.s32.totalorder %v10355_v5, 1 }
 0x2a1   : > { %v2968_v22 = vmax.f32 %v2926_v58, 0.0  ;;  %v2927_v14 = vadd.f32 %v10154_v0, %v2878_v41 }
 0x2a2   : > { %13453 = vst [vmem:[#allocation10_spill] sm:$0xff] %v10349_v13  ;;  %v2748_v60 = vpop.f32.mrb[192].mxu0  ;;  %7313 = vmatmul.mubr.bf16.gmra.mrb[8].mxu0 %v10349_v13 }
 0x2a3   : > { %v2749_v45 = vadd.f32 %v2748_v60, %v10193_v30  ;;  %v7226_v27 = vpop.f32.mrb[193].mxu0  ;;  %v10360_v8 = vpop.f32.mrb[208].mxu1  ;;  %7316 = vmatprep.mubr.msk.bf16.mxu0 %vm7817_vm0, %v13266_v62  ;;  %v7731_v60 = vld [vmem:[%s12908_s4 + $0x138] sm:$0xff]   ;;  %v2969_v13 = vmax.f32 %v2927_v14, 0.0  ;;  %7391 = vmatpush3.bf16.msra.mxu0 %v7733_v4 }
 0x2a4   : > { %v2751_v50 = vpop.f32.mrb[194].mxu0  ;;  %v2581_v35 = vpop.f32.mrb[209].mxu1  ;;  %v10377_v27 = vsel %vm13072_vm14, %v2968_v22, 0.0  ;;  %3965 = vmatpush1.bf16.msra.mxu1 %v7731_v60  ;;  %7392 = vmatprep.subr.bf16.mxu0 %v13266_v62  ;;  %v7736_v60 = vld [vmem:[%s12908_s4 + $0xa8] sm:$0xff]  }
 0x2a5   : > { %v7227_v58 = vpop.f32.mrb[195].mxu0  ;;  %v10370_v30 = vpop.f32.mrb[210].mxu1  ;;  %13455 = vst [vmem:[#allocation17_spill] sm:$0xff] %v10377_v27  ;;  %v2879_v41 = vadd.f32 %v2749_v45, %v9829_v17  ;;  %v2752_v35 = vadd.f32 %v2751_v50, %v10205_v2  ;;  %v10387_v39 = vpack.c.bf16 %v2969_v13, %v2968_v22  ;;  %4480 = vmatprep.subr.bf16.mxu1 %v13306_v36  ;;  %v10402_v22 = vsel %vm13074_vm5, %v2969_v13, 0.0 }
 0x2a6   : > { %v2584_v16 = vpop.f32.mrb[211].mxu1  ;;  %v3625_v58 = vrot.slane %v10377_v27, 1  ;;  %v10390_v45 = vpop.permute.xlu1 %3079  ;;  %13459 = vst [vmem:[#allocation77_spill] sm:$0xff] %v10402_v22 }
 0x2a7   : > { %13456 = vst [vmem:[#allocation20_spill] sm:$0xff] %v10387_v39  ;;  %v2880_v17 = vadd.f32 %v2752_v35, %v9838_v52  ;;  %13457 = vst [vmem:[#allocation23_spill] sm:$0xff] %v10390_v45  ;;  %v2928_v2 = vadd.f32 %v10154_v0, %v2879_v41  ;;  %v3689_v16 = vsel %vm834_vm1, %v3623_v55, %v3624_v34  ;;  %v10404_v52 = vpop.permute.xlu0 %3082  ;;  %7393 = vmatpush3.bf16.msra.mxu0 %v7734_v29 }
 0x2a8   : > { %v3688_v4 = vsel %vm834_vm1, %v3624_v34, %v3625_v58  ;;  %13460 = vst [vmem:[#allocation80_spill] sm:$0xff] %v10404_v52  ;;  %vm13078_vm14 = vcmp.eq.s32.totalorder %v10390_v45, 1  ;;  %7394 = vmatprep.subr.bf16.mxu0 %v13266_v62  ;;  %vm13080_vm5 = vcmp.eq.s32.totalorder %v10404_v52, 1 }
 0x2a9   : > { %v10398_v14 = vpack.c.bf16 %v3688_v4, %v3689_v16  ;;  %v2970_v41 = vmax.f32 %v2928_v2, 0.0  ;;  %v2929_v13 = vadd.f32 %v10154_v0, %v2880_v17  ;;  %v3626_v4 = vrot.slane %v10402_v22, 1 }
 0x2aa   : > { %v2756_v50 = vpop.f32.mrb[196].mxu0 }
 0x2ab   : > { %13458 = vst [vmem:[#allocation26_spill] sm:$0xff] %v10398_v14  ;;  %v2757_v55 = vadd.f32 %v2756_v50, %v10231_v19  ;;  %v7230_v34 = vpop.f32.mrb[197].mxu0  ;;  %v10411_v35 = vpop.f32.mrb[212].mxu1  ;;  %7317 = vmatmul.mubr.bf16.gmra.mrb[12].mxu0 %v10398_v14  ;;  %v10423_v19 = vsel %vm13078_vm14, %v2970_v41, 0.0 }
 0x2ac   : > { %v2759_v16 = vpop.f32.mrb[198].mxu0  ;;  %v2589_v29 = vpop.f32.mrb[213].mxu1  ;;  %7320 = vmatprep.mubr.msk.bf16.mxu0 %vm7817_vm0, %v13266_v62  ;;  %13461 = vst [vmem:[#allocation81_spill] sm:$0xff] %v10423_v19  ;;  %v2971_v34 = vmax.f32 %v2929_v13, 0.0  ;;  %7395 = vmatpush3.bf16.msra.mxu0 %v7736_v60  ;;  %v3687_v60 = vsel %vm834_vm1, %v3625_v58, %v3626_v4 }
 0x2ad   : > { %v7231_v39 = vpop.f32.mrb[199].mxu0  ;;  %v10419_v2 = vpop.f32.mrb[214].mxu1  ;;  %v2881_v50 = vadd.f32 %v2757_v55, %v9875_v10  ;;  %v2760_v14 = vadd.f32 %v2759_v16, %v10241_v15  ;;  %v3627_v29 = vrot.slane %v10423_v19, 1  ;;  %7396 = vmatprep.subr.bf16.mxu0 %v13266_v62 }
 0x2ae   : > { %v2592_v17 = vpop.f32.mrb[215].mxu1  ;;  %v7737_v39 = vld [vmem:[%s12908_s4 + $0xb0] sm:$0xff]   ;;  %v10433_v45 = vpack.c.bf16 %v2971_v34, %v2970_v41  ;;  %v10436_v10 = vpop.permute.xlu1 %3085  ;;  %v10447_v16 = vsel %vm13080_vm5, %v2971_v34, 0.0 }
 0x2af   : > { %v2882_v27 = vadd.f32 %v2760_v14, %v9885_v24  ;;  %13463 = vst [vmem:[#allocation83_spill] sm:$0xff] %v10436_v10  ;;  %v2930_v15 = vadd.f32 %v10154_v0, %v2881_v50  ;;  %v3686_v55 = vsel %vm834_vm1, %v3626_v4, %v3627_v29  ;;  %13465 = vst [vmem:[#allocation85_spill] sm:$0xff] %v10447_v16  ;;  %v10449_v17 = vpop.permute.xlu0 %3088  ;;  %v7738_v24 = vld [vmem:[%s12908_s4 + $0xb8] sm:$0xff]   ;;  %vm13085_vm14 = vcmp.eq.s32.totalorder %v10436_v10, 1 }
 0x2b0   : > { %13462 = vst [vmem:[#allocation82_spill] sm:$0xff] %v10433_v45  ;;  %v10443_v13 = vpack.c.bf16 %v3686_v55, %v3687_v60  ;;  %7397 = vmatpush3.bf16.msra.mxu0 %v7737_v39  ;;  %v3628_v55 = vrot.slane %v10447_v16, 1  ;;  %vm13086_vm5 = vcmp.eq.s32.totalorder %v10449_v17, 1 }
 0x2b1   : > { %v2972_v14 = vmax.f32 %v2930_v15, 0.0  ;;  %7398 = vmatprep.subr.bf16.mxu0 %v13266_v62  ;;  %v2931_v34 = vadd.f32 %v10154_v0, %v2882_v27 }
 0x2b2   : > { %13464 = vst [vmem:[#allocation84_spill] sm:$0xff] %v10443_v13  ;;  %v2764_v41 = vpop.f32.mrb[200].mxu0  ;;  %v10478_v10 = vpop.permute.xlu1 %3091 }
 0x2b3   : > { %v2765_v58 = vadd.f32 %v2764_v41, %v10269_v25  ;;  %v7234_v4 = vpop.f32.mrb[201].mxu0  ;;  %v10456_v50 = vpop.f32.mrb[216].mxu1  ;;  %7321 = vmatmul.mubr.bf16.gmra.mrb[16].mxu0 %v10443_v13  ;;  %v10468_v25 = vsel %vm13085_vm14, %v2972_v14, 0.0  ;;  %13468 = vst [vmem:[#allocation88_spill] sm:$0xff] %v10478_v10  ;;  %vm13091_vm14 = vcmp.eq.s32.totalorder %v10478_v10, 1 }
 0x2b4   : > { %v2767_v60 = vpop.f32.mrb[202].mxu0  ;;  %v2597_v39 = vpop.f32.mrb[217].mxu1  ;;  %7324 = vmatprep.mubr.msk.bf16.mxu0 %vm7817_vm0, %v13266_v62  ;;  %13466 = vst [vmem:[#allocation86_spill] sm:$0xff] %v10468_v25  ;;  %v2973_v4 = vmax.f32 %v2931_v34, 0.0  ;;  %7399 = vmatpush3.bf16.msra.mxu0 %v7738_v24 }
 0x2b5   : > { %v7235_v45 = vpop.f32.mrb[203].mxu0  ;;  %v10464_v15 = vpop.f32.mrb[218].mxu1  ;;  %v2883_v41 = vadd.f32 %v2765_v58, %v9915_v54  ;;  %v2768_v13 = vadd.f32 %v2767_v60, %v10278_v7  ;;  %v3629_v39 = vrot.slane %v10468_v25, 1  ;;  %7484 = vmatprep.subr.bf16.mxu0 %v13266_v62  ;;  %v3685_v54 = vsel %vm834_vm1, %v3627_v29, %v3628_v55 }
 0x2b6   : > { %v2600_v27 = vpop.f32.mrb[219].mxu1  ;;  %v10475_v45 = vpack.c.bf16 %v2973_v4, %v2972_v14  ;;  %v10489_v58 = vsel %vm13086_vm5, %v2973_v4, 0.0  ;;  %v10491_v34 = vpop.permute.xlu0 %3094 }
 0x2b7   : > { %v2884_v19 = vadd.f32 %v2768_v13, %v9927_v43  ;;  %v2932_v52 = vadd.f32 %v10154_v0, %v2883_v41  ;;  %v3684_v7 = vsel %vm834_vm1, %v3628_v55, %v3629_v39  ;;  %v3630_v4 = vrot.slane %v10489_v58, 1 }
 0x2b8   : > { %13467 = vst [vmem:[#allocation87_spill] sm:$0xff] %v10475_v45  ;;  %v10485_v24 = vpack.c.bf16 %v3684_v7, %v3685_v54  ;;  %vm13092_vm5 = vcmp.eq.s32.totalorder %v10491_v34, 1  ;;  %v10515_v45 = vpop.permute.xlu1 %3097 }
 0x2b9   : > { %v2974_v43 = vmax.f32 %v2932_v52, 0.0  ;;  %v2933_v29 = vadd.f32 %v10154_v0, %v2884_v19  ;;  %13472 = vst [vmem:[#allocation92_spill] sm:$0xff] %v10515_v45  ;;  %v3683_v25 = vsel %vm834_vm1, %v3629_v39, %v3630_v4 }
 0x2ba   : > { %13469 = vst [vmem:[#allocation89_spill] sm:$0xff] %v10485_v24  ;;  %v2772_v14 = vpop.f32.mrb[204].mxu0 }
 0x2bb   : > { %v2773_v13 = vadd.f32 %v2772_v14, %v10318_v40  ;;  %v7238_v60 = vpop.f32.mrb[205].mxu0  ;;  %v10495_v41 = vpop.f32.mrb[220].mxu1  ;;  %7325 = vmatmul.mubr.bf16.gmra.mrb[20].mxu0 %v10485_v24  ;;  %v10506_v40 = vsel %vm13091_vm14, %v2974_v43, 0.0  ;;  %v2975_v14 = vmax.f32 %v2933_v29, 0.0  ;;  %vm13097_vm14 = vcmp.eq.s32.totalorder %v10515_v45, 1 }
 0x2bc   : > { %v2775_v55 = vpop.f32.mrb[206].mxu0  ;;  %v2605_v27 = vpop.f32.mrb[221].mxu1  ;;  %7328 = vmatprep.mubr.msk.bf16.mxu0 %vm7817_vm0, %v13266_v62  ;;  %13470 = vst [vmem:[#allocation90_spill] sm:$0xff] %v10506_v40 }
 0x2bd   : > { %v7239_v54 = vpop.f32.mrb[207].mxu0  ;;  %v10502_v52 = vpop.f32.mrb[222].mxu1  ;;  %v2885_v7 = vadd.f32 %v2773_v13, %v9952_v63  ;;  %v2776_v60 = vadd.f32 %v2775_v55, %v10326_v51  ;;  %v3631_v27 = vrot.slane %v10506_v40, 1  ;;  %v10526_v13 = vsel %vm13092_vm5, %v2975_v14, 0.0 }
 0x2be   : > { %v2608_v19 = vpop.f32.mrb[223].mxu1  ;;  %v10512_v54 = vpack.c.bf16 %v2975_v14, %v2974_v43  ;;  %v10528_v29 = vpop.permute.xlu0 %3100  ;;  %v3632_v14 = vrot.slane %v10526_v13, 1 }
 0x2bf   : > { %v2886_v24 = vadd.f32 %v2776_v60, %v9961_v21  ;;  %v2934_v10 = vadd.f32 %v10154_v0, %v2885_v7  ;;  %v3682_v63 = vsel %vm834_vm1, %v3630_v4, %v3631_v27  ;;  %vm13098_vm5 = vcmp.eq.s32.totalorder %v10528_v29, 1 }
 0x2c0   : > { %13471 = vst [vmem:[#allocation91_spill] sm:$0xff] %v10512_v54  ;;  %v10522_v51 = vpack.c.bf16 %v3682_v63, %v3683_v25  ;;  %v10552_v54 = vpop.permute.xlu1 %3103  ;;  %v3681_v40 = vsel %vm834_vm1, %v3631_v27, %v3632_v14 }
 0x2c1   : > { %v2976_v21 = vmax.f32 %v2934_v10, 0.0  ;;  %v2935_v25 = vadd.f32 %v10154_v0, %v2886_v24  ;;  %13476 = vst [vmem:[#allocation96_spill] sm:$0xff] %v10552_v54 }
 0x2c2   : > { %13473 = vst [vmem:[#allocation93_spill] sm:$0xff] %v10522_v51  ;;  %v2780_v43 = vpop.f32.mrb[208].mxu0 }
 0x2c3   : > { %v2781_v55 = vadd.f32 %v2780_v43, %v10360_v8  ;;  %v7242_v7 = vpop.f32.mrb[209].mxu0  ;;  %v10532_v60 = vpop.f32.mrb[224].mxu1  ;;  %7329 = vmatmul.mubr.bf16.gmra.mrb[24].mxu0 %v10522_v51  ;;  %v10543_v8 = vsel %vm13097_vm14, %v2976_v21, 0.0  ;;  %v2977_v43 = vmax.f32 %v2935_v25, 0.0  ;;  %vm13103_vm14 = vcmp.eq.s32.totalorder %v10552_v54, 1 }
 0x2c4   : > { %v2783_v39 = vpop.f32.mrb[210].mxu0  ;;  %v2613_v4 = vpop.f32.mrb[225].mxu1  ;;  %7332 = vmatprep.mubr.msk.bf16.mxu0 %vm7817_vm0, %v13266_v62  ;;  %13474 = vst [vmem:[#allocation94_spill] sm:$0xff] %v10543_v8 }
 0x2c5   : > { %v7243_v19 = vpop.f32.mrb[211].mxu0  ;;  %v10539_v10 = vpop.f32.mrb[226].mxu1  ;;  %v2887_v63 = vadd.f32 %v2781_v55, %v9981_v53  ;;  %v2784_v7 = vadd.f32 %v2783_v39, %v10370_v30  ;;  %v3633_v4 = vrot.slane %v10543_v8, 1  ;;  %v10563_v55 = vsel %vm13098_vm5, %v2977_v43, 0.0 }
 0x2c6   : > { %v2616_v24 = vpop.f32.mrb[227].mxu1  ;;  %v10549_v19 = vpack.c.bf16 %v2977_v43, %v2976_v21  ;;  %v10565_v25 = vpop.permute.xlu0 %3106  ;;  %v3634_v43 = vrot.slane %v10563_v55, 1 }
 0x2c7   : > { %v2888_v51 = vadd.f32 %v2784_v7, %v9992_v12  ;;  %v2936_v45 = vadd.f32 %v10154_v0, %v2887_v63  ;;  %v3680_v53 = vsel %vm834_vm1, %v3632_v14, %v3633_v4  ;;  %vm13104_vm5 = vcmp.eq.s32.totalorder %v10565_v25, 1 }
 0x2c8   : > { %13475 = vst [vmem:[#allocation95_spill] sm:$0xff] %v10549_v19  ;;  %v10559_v30 = vpack.c.bf16 %v3680_v53, %v3681_v40  ;;  %v10589_v19 = vpop.permute.xlu1 %3109  ;;  %v3679_v8 = vsel %vm834_vm1, %v3633_v4, %v3634_v43 }
 0x2c9   : > { %v2978_v12 = vmax.f32 %v2936_v45, 0.0  ;;  %v2937_v40 = vadd.f32 %v10154_v0, %v2888_v51  ;;  %13480 = vst [vmem:[#allocation100_spill] sm:$0xff] %v10589_v19 }
 0x2ca   : > { %13477 = vst [vmem:[#allocation97_spill] sm:$0xff] %v10559_v30  ;;  %v2788_v21 = vpop.f32.mrb[212].mxu0 }
 0x2cb   : > { %v2789_v39 = vadd.f32 %v2788_v21, %v10411_v35  ;;  %v7246_v63 = vpop.f32.mrb[213].mxu0  ;;  %v10569_v7 = vpop.f32.mrb[228].mxu1  ;;  %7333 = vmatmul.mubr.bf16.gmra.mrb[28].mxu0 %v10559_v30  ;;  %v10580_v35 = vsel %vm13103_vm14, %v2978_v12, 0.0  ;;  %v2979_v21 = vmax.f32 %v2937_v40, 0.0  ;;  %vm13109_vm14 = vcmp.eq.s32.totalorder %v10589_v19, 1 }
 0x2cc   : > { %v2791_v27 = vpop.f32.mrb[214].mxu0  ;;  %v2621_v14 = vpop.f32.mrb[229].mxu1  ;;  %7336 = vmatprep.mubr.msk.bf16.mxu0 %vm7817_vm0, %v13266_v62  ;;  %13478 = vst [vmem:[#allocation98_spill] sm:$0xff] %v10580_v35 }
 0x2cd   : > { %v7247_v24 = vpop.f32.mrb[215].mxu0  ;;  %v10576_v45 = vpop.f32.mrb[230].mxu1  ;;  %v2889_v53 = vadd.f32 %v2789_v39, %v10007_v33  ;;  %v2792_v63 = vadd.f32 %v2791_v27, %v10419_v2  ;;  %v3635_v14 = vrot.slane %v10580_v35, 1  ;;  %v10600_v39 = vsel %vm13104_vm5, %v2979_v21, 0.0 }
 0x2ce   : > { %v2624_v51 = vpop.f32.mrb[231].mxu1  ;;  %v10586_v24 = vpack.c.bf16 %v2979_v21, %v2978_v12  ;;  %v10602_v40 = vpop.permute.xlu0 %3112  ;;  %v3636_v21 = vrot.slane %v10600_v39, 1 }
 0x2cf   : > { %v2890_v30 = vadd.f32 %v2792_v63, %v10015_v44  ;;  %v2938_v54 = vadd.f32 %v10154_v0, %v2889_v53  ;;  %v3678_v33 = vsel %vm834_vm1, %v3634_v43, %v3635_v14  ;;  %vm13110_vm5 = vcmp.eq.s32.totalorder %v10602_v40, 1 }
 0x2d0   : > { %13479 = vst [vmem:[#allocation99_spill] sm:$0xff] %v10586_v24  ;;  %v10596_v2 = vpack.c.bf16 %v3678_v33, %v3679_v8  ;;  %v10626_v24 = vpop.permute.xlu1 %3115  ;;  %v3677_v35 = vsel %vm834_vm1, %v3635_v14, %v3636_v21 }
 0x2d1   : > { %v2980_v44 = vmax.f32 %v2938_v54, 0.0  ;;  %v2939_v8 = vadd.f32 %v10154_v0, %v2890_v30  ;;  %13484 = vst [vmem:[#allocation104_spill] sm:$0xff] %v10626_v24 }
 0x2d2   : > { %13481 = vst [vmem:[#allocation101_spill] sm:$0xff] %v10596_v2  ;;  %v2796_v12 = vpop.f32.mrb[216].mxu0 }
 0x2d3   : > { %v2797_v27 = vadd.f32 %v2796_v12, %v10456_v50  ;;  %v7250_v53 = vpop.f32.mrb[217].mxu0  ;;  %v10606_v63 = vpop.f32.mrb[232].mxu1  ;;  %7337 = vmatmul.mubr.bf16.gmra.mrb[32].mxu0 %v10596_v2  ;;  %v10617_v50 = vsel %vm13109_vm14, %v2980_v44, 0.0  ;;  %v2981_v12 = vmax.f32 %v2939_v8, 0.0  ;;  %vm13115_vm14 = vcmp.eq.s32.totalorder %v10626_v24, 1 }
 0x2d4   : > { %v2799_v4 = vpop.f32.mrb[218].mxu0  ;;  %v2629_v43 = vpop.f32.mrb[233].mxu1  ;;  %7340 = vmatprep.mubr.msk.bf16.mxu0 %vm7817_vm0, %v13266_v62  ;;  %13482 = vst [vmem:[#allocation102_spill] sm:$0xff] %v10617_v50 }
 0x2d5   : > { %v7251_v51 = vpop.f32.mrb[219].mxu0  ;;  %v10613_v54 = vpop.f32.mrb[234].mxu1  ;;  %v2891_v33 = vadd.f32 %v2797_v27, %v10031_v46  ;;  %v2800_v53 = vadd.f32 %v2799_v4, %v10464_v15  ;;  %v3637_v43 = vrot.slane %v10617_v50, 1  ;;  %v10637_v27 = vsel %vm13110_vm5, %v2981_v12, 0.0 }
 0x2d6   : > { %v2632_v30 = vpop.f32.mrb[235].mxu1  ;;  %v10623_v51 = vpack.c.bf16 %v2981_v12, %v2980_v44  ;;  %v10639_v8 = vpop.permute.xlu0 %3118  ;;  %v3638_v12 = vrot.slane %v10637_v27, 1 }
 0x2d7   : > { %v2892_v2 = vadd.f32 %v2800_v53, %v10039_v57  ;;  %v2940_v19 = vadd.f32 %v10154_v0, %v2891_v33  ;;  %v3676_v46 = vsel %vm834_vm1, %v3636_v21, %v3637_v43  ;;  %vm13116_vm5 = vcmp.eq.s32.totalorder %v10639_v8, 1 }
 0x2d8   : > { %13483 = vst [vmem:[#allocation103_spill] sm:$0xff] %v10623_v51  ;;  %v10633_v15 = vpack.c.bf16 %v3676_v46, %v3677_v35  ;;  %v10663_v51 = vpop.permute.xlu1 %3121  ;;  %v3675_v50 = vsel %vm834_vm1, %v3637_v43, %v3638_v12 }
 0x2d9   : > { %v2982_v57 = vmax.f32 %v2940_v19, 0.0  ;;  %v2941_v35 = vadd.f32 %v10154_v0, %v2892_v2  ;;  %13488 = vst [vmem:[#allocation108_spill] sm:$0xff] %v10663_v51 }
 0x2da   : > { %13485 = vst [vmem:[#allocation105_spill] sm:$0xff] %v10633_v15  ;;  %v2804_v44 = vpop.f32.mrb[220].mxu0 }
 0x2db   : > { %v2805_v4 = vadd.f32 %v2804_v44, %v10495_v41  ;;  %v7254_v33 = vpop.f32.mrb[221].mxu0  ;;  %v10643_v53 = vpop.f32.mrb[236].mxu1  ;;  %7341 = vmatmul.mubr.bf16.gmra.mrb[36].mxu0 %v10633_v15  ;;  %v10654_v41 = vsel %vm13115_vm14, %v2982_v57, 0.0  ;;  %v2983_v44 = vmax.f32 %v2941_v35, 0.0  ;;  %vm13121_vm14 = vcmp.eq.s32.totalorder %v10663_v51, 1 }
 0x2dc   : > { %v2807_v14 = vpop.f32.mrb[222].mxu0  ;;  %v2637_v21 = vpop.f32.mrb[237].mxu1  ;;  %7344 = vmatprep.mubr.msk.bf16.mxu0 %vm7817_vm0, %v13266_v62  ;;  %13486 = vst [vmem:[#allocation106_spill] sm:$0xff] %v10654_v41 }
 0x2dd   : > { %v7255_v30 = vpop.f32.mrb[223].mxu0  ;;  %v10650_v19 = vpop.f32.mrb[238].mxu1  ;;  %v2893_v46 = vadd.f32 %v2805_v4, %v10055_v26  ;;  %v2808_v33 = vadd.f32 %v2807_v14, %v10502_v52  ;;  %v3639_v21 = vrot.slane %v10654_v41, 1  ;;  %v10674_v4 = vsel %vm13116_vm5, %v2983_v44, 0.0 }
 0x2de   : > { %v2640_v2 = vpop.f32.mrb[239].mxu1  ;;  %v10660_v30 = vpack.c.bf16 %v2983_v44, %v2982_v57  ;;  %13490 = vst [vmem:[#allocation110_spill] sm:$0xff] %v10674_v4  ;;  %v10676_v35 = vpop.permute.xlu0 %3124  ;;  %v3640_v44 = vrot.slane %v10674_v4, 1 }
 0x2df   : > { %v2894_v15 = vadd.f32 %v2808_v33, %v10060_v1  ;;  %v2942_v24 = vadd.f32 %v10154_v0, %v2893_v46  ;;  %v3674_v26 = vsel %vm834_vm1, %v3638_v12, %v3639_v21  ;;  %vm13122_vm5 = vcmp.eq.s32.totalorder %v10676_v35, 1 }
 0x2e0   : > { %13487 = vst [vmem:[#allocation107_spill] sm:$0xff] %v10660_v30  ;;  %v10670_v52 = vpack.c.bf16 %v3674_v26, %v3675_v50  ;;  %v10700_v30 = vpop.permute.xlu1 %3127  ;;  %v3673_v41 = vsel %vm834_vm1, %v3639_v21, %v3640_v44 }
 0x2e1   : > { %v2984_v1 = vmax.f32 %v2942_v24, 0.0  ;;  %v2943_v50 = vadd.f32 %v10154_v0, %v2894_v15  ;;  %13493 = vst [vmem:[#allocation113_spill] sm:$0xff] %v10700_v30 }
 0x2e2   : > { %13489 = vst [vmem:[#allocation109_spill] sm:$0xff] %v10670_v52  ;;  %v2812_v57 = vpop.f32.mrb[224].mxu0 }
 0x2e3   : > { %v2813_v14 = vadd.f32 %v2812_v57, %v10532_v60  ;;  %v7258_v46 = vpop.f32.mrb[225].mxu0  ;;  %v10680_v33 = vpop.f32.mrb[240].mxu1  ;;  %7345 = vmatmul.mubr.bf16.gmra.mrb[40].mxu0 %v10670_v52  ;;  %v10691_v60 = vsel %vm13121_vm14, %v2984_v1, 0.0  ;;  %v2985_v57 = vmax.f32 %v2943_v50, 0.0  ;;  %vm13127_vm14 = vcmp.eq.s32.totalorder %v10700_v30, 1 }
 0x2e4   : > { %v2815_v43 = vpop.f32.mrb[226].mxu0  ;;  %v2645_v12 = vpop.f32.mrb[241].mxu1  ;;  %7348 = vmatprep.mubr.msk.bf16.mxu0 %vm7817_vm0, %v13266_v62  ;;  %13491 = vst [vmem:[#allocation111_spill] sm:$0xff] %v10691_v60 }
 0x2e5   : > { %v7259_v2 = vpop.f32.mrb[227].mxu0  ;;  %v10687_v24 = vpop.f32.mrb[242].mxu1  ;;  %v2895_v26 = vadd.f32 %v2813_v14, %v10075_v11  ;;  %v2816_v46 = vadd.f32 %v2815_v43, %v10539_v10  ;;  %v3641_v12 = vrot.slane %v10691_v60, 1  ;;  %v10711_v14 = vsel %vm13122_vm5, %v2985_v57, 0.0 }
 0x2e6   : > { %v2648_v15 = vpop.f32.mrb[243].mxu1  ;;  %v10697_v2 = vpack.c.bf16 %v2985_v57, %v2984_v1  ;;  %13495 = vst [vmem:[#allocation115_spill] sm:$0xff] %v10711_v14  ;;  %v10713_v50 = vpop.permute.xlu0 %3130  ;;  %v3642_v57 = vrot.slane %v10711_v14, 1 }
 0x2e7   : > { %v2896_v52 = vadd.f32 %v2816_v46, %v10079_v42  ;;  %v2944_v51 = vadd.f32 %v10154_v0, %v2895_v26  ;;  %v3672_v11 = vsel %vm834_vm1, %v3640_v44, %v3641_v12  ;;  %vm13128_vm5 = vcmp.eq.s32.totalorder %v10713_v50, 1 }
 0x2e8   : > { %13492 = vst [vmem:[#allocation112_spill] sm:$0xff] %v10697_v2  ;;  %v10707_v10 = vpack.c.bf16 %v3672_v11, %v3673_v41  ;;  %v10737_v2 = vpop.permute.xlu1 %3133  ;;  %v3671_v60 = vsel %vm834_vm1, %v3641_v12, %v3642_v57 }
 0x2e9   : > { %v2986_v42 = vmax.f32 %v2944_v51, 0.0  ;;  %v2945_v41 = vadd.f32 %v10154_v0, %v2896_v52  ;;  %13497 = vst [vmem:[#allocation117_spill] sm:$0xff] %v10737_v2 }
 0x2ea   : > { %13494 = vst [vmem:[#allocation114_spill] sm:$0xff] %v10707_v10  ;;  %v2820_v1 = vpop.f32.mrb[228].mxu0 }
 0x2eb   : > { %v2821_v43 = vadd.f32 %v2820_v1, %v10569_v7  ;;  %v7262_v26 = vpop.f32.mrb[229].mxu0  ;;  %v10717_v46 = vpop.f32.mrb[244].mxu1  ;;  %7349 = vmatmul.mubr.bf16.gmra.mrb[44].mxu0 %v10707_v10  ;;  %v10728_v7 = vsel %vm13127_vm14, %v2986_v42, 0.0  ;;  %v2987_v1 = vmax.f32 %v2945_v41, 0.0  ;;  %vm13131_vm14 = vcmp.eq.s32.totalorder %v10737_v2, 1 }
 0x2ec   : > { %v2823_v21 = vpop.f32.mrb[230].mxu0  ;;  %v2653_v44 = vpop.f32.mrb[245].mxu1  ;;  %7352 = vmatprep.mubr.msk.bf16.mxu0 %vm7817_vm0, %v13266_v62  ;;  %13496 = vst [vmem:[#allocation116_spill] sm:$0xff] %v10728_v7  ;;  %v10779_v2 = vld [vmem:[%s12907_s3] ss:$0 sm:$0xff] }
 0x2ed   : > { %v7263_v15 = vpop.f32.mrb[231].mxu0  ;;  %v10724_v51 = vpop.f32.mrb[246].mxu1  ;;  %v2897_v11 = vadd.f32 %v2821_v43, %v10086_v56  ;;  %v2824_v26 = vadd.f32 %v2823_v21, %v10576_v45  ;;  %v3643_v44 = vrot.slane %v10728_v7, 1  ;;  %v10748_v43 = vsel %vm13128_vm5, %v2987_v1, 0.0 }
 0x2ee   : > { %v2656_v52 = vpop.f32.mrb[247].mxu1  ;;  %v10734_v15 = vpack.c.bf16 %v2987_v1, %v2986_v42  ;;  %13499 = vst [vmem:[#allocation119_spill] sm:$0xff] %v10748_v43  ;;  %v10750_v41 = vpop.permute.xlu0 %3136  ;;  %v3644_v1 = vrot.slane %v10748_v43, 1 }
 0x2ef   : > { %v2898_v10 = vadd.f32 %v2824_v26, %v10090_v48  ;;  %v2946_v30 = vadd.f32 %v10154_v0, %v2897_v11  ;;  %v3670_v56 = vsel %vm834_vm1, %v3642_v57, %v3643_v44  ;;  %13500 = vst [vmem:[#allocation120_spill] sm:$0xff] %v10750_v41  ;;  %vm13132_vm5 = vcmp.eq.s32.totalorder %v10750_v41, 1 }
 0x2f0   : > { %v10744_v45 = vpack.c.bf16 %v3670_v56, %v3671_v60 }
 0x2f1   : > { %v2988_v48 = vmax.f32 %v2946_v30, 0.0  ;;  %v2947_v60 = vadd.f32 %v10154_v0, %v2898_v10 }
 0x2f2   : > { %13498 = vst [vmem:[#allocation118_spill] sm:$0xff] %v10744_v45  ;;  %v2828_v42 = vpop.f32.mrb[232].mxu0 }
 0x2f3   : > { %v2829_v21 = vadd.f32 %v2828_v42, %v10606_v63  ;;  %v7266_v11 = vpop.f32.mrb[233].mxu0  ;;  %v10754_v26 = vpop.f32.mrb[248].mxu1  ;;  %7353 = vmatmul.mubr.bf16.gmra.mrb[48].mxu0 %v10744_v45  ;;  %v10765_v63 = vsel %vm13131_vm14, %v2988_v48, 0.0  ;;  %v2989_v42 = vmax.f32 %v2947_v60, 0.0 }
 0x2f4   : > { %v2831_v12 = vpop.f32.mrb[234].mxu0  ;;  %v2661_v57 = vpop.f32.mrb[249].mxu1  ;;  %7356 = vmatprep.mubr.msk.bf16.mxu0 %vm7817_vm0, %v13266_v62  ;;  %13501 = vst [vmem:[#allocation121_spill] sm:$0xff] %v10765_v63  ;;  %v3645_v10 = vrot.slane %v10765_v63, 1 }
 0x2f5   : > { %v7267_v52 = vpop.f32.mrb[235].mxu0  ;;  %v10761_v30 = vpop.f32.mrb[250].mxu1  ;;  %v2899_v56 = vadd.f32 %v2829_v21, %v10098_v59  ;;  %v2832_v11 = vadd.f32 %v2831_v12, %v10613_v54  ;;  %v10771_v57 = vpack.c.bf16 %v2989_v42, %v2988_v48  ;;  %v3669_v54 = vsel %vm834_vm1, %v3643_v44, %v3644_v1 }
 0x2f6   : > { %v2664_v0 = vpop.f32.mrb[251].mxu1  ;;  %v10774_v45 = vpop.permute.xlu1 %3139  ;;  %v3668_v21 = vsel %vm834_vm1, %v3644_v1, %v3645_v10 }
 0x2f7   : > { %13502 = vst [vmem:[#allocation122_spill] sm:$0xff] %v10771_v57  ;;  %v2900_v52 = vadd.f32 %v2832_v11, %v10102_v61  ;;  %13503 = vst [vmem:[#allocation123_spill] sm:$0xff] %v10774_v45  ;;  %v2948_v59 = vadd.f32 %v10779_v2, %v2899_v56  ;;  %v10786_v60 = vpack.c.bf16 %v3668_v21, %v3669_v54  ;;  %v10790_v61 = vsel %vm13132_vm5, %v2989_v42, 0.0  ;;  %v10795_v56 = vpop.permute.xlu0 %3142 }
 0x2f8   : > { %13505 = vst [vmem:[#allocation125_spill] sm:$0xff] %v10790_v61  ;;  %vm13135_vm14 = vcmp.eq.s32.totalorder %v10774_v45, 1  ;;  %13506 = vst [vmem:[#allocation126_spill] sm:$0xff] %v10795_v56  ;;  %v3646_v54 = vrot.slane %v10790_v61, 1  ;;  %vm13136_vm5 = vcmp.eq.s32.totalorder %v10795_v56, 1 }
 0x2f9   : > { %13504 = vst [vmem:[#allocation124_spill] sm:$0xff] %v10786_v60  ;;  %v2990_v12 = vmax.f32 %v2948_v59, 0.0  ;;  %v2949_v44 = vadd.f32 %v10779_v2, %v2900_v52 }
 0x2fa   : > { %v2836_v48 = vpop.f32.mrb[236].mxu0  ;;  %v3667_v45 = vsel %vm834_vm1, %v3645_v10, %v3646_v54 }
 0x2fb   : > { %v2837_v11 = vadd.f32 %v2836_v48, %v10643_v53  ;;  %v7270_v0 = vpop.f32.mrb[237].mxu0  ;;  %7357 = vmatmul.mubr.bf16.gmra.mrb[52].mxu0 %v10786_v60  ;;  %v10803_v42 = vsel %vm13135_vm14, %v2990_v12, 0.0  ;;  %v2991_v59 = vmax.f32 %v2949_v44, 0.0  ;;  %v10812_v60 = vpop.permute.xlu1 %3145 }
 0x2fc   : > { %v2839_v1 = vpop.f32.mrb[238].mxu0  ;;  %7360 = vmatprep.mubr.msk.bf16.mxu0 %vm7817_vm0, %v13266_v62  ;;  %13507 = vst [vmem:[#allocation127_spill] sm:$0xff] %v10803_v42  ;;  %v3647_v0 = vrot.slane %v10803_v42, 1  ;;  %13509 = vst [vmem:[#allocation129_spill] sm:$0xff] %v10812_v60  ;;  %v10825_v44 = vpop.permute.xlu0 %3148  ;;  %vm13141_vm14 = vcmp.eq.s32.totalorder %v10812_v60, 1 }
 0x2fd   : > { %v7271_v21 = vpop.f32.mrb[239].mxu0  ;;  %v2901_v53 = vadd.f32 %v2837_v11, %v10109_v37  ;;  %v2840_v48 = vadd.f32 %v2839_v1, %v10650_v19  ;;  %v10809_v52 = vpack.c.bf16 %v2991_v59, %v2990_v12  ;;  %v10823_v19 = vsel %vm13136_vm5, %v2991_v59, 0.0  ;;  %13512 = vst [vmem:[#allocation132_spill] sm:$0xff] %v10825_v44 }
 0x2fe   : > { %v3666_v37 = vsel %vm834_vm1, %v3646_v54, %v3647_v0  ;;  %13511 = vst [vmem:[#allocation131_spill] sm:$0xff] %v10823_v19  ;;  %vm13143_vm5 = vcmp.eq.s32.totalorder %v10825_v44, 1  ;;  %v13524_v44 = vld [vmem:[#allocation78_spill] sm:$0xff] }
 0x2ff   : > { %13508 = vst [vmem:[#allocation128_spill] sm:$0xff] %v10809_v52  ;;  %v2902_v21 = vadd.f32 %v2840_v48, %v10111_v6  ;;  %v2950_v57 = vadd.f32 %v10779_v2, %v2901_v53  ;;  %v10819_v11 = vpack.c.bf16 %v3666_v37, %v3667_v45  ;;  %v3648_v45 = vrot.slane %v10823_v19, 1  ;;  %v10834_v59 = vpop.permute.xlu1 %3151 }
 0x300   : > { %13513 = vst [vmem:[#allocation133_spill] sm:$0xff] %v10834_v59 }
 0x301   : > { %13510 = vst [vmem:[#allocation130_spill] sm:$0xff] %v10819_v11  ;;  %v2992_v6 = vmax.f32 %v2950_v57, 0.0  ;;  %v2951_v10 = vadd.f32 %v10779_v2, %v2902_v21  ;;  %v3665_v60 = vsel %vm834_vm1, %v3647_v0, %v3648_v45 }
 0x302   : > { %v2844_v12 = vpop.f32.mrb[240].mxu0 }
 0x303   : > { %v2845_v1 = vadd.f32 %v2844_v12, %v10680_v33  ;;  %v7274_v53 = vpop.f32.mrb[241].mxu0  ;;  %7361 = vmatmul.mubr.bf16.gmra.mrb[56].mxu0 %v10819_v11  ;;  %v10838_v57 = vsel %vm13141_vm14, %v2992_v6, 0.0  ;;  %v2993_v37 = vmax.f32 %v2951_v10, 0.0  ;;  %v13517_v11 = vld [vmem:[#allocation29_spill] sm:$0xff]  ;;  %vm3204_vm14 = vcmp.eq.s32.totalorder %v10834_v59, 1 }
 0x304   : > { %v2847_v54 = vpop.f32.mrb[242].mxu0  ;;  %7364 = vmatprep.mubr.msk.bf16.mxu0 %vm7817_vm0, %v13266_v62  ;;  %13514 = vst [vmem:[#allocation134_spill] sm:$0xff] %v10838_v57  ;;  %v10842_v53 = vpop.permute.xlu0 %3154  ;;  %v3649_v21 = vrot.slane %v10838_v57, 1 }
 0x305   : > { %v7275_v48 = vpop.f32.mrb[243].mxu0  ;;  %v2903_v33 = vadd.f32 %v2845_v1, %v10117_v18  ;;  %v2848_v12 = vadd.f32 %v2847_v54, %v10687_v24  ;;  %13515 = vst [vmem:[#allocation135_spill] sm:$0xff] %v10842_v53  ;;  %v10854_v1 = vpop.permute.xlu1 %3157  ;;  %v10860_v10 = vsel %vm13143_vm5, %v2993_v37, 0.0  ;;  %vm13152_vm13 = vcmp.eq.s32.totalorder %v10842_v53, 1 }
 0x306   : > { %v10846_v48 = vpack.c.bf16 %v2993_v37, %v2992_v6  ;;  %v3664_v18 = vsel %vm834_vm1, %v3648_v45, %v3649_v21  ;;  %13518 = vst [vmem:[#allocation29_spill] sm:$0xff] %v10854_v1  ;;  %13520 = vst [vmem:[#allocation138_spill] sm:$0xff] %v10860_v10  ;;  %vm3206_vm5 = vcmp.eq.s32.totalorder %v10854_v1, 1  ;;  %v13525_v53 = vrot.slane %v10860_v10, 5  ;;  %v13535_v1 = vld [vmem:[#allocation39_spill] sm:$0xff] }
 0x307   : > { %v2904_v52 = vadd.f32 %v2848_v12, %v13517_v11  ;;  %v2952_v42 = vadd.f32 %v10779_v2, %v2903_v33  ;;  %v10856_v24 = vpack.c.bf16 %v3664_v18, %v3665_v60  ;;  %v3650_v60 = vrot.slane %v10860_v10, 1 }
 0x308   : > { %13516 = vst [vmem:[#allocation136_spill] sm:$0xff] %v10846_v48  ;;  %v10862_v54 = vpop.permute.xlu0 %3160 }
 0x309   : > { %13519 = vst [vmem:[#allocation137_spill] sm:$0xff] %v10856_v24  ;;  %v2994_v11 = vmax.f32 %v2952_v42, 0.0  ;;  %v2953_v45 = vadd.f32 %v10779_v2, %v2904_v52  ;;  %vm13163_vm12 = vcmp.eq.s32.totalorder %v10862_v54, 1  ;;  %v13522_v42 = vld [vmem:[#allocation35_spill] sm:$0xff] }
 0x30a   : > { %v2852_v6 = vpop.f32.mrb[244].mxu0 }
 0x30b   : > { %v2853_v33 = vadd.f32 %v2852_v6, %v10717_v46  ;;  %v7278_v0 = vpop.f32.mrb[245].mxu0  ;;  %7365 = vmatmul.mubr.bf16.gmra.mrb[60].mxu0 %v10856_v24  ;;  %v10876_v46 = vsel %vm3204_vm14, %v2994_v11, 0.0  ;;  %v2995_v52 = vmax.f32 %v2953_v45, 0.0  ;;  %v10892_v45 = vpop.permute.xlu1 %3163 }
 0x30c   : > { %v2855_v12 = vpop.f32.mrb[246].mxu0  ;;  %7368 = vmatprep.mubr.msk.bf16.mxu0 %vm7817_vm0, %v13266_v62  ;;  %13521 = vst [vmem:[#allocation139_spill] sm:$0xff] %v10876_v46  ;;  %v3456_v24 = vrot.slane %v10876_v46, 7  ;;  %v3651_v48 = vrot.slane %v10876_v46, 1  ;;  %v13531_v63 = vrot.slane %v10876_v46, 3 }
 0x30d   : > { %v7279_v37 = vpop.f32.mrb[247].mxu0  ;;  %v2905_v18 = vadd.f32 %v2853_v33, %v13522_v42  ;;  %v2856_v6 = vadd.f32 %v2855_v12, %v10724_v51  ;;  %v10886_v57 = vsel %vm13152_vm13, %v2995_v52, 0.0  ;;  %v10888_v59 = vpack.c.bf16 %v2995_v52, %v2994_v11 }
 0x30e   : > { %v3288_v37 = vrot.slane %v10876_v46, 5  ;;  %v3663_v12 = vsel %vm834_vm1, %v3649_v21, %v3650_v60  ;;  %v3662_v42 = vsel %vm834_vm1, %v3650_v60, %v3651_v48  ;;  %v3457_v52 = vrot.slane %v10886_v57, 7 }
 0x30f   : > { %13523 = vst [vmem:[#allocation35_spill] sm:$0xff] %v10888_v59  ;;  %v2906_v56 = vadd.f32 %v2856_v6, %v13524_v44  ;;  %v2954_v33 = vadd.f32 %v10779_v2, %v2905_v18  ;;  %v10906_v44 = vpack.c.bf16 %v3662_v42, %v3663_v12  ;;  %v3289_v18 = vrot.slane %v10886_v57, 5 }
 0x310   : > { %v10904_v11 = vsel %vm468_vm4, %v13525_v53, %v3288_v37  ;;  %v3652_v21 = vrot.slane %v10886_v57, 1  ;;  %v5003_v51 = vrot.slane %v10886_v57, 3  ;;  %vm3208_vm13 = vcmp.eq.s32.totalorder %v10892_v45, 1 }
 0x311   : > { %13526 = vst [vmem:[#allocation78_spill] sm:$0xff] %v10904_v11  ;;  %13527 = vst [vmem:[#allocation140_spill] sm:$0xff] %v10906_v44  ;;  %v2996_v60 = vmax.f32 %v2954_v33, 0.0  ;;  %v13528_v53 = vrot.slane %v10860_v10, 7  ;;  %v10920_v42 = vsel %vm468_vm4, %v3288_v37, %v3289_v18  ;;  %v3466_v19 = vsel %vm638_vm2, %v3456_v24, %v3457_v52 }
 0x312   : > { %v2860_v6 = vpop.f32.mrb[248].mxu0  ;;  %13529 = vst [vmem:[#allocation141_spill] sm:$0xff] %v10920_v42  ;;  %v2955_v33 = vadd.f32 %v10779_v2, %v2906_v56  ;;  %v10936_v37 = vsel %vm13173_vm15, %v13531_v63, %v5003_v51 }
 0x313   : > { %v2861_v0 = vadd.f32 %v2860_v6, %v10754_v26  ;;  %v7282_v59 = vpop.f32.mrb[249].mxu0  ;;  %v3467_v12 = vsel %vm638_vm2, %v13528_v53, %v3456_v24  ;;  %7369 = vmatmul.mubr.bf16.gmra.mrb[64].mxu0 %v10906_v44  ;;  %v3661_v53 = vsel %vm834_vm1, %v3651_v48, %v3652_v21  ;;  %13532 = vst [vmem:[#allocation143_spill] sm:$0xff] %v10936_v37  ;;  %v10942_v56 = vsel %vm3206_vm5, %v2996_v60, 0.0 }
 0x314   : > { %v2863_v26 = vpop.f32.mrb[250].mxu0  ;;  %v10928_v6 = vpack.c.bf16 %v3466_v19, %v3467_v12  ;;  %7372 = vmatprep.mubr.msk.bf16.mxu0 %vm7817_vm0, %v13266_v62  ;;  %v13533_v59 = vld [vmem:[#allocation32_spill] sm:$0xff]  ;;  %v2997_v12 = vmax.f32 %v2955_v33, 0.0  ;;  %v3290_v48 = vrot.slane %v10942_v56, 5  ;;  %v3458_v11 = vrot.slane %v10942_v56, 7 }
 0x315   : > { %v7283_v24 = vpop.f32.mrb[251].mxu0  ;;  %v2907_v19 = vadd.f32 %v2861_v0, %v13533_v59  ;;  %v2864_v44 = vadd.f32 %v2863_v26, %v10761_v30  ;;  %v3653_v63 = vrot.slane %v10942_v56, 1 }
 0x316   : > { %13530 = vst [vmem:[#allocation142_spill] sm:$0xff] %v10928_v6  ;;  %v5004_v24 = vrot.slane %v10942_v56, 3  ;;  %v10952_v42 = vsel %vm13163_vm12, %v2997_v12, 0.0  ;;  %v10954_v6 = vpack.c.bf16 %v2997_v12, %v2996_v60  ;;  %v10960_v30 = vsel %vm468_vm4, %v3289_v18, %v3290_v48 }
 0x317   : > { %v2908_v41 = vadd.f32 %v2864_v44, %v13535_v1  ;;  %v2956_v0 = vadd.f32 %v10779_v2, %v2907_v19  ;;  %13536 = vst [vmem:[#allocation39_spill] sm:$0xff] %v10960_v30  ;;  %v3465_v33 = vsel %vm638_vm2, %v3457_v52, %v3458_v11  ;;  %v3660_v26 = vsel %vm834_vm1, %v3652_v21, %v3653_v63 }
 0x318   : > { %13534 = vst [vmem:[#allocation32_spill] sm:$0xff] %v10954_v6  ;;  %v10968_v59 = vsel %vm13173_vm15, %v5003_v51, %v5004_v24  ;;  %v10970_v60 = vpack.c.bf16 %v3660_v26, %v3661_v53  ;;  %v3291_v44 = vrot.slane %v10952_v42, 5  ;;  %v3459_v18 = vrot.slane %v10952_v42, 7  ;;  %v13539_v6 = vld [vmem:[#allocation36_spill] sm:$0xff] }
 0x319   : > { %13537 = vst [vmem:[#allocation144_spill] sm:$0xff] %v10968_v59  ;;  %v3654_v19 = vrot.slane %v10952_v42, 1  ;;  %v5005_v52 = vrot.slane %v10952_v42, 3  ;;  %v2957_v12 = vadd.f32 %v10779_v2, %v2908_v41  ;;  %v2998_v21 = vmax.f32 %v2956_v0, 0.0 }
 0x31a   : > { %13538 = vst [vmem:[#allocation145_spill] sm:$0xff] %v10970_v60  ;;  %vm3209_vm12 = vcmp.eq.s32.totalorder %v13539_v6, 1  ;;  %v10982_v51 = vsel %vm468_vm4, %v3290_v48, %v3291_v44  ;;  %v3464_v53 = vsel %vm638_vm2, %v3458_v11, %v3459_v18 }
 0x31b   : > { %13540 = vst [vmem:[#allocation36_spill] sm:$0xff] %v10982_v51  ;;  %7373 = vmatmul.mubr.bf16.gmra.mrb[68].mxu0 %v10970_v60  ;;  %v10989_v1 = vpack.c.bf16 %v3464_v53, %v3465_v33  ;;  %v3659_v2 = vsel %vm834_vm1, %v3653_v63, %v3654_v19  ;;  %v10995_v41 = vsel %vm13173_vm15, %v5004_v24, %v5005_v52  ;;  %v2999_v48 = vmax.f32 %v2957_v12, 0.0 }
 0x31c   : > { %13542 = vst [vmem:[#allocation147_spill] sm:$0xff] %v10995_v41  ;;  %7376 = vmatprep.mubr.msk.bf16.mxu0 %vm7817_vm0, %v13266_v62  ;;  %v11001_v11 = vsel %vm3208_vm13, %v2998_v21, 0.0  ;;  %v3421_v12 = vrot.slane %v10183_v31, 7  ;;  %v13551_v41 = vrot.slane %v10196_v9, 1 }
 0x31d   : > { %13541 = vst [vmem:[#allocation146_spill] sm:$0xff] %v10989_v1  ;;  %13543 = vst [vmem:[#allocation148_spill] sm:$0xff] %v11001_v11  ;;  %v3292_v0 = vrot.slane %v11001_v11, 5  ;;  %v3460_v33 = vrot.slane %v11001_v11, 7  ;;  %v3655_v53 = vrot.slane %v11001_v11, 1  ;;  %v11009_v24 = vsel %vm3209_vm12, %v2999_v48, 0.0 }
 0x31e   : > { %13544 = vst [vmem:[#allocation149_spill] sm:$0xff] %v11009_v24  ;;  %v11011_v26 = vpack.c.bf16 %v2999_v48, %v2998_v21  ;;  %v13172_v60 = vrot.slane %v11009_v24, 5  ;;  %v3461_v30 = vrot.slane %v11009_v24, 7  ;;  %v13546_v59 = vrot.slane %v11001_v11, 3 }
 0x31f   : > { %v11018_v51 = vsel %vm468_vm4, %v3291_v44, %v3292_v0  ;;  %v3463_v37 = vsel %vm638_vm2, %v3459_v18, %v3460_v33  ;;  %v3658_v63 = vsel %vm834_vm1, %v3654_v19, %v3655_v53  ;;  %v3420_v48 = vrot.slane %v10196_v9, 7 }
 0x320   : > { %13545 = vst [vmem:[#allocation150_spill] sm:$0xff] %v11011_v26  ;;  %v11028_v21 = vsel %vm13173_vm15, %v5005_v52, %v13546_v59  ;;  %v11035_v44 = vsel %vm468_vm4, %v3292_v0, %v13172_v60  ;;  %v3462_v18 = vsel %vm638_vm2, %v3460_v33, %v3461_v30  ;;  %v3376_v31 = vrot.slane %v11001_v11, 6  ;;  %vm6442_vm15 = vmpackc.low %vm3171_vm7, %vm3170_vm6 }
 0x321   : > { %13547 = vst [vmem:[#allocation151_spill] sm:$0xff] %v11028_v21  ;;  %v11042_v26 = vpack.c.bf16 %v3462_v18, %v3463_v37  ;;  %v11044_v59 = vpack.c.bf16 %v3658_v63, %v3659_v2  ;;  %v3502_v52 = vsel %vm638_vm2, %v3420_v48, %v3421_v12  ;;  %v3375_v1 = vrot.slane %v10952_v42, 6  ;;  %v7735_v37 = vld [vmem:[%s12908_s4] sm:$0xff]  }
 0x322   : > { %v3656_v0 = vrot.slane %v11009_v24, 1  ;;  %v3503_v33 = vsel %vm638_vm2, %v3461_v30, %v3420_v48  ;;  %v13176_v2 = vrot.slane %v11009_v24, 6  ;;  %v3423_v19 = vrot.slane %v10213_v3, 7 }
 0x323   : > { %13548 = vst [vmem:[#allocation152_spill] sm:$0xff] %v11044_v59  ;;  %7377 = vmatmul.mubr.bf16.gmra.mrb[72].mxu0 %v11044_v59  ;;  %v11059_v63 = vpack.c.bf16 %v3502_v52, %v3503_v33  ;;  %v11063_v18 = vsel %vm553_vm3, %v3375_v1, %v3376_v31  ;;  %v13550_v33 = vld [vmem:[#allocation47_spill] sm:$0xff]  ;;  %vm13567_vm7 = vcmp.eq.s32.totalorder %v10314_v32, 1 }
 0x324   : > { %7380 = vmatprep.mubr.msk.bf16.mxu0 %vm7817_vm0, %v13266_v62  ;;  %v11072_v30 = vsel %vm553_vm3, %v3376_v31, %v13176_v2  ;;  %v3422_v60 = vrot.slane %v13550_v33, 7  ;;  %v3657_v59 = vsel %vm834_vm1, %v3655_v53, %v3656_v0  ;;  %v3698_v31 = vsel %vm834_vm1, %v3656_v0, %v13551_v41  ;;  %v13552_v2 = vld [vmem:[#allocation51_spill] sm:$0xff]  ;;  %v7740_v41 = vld [vmem:[%s12908_s4 + $0x10] sm:$0xff]   ;;  %vm6445_vm1 = vmpackc.low %vm3173_vm9, %vm3172_vm8 }
 0x325   : > { %3967 = vmatmul.mubr.bf16.vlgmr.msra.gmra.mrb[252].mxu1 %v11059_v63  ;;  %v11095_v52 = vpack.c.bf16 %v3698_v31, %v3657_v59  ;;  %v3424_v59 = vrot.slane %v10235_v49, 7  ;;  %v7741_v31 = vld [vmem:[%s12908_s4 + $0x18] sm:$0xff]   ;;  %v7744_v49 = vld [vmem:[%s12908_s4 + $0x30] sm:$0xff]   ;;  %v13664_v6 = vpack.c.bf16 %v11072_v30, %v11063_v18 }
 0x326   : > { %6444 = vmatprep.mubr.msk.bf16.mxu1 %vm6442_vm15, %v13552_v2  ;;  %4481 = vmatpush1.bf16.msra.mxu1 %v7735_v37  ;;  %v3500_v48 = vsel %vm638_vm2, %v3422_v60, %v3423_v19  ;;  %v3501_v53 = vsel %vm638_vm2, %v3421_v12, %v3422_v60  ;;  %v3425_v37 = vrot.slane %v10264_v47, 7  ;;  %v13556_v12 = vld [vmem:[#allocation64_spill] sm:$0xff]  ;;  %v7742_v2 = vld [vmem:[%s12908_s4 + $0x20] sm:$0xff]   ;;  %v3372_v60 = vrot.slane %v10876_v46, 6  ;;  %vm6448_vm15 = vmpackc.low %vm3175_vm11, %vm3174_vm10 }
 0x327   : > { %4482 = vmatprep.subr.bf16.mxu1 %v13306_v36  ;;  %13553 = vst [vmem:[#allocation43_spill] sm:$0xff] %v11095_v52  ;;  %v11102_v0 = vpack.c.bf16 %v3500_v48, %v3501_v53  ;;  %v3499_v48 = vsel %vm638_vm2, %v3423_v19, %v3424_v59  ;;  %v3427_v19 = vrot.slane %v10312_v28, 7  ;;  %v7743_v47 = vld [vmem:[%s12908_s4 + $0x28] sm:$0xff]   ;;  %vm13572_vm10 = vcmp.eq.s32.totalorder %v10355_v5, 1 }
 0x32a   : > { %4483 = vmatpush1.bf16.msra.mxu1 %v7739_v38  ;;  %v3498_v38 = vsel %vm638_vm2, %v3424_v59, %v3425_v37  ;;  %v13562_v59 = vld [vmem:[#allocation59_spill] sm:$0xff] }
 0x32b   : > { %7381 = vmatmul.mubr.bf16.gmra.mrb[76].mxu0 %v11095_v52  ;;  %4484 = vmatprep.subr.bf16.mxu1 %v13306_v36  ;;  %v11124_v53 = vpack.c.bf16 %v3498_v38, %v3499_v48  ;;  %v3374_v52 = vrot.slane %v10942_v56, 6  ;;  %v3426_v28 = vrot.slane %v13562_v59, 7 }
 0x32c   : > { %7400 = vmatprep.mubr.msk.bf16.mxu0 %vm7817_vm0, %v13266_v62 }
 0x32d   : > { %3975 = vmatmul.mubr.bf16.gmra.mrb[0].mxu1 %v11102_v0  ;;  %v11155_v21 = vsel %vm553_vm3, %v3374_v52, %v3375_v1  ;;  %v4920_v1 = vrot.slane %v10942_v56, 2  ;;  %v3433_v56 = vrot.slane %v10447_v16, 7 }
 0x32e   : > { %6447 = vmatprep.mubr.msk.bf16.mxu1 %vm6445_vm1, %v13556_v12  ;;  %4485 = vmatpush1.bf16.msra.mxu1 %v7740_v41  ;;  %v13185_v41 = vrot.slane %v10860_v10, 6  ;;  %v3373_v12 = vrot.slane %v10886_v57, 6  ;;  %13561 = vst [vmem:[#allocation56_spill] sm:$0xff] %v11155_v21  ;;  %vm13575_vm1 = vcmp.lt.s32.totalorder %v7934_v20, 6  ;;  %v13586_v21 = vld [vmem:[#allocation82_spill] sm:$0xff] }
 0x32f   : > { %4486 = vmatprep.subr.bf16.mxu1 %v13306_v36 }
 0x330   : > { %v11145_v38 = vsel %vm553_vm3, %v3372_v60, %v3373_v12  ;;  %v11151_v48 = vsel %vm553_vm3, %v13185_v41, %v3372_v60  ;;  %v11166_v60 = vsel %vm553_vm3, %v3373_v12, %v3374_v52  ;;  %v7753_v52 = vld [vmem:[%s12908_s4 + $0x200] sm:$0xff]   ;;  %v3429_v12 = vrot.slane %v10353_v23, 7 }
 0x331   : > { %13559 = vst [vmem:[#allocation51_spill] sm:$0xff] %v11145_v38  ;;  %13560 = vst [vmem:[#allocation79_spill] sm:$0xff] %v11151_v48  ;;  %v13610_v38 = vld [vmem:[#allocation100_spill] sm:$0xff] }
 0x332   : > { %4487 = vmatpush1.bf16.msra.mxu1 %v7741_v31  ;;  %v13563_v31 = vld [vmem:[#allocation63_spill] sm:$0xff]  ;;  %13564 = vst [vmem:[#allocation64_spill] sm:$0xff] %v11166_v60 }
 0x333   : > { %7401 = vmatmul.mubr.bf16.vlgmr.msra.gmra.mrb[80].mxu0 %v11042_v26  ;;  %4488 = vmatprep.subr.bf16.mxu1 %v13306_v36 }
 0x334   : > { %7404 = vmatprep.mubr.msk.bf16.mxu0 %vm7817_vm0, %v13266_v62  ;;  %7485 = vmatpush3.bf16.msra.mxu0 %v7753_v52 }
 0x335   : > { %3983 = vmatmul.mubr.bf16.gmra.mrb[4].mxu1 %v11124_v53  ;;  %7486 = vmatprep.subr.bf16.mxu0 %v13266_v62 }
 0x336   : > { %6450 = vmatprep.mubr.msk.bf16.mxu1 %vm6448_vm15, %v13563_v31  ;;  %4489 = vmatpush1.bf16.msra.mxu1 %v7742_v2  ;;  %v3496_v31 = vsel %vm638_vm2, %v3426_v28, %v3427_v19  ;;  %v3497_v2 = vsel %vm638_vm2, %v3425_v37, %v3426_v28  ;;  %v13568_v28 = vld [vmem:[#allocation7_spill] sm:$0xff]  ;;  %v13569_v37 = vld [vmem:[#allocation73_spill] sm:$0xff]  ;;  %vm13577_vm15 = vmmov %vm13575_vm1 }
 0x337   : > { %4490 = vmatprep.subr.bf16.mxu1 %v13306_v36  ;;  %v11178_v41 = vpack.c.bf16 %v3496_v31, %v3497_v2  ;;  %v7745_v31 = vld [vmem:[%s12908_s4 + $0x38] sm:$0xff]   ;;  %v7754_v2 = vld [vmem:[%s12908_s4 + $0x208] sm:$0xff]  }
 0x338   : > { %7487 = vmatpush3.bf16.msra.mxu0 %v7754_v2  ;;  %v3431_v2 = vrot.slane %v10402_v22, 7 }
 0x339   : > { %7488 = vmatprep.subr.bf16.mxu0 %v13266_v62 }
 0x33a   : > { %4491 = vmatpush1.bf16.msra.mxu1 %v7743_v47  ;;  %v13565_v47 = vld [vmem:[#allocation76_spill] sm:$0xff] }
 0x33b   : > { %7405 = vmatmul.mubr.bf16.gmra.mrb[84].mxu0 %v11059_v63  ;;  %4492 = vmatprep.subr.bf16.mxu1 %v13306_v36  ;;  %vm13566_vm6 = vcmp.eq.s32.totalorder %v13565_v47, 1  ;;  %v3428_v63 = vrot.slane %v13568_v28, 7 }
 0x33c   : > { %7408 = vmatprep.mubr.msk.bf16.mxu0 %vm7817_vm0, %v13266_v62  ;;  %vm6451_vm8 = vmpackc.low %vm13567_vm7, %vm13566_vm6 }
 0x33d   : > { %3991 = vmatmul.mubr.bf16.gmra.mrb[8].mxu1 %v11178_v41  ;;  %v3494_v32 = vsel %vm638_vm2, %v3428_v63, %v3429_v12  ;;  %v3495_v52 = vsel %vm638_vm2, %v3427_v19, %v3428_v63  ;;  %v13570_v19 = vld [vmem:[#allocation75_spill] sm:$0xff] }
 0x33e   : > { %6453 = vmatprep.mubr.msk.bf16.mxu1 %vm6451_vm8, %v13569_v37  ;;  %4493 = vmatpush1.bf16.msra.mxu1 %v7744_v49  ;;  %v7746_v49 = vld [vmem:[%s12908_s4 + $0x40] sm:$0xff]   ;;  %v11211_v47 = vpack.c.bf16 %v3494_v32, %v3495_v52  ;;  %v7756_v37 = vld [vmem:[%s12908_s4 + $0x210] sm:$0xff]   ;;  %vm13571_vm9 = vcmp.eq.s32.totalorder %v13570_v19, 1  ;;  %v7747_v32 = vld [vmem:[%s12908_s4 + $0x48] sm:$0xff]  }
 0x33f   : > { %4494 = vmatprep.subr.bf16.mxu1 %v13306_v36  ;;  %vm6454_vm11 = vmpackc.low %vm13572_vm10, %vm13571_vm9  ;;  %7489 = vmatpush3.bf16.msra.mxu0 %v7756_v37  ;;  %v7757_v52 = vld [vmem:[%s12908_s4 + $0x218] sm:$0xff]   ;;  %v13187_v37 = vrot.slane %v10876_v46, 2 }
 0x340   : > { %7490 = vmatprep.subr.bf16.mxu0 %v13266_v62  ;;  %vm13583_vm9 = vmmov %vm13575_vm1 }
 0x341   : > { %vm13587_vm10 = vmmov %vm13575_vm1 }
 0x342   : > { %4495 = vmatpush1.bf16.msra.mxu1 %v7745_v31  ;;  %v13574_v31 = vld [vmem:[#allocation20_spill] sm:$0xff] }
 0x343   : > { %7409 = vmatmul.mubr.bf16.gmra.mrb[88].mxu0 %v11102_v0  ;;  %4496 = vmatprep.subr.bf16.mxu1 %v13306_v36  ;;  %v13573_v0 = vld [vmem:[#allocation17_spill] sm:$0xff] }
 0x344   : > { %7412 = vmatprep.mubr.msk.bf16.mxu0 %vm7817_vm0, %v13266_v62  ;;  %v3430_v63 = vrot.slane %v13573_v0, 7  ;;  %7491 = vmatpush3.bf16.msra.mxu0 %v7757_v52  ;;  %v13579_v52 = vld [vmem:[#allocation23_spill] sm:$0xff] }
 0x345   : > { %3999 = vmatmul.mubr.bf16.gmra.mrb[12].mxu1 %v11211_v47  ;;  %7492 = vmatprep.subr.bf16.mxu0 %v13266_v62  ;;  %vm13580_vm6 = vcmp.eq.s32.totalorder %v13579_v52, 1  ;;  %v7749_v52 = vld [vmem:[%s12908_s4 + $0x58] sm:$0xff]  }
 0x346   : > { %6456 = vmatprep.mubr.msk.bf16.mxu1 %vm6454_vm11, %v13574_v31  ;;  %4497 = vmatpush1.bf16.msra.mxu1 %v7746_v49  ;;  %v3492_v5 = vsel %vm638_vm2, %v3430_v63, %v3431_v2  ;;  %v4919_v49 = vrot.slane %v10886_v57, 2  ;;  %v3493_v19 = vsel %vm638_vm2, %v3429_v12, %v3430_v63  ;;  %v7748_v31 = vld [vmem:[%s12908_s4 + $0x50] sm:$0xff]   ;;  %v7758_v57 = vld [vmem:[%s12908_s4 + $0x220] sm:$0xff]   ;;  %v4921_v63 = vrot.slane %v10952_v42, 2 }
 0x347   : > { %4498 = vmatprep.subr.bf16.mxu1 %v13306_v36  ;;  %v11247_v60 = vpack.c.bf16 %v3492_v5, %v3493_v19  ;;  %v13581_v5 = vld [vmem:[#allocation80_spill] sm:$0xff]  ;;  %v3437_v42 = vrot.slane %v10526_v13, 7 }
 0x348   : > { %v11258_v12 = vsel %vm13575_vm1, %v13187_v37, %v4919_v49  ;;  %vm13582_vm7 = vcmp.eq.s32.totalorder %v13581_v5, 1  ;;  %7493 = vmatpush3.bf16.msra.mxu0 %v7758_v57  ;;  %v11278_v19 = vsel %vm13583_vm9, %v4920_v1, %v4921_v63  ;;  %v13585_v37 = vld [vmem:[#allocation81_spill] sm:$0xff]  ;;  %v7760_v57 = vld [vmem:[%s12908_s4 + $0x228] sm:$0xff]   ;;  %vm13591_vm1 = vcmp.eq.s32.totalorder %v10449_v17, 1 }
 0x349   : > { %13576 = vst [vmem:[#allocation55_spill] sm:$0xff] %v11258_v12  ;;  %vm6457_vm8 = vmpackc.low %vm13582_vm7, %vm13580_vm6  ;;  %7494 = vmatprep.subr.bf16.mxu0 %v13266_v62  ;;  %vm13596_vm7 = vcmp.eq.s32.totalorder %v10491_v34, 1 }
 0x34a   : > { %4499 = vmatpush1.bf16.msra.mxu1 %v7747_v32  ;;  %v13189_v32 = vrot.slane %v11001_v11, 2  ;;  %13584 = vst [vmem:[#allocation59_spill] sm:$0xff] %v11278_v19 }
 0x34b   : > { %7413 = vmatmul.mubr.bf16.gmra.mrb[92].mxu0 %v11124_v53  ;;  %4500 = vmatprep.subr.bf16.mxu1 %v13306_v36  ;;  %v11266_v53 = vsel %vm13577_vm15, %v4919_v49, %v4920_v1  ;;  %v3432_v49 = vrot.slane %v13585_v37, 7 }
 0x34c   : > { %7416 = vmatprep.mubr.msk.bf16.mxu0 %vm7817_vm0, %v13266_v62  ;;  %13578 = vst [vmem:[#allocation74_spill] sm:$0xff] %v11266_v53  ;;  %v11292_v5 = vsel %vm13587_vm10, %v4921_v63, %v13189_v32  ;;  %7495 = vmatpush3.bf16.msra.mxu0 %v7760_v57  ;;  %v7750_v63 = vld [vmem:[%s12908_s4 + $0x60] sm:$0xff]   ;;  %v3435_v57 = vrot.slane %v10489_v58, 7  ;;  %vm13602_vm10 = vcmp.eq.s32.totalorder %v10528_v29, 1  ;;  %v3441_v29 = vrot.slane %v10600_v39, 7  ;;  %v13605_v53 = vld [vmem:[#allocation96_spill] sm:$0xff] }
 0x34d   : > { %4007 = vmatmul.mubr.bf16.gmra.mrb[16].mxu1 %v11247_v60  ;;  %13588 = vst [vmem:[#allocation63_spill] sm:$0xff] %v11292_v5  ;;  %v3490_v1 = vsel %vm638_vm2, %v3432_v49, %v3433_v56  ;;  %7496 = vmatprep.subr.bf16.mxu0 %v13266_v62 }
 0x34e   : > { %6459 = vmatprep.mubr.msk.bf16.mxu1 %vm6457_vm8, %v13586_v21  ;;  %4501 = vmatpush1.bf16.msra.mxu1 %v7748_v31  ;;  %v3491_v31 = vsel %vm638_vm2, %v3431_v2, %v3432_v49  ;;  %v7761_v21 = vld [vmem:[%s12908_s4 + $0x230] sm:$0xff]   ;;  %v13589_v2 = vld [vmem:[#allocation83_spill] sm:$0xff]  ;;  %v13592_v49 = vld [vmem:[#allocation86_spill] sm:$0xff] }
 0x34f   : > { %4502 = vmatprep.subr.bf16.mxu1 %v13306_v36  ;;  %v3527_v32 = vpack.c.bf16 %v3490_v1, %v3491_v31  ;;  %vm13590_vm11 = vcmp.eq.s32.totalorder %v13589_v2, 1  ;;  %v7751_v1 = vld [vmem:[%s12908_s4 + $0x68] sm:$0xff]   ;;  %v7762_v31 = vld [vmem:[%s12908_s4 + $0x238] sm:$0xff]  }
 0x350   : > { %vm6460_vm15 = vmpackc.low %vm13591_vm1, %vm13590_vm11  ;;  %7497 = vmatpush3.bf16.msra.mxu0 %v7761_v21  ;;  %vm13606_vm1 = vcmp.eq.s32.totalorder %v13605_v53, 1 }
 0x351   : > { %7498 = vmatprep.subr.bf16.mxu0 %v13266_v62 }
 0x352   : > { %4503 = vmatpush1.bf16.msra.mxu1 %v7749_v52  ;;  %v13593_v52 = vld [vmem:[#allocation87_spill] sm:$0xff] }
 0x353   : > { %7417 = vmatmul.mubr.bf16.gmra.mrb[96].mxu0 %v11178_v41  ;;  %4504 = vmatprep.subr.bf16.mxu1 %v13306_v36  ;;  %v3434_v41 = vrot.slane %v13592_v49, 7 }
 0x354   : > { %7420 = vmatprep.mubr.msk.bf16.mxu0 %vm7817_vm0, %v13266_v62  ;;  %7499 = vmatpush3.bf16.msra.mxu0 %v7762_v31  ;;  %v13594_v31 = vld [vmem:[#allocation88_spill] sm:$0xff] }
 0x355   : > { %4015 = vmatmul.mubr.bf16.gmra.mrb[20].mxu1 %v3527_v32  ;;  %v3488_v17 = vsel %vm638_vm2, %v3434_v41, %v3435_v57  ;;  %v3489_v21 = vsel %vm638_vm2, %v3433_v56, %v3434_v41  ;;  %vm13595_vm6 = vcmp.eq.s32.totalorder %v13594_v31, 1  ;;  %v13598_v41 = vld [vmem:[#allocation90_spill] sm:$0xff] }
 0x356   : > { %6462 = vmatprep.mubr.msk.bf16.mxu1 %vm6460_vm15, %v13593_v52  ;;  %4505 = vmatpush1.bf16.msra.mxu1 %v7750_v63  ;;  %v7752_v63 = vld [vmem:[%s12908_s4 + $0x70] sm:$0xff]   ;;  %v3530_v2 = vpack.c.bf16 %v3488_v17, %v3489_v21  ;;  %vm6463_vm8 = vmpackc.low %vm13596_vm7, %vm13595_vm6  ;;  %vm13607_vm15 = vcmp.eq.s32.totalorder %v10565_v25, 1  ;;  %v3443_v25 = vrot.slane %v10637_v27, 7  ;;  %vm13611_vm7 = vcmp.eq.s32.totalorder %v13610_v38, 1 }
 0x357   : > { %4506 = vmatprep.subr.bf16.mxu1 %v13306_v36  ;;  %vm6469_vm6 = vmpackc.low %vm13607_vm15, %vm13606_vm1 }
 0x35a   : > { %4507 = vmatpush1.bf16.msra.mxu1 %v7751_v1  ;;  %v13599_v1 = vld [vmem:[#allocation91_spill] sm:$0xff] }
 0x35b   : > { %7421 = vmatmul.mubr.bf16.gmra.mrb[100].mxu0 %v11211_v47  ;;  %4508 = vmatprep.subr.bf16.mxu1 %v13306_v36  ;;  %v3436_v47 = vrot.slane %v13598_v41, 7 }
 0x35c   : > { %v11336_v52 = vpop.f32.mrb[252].mxu0  ;;  %7424 = vmatprep.mubr.msk.bf16.mxu0 %vm7817_vm0, %v13266_v62 }
 0x35d   : > { %v7302_v11 = vpop.f32.mrb[253].mxu0  ;;  %4023 = vmatmul.mubr.bf16.gmra.mrb[24].mxu1 %v3530_v2  ;;  %v3486_v21 = vsel %vm638_vm2, %v3436_v47, %v3437_v42  ;;  %v3487_v34 = vsel %vm638_vm2, %v3435_v57, %v3436_v47  ;;  %v13603_v47 = vld [vmem:[#allocation94_spill] sm:$0xff] }
 0x35e   : > { %v11346_v56 = vpop.f32.mrb[254].mxu0  ;;  %6465 = vmatprep.mubr.msk.bf16.mxu1 %vm6463_vm8, %v13599_v1  ;;  %4509 = vmatpush1.bf16.msra.mxu1 %v7752_v63  ;;  %v7755_v11 = vld [vmem:[%s12908_s4 + $0x78] sm:$0xff]   ;;  %v3533_v31 = vpack.c.bf16 %v3486_v21, %v3487_v34  ;;  %v3439_v63 = vrot.slane %v10563_v55, 7  ;;  %vm13612_vm8 = vcmp.eq.s32.totalorder %v10602_v40, 1  ;;  %v3445_v40 = vrot.slane %v10674_v4, 7 }
 0x35f   : > { %13597 = vst [vmem:[#allocation76_spill] sm:$0xff] %v11346_v56  ;;  %v7303_v17 = vpop.f32.mrb[255].mxu0  ;;  %4510 = vmatprep.subr.bf16.mxu1 %v13306_v36  ;;  %v13615_v56 = vld [vmem:[#allocation104_spill] sm:$0xff] }
 0x360   : > { %v13600_v17 = vld [vmem:[#allocation92_spill] sm:$0xff] }
 0x361   : > { %vm13601_vm9 = vcmp.eq.s32.totalorder %v13600_v17, 1 }
 0x362   : > { %4511 = vmatpush1.bf16.msra.mxu1 %v7755_v11  ;;  %vm6466_vm11 = vmpackc.low %vm13602_vm10, %vm13601_vm9  ;;  %v13604_v11 = vld [vmem:[#allocation95_spill] sm:$0xff]  ;;  %vm13616_vm10 = vcmp.eq.s32.totalorder %v13615_v56, 1 }
 0x363   : > { %7425 = vmatmul.mubr.bf16.gmra.mrb[104].mxu0 %v11247_v60  ;;  %5285 = vmatprep.subr.bf16.mxu1 %v13306_v36  ;;  %v3438_v60 = vrot.slane %v13603_v47, 7  ;;  %vm6472_vm9 = vmpackc.low %vm13612_vm8, %vm13611_vm7 }
 0x364   : > { %v11359_v19 = vpop.f32.mrb[0].mxu0  ;;  %7428 = vmatprep.mubr.msk.bf16.mxu0 %vm7817_vm0, %v13266_v62 }
 0x365   : > { %v7306_v1 = vpop.f32.mrb[1].mxu0  ;;  %4031 = vmatmul.mubr.bf16.gmra.mrb[28].mxu1 %v3533_v31  ;;  %v3484_v34 = vsel %vm638_vm2, %v3438_v60, %v3439_v63 }
 0x366   : > { %v11369_v57 = vpop.f32.mrb[2].mxu0  ;;  %6468 = vmatprep.mubr.msk.bf16.mxu1 %vm6466_vm11, %v13604_v11  ;;  %v3485_v1 = vsel %vm638_vm2, %v3437_v42, %v3438_v60  ;;  %v13609_v60 = vld [vmem:[#allocation99_spill] sm:$0xff]  ;;  %vm13617_vm11 = vcmp.eq.s32.totalorder %v10639_v8, 1  ;;  %v3447_v8 = vrot.slane %v10711_v14, 7 }
 0x367   : > { %v7307_v21 = vpop.f32.mrb[3].mxu0  ;;  %v3536_v5 = vpack.c.bf16 %v3484_v34, %v3485_v1  ;;  %vm6475_vm1 = vmpackc.low %vm13617_vm11, %vm13616_vm10 }
 0x368   : > { %v13608_v21 = vld [vmem:[#allocation98_spill] sm:$0xff] }
 0x369   : > { %v3440_v42 = vrot.slane %v13608_v21, 7 }
 0x36b   : > { %7429 = vmatmul.mubr.bf16.gmra.mrb[108].mxu0 %v3527_v32  ;;  %v3482_v34 = vsel %vm638_vm2, %v3440_v42, %v3441_v29 }
 0x36c   : > { %7432 = vmatprep.mubr.msk.bf16.mxu0 %vm7817_vm0, %v13266_v62 }
 0x36d   : > { %v11377_v17 = vpop.f32.mrb[4].mxu0  ;;  %4039 = vmatmul.mubr.bf16.gmra.mrb[32].mxu1 %v3536_v5 }
 0x36e   : > { %v7310_v12 = vpop.f32.mrb[5].mxu0  ;;  %6471 = vmatprep.mubr.msk.bf16.mxu1 %vm6469_vm6, %v13609_v60  ;;  %vm13622_vm6 = vcmp.eq.s32.totalorder %v10676_v35, 1  ;;  %v3449_v35 = vrot.slane %v10748_v43, 7  ;;  %v13633_v43 = vld [vmem:[#allocation121_spill] sm:$0xff] }
 0x36f   : > { %v11386_v11 = vpop.f32.mrb[6].mxu0  ;;  %v3483_v12 = vsel %vm638_vm2, %v3439_v63, %v3440_v42  ;;  %v13614_v42 = vld [vmem:[#allocation103_spill] sm:$0xff] }
 0x370   : > { %v7311_v32 = vpop.f32.mrb[7].mxu0  ;;  %v3539_v1 = vpack.c.bf16 %v3482_v34, %v3483_v12 }
 0x371   : > { %v13613_v32 = vld [vmem:[#allocation102_spill] sm:$0xff] }
 0x372   : > { %v3442_v63 = vrot.slane %v13613_v32, 7 }
 0x373   : > { %7433 = vmatmul.mubr.bf16.gmra.mrb[112].mxu0 %v3530_v2 }
 0x374   : > { %7436 = vmatprep.mubr.msk.bf16.mxu0 %vm7817_vm0, %v13266_v62  ;;  %v3480_v34 = vsel %vm638_vm2, %v3442_v63, %v3443_v25 }
 0x375   : > { %v11394_v53 = vpop.f32.mrb[8].mxu0  ;;  %4047 = vmatmul.mubr.bf16.gmra.mrb[36].mxu1 %v3539_v1 }
 0x376   : > { %v7314_v48 = vpop.f32.mrb[9].mxu0  ;;  %6474 = vmatprep.mubr.msk.bf16.mxu1 %vm6472_vm9, %v13614_v42  ;;  %vm13627_vm9 = vcmp.eq.s32.totalorder %v10713_v50, 1  ;;  %v3451_v50 = vrot.slane %v10790_v61, 7 }
 0x377   : > { %v11403_v60 = vpop.f32.mrb[10].mxu0  ;;  %v3481_v48 = vsel %vm638_vm2, %v3441_v29, %v3442_v63  ;;  %v13619_v63 = vld [vmem:[#allocation107_spill] sm:$0xff] }
 0x378   : > { %v7315_v2 = vpop.f32.mrb[11].mxu0  ;;  %v3542_v12 = vpack.c.bf16 %v3480_v34, %v3481_v48 }
 0x379   : > { %v13618_v2 = vld [vmem:[#allocation106_spill] sm:$0xff] }
 0x37a   : > { %v3444_v29 = vrot.slane %v13618_v2, 7  ;;  %v13620_v2 = vld [vmem:[#allocation108_spill] sm:$0xff] }
 0x37b   : > { %7437 = vmatmul.mubr.bf16.gmra.mrb[116].mxu0 %v3533_v31  ;;  %vm13621_vm15 = vcmp.eq.s32.totalorder %v13620_v2, 1 }
 0x37c   : > { %7440 = vmatprep.mubr.msk.bf16.mxu0 %vm7817_vm0, %v13266_v62  ;;  %v3478_v34 = vsel %vm638_vm2, %v3444_v29, %v3445_v40  ;;  %vm6478_vm7 = vmpackc.low %vm13622_vm6, %vm13621_vm15 }
 0x37d   : > { %4055 = vmatmul.mubr.bf16.gmra.mrb[40].mxu1 %v3542_v12 }
 0x37e   : > { %v11411_v38 = vpop.f32.mrb[12].mxu0  ;;  %6477 = vmatprep.mubr.msk.bf16.mxu1 %vm6475_vm1, %v13619_v63 }
 0x37f   : > { %v7318_v46 = vpop.f32.mrb[13].mxu0 }
 0x380   : > { %v11420_v42 = vpop.f32.mrb[14].mxu0  ;;  %v3479_v46 = vsel %vm638_vm2, %v3443_v25, %v3444_v29  ;;  %v13624_v29 = vld [vmem:[#allocation112_spill] sm:$0xff] }
 0x381   : > { %v7319_v31 = vpop.f32.mrb[15].mxu0  ;;  %v3545_v48 = vpack.c.bf16 %v3478_v34, %v3479_v46 }
 0x382   : > { %v13623_v31 = vld [vmem:[#allocation111_spill] sm:$0xff] }
 0x383   : > { %7441 = vmatmul.mubr.bf16.gmra.mrb[120].mxu0 %v3536_v5  ;;  %v3446_v25 = vrot.slane %v13623_v31, 7  ;;  %v13625_v31 = vld [vmem:[#allocation113_spill] sm:$0xff] }
 0x384   : > { %7444 = vmatprep.mubr.msk.bf16.mxu0 %vm7817_vm0, %v13266_v62  ;;  %vm13626_vm8 = vcmp.eq.s32.totalorder %v13625_v31, 1 }
 0x385   : > { %4063 = vmatmul.mubr.bf16.gmra.mrb[44].mxu1 %v3545_v48  ;;  %v3476_v34 = vsel %vm638_vm2, %v3446_v25, %v3447_v8  ;;  %vm6481_vm10 = vmpackc.low %vm13627_vm9, %vm13626_vm8 }
 0x386   : > { %v11428_v56 = vpop.f32.mrb[16].mxu0  ;;  %6480 = vmatprep.mubr.msk.bf16.mxu1 %vm6478_vm7, %v13624_v29 }
 0x387   : > { %v7322_v4 = vpop.f32.mrb[17].mxu0 }
 0x388   : > { %v11437_v63 = vpop.f32.mrb[18].mxu0  ;;  %v3477_v4 = vsel %vm638_vm2, %v3445_v40, %v3446_v25  ;;  %v3448_v40 = vrot.slane %v10728_v7, 7 }
 0x389   : > { %v7323_v5 = vpop.f32.mrb[19].mxu0  ;;  %v3548_v46 = vpack.c.bf16 %v3476_v34, %v3477_v4  ;;  %v13628_v4 = vld [vmem:[#allocation117_spill] sm:$0xff] }
 0x38a   : > { %v3474_v25 = vsel %vm638_vm2, %v3448_v40, %v3449_v35  ;;  %vm13629_vm11 = vcmp.eq.s32.totalorder %v13628_v4, 1 }
 0x38b   : > { %7445 = vmatmul.mubr.bf16.gmra.mrb[124].mxu0 %v3539_v1 }
 0x38c   : > { %7448 = vmatprep.mubr.msk.bf16.mxu0 %vm7817_vm0, %v13266_v62 }
 0x38d   : > { %4071 = vmatmul.mubr.bf16.gmra.mrb[48].mxu1 %v3548_v46 }
 0x38e   : > { %v11445_v2 = vpop.f32.mrb[20].mxu0  ;;  %6483 = vmatprep.mubr.msk.bf16.mxu1 %vm6481_vm10, %v10734_v15  ;;  %v13630_v15 = vld [vmem:[#allocation120_spill] sm:$0xff] }
 0x38f   : > { %v7326_v14 = vpop.f32.mrb[21].mxu0  ;;  %vm13631_vm1 = vcmp.eq.s32.totalorder %v13630_v15, 1  ;;  %v13636_v15 = vld [vmem:[#allocation131_spill] sm:$0xff] }
 0x390   : > { %v11454_v29 = vpop.f32.mrb[22].mxu0  ;;  %v3475_v14 = vsel %vm638_vm2, %v3447_v8, %v3448_v40  ;;  %vm6484_vm15 = vmpackc.low %vm13631_vm1, %vm13629_vm11  ;;  %v3450_v8 = vrot.slane %v13633_v43, 7  ;;  %v13634_v40 = vld [vmem:[#allocation122_spill] sm:$0xff]  ;;  %v3453_v61 = vrot.slane %v13636_v15, 7  ;;  %v13637_v43 = vld [vmem:[#allocation123_spill] sm:$0xff] }
 0x391   : > { %v7327_v1 = vpop.f32.mrb[23].mxu0  ;;  %v3551_v5 = vpack.c.bf16 %v3474_v25, %v3475_v14  ;;  %vm13638_vm6 = vcmp.eq.s32.totalorder %v13637_v43, 1  ;;  %v13644_v15 = vld [vmem:[#allocation129_spill] sm:$0xff] }
 0x392   : > { %v3472_v25 = vsel %vm638_vm2, %v3450_v8, %v3451_v50  ;;  %v3473_v14 = vsel %vm638_vm2, %v3449_v35, %v3450_v8  ;;  %v13643_v8 = vld [vmem:[#allocation128_spill] sm:$0xff]  ;;  %vm13645_vm9 = vcmp.eq.s32.totalorder %v13644_v15, 1 }
 0x393   : > { %7449 = vmatmul.mubr.bf16.gmra.mrb[128].mxu0 %v3542_v12 }
 0x394   : > { %7452 = vmatprep.mubr.msk.bf16.mxu0 %vm7817_vm0, %v13266_v62 }
 0x395   : > { %4079 = vmatmul.mubr.bf16.gmra.mrb[52].mxu1 %v3551_v5 }
 0x396   : > { %v11462_v31 = vpop.f32.mrb[24].mxu0  ;;  %6486 = vmatprep.mubr.msk.bf16.mxu1 %vm6484_vm15, %v13634_v40  ;;  %v13639_v40 = vld [vmem:[#allocation126_spill] sm:$0xff] }
 0x397   : > { %v7330_v34 = vpop.f32.mrb[25].mxu0  ;;  %vm13640_vm7 = vcmp.eq.s32.totalorder %v13639_v40, 1 }
 0x398   : > { %v11471_v1 = vpop.f32.mrb[26].mxu0  ;;  %v3554_v34 = vpack.c.bf16 %v3472_v25, %v3473_v14  ;;  %vm6487_vm8 = vmpackc.low %vm13640_vm7, %vm13638_vm6 }
 0x399   : > { %13632 = vst [vmem:[#allocation7_spill] sm:$0xff] %v11471_v1  ;;  %v7331_v12 = vpop.f32.mrb[27].mxu0  ;;  %v13642_v1 = vld [vmem:[#allocation127_spill] sm:$0xff] }
 0x39a   : > { %v3452_v35 = vrot.slane %v13642_v1, 7  ;;  %v13646_v1 = vld [vmem:[#allocation132_spill] sm:$0xff] }
 0x39b   : > { %7453 = vmatmul.mubr.bf16.gmra.mrb[132].mxu0 %v3545_v48  ;;  %vm13647_vm10 = vcmp.eq.s32.totalorder %v13646_v1, 1 }
 0x39c   : > { %7456 = vmatprep.mubr.msk.bf16.mxu0 %vm7817_vm0, %v13266_v62  ;;  %v3470_v25 = vsel %vm638_vm2, %v3452_v35, %v3453_v61  ;;  %vm6490_vm11 = vmpackc.low %vm13647_vm10, %vm13645_vm9 }
 0x39d   : > { %4087 = vmatmul.mubr.bf16.gmra.mrb[56].mxu1 %v3554_v34 }
 0x39e   : > { %v11479_v4 = vpop.f32.mrb[28].mxu0  ;;  %6489 = vmatprep.mubr.msk.bf16.mxu1 %vm6487_vm8, %v13643_v8 }
 0x39f   : > { %13635 = vst [vmem:[#allocation73_spill] sm:$0xff] %v11479_v4  ;;  %v7334_v7 = vpop.f32.mrb[29].mxu0  ;;  %v13649_v4 = vld [vmem:[#allocation136_spill] sm:$0xff] }
 0x3a0   : > { %v11488_v12 = vpop.f32.mrb[30].mxu0  ;;  %v3471_v7 = vsel %vm638_vm2, %v3451_v50, %v3452_v35 }
 0x3a1   : > { %13641 = vst [vmem:[#allocation75_spill] sm:$0xff] %v11488_v12  ;;  %v7335_v48 = vpop.f32.mrb[31].mxu0  ;;  %v3557_v14 = vpack.c.bf16 %v3470_v25, %v3471_v7 }
 0x3a2   : > { %v13648_v48 = vld [vmem:[#allocation134_spill] sm:$0xff] }
 0x3a3   : > { %7457 = vmatmul.mubr.bf16.gmra.mrb[136].mxu0 %v3548_v46  ;;  %v3454_v12 = vrot.slane %v13648_v48, 7  ;;  %v13650_v46 = vrot.slane %v10860_v10, 7 }
 0x3a4   : > { %7460 = vmatprep.mubr.msk.bf16.mxu0 %vm7817_vm0, %v13266_v62 }
 0x3a5   : > { %4095 = vmatmul.mubr.bf16.gmra.mrb[60].mxu1 %v3557_v14  ;;  %v3468_v35 = vsel %vm638_vm2, %v3454_v12, %v13650_v46  ;;  %v3469_v25 = vsel %vm638_vm2, %v3453_v61, %v3454_v12  ;;  %v13654_v46 = vld [vmem:[#allocation35_spill] sm:$0xff]  ;;  %vm13656_vm2 = vcmp.eq.s32.totalorder %v10862_v54, 1  ;;  %v13659_v54 = vld [vmem:[#allocation146_spill] sm:$0xff] }
 0x3a6   : > { %v11496_v43 = vpop.f32.mrb[32].mxu0  ;;  %6492 = vmatprep.mubr.msk.bf16.mxu1 %vm6490_vm11, %v13649_v4  ;;  %v3560_v15 = vpack.c.bf16 %v3468_v35, %v3469_v25  ;;  %v13652_v4 = vld [vmem:[#allocation135_spill] sm:$0xff]  ;;  %vm6496_vm6 = vmpackc.low %vm13656_vm2, %vm3206_vm5  ;;  %v13657_v35 = vld [vmem:[#allocation142_spill] sm:$0xff]  ;;  %vm13675_vm5 = vcmp.lt.s32.totalorder %v7934_v20, 5 }
 0x3a7   : > { %v7338_v40 = vpop.f32.mrb[33].mxu0  ;;  %vm13653_vm1 = vcmp.eq.s32.totalorder %v13652_v4, 1  ;;  %vm13681_vm7 = vmmov %vm13675_vm5 }
 0x3a8   : > { %v11504_v8 = vpop.f32.mrb[34].mxu0  ;;  %vm6493_vm15 = vmpackc.low %vm13653_vm1, %vm3204_vm14 }
 0x3a9   : > { %v7339_v50 = vpop.f32.mrb[35].mxu0  ;;  %vm6499_vm14 = vmpackc.low %vm3209_vm12, %vm3208_vm13 }
 0x3aa   : > { %vm13676_vm12 = vmmov %vm13675_vm5 }
 0x3ab   : > { %7461 = vmatmul.mubr.bf16.gmra.mrb[140].mxu0 %v3551_v5  ;;  %vm13680_vm13 = vmmov %vm13675_vm5 }
 0x3ac   : > { %7464 = vmatprep.mubr.msk.bf16.mxu0 %vm7817_vm0, %v13266_v62  ;;  %vm13684_vm8 = vmmov %vm13675_vm5 }
 0x3ad   : > { %4103 = vmatmul.mubr.bf16.gmra.mrb[64].mxu1 %v3560_v15  ;;  %vm13685_vm9 = vmmov %vm13675_vm5 }
 0x3ae   : > { %v11514_v1 = vpop.f32.mrb[36].mxu0  ;;  %6495 = vmatprep.mubr.msk.bf16.mxu1 %vm6493_vm15, %v13654_v46  ;;  %v13661_v46 = vld [vmem:[#allocation150_spill] sm:$0xff]  ;;  %vm13688_vm10 = vmmov %vm13675_vm5 }
 0x3af   : > { %v7342_v7 = vpop.f32.mrb[37].mxu0  ;;  %vm13689_vm11 = vmmov %vm13675_vm5 }
 0x3b0   : > { %v11522_v50 = vpop.f32.mrb[38].mxu0  ;;  %v13658_v7 = vld [vmem:[#allocation32_spill] sm:$0xff]  ;;  %vm13690_vm1 = vmmov %vm13675_vm5 }
 0x3b1   : > { %v7343_v10 = vpop.f32.mrb[39].mxu0  ;;  %vm13692_vm15 = vmmov %vm13690_vm1 }
 0x3b2   : > { %vm13694_vm2 = vmmov %vm13690_vm1 }
 0x3b3   : > { %7465 = vmatmul.mubr.bf16.gmra.mrb[144].mxu0 %v3554_v34 }
 0x3b4   : > { %7468 = vmatprep.mubr.msk.bf16.mxu0 %vm7817_vm0, %v13266_v62 }
 0x3b5   : > { %4111 = vmatmul.mubr.bf16.gmra.mrb[68].mxu1 %v13657_v35 }
 0x3b6   : > { %v11525_v61 = vpop.f32.mrb[40].mxu0  ;;  %6498 = vmatprep.mubr.msk.bf16.mxu1 %vm6496_vm6, %v13658_v7  ;;  %vm13696_vm6 = vmmov %vm13690_vm1 }
 0x3b7   : > { %v7346_v5 = vpop.f32.mrb[41].mxu0 }
 0x3b8   : > { %v11534_v25 = vpop.f32.mrb[42].mxu0 }
 0x3b9   : > { %v7347_v40 = vpop.f32.mrb[43].mxu0 }
 0x3ba   : > { %v3336_v40 = vrot.slane %v10196_v9, 6 }
 0x3bb   : > { %7469 = vmatmul.mubr.bf16.gmra.mrb[148].mxu0 %v3557_v14 }
 0x3bc   : > { %7472 = vmatprep.mubr.msk.bf16.mxu0 %vm7817_vm0, %v13266_v62 }
 0x3bd   : > { %4119 = vmatmul.mubr.bf16.gmra.mrb[72].mxu1 %v13659_v54 }
 0x3be   : > { %v11537_v10 = vpop.f32.mrb[44].mxu0  ;;  %6501 = vmatprep.mubr.msk.bf16.mxu1 %vm6499_vm14, %v13661_v46  ;;  %vm13699_vm14 = vmmov %vm13690_vm1 }
 0x3bf   : > { %v7350_v34 = vpop.f32.mrb[45].mxu0 }
 0x3c0   : > { %v11546_v4 = vpop.f32.mrb[46].mxu0  ;;  %v13665_v34 = vld [vmem:[#allocation40_spill] sm:$0xff] }
 0x3c1   : > { %13660 = vst [vmem:[#allocation17_spill] sm:$0xff] %v11546_v4  ;;  %v7351_v5 = vpop.f32.mrb[47].mxu0  ;;  %v3337_v46 = vrot.slane %v13665_v34, 6 }
 0x3c3   : > { %7473 = vmatmul.mubr.bf16.gmra.mrb[152].mxu0 %v3560_v15  ;;  %v13666_v15 = vrot.slane %v11009_v24, 6  ;;  %v3418_v18 = vsel %vm553_vm3, %v3336_v40, %v3337_v46 }
 0x3c4   : > { %7476 = vmatprep.mubr.msk.bf16.mxu0 %vm7817_vm0, %v13266_v62 }
 0x3c5   : > { %4127 = vmatmul.mubr.bf16.gmra.mrb[76].mxu1 %v11042_v26  ;;  %v3419_v5 = vsel %vm553_vm3, %v13666_v15, %v3336_v40  ;;  %v7759_v26 = vld [vmem:[%s12908_s4 + $0x180] sm:$0xff]  }
 0x3c6   : > { %v11549_v14 = vpop.f32.mrb[48].mxu0  ;;  %4512 = vmatprep.mubr.bf16.mxu1 %v13664_v6  ;;  %v3508_v30 = vpack.c.bf16 %v3418_v18, %v3419_v5  ;;  %v7763_v5 = vld [vmem:[%s12908_s4 + $0x188] sm:$0xff]   ;;  %v3338_v18 = vrot.slane %v13550_v33, 6 }
 0x3c7   : > { %13662 = vst [vmem:[#allocation20_spill] sm:$0xff] %v11549_v14  ;;  %v7354_v12 = vpop.f32.mrb[49].mxu0 }
 0x3c8   : > { %v11554_v45 = vpop.f32.mrb[50].mxu0 }
 0x3c9   : > { %13663 = vst [vmem:[#allocation23_spill] sm:$0xff] %v11554_v45  ;;  %v7355_v7 = vpop.f32.mrb[51].mxu0  ;;  %v3339_v45 = vrot.slane %v10213_v3, 6 }
 0x3ca   : > { %v13668_v7 = vpack.c.bf16 %v11035_v44, %v11018_v51  ;;  %v13670_v51 = vrot.slane %v11009_v24, 5  ;;  %v3255_v24 = vrot.slane %v10213_v3, 5 }
 0x3cb   : > { %7477 = vmatmul.mubr.bf16.gmra.mrb[156].mxu0 %v13657_v35  ;;  %v3252_v35 = vrot.slane %v10196_v9, 5 }
 0x3cc   : > { %7480 = vmatprep.mubr.msk.bf16.mxu0 %vm7817_vm0, %v13266_v62 }
 0x3cd   : > { %4513 = vmatmul.mubr.bf16.vlgmr.msra.gmra.mrb[80].mxu1 %v13668_v7  ;;  %v3335_v44 = vsel %vm468_vm4, %v13670_v51, %v3252_v35  ;;  %v3417_v51 = vsel %vm553_vm3, %v3337_v46, %v3338_v18  ;;  %v13219_v46 = vrot.slane %v13550_v33, 3 }
 0x3ce   : > { %v11569_v12 = vpop.f32.mrb[52].mxu0  ;;  %4520 = vmatprep.mubr.bf16.mxu1 %v3508_v30  ;;  %5286 = vmatpush1.bf16.msra.mxu1 %v7759_v26  ;;  %v13671_v30 = vld [vmem:[#allocation60_spill] sm:$0xff] }
 0x3cf   : > { %13667 = vst [vmem:[#allocation80_spill] sm:$0xff] %v11569_v12  ;;  %v7358_v6 = vpop.f32.mrb[53].mxu0  ;;  %v3253_v12 = vrot.slane %v13665_v34, 5  ;;  %5287 = vmatprep.subr.bf16.mxu1 %v13306_v36  ;;  %v4970_v7 = vrot.slane %v13671_v30, 3 }
 0x3d0   : > { %v11578_v15 = vpop.f32.mrb[54].mxu0  ;;  %v3416_v6 = vsel %vm553_vm3, %v3338_v18, %v3339_v45 }
 0x3d1   : > { %13669 = vst [vmem:[#allocation82_spill] sm:$0xff] %v11578_v15  ;;  %v7359_v40 = vpop.f32.mrb[55].mxu0  ;;  %v3334_v26 = vsel %vm468_vm4, %v3252_v35, %v3253_v12  ;;  %v4969_v35 = vrot.slane %v10213_v3, 3  ;;  %v3511_v15 = vpack.c.bf16 %v3416_v6, %v3417_v51  ;;  %v7765_v6 = vld [vmem:[%s12908_s4 + $0x198] sm:$0xff]   ;;  %v7766_v3 = vld [vmem:[%s12908_s4 + $0x1a0] sm:$0xff]  }
 0x3d2   : > { %5288 = vmatpush1.bf16.msra.mxu1 %v7763_v5  ;;  %v7764_v40 = vld [vmem:[%s12908_s4 + $0x190] sm:$0xff]   ;;  %v3507_v34 = vpack.c.bf16 %v3334_v26, %v3335_v44 }
 0x3d3   : > { %7481 = vmatmul.mubr.bf16.gmra.mrb[160].mxu0 %v13659_v54  ;;  %5289 = vmatprep.subr.bf16.mxu1 %v13306_v36  ;;  %v13674_v54 = vld [vmem:[#allocation72_spill] sm:$0xff]  ;;  %v5045_v18 = vsel %vm13675_vm5, %v4969_v35, %v4970_v7  ;;  %vm13700_vm5 = vmmov %vm13690_vm1 }
 0x3d4   : > { %7500 = vmatprep.mubr.msk.bf16.mxu0 %vm7817_vm0, %v13266_v62  ;;  %v3341_v26 = vrot.slane %v13674_v54, 6 }
 0x3d5   : > { %4521 = vmatmul.mubr.bf16.gmra.mrb[84].mxu1 %v3507_v34  ;;  %v3340_v34 = vrot.slane %v13671_v30, 6 }
 0x3d6   : > { %v11601_v9 = vpop.f32.mrb[56].mxu0  ;;  %4528 = vmatprep.mubr.bf16.mxu1 %v3511_v15  ;;  %5290 = vmatpush1.bf16.msra.mxu1 %v7764_v40  ;;  %v4972_v40 = vrot.slane %v13562_v59, 3 }
 0x3d7   : > { %13672 = vst [vmem:[#allocation83_spill] sm:$0xff] %v11601_v9  ;;  %v7362_v5 = vpop.f32.mrb[57].mxu0  ;;  %v3254_v9 = vrot.slane %v13550_v33, 5  ;;  %5291 = vmatprep.subr.bf16.mxu1 %v13306_v36 }
 0x3d8   : > { %v11610_v44 = vpop.f32.mrb[58].mxu0  ;;  %v5046_v5 = vsel %vm13676_vm12, %v13219_v46, %v4969_v35  ;;  %v3415_v35 = vsel %vm553_vm3, %v3339_v45, %v3340_v34  ;;  %vm13704_vm12 = vmmov %vm13690_vm1 }
 0x3d9   : > { %13673 = vst [vmem:[#allocation86_spill] sm:$0xff] %v11610_v44  ;;  %v7363_v14 = vpop.f32.mrb[59].mxu0  ;;  %v3332_v51 = vsel %vm468_vm4, %v3254_v9, %v3255_v24  ;;  %v5051_v44 = vpack.c.bf16 %v5045_v18, %v5046_v5  ;;  %v3333_v15 = vsel %vm468_vm4, %v3253_v12, %v3254_v9  ;;  %v3257_v18 = vrot.slane %v13674_v54, 5 }
 0x3da   : > { %v3414_v14 = vsel %vm553_vm3, %v3340_v34, %v3341_v26  ;;  %5292 = vmatpush1.bf16.msra.mxu1 %v7765_v6  ;;  %v3510_v4 = vpack.c.bf16 %v3332_v51, %v3333_v15  ;;  %v4971_v9 = vrot.slane %v13674_v54, 3  ;;  %v3256_v15 = vrot.slane %v13671_v30, 5 }
 0x3db   : > { %7501 = vmatmul.mubr.bf16.vlgmr.msra.gmra.mrb[164].mxu0 %v5051_v44  ;;  %5293 = vmatprep.subr.bf16.mxu1 %v13306_v36  ;;  %v3514_v12 = vpack.c.bf16 %v3414_v14, %v3415_v35  ;;  %v13679_v44 = vld [vmem:[#allocation71_spill] sm:$0xff]  ;;  %v3342_v35 = vrot.slane %v13562_v59, 6 }
 0x3dc   : > { %7504 = vmatprep.mubr.msk.bf16.mxu0 %vm7817_vm0, %v13266_v62  ;;  %v3343_v51 = vrot.slane %v13679_v44, 6  ;;  %v5043_v45 = vsel %vm13680_vm13, %v4971_v9, %v4972_v40  ;;  %v7767_v14 = vld [vmem:[%s12908_s4 + $0x1a8] sm:$0xff]   ;;  %vm13706_vm13 = vmmov %vm13690_vm1 }
 0x3dd   : > { %4529 = vmatmul.mubr.bf16.gmra.mrb[88].mxu1 %v3510_v4  ;;  %v3330_v4 = vsel %vm468_vm4, %v3256_v15, %v3257_v18 }
 0x3de   : > { %v11636_v33 = vpop.f32.mrb[60].mxu0  ;;  %4536 = vmatprep.mubr.bf16.mxu1 %v3514_v12  ;;  %5294 = vmatpush1.bf16.msra.mxu1 %v7766_v3  ;;  %v3412_v12 = vsel %vm553_vm3, %v3342_v35, %v3343_v51  ;;  %v3331_v3 = vsel %vm468_vm4, %v3255_v24, %v3256_v15  ;;  %v4973_v24 = vrot.slane %v13679_v44, 3 }
 0x3df   : > { %13677 = vst [vmem:[#allocation87_spill] sm:$0xff] %v11636_v33  ;;  %v7366_v5 = vpop.f32.mrb[61].mxu0  ;;  %5295 = vmatprep.subr.bf16.mxu1 %v13306_v36  ;;  %v3513_v33 = vpack.c.bf16 %v3330_v4, %v3331_v3  ;;  %v3258_v4 = vrot.slane %v13562_v59, 5 }
 0x3e0   : > { %v11645_v6 = vpop.f32.mrb[62].mxu0  ;;  %v5044_v5 = vsel %vm13681_vm7, %v4970_v7, %v4971_v9  ;;  %v3413_v7 = vsel %vm553_vm3, %v3341_v26, %v3342_v35  ;;  %v3259_v9 = vrot.slane %v13679_v44, 5  ;;  %v5042_v3 = vsel %vm13685_vm9, %v4972_v40, %v4973_v24  ;;  %vm13709_vm7 = vmmov %vm13690_vm1 }
 0x3e1   : > { %13678 = vst [vmem:[#allocation88_spill] sm:$0xff] %v11645_v6  ;;  %v7367_v34 = vpop.f32.mrb[63].mxu0  ;;  %v5053_v46 = vpack.c.bf16 %v5043_v45, %v5044_v5  ;;  %v7768_v6 = vld [vmem:[%s12908_s4 + $0x1b0] sm:$0xff]   ;;  %v3517_v15 = vpack.c.bf16 %v3412_v12, %v3413_v7  ;;  %v7769_v5 = vld [vmem:[%s12908_s4 + $0x1b8] sm:$0xff]   ;;  %v3344_v12 = vrot.slane %v13568_v28, 6  ;;  %vm13713_vm9 = vmmov %vm13690_vm1 }
 0x3e2   : > { %v4974_v34 = vrot.slane %v13568_v28, 3  ;;  %5296 = vmatpush1.bf16.msra.mxu1 %v7767_v14 }
 0x3e3   : > { %7505 = vmatmul.mubr.bf16.gmra.mrb[168].mxu0 %v5053_v46  ;;  %5297 = vmatprep.subr.bf16.mxu1 %v13306_v36  ;;  %v3345_v46 = vrot.slane %v10353_v23, 6  ;;  %v3411_v40 = vsel %vm553_vm3, %v3343_v51, %v3344_v12 }
 0x3e4   : > { %7508 = vmatprep.mubr.msk.bf16.mxu0 %vm7817_vm0, %v13266_v62  ;;  %v5041_v26 = vsel %vm13684_vm8, %v4973_v24, %v4974_v34  ;;  %v3261_v24 = vrot.slane %v10353_v23, 5  ;;  %vm13710_vm8 = vmmov %vm13690_vm1 }
 0x3e5   : > { %4537 = vmatmul.mubr.bf16.gmra.mrb[92].mxu1 %v3513_v33  ;;  %v3328_v33 = vsel %vm468_vm4, %v3258_v4, %v3259_v9  ;;  %v5055_v7 = vpack.c.bf16 %v5041_v26, %v5042_v3  ;;  %v3260_v3 = vrot.slane %v13568_v28, 5 }
 0x3e6   : > { %v11668_v54 = vpop.f32.mrb[64].mxu0  ;;  %4544 = vmatprep.mubr.bf16.mxu1 %v3517_v15  ;;  %5298 = vmatpush1.bf16.msra.mxu1 %v7768_v6  ;;  %v3410_v15 = vsel %vm553_vm3, %v3344_v12, %v3345_v46  ;;  %v3329_v6 = vsel %vm468_vm4, %v3257_v18, %v3258_v4  ;;  %v4975_v18 = vrot.slane %v10353_v23, 3 }
 0x3e7   : > { %13682 = vst [vmem:[#allocation90_spill] sm:$0xff] %v11668_v54  ;;  %v7370_v45 = vpop.f32.mrb[65].mxu0  ;;  %5299 = vmatprep.subr.bf16.mxu1 %v13306_v36  ;;  %v3520_v4 = vpack.c.bf16 %v3410_v15, %v3411_v40  ;;  %v3346_v15 = vrot.slane %v13573_v0, 6 }
 0x3e8   : > { %v11677_v14 = vpop.f32.mrb[66].mxu0  ;;  %v4976_v45 = vrot.slane %v13573_v0, 3 }
 0x3e9   : > { %13683 = vst [vmem:[#allocation91_spill] sm:$0xff] %v11677_v14  ;;  %v7371_v35 = vpop.f32.mrb[67].mxu0  ;;  %v3516_v14 = vpack.c.bf16 %v3328_v33, %v3329_v6  ;;  %v3347_v33 = vrot.slane %v10402_v22, 6  ;;  %v5040_v6 = vsel %vm13689_vm11, %v4974_v34, %v4975_v18  ;;  %v3263_v34 = vrot.slane %v10402_v22, 5  ;;  %vm13721_vm11 = vmmov %vm13690_vm1 }
 0x3ea   : > { %5300 = vmatpush1.bf16.msra.mxu1 %v7769_v5  ;;  %v7770_v35 = vld [vmem:[%s12908_s4 + $0x1c0] sm:$0xff]   ;;  %v5039_v51 = vsel %vm13688_vm10, %v4975_v18, %v4976_v45  ;;  %v4977_v18 = vrot.slane %v10402_v22, 3  ;;  %v4980_v22 = vrot.slane %v13592_v49, 3  ;;  %vm13714_vm10 = vmmov %vm13690_vm1 }
 0x3eb   : > { %7509 = vmatmul.mubr.bf16.gmra.mrb[172].mxu0 %v5055_v7  ;;  %5301 = vmatprep.subr.bf16.mxu1 %v13306_v36  ;;  %v7771_v7 = vld [vmem:[%s12908_s4 + $0x1c8] sm:$0xff]   ;;  %v5057_v40 = vpack.c.bf16 %v5039_v51, %v5040_v6 }
 0x3ec   : > { %7512 = vmatprep.mubr.msk.bf16.mxu0 %vm7817_vm0, %v13266_v62  ;;  %v5038_v6 = vsel %vm13692_vm15, %v4976_v45, %v4977_v18  ;;  %v7774_v45 = vld [vmem:[%s12908_s4 + $0x1e0] sm:$0xff]   ;;  %vm13728_vm15 = vmmov %vm13690_vm1 }
 0x3ed   : > { %4545 = vmatmul.mubr.bf16.gmra.mrb[96].mxu1 %v3516_v14  ;;  %v3326_v14 = vsel %vm468_vm4, %v3260_v3, %v3261_v24 }
 0x3ee   : > { %v11700_v54 = vpop.f32.mrb[68].mxu0  ;;  %4552 = vmatprep.mubr.bf16.mxu1 %v3520_v4  ;;  %5302 = vmatpush1.bf16.msra.mxu1 %v7770_v35  ;;  %v3408_v4 = vsel %vm553_vm3, %v3346_v15, %v3347_v33  ;;  %v3327_v35 = vsel %vm468_vm4, %v3259_v9, %v3260_v3  ;;  %v3349_v9 = vrot.slane %v10447_v16, 6  ;;  %v3262_v3 = vrot.slane %v13573_v0, 5 }
 0x3ef   : > { %13686 = vst [vmem:[#allocation92_spill] sm:$0xff] %v11700_v54  ;;  %v7374_v26 = vpop.f32.mrb[69].mxu0  ;;  %5303 = vmatprep.subr.bf16.mxu1 %v13306_v36  ;;  %v3409_v54 = vsel %vm553_vm3, %v3345_v46, %v3346_v15  ;;  %v7773_v46 = vld [vmem:[%s12908_s4 + $0x1d8] sm:$0xff]   ;;  %v3348_v15 = vrot.slane %v13585_v37, 6 }
 0x3f0   : > { %v11709_v5 = vpop.f32.mrb[70].mxu0  ;;  %v4978_v26 = vrot.slane %v13585_v37, 3  ;;  %v3523_v51 = vpack.c.bf16 %v3408_v4, %v3409_v54 }
 0x3f1   : > { %13687 = vst [vmem:[#allocation94_spill] sm:$0xff] %v11709_v5  ;;  %v7375_v12 = vpop.f32.mrb[71].mxu0  ;;  %v3519_v5 = vpack.c.bf16 %v3326_v14, %v3327_v35 }
 0x3f2   : > { %5304 = vmatpush1.bf16.msra.mxu1 %v7771_v7  ;;  %v7772_v12 = vld [vmem:[%s12908_s4 + $0x1d0] sm:$0xff]   ;;  %v5037_v7 = vsel %vm13690_vm1, %v4977_v18, %v4978_v26 }
 0x3f3   : > { %7513 = vmatmul.mubr.bf16.gmra.mrb[176].mxu0 %v5057_v40  ;;  %5305 = vmatprep.subr.bf16.mxu1 %v13306_v36  ;;  %v5059_v35 = vpack.c.bf16 %v5037_v7, %v5038_v6  ;;  %v3407_v7 = vsel %vm553_vm3, %v3347_v33, %v3348_v15  ;;  %v3265_v6 = vrot.slane %v10447_v16, 5  ;;  %v7775_v33 = vld [vmem:[%s12908_s4 + $0x1e8] sm:$0xff]  }
 0x3f4   : > { %7516 = vmatprep.mubr.msk.bf16.mxu0 %vm7817_vm0, %v13266_v62 }
 0x3f5   : > { %4553 = vmatmul.mubr.bf16.gmra.mrb[100].mxu1 %v3519_v5  ;;  %v3324_v5 = vsel %vm468_vm4, %v3262_v3, %v3263_v34 }
 0x3f6   : > { %v11743_v14 = vpop.f32.mrb[72].mxu0  ;;  %4560 = vmatprep.mubr.bf16.mxu1 %v3523_v51  ;;  %5306 = vmatpush1.bf16.msra.mxu1 %v7772_v12 }
 0x3f7   : > { %13691 = vst [vmem:[#allocation95_spill] sm:$0xff] %v11743_v14  ;;  %v7378_v54 = vpop.f32.mrb[73].mxu0  ;;  %5307 = vmatprep.subr.bf16.mxu1 %v13306_v36  ;;  %v3325_v14 = vsel %vm468_vm4, %v3261_v24, %v3262_v3  ;;  %v4979_v24 = vrot.slane %v10447_v16, 3 }
 0x3f8   : > { %v11754_v40 = vpop.f32.mrb[252].mxu1  ;;  %v11756_v4 = vpop.f32.mrb[74].mxu0  ;;  %v3406_v54 = vsel %vm553_vm3, %v3348_v15, %v3349_v9  ;;  %v3522_v18 = vpack.c.bf16 %v3324_v5, %v3325_v14  ;;  %v3264_v14 = vrot.slane %v13585_v37, 5  ;;  %v4982_v37 = vrot.slane %v13598_v41, 3 }
 0x3f9   : > { %13693 = vst [vmem:[#allocation96_spill] sm:$0xff] %v11756_v4  ;;  %v3970_v12 = vpop.f32.mrb[253].mxu1  ;;  %v7379_v51 = vpop.f32.mrb[75].mxu0  ;;  %v3526_v3 = vpack.c.bf16 %v3406_v54, %v3407_v7  ;;  %v5035_v5 = vsel %vm13694_vm2, %v4979_v24, %v4980_v22  ;;  %vm13730_vm2 = vmmov %vm13690_vm1 }
 0x3fa   : > { %v11763_v23 = vpop.f32.mrb[254].mxu1  ;;  %5308 = vmatpush1.bf16.msra.mxu1 %v7773_v46  ;;  %v3322_v12 = vsel %vm468_vm4, %v3264_v14, %v3265_v6  ;;  %v5036_v51 = vsel %vm13696_vm6, %v4978_v26, %v4979_v24  ;;  %v3323_v16 = vsel %vm468_vm4, %v3263_v34, %v3264_v14  ;;  %v7776_v24 = vld [vmem:[%s12908_s4 + $0x1f0] sm:$0xff]   ;;  %v3267_v34 = vrot.slane %v10489_v58, 5  ;;  %vm13737_vm6 = vmmov %vm13690_vm1 }
 0x3fb   : > { %v3973_v4 = vpop.f32.mrb[255].mxu1  ;;  %7517 = vmatmul.mubr.bf16.gmra.mrb[180].mxu0 %v5059_v35  ;;  %5309 = vmatprep.subr.bf16.mxu1 %v13306_v36  ;;  %v3350_v35 = vrot.slane %v13592_v49, 6  ;;  %v5061_v7 = vpack.c.bf16 %v5035_v5, %v5036_v51  ;;  %v4981_v14 = vrot.slane %v10489_v58, 3 }
 0x3fc   : > { %7520 = vmatprep.mubr.msk.bf16.mxu0 %vm7817_vm0, %v13266_v62 }
 0x3fd   : > { %4561 = vmatmul.mubr.bf16.gmra.mrb[104].mxu1 %v3522_v18  ;;  %v3405_v51 = vsel %vm553_vm3, %v3349_v9, %v3350_v35 }
 0x3fe   : > { %v11779_v4 = vpop.f32.mrb[76].mxu0  ;;  %4568 = vmatprep.mubr.bf16.mxu1 %v3526_v3  ;;  %5310 = vmatpush1.bf16.msra.mxu1 %v7774_v45 }
 0x3ff   : > { %13695 = vst [vmem:[#allocation98_spill] sm:$0xff] %v11779_v4  ;;  %v7382_v15 = vpop.f32.mrb[77].mxu0  ;;  %5311 = vmatprep.subr.bf16.mxu1 %v13306_v36 }
 0x400   : > { %v3976_v54 = vpop.f32.mrb[0].mxu1  ;;  %v11790_v18 = vpop.f32.mrb[78].mxu0  ;;  %v13697_v15 = vrot.slane %v10489_v58, 6 }
 0x401   : > { %v11793_v45 = vadd.f32 %v11359_v19, %v3976_v54  ;;  %v3978_v3 = vpop.f32.mrb[1].mxu1  ;;  %v7383_v46 = vpop.f32.mrb[79].mxu0  ;;  %v3525_v19 = vpack.c.bf16 %v3322_v12, %v3323_v16  ;;  %v3353_v16 = vrot.slane %v10526_v13, 6  ;;  %v5033_v12 = vsel %vm13699_vm14, %v4981_v14, %v4982_v37  ;;  %vm13739_vm14 = vmmov %vm13690_vm1 }
 0x402   : > { %v3404_v4 = vsel %vm553_vm3, %v3350_v35, %v13697_v15  ;;  %v3979_v26 = vpop.f32.mrb[2].mxu1  ;;  %5312 = vmatpush1.bf16.msra.mxu1 %v7775_v33  ;;  %v7777_v35 = vld [vmem:[%s12908_s4 + $0x1f8] sm:$0xff]   ;;  %v3352_v54 = vrot.slane %v13598_v41, 6  ;;  %v5034_v3 = vsel %vm13700_vm5, %v4980_v22, %v4981_v14  ;;  %vm13747_vm5 = vmmov %vm13690_vm1 }
 0x403   : > { %v11806_v5 = vadd.f32 %v11369_v57, %v3979_v26  ;;  %v3981_v46 = vpop.f32.mrb[3].mxu1  ;;  %7521 = vmatmul.mubr.bf16.gmra.mrb[184].mxu0 %v5061_v7  ;;  %5313 = vmatprep.subr.bf16.mxu1 %v13306_v36  ;;  %v3529_v33 = vpack.c.bf16 %v3404_v4, %v3405_v51  ;;  %v3266_v57 = vrot.slane %v13592_v49, 5 }
 0x404   : > { %7524 = vmatprep.mubr.msk.bf16.mxu0 %vm7817_vm0, %v13266_v62 }
 0x405   : > { %13698 = vst [vmem:[#allocation99_spill] sm:$0xff] %v11806_v5  ;;  %4569 = vmatmul.mubr.bf16.gmra.mrb[108].mxu1 %v3525_v19  ;;  %v3320_v7 = vsel %vm468_vm4, %v3266_v57, %v3267_v34  ;;  %v5063_v19 = vpack.c.bf16 %v5033_v12, %v5034_v3 }
 0x406   : > { %4576 = vmatprep.mubr.bf16.mxu1 %v3529_v33  ;;  %v11819_v9 = vpop.f32.mrb[80].mxu0  ;;  %5314 = vmatpush1.bf16.msra.mxu1 %v7776_v24  ;;  %v3402_v33 = vsel %vm553_vm3, %v3352_v54, %v3353_v16 }
 0x407   : > { %v7402_v4 = vpop.f32.mrb[81].mxu0  ;;  %5315 = vmatprep.subr.bf16.mxu1 %v13306_v36  ;;  %v3321_v36 = vsel %vm468_vm4, %v3265_v6, %v3266_v57  ;;  %v4983_v6 = vrot.slane %v10526_v13, 3 }
 0x408   : > { %v3984_v15 = vpop.f32.mrb[4].mxu1  ;;  %v11830_v26 = vpop.f32.mrb[82].mxu0  ;;  %v4984_v4 = vrot.slane %v13603_v47, 3  ;;  %v3528_v22 = vpack.c.bf16 %v3320_v7, %v3321_v36 }
 0x409   : > { %v11833_v24 = vadd.f32 %v11377_v17, %v3984_v15  ;;  %v3986_v46 = vpop.f32.mrb[5].mxu1  ;;  %v7403_v51 = vpop.f32.mrb[83].mxu0  ;;  %v13703_v17 = vrot.slane %v10489_v58, 6  ;;  %v3269_v15 = vrot.slane %v10526_v13, 5 }
 0x40a   : > { %v3987_v5 = vpop.f32.mrb[6].mxu1  ;;  %5316 = vmatpush1.bf16.msra.mxu1 %v7777_v35  ;;  %v5031_v35 = vsel %vm13704_vm12, %v4983_v6, %v4984_v4  ;;  %v5032_v51 = vsel %vm13706_vm13, %v4982_v37, %v4983_v6  ;;  %vm13749_vm12 = vmmov %vm13690_vm1 }
 0x40b   : > { %13701 = vst [vmem:[#allocation100_spill] sm:$0xff] %v11833_v24  ;;  %v11841_v14 = vadd.f32 %v11386_v11, %v3987_v5  ;;  %v3989_v12 = vpop.f32.mrb[7].mxu1  ;;  %7525 = vmatmul.mubr.bf16.gmra.mrb[188].mxu0 %v5063_v19  ;;  %v3403_v3 = vsel %vm553_vm3, %v13703_v17, %v3352_v54  ;;  %7584 = vmatprep.subr.bf16.mxu1 %v13266_v62  ;;  %v3355_v11 = vrot.slane %v10563_v55, 6  ;;  %v3268_v5 = vrot.slane %v13598_v41, 5  ;;  %vm13754_vm13 = vmmov %vm13690_vm1 }
 0x40c   : > { %v3532_v57 = vpack.c.bf16 %v3402_v33, %v3403_v3  ;;  %7528 = vmatprep.mubr.msk.bf16.mxu0 %vm7817_vm0, %v13266_v62  ;;  %v3354_v19 = vrot.slane %v13603_v47, 6 }
 0x40d   : > { %13702 = vst [vmem:[#allocation102_spill] sm:$0xff] %v11841_v14  ;;  %4577 = vmatmul.mubr.bf16.gmra.mrb[112].mxu1 %v3528_v22  ;;  %v3318_v46 = vsel %vm468_vm4, %v3268_v5, %v3269_v15  ;;  %v5065_v22 = vpack.c.bf16 %v5031_v35, %v5032_v51  ;;  %v4986_v14 = vrot.slane %v13608_v21, 3  ;;  %v3271_v35 = vrot.slane %v10563_v55, 5 }
 0x40e   : > { %4584 = vmatprep.mubr.bf16.mxu1 %v3532_v57  ;;  %v11856_v54 = vpop.f32.mrb[84].mxu0  ;;  %v3400_v57 = vsel %vm553_vm3, %v3354_v19, %v3355_v11  ;;  %v4985_v51 = vrot.slane %v10563_v55, 3 }
 0x40f   : > { %13705 = vst [vmem:[#allocation103_spill] sm:$0xff] %v11856_v54  ;;  %v7406_v7 = vpop.f32.mrb[85].mxu0 }
 0x410   : > { %v3992_v33 = vpop.f32.mrb[8].mxu1  ;;  %v11863_v36 = vpop.f32.mrb[86].mxu0  ;;  %v3319_v7 = vsel %vm468_vm4, %v3267_v34, %v3268_v5  ;;  %v3357_v34 = vrot.slane %v10600_v39, 6  ;;  %v3270_v5 = vrot.slane %v13603_v47, 5 }
 0x411   : > { %v11866_v12 = vadd.f32 %v11394_v53, %v3992_v33  ;;  %v3994_v17 = vpop.f32.mrb[9].mxu1  ;;  %v7407_v3 = vpop.f32.mrb[87].mxu0  ;;  %v3531_v54 = vpack.c.bf16 %v3318_v46, %v3319_v7  ;;  %v3401_v53 = vsel %vm553_vm3, %v3353_v16, %v3354_v19  ;;  %v3356_v19 = vrot.slane %v13608_v21, 6 }
 0x412   : > { %v3995_v24 = vpop.f32.mrb[10].mxu1  ;;  %v3535_v33 = vpack.c.bf16 %v3400_v57, %v3401_v53  ;;  %v3316_v46 = vsel %vm468_vm4, %v3270_v5, %v3271_v35 }
 0x413   : > { %13707 = vst [vmem:[#allocation104_spill] sm:$0xff] %v11866_v12  ;;  %v11874_v37 = vadd.f32 %v11403_v60, %v3995_v24  ;;  %v3997_v6 = vpop.f32.mrb[11].mxu1  ;;  %7529 = vmatmul.mubr.bf16.gmra.mrb[192].mxu0 %v5065_v22  ;;  %v5029_v60 = vsel %vm13709_vm7, %v4985_v51, %v4986_v14  ;;  %v5030_v22 = vsel %vm13710_vm8, %v4984_v4, %v4985_v51  ;;  %vm13756_vm7 = vmmov %vm13690_vm1 }
 0x414   : > { %7532 = vmatprep.mubr.msk.bf16.mxu0 %vm7817_vm0, %v13266_v62  ;;  %v5067_v3 = vpack.c.bf16 %v5029_v60, %v5030_v22  ;;  %v3398_v53 = vsel %vm553_vm3, %v3356_v19, %v3357_v34  ;;  %v3273_v60 = vrot.slane %v10600_v39, 5  ;;  %v4987_v22 = vrot.slane %v10600_v39, 3  ;;  %vm13759_vm8 = vmmov %vm13690_vm1 }
 0x415   : > { %13708 = vst [vmem:[#allocation107_spill] sm:$0xff] %v11874_v37  ;;  %4585 = vmatmul.mubr.bf16.gmra.mrb[116].mxu1 %v3531_v54 }
 0x416   : > { %4592 = vmatprep.mubr.bf16.mxu1 %v3535_v33  ;;  %v11886_v24 = vpop.f32.mrb[88].mxu0  ;;  %v3317_v33 = vsel %vm468_vm4, %v3269_v15, %v3270_v5  ;;  %v3359_v15 = vrot.slane %v10637_v27, 6  ;;  %v3272_v5 = vrot.slane %v13608_v21, 5 }
 0x417   : > { %v7410_v16 = vpop.f32.mrb[89].mxu0  ;;  %v3534_v12 = vpack.c.bf16 %v3316_v46, %v3317_v33  ;;  %v11921_v46 = vadd.f32 %v11336_v52, %v11754_v40  ;;  %v13717_v40 = vld [vmem:[#allocation106_spill] sm:$0xff] }
 0x418   : > { %v4000_v54 = vpop.f32.mrb[12].mxu1  ;;  %v11893_v17 = vpop.f32.mrb[90].mxu0  ;;  %v4988_v16 = vrot.slane %v13613_v32, 3  ;;  %v3315_v52 = vsel %vm468_vm4, %v3271_v35, %v3272_v5  ;;  %v4989_v35 = vrot.slane %v10637_v27, 3 }
 0x419   : > { %v11896_v57 = vadd.f32 %v11411_v38, %v4000_v54  ;;  %v4002_v7 = vpop.f32.mrb[13].mxu1  ;;  %v7411_v6 = vpop.f32.mrb[91].mxu0  ;;  %v3399_v38 = vsel %vm553_vm3, %v3355_v11, %v3356_v19  ;;  %v3358_v19 = vrot.slane %v13613_v32, 6 }
 0x41a   : > { %v4003_v37 = vpop.f32.mrb[14].mxu1  ;;  %v3538_v54 = vpack.c.bf16 %v3398_v53, %v3399_v38 }
 0x41b   : > { %13711 = vst [vmem:[#allocation108_spill] sm:$0xff] %v11896_v57  ;;  %v11904_v4 = vadd.f32 %v11420_v42, %v4003_v37  ;;  %v4005_v51 = vpop.f32.mrb[15].mxu1  ;;  %7533 = vmatmul.mubr.bf16.gmra.mrb[196].mxu0 %v5067_v3  ;;  %v5027_v42 = vsel %vm13713_vm9, %v4987_v22, %v4988_v16  ;;  %v5028_v3 = vsel %vm13714_vm10, %v4986_v14, %v4987_v22  ;;  %vm13760_vm9 = vmmov %vm13690_vm1 }
 0x41c   : > { %7536 = vmatprep.mubr.msk.bf16.mxu0 %vm7817_vm0, %v13266_v62  ;;  %v5069_v53 = vpack.c.bf16 %v5027_v42, %v5028_v3  ;;  %v13719_v42 = vld [vmem:[#allocation76_spill] sm:$0xff]  ;;  %vm13765_vm10 = vmmov %vm13690_vm1 }
 0x41d   : > { %13712 = vst [vmem:[#allocation112_spill] sm:$0xff] %v11904_v4  ;;  %4593 = vmatmul.mubr.bf16.gmra.mrb[120].mxu1 %v3534_v12  ;;  %v3314_v12 = vsel %vm468_vm4, %v3272_v5, %v3273_v60  ;;  %v11944_v3 = vadd.f32 %v13719_v42, %v11763_v23 }
 0x41e   : > { %4600 = vmatprep.mubr.bf16.mxu1 %v3538_v54  ;;  %v11916_v37 = vpop.f32.mrb[92].mxu0  ;;  %v3396_v54 = vsel %vm553_vm3, %v3358_v19, %v3359_v15  ;;  %v3537_v57 = vpack.c.bf16 %v3314_v12, %v3315_v52  ;;  %v3274_v12 = vrot.slane %v13613_v32, 5 }
 0x41f   : > { %v7414_v11 = vpop.f32.mrb[93].mxu0 }
 0x420   : > { %v4008_v7 = vpop.f32.mrb[16].mxu1  ;;  %v11927_v6 = vpop.f32.mrb[94].mxu0  ;;  %v4990_v11 = vrot.slane %v13717_v40, 3 }
 0x421   : > { %13715 = vst [vmem:[#allocation113_spill] sm:$0xff] %v11927_v6  ;;  %v11930_v33 = vadd.f32 %v11428_v56, %v4008_v7  ;;  %v4010_v51 = vpop.f32.mrb[17].mxu1  ;;  %v7415_v38 = vpop.f32.mrb[95].mxu0  ;;  %v3397_v56 = vsel %vm553_vm3, %v3357_v34, %v3358_v19  ;;  %v3275_v7 = vrot.slane %v10637_v27, 5 }
 0x422   : > { %v4011_v4 = vpop.f32.mrb[18].mxu1  ;;  %v3541_v5 = vpack.c.bf16 %v3396_v54, %v3397_v56  ;;  %v5025_v34 = vsel %vm13721_vm11, %v4989_v35, %v4990_v11  ;;  %v5026_v38 = vsel %vm13690_vm1, %v4988_v16, %v4989_v35 }
 0x423   : > { %13716 = vst [vmem:[#allocation117_spill] sm:$0xff] %v11930_v33  ;;  %v11938_v14 = vadd.f32 %v11437_v63, %v4011_v4  ;;  %v4013_v22 = vpop.f32.mrb[19].mxu1  ;;  %7537 = vmatmul.mubr.bf16.gmra.mrb[200].mxu0 %v5069_v53  ;;  %v13720_v63 = vld [vmem:[#allocation110_spill] sm:$0xff]  ;;  %v3360_v53 = vrot.slane %v13717_v40, 6  ;;  %v3312_v51 = vsel %vm468_vm4, %v3274_v12, %v3275_v7  ;;  %v5071_v52 = vpack.c.bf16 %v5025_v34, %v5026_v38 }
 0x424   : > { %7540 = vmatprep.mubr.msk.bf16.mxu0 %vm7817_vm0, %v13266_v62  ;;  %v3361_v4 = vrot.slane %v13720_v63, 6  ;;  %v3277_v34 = vrot.slane %v13720_v63, 5  ;;  %v4991_v38 = vrot.slane %v13720_v63, 3 }
 0x425   : > { %13718 = vst [vmem:[#allocation120_spill] sm:$0xff] %v11938_v14  ;;  %4601 = vmatmul.mubr.bf16.gmra.mrb[124].mxu1 %v3537_v57  ;;  %v13725_v14 = vld [vmem:[#allocation111_spill] sm:$0xff] }
 0x426   : > { %4608 = vmatprep.mubr.bf16.mxu1 %v3541_v5  ;;  %v11954_v19 = vpop.f32.mrb[96].mxu0  ;;  %v3394_v5 = vsel %vm553_vm3, %v3360_v53, %v3361_v4  ;;  %v4992_v33 = vrot.slane %v13725_v14, 3 }
 0x427   : > { %13722 = vst [vmem:[#allocation122_spill] sm:$0xff] %v11954_v19  ;;  %v7418_v23 = vpop.f32.mrb[97].mxu0 }
 0x428   : > { %v4016_v57 = vpop.f32.mrb[20].mxu1  ;;  %v11961_v54 = vpop.f32.mrb[98].mxu0  ;;  %v3313_v23 = vsel %vm468_vm4, %v3273_v60, %v3274_v12  ;;  %v13727_v60 = vld [vmem:[#allocation115_spill] sm:$0xff] }
 0x429   : > { %13723 = vst [vmem:[#allocation123_spill] sm:$0xff] %v11961_v54  ;;  %v11964_v22 = vadd.f32 %v11445_v2, %v4016_v57  ;;  %v4018_v56 = vpop.f32.mrb[21].mxu1  ;;  %v7419_v42 = vpop.f32.mrb[99].mxu0  ;;  %v3540_v6 = vpack.c.bf16 %v3312_v51, %v3313_v23  ;;  %v3395_v2 = vsel %vm553_vm3, %v3359_v15, %v3360_v53  ;;  %v3363_v12 = vrot.slane %v13727_v60, 6 }
 0x42a   : > { %v4019_v19 = vpop.f32.mrb[22].mxu1  ;;  %v3544_v57 = vpack.c.bf16 %v3394_v5, %v3395_v2  ;;  %v3276_v51 = vrot.slane %v13717_v40, 5  ;;  %v3362_v53 = vrot.slane %v13725_v14, 6  ;;  %v5024_v56 = vsel %vm13730_vm2, %v4990_v11, %v4991_v38  ;;  %v13734_v11 = vld [vmem:[#allocation7_spill] sm:$0xff] }
 0x42b   : > { %13724 = vst [vmem:[#allocation126_spill] sm:$0xff] %v11964_v22  ;;  %v11972_v16 = vadd.f32 %v11454_v29, %v4019_v19  ;;  %v4021_v35 = vpop.f32.mrb[23].mxu1  ;;  %7541 = vmatmul.mubr.bf16.gmra.mrb[204].mxu0 %v5071_v52  ;;  %v5023_v29 = vsel %vm13728_vm15, %v4991_v38, %v4992_v33 }
 0x42c   : > { %7544 = vmatprep.mubr.msk.bf16.mxu0 %vm7817_vm0, %v13266_v62  ;;  %v3310_v52 = vsel %vm468_vm4, %v3276_v51, %v3277_v34  ;;  %v5073_v5 = vpack.c.bf16 %v5023_v29, %v5024_v56  ;;  %v3279_v29 = vrot.slane %v13727_v60, 5  ;;  %v4993_v56 = vrot.slane %v13727_v60, 3 }
 0x42d   : > { %13726 = vst [vmem:[#allocation128_spill] sm:$0xff] %v11972_v16  ;;  %4609 = vmatmul.mubr.bf16.gmra.mrb[128].mxu1 %v3540_v6  ;;  %v13733_v16 = vld [vmem:[#allocation116_spill] sm:$0xff] }
 0x42e   : > { %4616 = vmatprep.mubr.bf16.mxu1 %v3544_v57  ;;  %v11984_v19 = vpop.f32.mrb[100].mxu0  ;;  %v3392_v57 = vsel %vm553_vm3, %v3362_v53, %v3363_v12  ;;  %v4994_v22 = vrot.slane %v13733_v16, 3 }
 0x42f   : > { %13729 = vst [vmem:[#allocation129_spill] sm:$0xff] %v11984_v19  ;;  %v7422_v15 = vpop.f32.mrb[101].mxu0 }
 0x430   : > { %v4024_v6 = vpop.f32.mrb[24].mxu1  ;;  %v11991_v42 = vpop.f32.mrb[102].mxu0  ;;  %v3311_v15 = vsel %vm468_vm4, %v3275_v7, %v3276_v51  ;;  %v13736_v7 = vld [vmem:[#allocation119_spill] sm:$0xff] }
 0x431   : > { %13731 = vst [vmem:[#allocation132_spill] sm:$0xff] %v11991_v42  ;;  %v11994_v23 = vadd.f32 %v11462_v31, %v4024_v6  ;;  %v4026_v35 = vpop.f32.mrb[25].mxu1  ;;  %v7423_v2 = vpop.f32.mrb[103].mxu0  ;;  %v3543_v54 = vpack.c.bf16 %v3310_v52, %v3311_v15  ;;  %v3393_v31 = vsel %vm553_vm3, %v3361_v4, %v3362_v53  ;;  %v3365_v51 = vrot.slane %v13736_v7, 6  ;;  %v13741_v15 = vld [vmem:[#allocation73_spill] sm:$0xff] }
 0x432   : > { %v4027_v19 = vpop.f32.mrb[26].mxu1  ;;  %v3547_v6 = vpack.c.bf16 %v3392_v57, %v3393_v31  ;;  %v3278_v52 = vrot.slane %v13725_v14, 5  ;;  %v3364_v53 = vrot.slane %v13733_v16, 6  ;;  %v5022_v35 = vsel %vm13739_vm14, %v4992_v33, %v4993_v56  ;;  %v13744_v33 = vld [vmem:[#allocation75_spill] sm:$0xff] }
 0x433   : > { %13732 = vst [vmem:[#allocation134_spill] sm:$0xff] %v11994_v23  ;;  %v12002_v38 = vadd.f32 %v13734_v11, %v4027_v19  ;;  %v4029_v42 = vpop.f32.mrb[27].mxu1  ;;  %7545 = vmatmul.mubr.bf16.gmra.mrb[208].mxu0 %v5073_v5  ;;  %v5021_v19 = vsel %vm13737_vm6, %v4993_v56, %v4994_v22  ;;  %v13743_v23 = vld [vmem:[#allocation121_spill] sm:$0xff] }
 0x434   : > { %7548 = vmatprep.mubr.msk.bf16.mxu0 %vm7817_vm0, %v13266_v62  ;;  %v3308_v5 = vsel %vm468_vm4, %v3278_v52, %v3279_v29  ;;  %v5075_v57 = vpack.c.bf16 %v5021_v19, %v5022_v35  ;;  %v3391_v19 = vsel %vm553_vm3, %v3363_v12, %v3364_v53  ;;  %v3281_v35 = vrot.slane %v13736_v7, 5 }
 0x435   : > { %13735 = vst [vmem:[#allocation136_spill] sm:$0xff] %v12002_v38  ;;  %4617 = vmatmul.mubr.bf16.gmra.mrb[132].mxu1 %v3543_v54  ;;  %v3309_v38 = vsel %vm468_vm4, %v3277_v34, %v3278_v52  ;;  %v13746_v34 = vld [vmem:[#allocation125_spill] sm:$0xff] }
 0x436   : > { %4624 = vmatprep.mubr.bf16.mxu1 %v3547_v6  ;;  %v12014_v42 = vpop.f32.mrb[104].mxu0  ;;  %v3546_v63 = vpack.c.bf16 %v3308_v5, %v3309_v38  ;;  %v3367_v52 = vrot.slane %v13746_v34, 6  ;;  %v3280_v38 = vrot.slane %v13733_v16, 5 }
 0x437   : > { %13738 = vst [vmem:[#allocation133_spill] sm:$0xff] %v12014_v42  ;;  %v7426_v4 = vpop.f32.mrb[105].mxu0  ;;  %v4996_v42 = vrot.slane %v13743_v23, 3 }
 0x438   : > { %v4032_v54 = vpop.f32.mrb[28].mxu1  ;;  %v12021_v2 = vpop.f32.mrb[106].mxu0  ;;  %v3390_v4 = vsel %vm553_vm3, %v3364_v53, %v3365_v51  ;;  %v3366_v53 = vrot.slane %v13743_v23, 6 }
 0x439   : > { %13740 = vst [vmem:[#allocation135_spill] sm:$0xff] %v12021_v2  ;;  %v12024_v11 = vadd.f32 %v13741_v15, %v4032_v54  ;;  %v4034_v31 = vpop.f32.mrb[29].mxu1  ;;  %v7427_v6 = vpop.f32.mrb[107].mxu0  ;;  %v4995_v54 = vrot.slane %v13736_v7, 3  ;;  %v3550_v15 = vpack.c.bf16 %v3390_v4, %v3391_v19 }
 0x43a   : > { %v4035_v60 = vpop.f32.mrb[30].mxu1 }
 0x43b   : > { %13742 = vst [vmem:[#allocation35_spill] sm:$0xff] %v12024_v11  ;;  %v12032_v56 = vadd.f32 %v13744_v33, %v4035_v60  ;;  %v4037_v2 = vpop.f32.mrb[31].mxu1  ;;  %7549 = vmatmul.mubr.bf16.gmra.mrb[212].mxu0 %v5075_v57  ;;  %v5019_v60 = vsel %vm13747_vm5, %v4995_v54, %v4996_v42  ;;  %v5020_v57 = vsel %vm13749_vm12, %v4994_v22, %v4995_v54 }
 0x43c   : > { %7552 = vmatprep.mubr.msk.bf16.mxu0 %vm7817_vm0, %v13266_v62  ;;  %v3306_v2 = vsel %vm468_vm4, %v3280_v38, %v3281_v35  ;;  %v5077_v6 = vpack.c.bf16 %v5019_v60, %v5020_v57  ;;  %v3283_v60 = vrot.slane %v13746_v34, 5  ;;  %v4997_v57 = vrot.slane %v13746_v34, 3 }
 0x43d   : > { %13745 = vst [vmem:[#allocation29_spill] sm:$0xff] %v12032_v56  ;;  %4625 = vmatmul.mubr.bf16.gmra.mrb[136].mxu1 %v3546_v63  ;;  %v13751_v56 = vld [vmem:[#allocation127_spill] sm:$0xff] }
 0x43e   : > { %4632 = vmatprep.mubr.bf16.mxu1 %v3550_v15  ;;  %v12044_v5 = vpop.f32.mrb[108].mxu0  ;;  %v3388_v15 = vsel %vm553_vm3, %v3366_v53, %v3367_v52  ;;  %v4998_v11 = vrot.slane %v13751_v56, 3 }
 0x43f   : > { %13748 = vst [vmem:[#allocation142_spill] sm:$0xff] %v12044_v5  ;;  %v7430_v12 = vpop.f32.mrb[109].mxu0 }
 0x440   : > { %v4040_v63 = vpop.f32.mrb[32].mxu1  ;;  %v12051_v31 = vpop.f32.mrb[110].mxu0  ;;  %v3307_v12 = vsel %vm468_vm4, %v3279_v29, %v3280_v38  ;;  %v13753_v29 = vld [vmem:[#allocation131_spill] sm:$0xff] }
 0x441   : > { %v12054_v4 = vadd.f32 %v11496_v43, %v4040_v63  ;;  %v4042_v33 = vpop.f32.mrb[33].mxu1  ;;  %v7431_v19 = vpop.f32.mrb[111].mxu0  ;;  %v3549_v7 = vpack.c.bf16 %v3306_v2, %v3307_v12  ;;  %v3389_v43 = vsel %vm553_vm3, %v3365_v51, %v3366_v53  ;;  %v3369_v38 = vrot.slane %v13753_v29, 6 }
 0x442   : > { %v4043_v5 = vpop.f32.mrb[34].mxu1  ;;  %v3553_v63 = vpack.c.bf16 %v3388_v15, %v3389_v43  ;;  %v3282_v2 = vrot.slane %v13743_v23, 5  ;;  %v3368_v53 = vrot.slane %v13751_v56, 6  ;;  %v5018_v33 = vsel %vm13756_vm7, %v4996_v42, %v4997_v57 }
 0x443   : > { %13750 = vst [vmem:[#allocation32_spill] sm:$0xff] %v12054_v4  ;;  %v12062_v22 = vadd.f32 %v11504_v8, %v4043_v5  ;;  %v4045_v54 = vpop.f32.mrb[35].mxu1  ;;  %7553 = vmatmul.mubr.bf16.gmra.mrb[216].mxu0 %v5077_v6  ;;  %v5017_v8 = vsel %vm13754_vm13, %v4997_v57, %v4998_v11 }
 0x444   : > { %7556 = vmatprep.mubr.msk.bf16.mxu0 %vm7817_vm0, %v13266_v62  ;;  %v3304_v6 = vsel %vm468_vm4, %v3282_v2, %v3283_v60  ;;  %v5079_v15 = vpack.c.bf16 %v5017_v8, %v5018_v33  ;;  %v3285_v8 = vrot.slane %v13753_v29, 5  ;;  %v4999_v33 = vrot.slane %v13753_v29, 3 }
 0x445   : > { %13752 = vst [vmem:[#allocation146_spill] sm:$0xff] %v12062_v22  ;;  %4633 = vmatmul.mubr.bf16.gmra.mrb[140].mxu1 %v3549_v7  ;;  %v5000_v22 = vrot.slane %v13648_v48, 3 }
 0x446   : > { %4640 = vmatprep.mubr.bf16.mxu1 %v3553_v63  ;;  %v12074_v5 = vpop.f32.mrb[112].mxu0  ;;  %v3386_v63 = vsel %vm553_vm3, %v3368_v53, %v3369_v38 }
 0x447   : > { %13755 = vst [vmem:[#allocation150_spill] sm:$0xff] %v12074_v5  ;;  %v7434_v51 = vpop.f32.mrb[113].mxu0 }
 0x448   : > { %v4048_v7 = vpop.f32.mrb[36].mxu1  ;;  %v12081_v19 = vpop.f32.mrb[114].mxu0  ;;  %v3305_v51 = vsel %vm468_vm4, %v3281_v35, %v3282_v2  ;;  %v3284_v35 = vrot.slane %v13751_v56, 5 }
 0x449   : > { %v12084_v12 = vadd.f32 %v11514_v1, %v4048_v7  ;;  %v4050_v54 = vpop.f32.mrb[37].mxu1  ;;  %v7435_v43 = vpop.f32.mrb[115].mxu0  ;;  %v3552_v5 = vpack.c.bf16 %v3304_v6, %v3305_v51  ;;  %v3387_v1 = vsel %vm553_vm3, %v3367_v52, %v3368_v53  ;;  %v3370_v52 = vrot.slane %v13648_v48, 6 }
 0x44a   : > { %v4051_v4 = vpop.f32.mrb[38].mxu1  ;;  %v3556_v7 = vpack.c.bf16 %v3386_v63, %v3387_v1  ;;  %v3302_v53 = vsel %vm468_vm4, %v3284_v35, %v3285_v8  ;;  %v5016_v6 = vsel %vm13760_vm9, %v4998_v11, %v4999_v33 }
 0x44b   : > { %13757 = vst [vmem:[#allocation60_spill] sm:$0xff] %v12084_v12  ;;  %v12092_v42 = vadd.f32 %v11522_v50, %v4051_v4  ;;  %v4053_v57 = vpop.f32.mrb[39].mxu1  ;;  %7557 = vmatmul.mubr.bf16.gmra.mrb[220].mxu0 %v5079_v15  ;;  %v5015_v50 = vsel %vm13759_vm8, %v4999_v33, %v5000_v22 }
 0x44c   : > { %7560 = vmatprep.mubr.msk.bf16.mxu0 %vm7817_vm0, %v13266_v62  ;;  %v13761_v57 = vld [vmem:[#allocation138_spill] sm:$0xff] }
 0x44d   : > { %13758 = vst [vmem:[#allocation71_spill] sm:$0xff] %v12092_v42  ;;  %4641 = vmatmul.mubr.bf16.gmra.mrb[144].mxu1 %v3552_v5  ;;  %v5081_v5 = vpack.c.bf16 %v5015_v50, %v5016_v6  ;;  %v13762_v1 = vrot.slane %v13761_v57, 6  ;;  %v5001_v50 = vrot.slane %v13761_v57, 3 }
 0x44e   : > { %4648 = vmatprep.mubr.bf16.mxu1 %v3556_v7  ;;  %v12103_v4 = vpop.f32.mrb[116].mxu0 }
 0x44f   : > { %v7438_v2 = vpop.f32.mrb[117].mxu0  ;;  %v3384_v7 = vsel %vm553_vm3, %v3370_v52, %v13762_v1 }
 0x450   : > { %v4056_v15 = vpop.f32.mrb[40].mxu1  ;;  %v12110_v54 = vpop.f32.mrb[118].mxu0  ;;  %v3303_v2 = vsel %vm468_vm4, %v3283_v60, %v3284_v35  ;;  %v13763_v60 = vld [vmem:[#allocation139_spill] sm:$0xff] }
 0x451   : > { %v12113_v43 = vadd.f32 %v11525_v61, %v4056_v15  ;;  %v4058_v63 = vpop.f32.mrb[41].mxu1  ;;  %v7439_v51 = vpop.f32.mrb[119].mxu0  ;;  %v3555_v12 = vpack.c.bf16 %v3302_v53, %v3303_v2  ;;  %v3385_v61 = vsel %vm553_vm3, %v3369_v38, %v3370_v52  ;;  %v3286_v15 = vrot.slane %v13648_v48, 5  ;;  %vm13767_vm3 = vmmov %vm13690_vm1 }
 0x452   : > { %v4059_v42 = vpop.f32.mrb[42].mxu1  ;;  %v3559_v6 = vpack.c.bf16 %v3384_v7, %v3385_v61  ;;  %v13764_v35 = vrot.slane %v13763_v60, 3  ;;  %v13766_v38 = vrot.slane %v13761_v57, 5 }
 0x453   : > { %v12122_v11 = vadd.f32 %v11534_v25, %v4059_v42  ;;  %v4061_v33 = vpop.f32.mrb[43].mxu1  ;;  %7561 = vmatmul.mubr.bf16.gmra.mrb[224].mxu0 %v5081_v5  ;;  %v5014_v5 = vsel %vm13767_vm3, %v5000_v22, %v5001_v50  ;;  %v13771_v22 = vld [vmem:[#allocation51_spill] sm:$0xff] }
 0x454   : > { %7564 = vmatprep.mubr.msk.bf16.mxu0 %vm7817_vm0, %v13266_v62  ;;  %v5013_v25 = vsel %vm13765_vm10, %v5001_v50, %v13764_v35  ;;  %v3300_v52 = vsel %vm468_vm4, %v3286_v15, %v13766_v38  ;;  %v3301_v33 = vsel %vm468_vm4, %v3285_v8, %v3286_v15  ;;  %v13769_v35 = vld [vmem:[#allocation17_spill] sm:$0xff]  ;;  %v13772_v50 = vld [vmem:[#allocation79_spill] sm:$0xff]  ;;  %v13775_v15 = vld [vmem:[#allocation20_spill] sm:$0xff]  ;;  %vm13794_vm4 = vcmp.lt.s32.totalorder %v7934_v20, 6 }
 0x455   : > { %4649 = vmatmul.mubr.bf16.gmra.mrb[148].mxu1 %v3555_v12  ;;  %v5083_v51 = vpack.c.bf16 %v5013_v25, %v5014_v5  ;;  %vm13800_vm11 = vmmov %vm13794_vm4 }
 0x456   : > { %4656 = vmatprep.mubr.bf16.mxu1 %v3559_v6  ;;  %v12134_v42 = vpop.f32.mrb[120].mxu0  ;;  %v3558_v6 = vpack.c.bf16 %v3300_v52, %v3301_v33  ;;  %v13777_v33 = vld [vmem:[#allocation23_spill] sm:$0xff]  ;;  %vm13806_vm1 = vmmov %vm13794_vm4 }
 0x457   : > { %v7442_v53 = vpop.f32.mrb[121].mxu0  ;;  %vm13809_vm15 = vmmov %vm13806_vm1 }
 0x458   : > { %v4064_v12 = vpop.f32.mrb[44].mxu1  ;;  %v12142_v63 = vpop.f32.mrb[122].mxu0  ;;  %vm13813_vm2 = vmmov %vm13806_vm1 }
 0x459   : > { %v12145_v1 = vadd.f32 %v11537_v10, %v4064_v12  ;;  %v4066_v7 = vpop.f32.mrb[45].mxu1  ;;  %v7443_v2 = vpop.f32.mrb[123].mxu0  ;;  %v13773_v10 = vpack.c.bf16 %v13771_v22, %v13772_v50  ;;  %v13782_v50 = vld [vmem:[#allocation141_spill] sm:$0xff]  ;;  %vm13816_vm6 = vmmov %vm13806_vm1 }
 0x45a   : > { %v4067_v61 = vpop.f32.mrb[46].mxu1  ;;  %vm13822_vm14 = vmmov %vm13806_vm1 }
 0x45b   : > { %13768 = vst [vmem:[#allocation106_spill] sm:$0xff] %v12145_v1  ;;  %v12150_v53 = vadd.f32 %v13769_v35, %v4067_v61  ;;  %v4069_v38 = vpop.f32.mrb[47].mxu1  ;;  %7565 = vmatmul.mubr.bf16.gmra.mrb[228].mxu0 %v5083_v51  ;;  %v13779_v35 = vld [vmem:[#allocation144_spill] sm:$0xff]  ;;  %vm13825_vm5 = vmmov %vm13806_vm1 }
 0x45c   : > { %7568 = vmatprep.mubr.msk.bf16.mxu0 %vm7817_vm0, %v13266_v62  ;;  %v13780_v38 = vld [vmem:[#allocation143_spill] sm:$0xff]  ;;  %vm13833_vm12 = vmmov %vm13806_vm1 }
 0x45d   : > { %13770 = vst [vmem:[#allocation76_spill] sm:$0xff] %v12150_v53  ;;  %4657 = vmatmul.mubr.bf16.gmra.mrb[152].mxu1 %v3558_v6  ;;  %v13781_v22 = vpack.c.bf16 %v13779_v35, %v13780_v38  ;;  %vm13836_vm13 = vmmov %vm13806_vm1 }
 0x45e   : > { %4664 = vmatprep.mubr.bf16.mxu1 %v13773_v10  ;;  %v12157_v25 = vpop.f32.mrb[124].mxu0  ;;  %v13783_v10 = vld [vmem:[#allocation78_spill] sm:$0xff]  ;;  %vm13843_vm7 = vmmov %vm13806_vm1 }
 0x45f   : > { %v7446_v5 = vpop.f32.mrb[125].mxu0  ;;  %vm13846_vm8 = vmmov %vm13806_vm1 }
 0x460   : > { %v4072_v12 = vpop.f32.mrb[48].mxu1  ;;  %v12159_v8 = vpop.f32.mrb[126].mxu0  ;;  %v13784_v5 = vpack.c.bf16 %v13782_v50, %v13783_v10  ;;  %v13793_v10 = vld [vmem:[#allocation47_spill] sm:$0xff]  ;;  %vm13849_vm9 = vmmov %vm13806_vm1 }
 0x461   : > { %13774 = vst [vmem:[#allocation111_spill] sm:$0xff] %v12159_v8  ;;  %v12162_v52 = vadd.f32 %v13775_v15, %v4072_v12  ;;  %v4074_v7 = vpop.f32.mrb[49].mxu1  ;;  %v7447_v2 = vpop.f32.mrb[127].mxu0  ;;  %v4886_v12 = vrot.slane %v13671_v30, 2  ;;  %v13785_v15 = vld [vmem:[#allocation56_spill] sm:$0xff]  ;;  %vm13850_vm10 = vmmov %vm13806_vm1 }
 0x462   : > { %v4075_v51 = vpop.f32.mrb[50].mxu1  ;;  %v13786_v7 = vld [vmem:[#allocation64_spill] sm:$0xff]  ;;  %vm13852_vm3 = vmmov %vm13806_vm1 }
 0x463   : > { %13776 = vst [vmem:[#allocation116_spill] sm:$0xff] %v12162_v52  ;;  %v12165_v61 = vadd.f32 %v13777_v33, %v4075_v51  ;;  %v4077_v6 = vpop.f32.mrb[51].mxu1  ;;  %7569 = vmatmul.mubr.bf16.gmra.mrb[232].mxu0 %v13781_v22  ;;  %v13787_v2 = vpack.c.bf16 %v13785_v15, %v13786_v7  ;;  %v13791_v22 = vld [vmem:[#allocation80_spill] sm:$0xff]  ;;  %v13795_v7 = vld [vmem:[#allocation82_spill] sm:$0xff] }
 0x464   : > { %7572 = vmatprep.mubr.msk.bf16.mxu0 %vm7817_vm0, %v13266_v62  ;;  %v13789_v6 = vld [vmem:[#allocation48_spill] sm:$0xff] }
 0x465   : > { %13778 = vst [vmem:[#allocation7_spill] sm:$0xff] %v12165_v61  ;;  %4665 = vmatmul.mubr.bf16.gmra.mrb[156].mxu1 %v13784_v5  ;;  %v4885_v61 = vrot.slane %v13789_v6, 2  ;;  %v13228_v5 = vrot.slane %v13793_v10, 2  ;;  %v13798_v6 = vld [vmem:[#allocation147_spill] sm:$0xff] }
 0x466   : > { %4672 = vmatprep.mubr.bf16.mxu1 %v13787_v2  ;;  %v12179_v51 = vpop.f32.mrb[128].mxu0 }
 0x467   : > { %13788 = vst [vmem:[#allocation73_spill] sm:$0xff] %v12179_v51  ;;  %v7450_v33 = vpop.f32.mrb[129].mxu0  ;;  %v4961_v30 = vsel %vm13794_vm4, %v4885_v61, %v4886_v12  ;;  %v13797_v51 = vld [vmem:[#allocation151_spill] sm:$0xff]  ;;  %vm13853_vm4 = vmmov %vm13806_vm1 }
 0x468   : > { %v4080_v35 = vpop.f32.mrb[52].mxu1  ;;  %v12182_v38 = vpop.f32.mrb[130].mxu0  ;;  %v13799_v1 = vpack.c.bf16 %v13797_v51, %v13798_v6  ;;  %v13805_v6 = vld [vmem:[#allocation83_spill] sm:$0xff] }
 0x469   : > { %13790 = vst [vmem:[#allocation121_spill] sm:$0xff] %v12182_v38  ;;  %v12185_v52 = vadd.f32 %v13791_v22, %v4080_v35  ;;  %v4082_v53 = vpop.f32.mrb[53].mxu1  ;;  %v7451_v50 = vpop.f32.mrb[131].mxu0  ;;  %v13801_v22 = vld [vmem:[#allocation36_spill] sm:$0xff]  ;;  %v4888_v38 = vrot.slane %v13562_v59, 2 }
 0x46a   : > { %v4083_v15 = vpop.f32.mrb[54].mxu1  ;;  %v4962_v53 = vsel %vm13800_vm11, %v13228_v5, %v4885_v61  ;;  %v13802_v50 = vld [vmem:[#allocation39_spill] sm:$0xff]  ;;  %v4890_v5 = vrot.slane %v13568_v28, 2  ;;  %vm13855_vm11 = vmmov %vm13806_vm1 }
 0x46b   : > { %13792 = vst [vmem:[#allocation75_spill] sm:$0xff] %v12185_v52  ;;  %v12191_v2 = vadd.f32 %v13795_v7, %v4083_v15  ;;  %v4085_v33 = vpop.f32.mrb[55].mxu1  ;;  %7573 = vmatmul.mubr.bf16.gmra.mrb[236].mxu0 %v13799_v1  ;;  %v5050_v35 = vpack.c.bf16 %v4961_v30, %v4962_v53  ;;  %v13803_v52 = vpack.c.bf16 %v13801_v22, %v13802_v50  ;;  %v13804_v7 = vld [vmem:[#allocation72_spill] sm:$0xff]  ;;  %v13807_v22 = vld [vmem:[#allocation86_spill] sm:$0xff] }
 0x46c   : > { %v4887_v33 = vrot.slane %v13804_v7, 2  ;;  %v13810_v7 = vld [vmem:[#allocation68_spill] sm:$0xff] }
 0x46d   : > { %13796 = vst [vmem:[#allocation125_spill] sm:$0xff] %v12191_v2  ;;  %4673 = vmatmul.mubr.bf16.gmra.mrb[160].mxu1 %v13803_v52 }
 0x46e   : > { %v12204_v8 = vpop.f32.mrb[132].mxu0  ;;  %5317 = vmatprep.mubr.bf16.mxu1 %v5050_v35  ;;  %v4959_v53 = vsel %vm13806_vm1, %v4887_v33, %v4888_v38  ;;  %v4960_v35 = vsel %vm13809_vm15, %v4886_v12, %v4887_v33  ;;  %v13811_v33 = vld [vmem:[#allocation87_spill] sm:$0xff]  ;;  %vm13860_vm15 = vmmov %vm13806_vm1 }
 0x46f   : > { %v7454_v15 = vpop.f32.mrb[133].mxu0 }
 0x470   : > { %v4088_v51 = vpop.f32.mrb[56].mxu1  ;;  %v12207_v1 = vpop.f32.mrb[134].mxu0  ;;  %v5052_v15 = vpack.c.bf16 %v4959_v53, %v4960_v35 }
 0x471   : > { %v12210_v2 = vadd.f32 %v13805_v6, %v4088_v51  ;;  %v4090_v61 = vpop.f32.mrb[57].mxu1  ;;  %v7455_v30 = vpop.f32.mrb[135].mxu0  ;;  %v7799_v6 = vld [vmem:[%s12908_s4 + $0x200] sm:$0xff]  }
 0x472   : > { %v4091_v52 = vpop.f32.mrb[58].mxu1  ;;  %v4889_v30 = vrot.slane %v13679_v44, 2  ;;  %v13814_v44 = vld [vmem:[#allocation88_spill] sm:$0xff] }
 0x473   : > { %v12215_v59 = vadd.f32 %v13807_v22, %v4091_v52  ;;  %v4093_v50 = vpop.f32.mrb[59].mxu1 }
 0x474   : > { %v4957_v50 = vsel %vm13813_vm2, %v4889_v30, %v4890_v5  ;;  %vm13862_vm2 = vmmov %vm13806_vm1 }
 0x475   : > { %13808 = vst [vmem:[#allocation127_spill] sm:$0xff] %v12215_v59  ;;  %5318 = vmatmul.mubr.bf16.vlgmr.msra.gmra.mrb[164].mxu1 %v13810_v7 }
 0x476   : > { %v12221_v51 = vpop.f32.mrb[136].mxu0  ;;  %5325 = vmatprep.mubr.bf16.mxu1 %v5052_v15  ;;  %7592 = vmatpush3.bf16.msra.mxu1 %v7799_v6  ;;  %v7800_v15 = vld [vmem:[%s12908_s4 + $0x208] sm:$0xff]  }
 0x477   : > { %v7458_v61 = vpop.f32.mrb[137].mxu0  ;;  %7585 = vmatprep.subr.bf16.mxu1 %v13266_v62 }
 0x478   : > { %v4096_v52 = vpop.f32.mrb[60].mxu1  ;;  %v12228_v12 = vpop.f32.mrb[138].mxu0  ;;  %v4958_v61 = vsel %vm13816_vm6, %v4888_v38, %v4889_v30  ;;  %vm13866_vm6 = vmmov %vm13806_vm1 }
 0x479   : > { %v12231_v53 = vadd.f32 %v13811_v33, %v4096_v52  ;;  %v4098_v28 = vpop.f32.mrb[61].mxu1  ;;  %v7459_v22 = vpop.f32.mrb[139].mxu0  ;;  %v5054_v52 = vpack.c.bf16 %v4957_v50, %v4958_v61  ;;  %v13817_v33 = vld [vmem:[#allocation67_spill] sm:$0xff]  ;;  %v13820_v50 = vld [vmem:[#allocation90_spill] sm:$0xff] }
 0x47a   : > { %v4099_v35 = vpop.f32.mrb[62].mxu1  ;;  %7593 = vmatpush3.bf16.msra.mxu1 %v7800_v15  ;;  %v4892_v28 = vrot.slane %v13573_v0, 2  ;;  %v7801_v15 = vld [vmem:[%s12908_s4 + $0x210] sm:$0xff]  }
 0x47b   : > { %13812 = vst [vmem:[#allocation131_spill] sm:$0xff] %v12231_v53  ;;  %v12239_v7 = vadd.f32 %v13814_v44, %v4099_v35  ;;  %v4101_v6 = vpop.f32.mrb[63].mxu1  ;;  %7586 = vmatprep.subr.bf16.mxu1 %v13266_v62  ;;  %v13818_v44 = vld [vmem:[#allocation13_spill] sm:$0xff] }
 0x47c   : > { %v4891_v6 = vrot.slane %v13818_v44, 2 }
 0x47d   : > { %13815 = vst [vmem:[#allocation138_spill] sm:$0xff] %v12239_v7  ;;  %5326 = vmatmul.mubr.bf16.gmra.mrb[168].mxu1 %v13817_v33 }
 0x47e   : > { %v12246_v22 = vpop.f32.mrb[140].mxu0  ;;  %5333 = vmatprep.mubr.bf16.mxu1 %v5054_v52  ;;  %7594 = vmatpush3.bf16.msra.mxu1 %v7801_v15  ;;  %v4955_v52 = vsel %vm13822_vm14, %v4891_v6, %v4892_v28  ;;  %v7802_v15 = vld [vmem:[%s12908_s4 + $0x218] sm:$0xff]   ;;  %vm13869_vm14 = vmmov %vm13806_vm1 }
 0x47f   : > { %v7462_v35 = vpop.f32.mrb[141].mxu0  ;;  %7587 = vmatprep.subr.bf16.mxu1 %v13266_v62 }
 0x480   : > { %v4104_v38 = vpop.f32.mrb[64].mxu1  ;;  %v12253_v30 = vpop.f32.mrb[142].mxu0  ;;  %v13823_v35 = vld [vmem:[#allocation91_spill] sm:$0xff] }
 0x481   : > { %13819 = vst [vmem:[#allocation139_spill] sm:$0xff] %v12253_v30  ;;  %v12256_v61 = vadd.f32 %v13820_v50, %v4104_v38  ;;  %v4106_v0 = vpop.f32.mrb[65].mxu1  ;;  %v7463_v33 = vpop.f32.mrb[143].mxu0  ;;  %v4956_v30 = vsel %vm13825_vm5, %v4890_v5, %v4891_v6  ;;  %v13826_v50 = vld [vmem:[#allocation10_spill] sm:$0xff]  ;;  %vm13875_vm5 = vmmov %vm13806_vm1 }
 0x482   : > { %v4107_v7 = vpop.f32.mrb[66].mxu1  ;;  %7595 = vmatpush3.bf16.msra.mxu1 %v7802_v15  ;;  %v5056_v38 = vpack.c.bf16 %v4955_v52, %v4956_v30  ;;  %v13827_v0 = vld [vmem:[#allocation81_spill] sm:$0xff]  ;;  %v7803_v15 = vld [vmem:[%s12908_s4 + $0x220] sm:$0xff]   ;;  %v13831_v30 = vld [vmem:[#allocation92_spill] sm:$0xff] }
 0x483   : > { %13821 = vst [vmem:[#allocation17_spill] sm:$0xff] %v12256_v61  ;;  %v12264_v44 = vadd.f32 %v13823_v35, %v4107_v7  ;;  %v4109_v53 = vpop.f32.mrb[67].mxu1  ;;  %7588 = vmatprep.subr.bf16.mxu1 %v13266_v62  ;;  %v4894_v33 = vrot.slane %v13827_v0, 2 }
 0x484   : > { %v13829_v53 = vld [vmem:[#allocation77_spill] sm:$0xff] }
 0x485   : > { %13824 = vst [vmem:[#allocation51_spill] sm:$0xff] %v12264_v44  ;;  %5334 = vmatmul.mubr.bf16.gmra.mrb[172].mxu1 %v13826_v50  ;;  %v4893_v35 = vrot.slane %v13829_v53, 2 }
 0x486   : > { %v12271_v61 = vpop.f32.mrb[144].mxu0  ;;  %5341 = vmatprep.mubr.bf16.mxu1 %v5056_v38  ;;  %7596 = vmatpush3.bf16.msra.mxu1 %v7803_v15  ;;  %v7804_v15 = vld [vmem:[%s12908_s4 + $0x228] sm:$0xff]  }
 0x487   : > { %13828 = vst [vmem:[#allocation79_spill] sm:$0xff] %v12271_v61  ;;  %v7466_v7 = vpop.f32.mrb[145].mxu0  ;;  %7589 = vmatprep.subr.bf16.mxu1 %v13266_v62  ;;  %v4953_v38 = vsel %vm13833_vm12, %v4893_v35, %v4894_v33  ;;  %vm13879_vm12 = vmmov %vm13806_vm1 }
 0x488   : > { %v4112_v5 = vpop.f32.mrb[68].mxu1  ;;  %v12278_v6 = vpop.f32.mrb[146].mxu0  ;;  %v13834_v7 = vld [vmem:[#allocation94_spill] sm:$0xff] }
 0x489   : > { %13830 = vst [vmem:[#allocation20_spill] sm:$0xff] %v12278_v6  ;;  %v12281_v52 = vadd.f32 %v13831_v30, %v4112_v5  ;;  %v4114_v50 = vpop.f32.mrb[69].mxu1  ;;  %v7467_v0 = vpop.f32.mrb[147].mxu0  ;;  %v4954_v6 = vsel %vm13836_vm13, %v4892_v28, %v4893_v35  ;;  %v13837_v30 = vld [vmem:[#allocation26_spill] sm:$0xff]  ;;  %vm13886_vm13 = vmmov %vm13806_vm1 }
 0x48a   : > { %v4115_v44 = vpop.f32.mrb[70].mxu1  ;;  %7597 = vmatpush3.bf16.msra.mxu1 %v7804_v15  ;;  %v5058_v5 = vpack.c.bf16 %v4953_v38, %v4954_v6  ;;  %v4896_v50 = vrot.slane %v13592_v49, 2  ;;  %v7805_v15 = vld [vmem:[%s12908_s4 + $0x230] sm:$0xff]   ;;  %v13841_v6 = vld [vmem:[#allocation95_spill] sm:$0xff] }
 0x48b   : > { %13832 = vst [vmem:[#allocation23_spill] sm:$0xff] %v12281_v52  ;;  %v12289_v53 = vadd.f32 %v13834_v7, %v4115_v44  ;;  %v4117_v61 = vpop.f32.mrb[71].mxu1  ;;  %7590 = vmatprep.subr.bf16.mxu1 %v13266_v62 }
 0x48c   : > { %v13839_v61 = vld [vmem:[#allocation85_spill] sm:$0xff] }
 0x48d   : > { %13835 = vst [vmem:[#allocation144_spill] sm:$0xff] %v12289_v53  ;;  %5342 = vmatmul.mubr.bf16.gmra.mrb[176].mxu1 %v13837_v30  ;;  %v4895_v7 = vrot.slane %v13839_v61, 2 }
 0x48e   : > { %v12296_v0 = vpop.f32.mrb[148].mxu0  ;;  %5349 = vmatprep.mubr.bf16.mxu1 %v5058_v5  ;;  %7598 = vmatpush3.bf16.msra.mxu1 %v7805_v15  ;;  %v7806_v15 = vld [vmem:[%s12908_s4 + $0x238] sm:$0xff]  }
 0x48f   : > { %13838 = vst [vmem:[#allocation143_spill] sm:$0xff] %v12296_v0  ;;  %v7470_v44 = vpop.f32.mrb[149].mxu0  ;;  %7591 = vmatprep.subr.bf16.mxu1 %v13266_v62  ;;  %v4951_v5 = vsel %vm13843_vm7, %v4895_v7, %v4896_v50  ;;  %v4897_v0 = vrot.slane %v10489_v58, 2  ;;  %vm13890_vm7 = vmmov %vm13806_vm1 }
 0x490   : > { %v4120_v28 = vpop.f32.mrb[72].mxu1  ;;  %v12303_v35 = vpop.f32.mrb[150].mxu0  ;;  %v13844_v44 = vld [vmem:[#allocation96_spill] sm:$0xff] }
 0x491   : > { %13840 = vst [vmem:[#allocation141_spill] sm:$0xff] %v12303_v35  ;;  %v12306_v38 = vadd.f32 %v13841_v6, %v4120_v28  ;;  %v4122_v49 = vpop.f32.mrb[73].mxu1  ;;  %v7471_v30 = vpop.f32.mrb[151].mxu0  ;;  %v4952_v35 = vsel %vm13846_vm8, %v4894_v33, %v4895_v7  ;;  %v13847_v6 = vld [vmem:[#allocation84_spill] sm:$0xff]  ;;  %vm13897_vm8 = vmmov %vm13806_vm1 }
 0x492   : > { %v4123_v53 = vpop.f32.mrb[74].mxu1  ;;  %7599 = vmatpush3.bf16.msra.mxu1 %v7806_v15  ;;  %v5060_v28 = vpack.c.bf16 %v4951_v5, %v4952_v35  ;;  %v4898_v49 = vrot.slane %v13598_v41, 2  ;;  %v13851_v5 = vld [vmem:[#allocation89_spill] sm:$0xff] }
 0x493   : > { %13842 = vst [vmem:[#allocation78_spill] sm:$0xff] %v12306_v38  ;;  %v12314_v61 = vadd.f32 %v13844_v44, %v4123_v53  ;;  %v4125_v52 = vpop.f32.mrb[75].mxu1  ;;  %v13848_v53 = vld [vmem:[#allocation98_spill] sm:$0xff] }
 0x494   : > { %v4949_v33 = vsel %vm13849_vm9, %v4897_v0, %v4898_v49  ;;  %vm13900_vm9 = vmmov %vm13806_vm1 }
 0x495   : > { %13845 = vst [vmem:[#allocation56_spill] sm:$0xff] %v12314_v61  ;;  %5350 = vmatmul.mubr.bf16.gmra.mrb[180].mxu1 %v13847_v6  ;;  %v4899_v6 = vrot.slane %v10526_v13, 2 }
 0x496   : > { %v12320_v30 = vpop.f32.mrb[152].mxu0  ;;  %5357 = vmatprep.mubr.bf16.mxu1 %v5060_v28  ;;  %v4900_v28 = vrot.slane %v13603_v47, 2 }
 0x497   : > { %v7474_v38 = vpop.f32.mrb[153].mxu0  ;;  %v4948_v13 = vsel %vm13853_vm4, %v4898_v49, %v4899_v6  ;;  %vm13912_vm4 = vmmov %vm13806_vm1 }
 0x498   : > { %v4128_v59 = vpop.f32.mrb[76].mxu1  ;;  %v12323_v15 = vpop.f32.mrb[154].mxu0  ;;  %v4950_v38 = vsel %vm13850_vm10, %v4896_v50, %v4897_v0  ;;  %v4947_v50 = vsel %vm13852_vm3, %v4899_v6, %v4900_v28  ;;  %vm13905_vm10 = vmmov %vm13806_vm1 }
 0x499   : > { %v12326_v44 = vadd.f32 %v13848_v53, %v4128_v59  ;;  %v4130_v52 = vpop.f32.mrb[77].mxu1  ;;  %v7475_v61 = vpop.f32.mrb[155].mxu0  ;;  %v5062_v58 = vpack.c.bf16 %v4949_v33, %v4950_v38  ;;  %vm13908_vm3 = vmmov %vm13806_vm1 }
 0x49a   : > { %v4131_v7 = vpop.f32.mrb[78].mxu1 }
 0x49b   : > { %v12331_v41 = vadd.f32 %v11790_v18, %v4131_v7  ;;  %v4133_v35 = vpop.f32.mrb[79].mxu1 }
 0x49d   : > { %5358 = vmatmul.mubr.bf16.gmra.mrb[184].mxu1 %v13851_v5 }
 0x49e   : > { %v12337_v59 = vpop.f32.mrb[156].mxu0  ;;  %5365 = vmatprep.mubr.bf16.mxu1 %v5062_v58  ;;  %v5064_v58 = vpack.c.bf16 %v4947_v50, %v4948_v13 }
 0x49f   : > { %v7478_v61 = vpop.f32.mrb[157].mxu0 }
 0x4a0   : > { %v4514_v53 = vpop.f32.mrb[80].mxu1  ;;  %v12340_v52 = vpop.f32.mrb[158].mxu0  ;;  %v4902_v61 = vrot.slane %v13608_v21, 2  ;;  %v13857_v21 = vld [vmem:[#allocation99_spill] sm:$0xff] }
 0x4a1   : > { %v4515_v18 = vadd.f32 %v4514_v53, %v11921_v46  ;;  %v4516_v7 = vpop.f32.mrb[81].mxu1  ;;  %v7479_v35 = vpop.f32.mrb[159].mxu0  ;;  %v13854_v46 = vld [vmem:[#allocation93_spill] sm:$0xff] }
 0x4a2   : > { %v4517_v0 = vpop.f32.mrb[82].mxu1 }
 0x4a3   : > { %v12346_v33 = vadd.f32 %v11819_v9, %v4515_v18  ;;  %v4518_v47 = vadd.f32 %v4517_v0, %v11944_v3  ;;  %v4519_v38 = vpop.f32.mrb[83].mxu1  ;;  %v4901_v9 = vrot.slane %v10563_v55, 2  ;;  %v13856_v0 = vld [vmem:[#allocation103_spill] sm:$0xff] }
 0x4a5   : > { %v12352_v5 = vadd.f32 %v11830_v26, %v4518_v47  ;;  %5366 = vmatmul.mubr.bf16.gmra.mrb[188].mxu1 %v13854_v46  ;;  %v4945_v26 = vsel %vm13855_vm11, %v4901_v9, %v4902_v61  ;;  %v4946_v55 = vsel %vm13806_vm1, %v4900_v28, %v4901_v9  ;;  %vm13916_vm11 = vmmov %vm13806_vm1 }
 0x4a6   : > { %v12356_v53 = vpop.f32.mrb[160].mxu0  ;;  %5373 = vmatprep.mubr.bf16.mxu1 %v5064_v58  ;;  %v5066_v58 = vpack.c.bf16 %v4945_v26, %v4946_v55 }
 0x4a7   : > { %v7482_v7 = vpop.f32.mrb[161].mxu0 }
 0x4a8   : > { %v4522_v18 = vpop.f32.mrb[84].mxu1  ;;  %v12359_v3 = vpop.f32.mrb[162].mxu0  ;;  %v4904_v7 = vrot.slane %v13613_v32, 2  ;;  %v13861_v32 = vld [vmem:[#allocation102_spill] sm:$0xff] }
 0x4a9   : > { %v4523_v35 = vadd.f32 %v4522_v18, %v11793_v45  ;;  %v4524_v49 = vpop.f32.mrb[85].mxu1  ;;  %v7483_v6 = vpop.f32.mrb[163].mxu0  ;;  %v13858_v45 = vld [vmem:[#allocation97_spill] sm:$0xff] }
 0x4aa   : > { %v4525_v50 = vpop.f32.mrb[86].mxu1 }
 0x4ab   : > { %v12365_v47 = vadd.f32 %v13856_v0, %v4523_v35  ;;  %v4526_v38 = vadd.f32 %v4525_v50, %v13857_v21  ;;  %v4527_v13 = vpop.f32.mrb[87].mxu1  ;;  %v4903_v35 = vrot.slane %v10600_v39, 2  ;;  %v13859_v0 = vld [vmem:[#allocation100_spill] sm:$0xff] }
 0x4ad   : > { %v12371_v46 = vadd.f32 %v11863_v36, %v4526_v38  ;;  %5374 = vmatmul.mubr.bf16.gmra.mrb[192].mxu1 %v13858_v45  ;;  %v4943_v36 = vsel %vm13860_vm15, %v4903_v35, %v4904_v7  ;;  %v4944_v39 = vsel %vm13862_vm2, %v4902_v61, %v4903_v35  ;;  %vm13922_vm15 = vmmov %vm13806_vm1 }
 0x4ae   : > { %5381 = vmatprep.mubr.bf16.mxu1 %v5066_v58  ;;  %v12375_v18 = vpop.f32.mrb[164].mxu0  ;;  %v5068_v58 = vpack.c.bf16 %v4943_v36, %v4944_v39  ;;  %vm13949_vm2 = vmmov %vm13806_vm1 }
 0x4af   : > { %v7502_v49 = vpop.f32.mrb[165].mxu0 }
 0x4b0   : > { %v4530_v6 = vpop.f32.mrb[88].mxu1  ;;  %v12378_v50 = vpop.f32.mrb[166].mxu0  ;;  %v13864_v49 = vld [vmem:[#allocation101_spill] sm:$0xff] }
 0x4b1   : > { %v4531_v21 = vadd.f32 %v4530_v6, %v13859_v0  ;;  %v4532_v28 = vpop.f32.mrb[89].mxu1  ;;  %v7503_v9 = vpop.f32.mrb[167].mxu0  ;;  %v4906_v6 = vrot.slane %v13717_v40, 2  ;;  %v13868_v40 = vld [vmem:[#allocation107_spill] sm:$0xff] }
 0x4b2   : > { %v4533_v26 = vpop.f32.mrb[90].mxu1 }
 0x4b3   : > { %v12384_v38 = vadd.f32 %v11886_v24, %v4531_v21  ;;  %v4534_v13 = vadd.f32 %v4533_v26, %v13861_v32  ;;  %v4535_v55 = vpop.f32.mrb[91].mxu1  ;;  %v4905_v24 = vrot.slane %v10637_v27, 2  ;;  %v13865_v26 = vld [vmem:[#allocation104_spill] sm:$0xff] }
 0x4b5   : > { %v12390_v45 = vadd.f32 %v11893_v17, %v4534_v13  ;;  %5382 = vmatmul.mubr.bf16.gmra.mrb[196].mxu1 %v13864_v49  ;;  %v4941_v17 = vsel %vm13866_vm6, %v4905_v24, %v4906_v6  ;;  %v4942_v27 = vsel %vm13869_vm14, %v4904_v7, %v4905_v24  ;;  %v13870_v49 = vld [vmem:[#allocation113_spill] sm:$0xff]  ;;  %vm13950_vm6 = vmmov %vm13806_vm1 }
 0x4b6   : > { %5389 = vmatprep.mubr.bf16.mxu1 %v5068_v58  ;;  %v12394_v0 = vpop.f32.mrb[168].mxu0  ;;  %v5070_v58 = vpack.c.bf16 %v4941_v17, %v4942_v27  ;;  %v13876_v27 = vld [vmem:[#allocation122_spill] sm:$0xff]  ;;  %vm13960_vm14 = vmmov %vm13806_vm1 }
 0x4b7   : > { %13863 = vst [vmem:[#allocation64_spill] sm:$0xff] %v12390_v45  ;;  %v7506_v28 = vpop.f32.mrb[169].mxu0 }
 0x4b8   : > { %v4538_v21 = vpop.f32.mrb[92].mxu1  ;;  %v12397_v9 = vpop.f32.mrb[170].mxu0 }
 0x4b9   : > { %v4539_v32 = vadd.f32 %v4538_v21, %v13865_v26  ;;  %v4540_v61 = vpop.f32.mrb[93].mxu1  ;;  %v7507_v35 = vpop.f32.mrb[171].mxu0  ;;  %v13872_v21 = vld [vmem:[#allocation105_spill] sm:$0xff]  ;;  %v4908_v26 = vrot.slane %v13725_v14, 2  ;;  %v13878_v14 = vld [vmem:[#allocation112_spill] sm:$0xff] }
 0x4ba   : > { %v4541_v36 = vpop.f32.mrb[94].mxu1 }
 0x4bb   : > { %v12403_v13 = vadd.f32 %v11916_v37, %v4539_v32  ;;  %v4542_v55 = vadd.f32 %v4541_v36, %v13868_v40  ;;  %v4543_v39 = vpop.f32.mrb[95].mxu1  ;;  %v13873_v37 = vld [vmem:[#allocation110_spill] sm:$0xff]  ;;  %v13874_v40 = vld [vmem:[#allocation108_spill] sm:$0xff] }
 0x4bc   : > { %v4907_v32 = vrot.slane %v13873_v37, 2 }
 0x4bd   : > { %13867 = vst [vmem:[#allocation48_spill] sm:$0xff] %v12403_v13  ;;  %v12409_v28 = vadd.f32 %v13870_v49, %v4542_v55  ;;  %5390 = vmatmul.mubr.bf16.gmra.mrb[200].mxu1 %v13872_v21 }
 0x4be   : > { %5397 = vmatprep.mubr.bf16.mxu1 %v5070_v58  ;;  %v12413_v61 = vpop.f32.mrb[172].mxu0  ;;  %v4939_v17 = vsel %vm13875_vm5, %v4907_v32, %v4908_v26  ;;  %vm13962_vm5 = vmmov %vm13806_vm1 }
 0x4bf   : > { %13871 = vst [vmem:[#allocation80_spill] sm:$0xff] %v12409_v28  ;;  %v7510_v35 = vpop.f32.mrb[173].mxu0  ;;  %v13880_v28 = vld [vmem:[#allocation123_spill] sm:$0xff] }
 0x4c0   : > { %v4546_v13 = vpop.f32.mrb[96].mxu1  ;;  %v12416_v36 = vpop.f32.mrb[174].mxu0  ;;  %v4940_v35 = vsel %vm13879_vm12, %v4906_v6, %v4907_v32  ;;  %vm13969_vm12 = vcmp.lt.s32.totalorder %v7934_v20, 5  ;;  %v13983_v20 = vld [vmem:[#allocation17_spill] sm:$0xff] }
 0x4c1   : > { %v4547_v39 = vadd.f32 %v4546_v13, %v13874_v40  ;;  %v4548_v7 = vpop.f32.mrb[97].mxu1  ;;  %v7511_v24 = vpop.f32.mrb[175].mxu0  ;;  %v5072_v37 = vpack.c.bf16 %v4939_v17, %v4940_v35  ;;  %v13882_v13 = vld [vmem:[#allocation109_spill] sm:$0xff]  ;;  %v4910_v40 = vrot.slane %v13733_v16, 2  ;;  %v13889_v16 = vld [vmem:[#allocation120_spill] sm:$0xff] }
 0x4c2   : > { %v4549_v55 = vpop.f32.mrb[98].mxu1 }
 0x4c3   : > { %v12422_v49 = vadd.f32 %v13876_v27, %v4547_v39  ;;  %v4550_v58 = vadd.f32 %v4549_v55, %v13878_v14  ;;  %v4551_v21 = vpop.f32.mrb[99].mxu1  ;;  %v13883_v39 = vld [vmem:[#allocation115_spill] sm:$0xff]  ;;  %v13885_v14 = vld [vmem:[#allocation117_spill] sm:$0xff] }
 0x4c4   : > { %v4909_v27 = vrot.slane %v13883_v39, 2 }
 0x4c5   : > { %13877 = vst [vmem:[#allocation47_spill] sm:$0xff] %v12422_v49  ;;  %v12428_v45 = vadd.f32 %v13880_v28, %v4550_v58  ;;  %5398 = vmatmul.mubr.bf16.gmra.mrb[204].mxu1 %v13882_v13  ;;  %v13887_v58 = vld [vmem:[#allocation129_spill] sm:$0xff] }
 0x4c6   : > { %5405 = vmatprep.mubr.bf16.mxu1 %v5072_v37  ;;  %v12432_v7 = vpop.f32.mrb[176].mxu0  ;;  %v4937_v28 = vsel %vm13886_vm13, %v4909_v27, %v4910_v40  ;;  %vm13970_vm13 = vmmov %vm13969_vm12 }
 0x4c7   : > { %13881 = vst [vmem:[#allocation82_spill] sm:$0xff] %v12428_v45  ;;  %v7514_v24 = vpop.f32.mrb[177].mxu0  ;;  %v13891_v45 = vld [vmem:[#allocation132_spill] sm:$0xff] }
 0x4c8   : > { %v4554_v49 = vpop.f32.mrb[100].mxu1  ;;  %v12435_v55 = vpop.f32.mrb[178].mxu0  ;;  %v4938_v24 = vsel %vm13890_vm7, %v4908_v26, %v4909_v27  ;;  %vm13975_vm7 = vmmov %vm13969_vm12 }
 0x4c9   : > { %13884 = vst [vmem:[#allocation151_spill] sm:$0xff] %v12435_v55  ;;  %v4555_v21 = vadd.f32 %v4554_v49, %v13885_v14  ;;  %v4556_v6 = vpop.f32.mrb[101].mxu1  ;;  %v7515_v32 = vpop.f32.mrb[179].mxu0  ;;  %v5074_v39 = vpack.c.bf16 %v4937_v28, %v4938_v24  ;;  %v13893_v49 = vld [vmem:[#allocation114_spill] sm:$0xff]  ;;  %v4912_v14 = vrot.slane %v13743_v23, 2  ;;  %v13899_v23 = vld [vmem:[#allocation128_spill] sm:$0xff] }
 0x4ca   : > { %v4557_v17 = vpop.f32.mrb[102].mxu1 }
 0x4cb   : > { %v12441_v35 = vadd.f32 %v13887_v58, %v4555_v21  ;;  %v4558_v37 = vadd.f32 %v4557_v17, %v13889_v16  ;;  %v4559_v13 = vpop.f32.mrb[103].mxu1  ;;  %v13894_v21 = vld [vmem:[#allocation119_spill] sm:$0xff]  ;;  %v13896_v16 = vld [vmem:[#allocation126_spill] sm:$0xff] }
 0x4cc   : > { %v4911_v58 = vrot.slane %v13894_v21, 2 }
 0x4cd   : > { %13888 = vst [vmem:[#allocation147_spill] sm:$0xff] %v12441_v35  ;;  %v12447_v55 = vadd.f32 %v13891_v45, %v4558_v37  ;;  %5406 = vmatmul.mubr.bf16.gmra.mrb[208].mxu1 %v13893_v49  ;;  %v13898_v37 = vld [vmem:[#allocation133_spill] sm:$0xff] }
 0x4ce   : > { %5413 = vmatprep.mubr.bf16.mxu1 %v5074_v39  ;;  %v12451_v6 = vpop.f32.mrb[180].mxu0  ;;  %v4935_v45 = vsel %vm13897_vm8, %v4911_v58, %v4912_v14  ;;  %vm13977_vm8 = vmmov %vm13975_vm7 }
 0x4cf   : > { %13892 = vst [vmem:[#allocation36_spill] sm:$0xff] %v12447_v55  ;;  %v7518_v32 = vpop.f32.mrb[181].mxu0  ;;  %v13901_v55 = vld [vmem:[#allocation135_spill] sm:$0xff] }
 0x4d0   : > { %v4562_v35 = vpop.f32.mrb[104].mxu1  ;;  %v12454_v17 = vpop.f32.mrb[182].mxu0  ;;  %v4936_v32 = vsel %vm13900_vm9, %v4910_v40, %v4911_v58 }
 0x4d1   : > { %13895 = vst [vmem:[#allocation39_spill] sm:$0xff] %v12454_v17  ;;  %v4563_v13 = vadd.f32 %v4562_v35, %v13896_v16  ;;  %v4564_v26 = vpop.f32.mrb[105].mxu1  ;;  %v7519_v27 = vpop.f32.mrb[183].mxu0  ;;  %v5076_v21 = vpack.c.bf16 %v4935_v45, %v4936_v32  ;;  %v13903_v35 = vld [vmem:[#allocation118_spill] sm:$0xff]  ;;  %v4914_v16 = vrot.slane %v13751_v56, 2  ;;  %v13907_v56 = vld [vmem:[#allocation136_spill] sm:$0xff] }
 0x4d2   : > { %v4565_v28 = vpop.f32.mrb[106].mxu1 }
 0x4d3   : > { %v12460_v24 = vadd.f32 %v13898_v37, %v4563_v13  ;;  %v4566_v39 = vadd.f32 %v4565_v28, %v13899_v23  ;;  %v4567_v49 = vpop.f32.mrb[107].mxu1  ;;  %v4913_v13 = vrot.slane %v13746_v34, 2  ;;  %v13904_v23 = vld [vmem:[#allocation134_spill] sm:$0xff] }
 0x4d5   : > { %v12466_v17 = vadd.f32 %v13901_v55, %v4566_v39  ;;  %5414 = vmatmul.mubr.bf16.gmra.mrb[212].mxu1 %v13903_v35  ;;  %v4933_v55 = vsel %vm13905_vm10, %v4913_v13, %v4914_v16  ;;  %v13906_v39 = vld [vmem:[#allocation142_spill] sm:$0xff]  ;;  %v4934_v34 = vsel %vm13908_vm3, %v4912_v14, %v4913_v13 }
 0x4d6   : > { %5421 = vmatprep.mubr.bf16.mxu1 %v5076_v21  ;;  %v12470_v26 = vpop.f32.mrb[184].mxu0 }
 0x4d7   : > { %13902 = vst [vmem:[#allocation72_spill] sm:$0xff] %v12466_v17  ;;  %v7522_v27 = vpop.f32.mrb[185].mxu0 }
 0x4d8   : > { %v4570_v37 = vpop.f32.mrb[108].mxu1  ;;  %v12473_v28 = vpop.f32.mrb[186].mxu0  ;;  %v5078_v27 = vpack.c.bf16 %v4933_v55, %v4934_v34 }
 0x4d9   : > { %v4571_v49 = vadd.f32 %v4570_v37, %v13904_v23  ;;  %v4572_v40 = vpop.f32.mrb[109].mxu1  ;;  %v7523_v58 = vpop.f32.mrb[187].mxu0  ;;  %v13910_v37 = vld [vmem:[#allocation124_spill] sm:$0xff]  ;;  %v4916_v23 = vrot.slane %v13648_v48, 2  ;;  %v13915_v48 = vld [vmem:[#allocation29_spill] sm:$0xff] }
 0x4da   : > { %v4573_v45 = vpop.f32.mrb[110].mxu1 }
 0x4db   : > { %v12479_v32 = vadd.f32 %v13906_v39, %v4571_v49  ;;  %v4574_v21 = vadd.f32 %v4573_v45, %v13907_v56  ;;  %v4575_v35 = vpop.f32.mrb[111].mxu1  ;;  %v4915_v49 = vrot.slane %v13753_v29, 2  ;;  %v13911_v56 = vld [vmem:[#allocation35_spill] sm:$0xff] }
 0x4dd   : > { %v12485_v17 = vadd.f32 %v12051_v31, %v4574_v21  ;;  %5422 = vmatmul.mubr.bf16.gmra.mrb[216].mxu1 %v13910_v37  ;;  %v4931_v31 = vsel %vm13912_vm4, %v4915_v49, %v4916_v23  ;;  %v13913_v21 = vld [vmem:[#allocation150_spill] sm:$0xff]  ;;  %v4932_v29 = vsel %vm13916_vm11, %v4914_v16, %v4915_v49  ;;  %v13919_v16 = vrot.slane %v13763_v60, 2 }
 0x4de   : > { %5429 = vmatprep.mubr.bf16.mxu1 %v5078_v27  ;;  %v12489_v40 = vpop.f32.mrb[188].mxu0 }
 0x4df   : > { %13909 = vst [vmem:[#allocation83_spill] sm:$0xff] %v12485_v17  ;;  %v7526_v58 = vpop.f32.mrb[189].mxu0 }
 0x4e0   : > { %v4578_v39 = vpop.f32.mrb[112].mxu1  ;;  %v12492_v45 = vpop.f32.mrb[190].mxu0  ;;  %v5080_v58 = vpack.c.bf16 %v4931_v31, %v4932_v29 }
 0x4e1   : > { %v4579_v35 = vadd.f32 %v4578_v39, %v13911_v56  ;;  %v4580_v14 = vpop.f32.mrb[113].mxu1  ;;  %v7527_v13 = vpop.f32.mrb[191].mxu0  ;;  %v13917_v39 = vld [vmem:[#allocation130_spill] sm:$0xff] }
 0x4e2   : > { %v4581_v55 = vpop.f32.mrb[114].mxu1  ;;  %v4917_v13 = vrot.slane %v13761_v57, 2 }
 0x4e3   : > { %v12498_v34 = vadd.f32 %v13913_v21, %v4579_v35  ;;  %v4582_v27 = vadd.f32 %v4581_v55, %v13915_v48  ;;  %v4583_v37 = vpop.f32.mrb[115].mxu1  ;;  %v13918_v55 = vld [vmem:[#allocation32_spill] sm:$0xff] }
 0x4e4   : > { %v4930_v57 = vsel %vm13922_vm15, %v4916_v23, %v4917_v13 }
 0x4e5   : > { %13914 = vst [vmem:[#allocation86_spill] sm:$0xff] %v12498_v34  ;;  %v12504_v17 = vadd.f32 %v12081_v19, %v4582_v27  ;;  %5430 = vmatmul.mubr.bf16.gmra.mrb[220].mxu1 %v13917_v39  ;;  %v4929_v19 = vsel %vm13806_vm1, %v4917_v13, %v13919_v16  ;;  %v13921_v27 = vld [vmem:[#allocation146_spill] sm:$0xff]  ;;  %v13927_v13 = vld [vmem:[#allocation71_spill] sm:$0xff] }
 0x4e6   : > { %5437 = vmatprep.mubr.bf16.mxu1 %v5080_v58  ;;  %v12507_v56 = vpop.f32.mrb[192].mxu0  ;;  %v5082_v39 = vpack.c.bf16 %v4929_v19, %v4930_v57  ;;  %v13930_v57 = vld [vmem:[#allocation74_spill] sm:$0xff] }
 0x4e7   : > { %v7530_v14 = vpop.f32.mrb[193].mxu0 }
 0x4e8   : > { %v4586_v35 = vpop.f32.mrb[116].mxu1  ;;  %v12510_v21 = vpop.f32.mrb[194].mxu0 }
 0x4e9   : > { %v4587_v48 = vadd.f32 %v4586_v35, %v13918_v55  ;;  %v4588_v37 = vpop.f32.mrb[117].mxu1  ;;  %v7531_v34 = vpop.f32.mrb[195].mxu0 }
 0x4ea   : > { %v4589_v49 = vpop.f32.mrb[118].mxu1  ;;  %v13924_v34 = vld [vmem:[#allocation137_spill] sm:$0xff] }
 0x4eb   : > { %v12518_v31 = vadd.f32 %v12103_v4, %v4587_v48  ;;  %v4590_v29 = vadd.f32 %v4589_v49, %v13921_v27  ;;  %v4591_v58 = vpop.f32.mrb[119].mxu1  ;;  %v13925_v4 = vld [vmem:[#allocation60_spill] sm:$0xff] }
 0x4ec   : > { %v13929_v58 = vld [vmem:[#allocation140_spill] sm:$0xff] }
 0x4ed   : > { %13920 = vst [vmem:[#allocation68_spill] sm:$0xff] %v12518_v31  ;;  %v12524_v14 = vadd.f32 %v12110_v54, %v4590_v29  ;;  %5438 = vmatmul.mubr.bf16.gmra.mrb[224].mxu1 %v13924_v34 }
 0x4ee   : > { %5445 = vmatprep.mubr.bf16.mxu1 %v5082_v39  ;;  %v12527_v60 = vpop.f32.mrb[196].mxu0  ;;  %v13931_v39 = vld [vmem:[#allocation55_spill] sm:$0xff] }
 0x4ef   : > { %13923 = vst [vmem:[#allocation87_spill] sm:$0xff] %v12524_v14  ;;  %v7534_v35 = vpop.f32.mrb[197].mxu0  ;;  %v13932_v34 = vpack.c.bf16 %v13930_v57, %v13931_v39  ;;  %v13938_v57 = vld [vmem:[#allocation145_spill] sm:$0xff] }
 0x4f0   : > { %v4594_v55 = vpop.f32.mrb[120].mxu1  ;;  %v12529_v37 = vpop.f32.mrb[198].mxu0  ;;  %v13939_v39 = vld [vmem:[#allocation149_spill] sm:$0xff] }
 0x4f1   : > { %v4595_v48 = vadd.f32 %v4594_v55, %v13925_v4  ;;  %v4596_v16 = vpop.f32.mrb[121].mxu1  ;;  %v7535_v49 = vpop.f32.mrb[199].mxu0 }
 0x4f2   : > { %v4597_v27 = vpop.f32.mrb[122].mxu1 }
 0x4f3   : > { %v12533_v23 = vadd.f32 %v12134_v42, %v4595_v48  ;;  %v4598_v54 = vadd.f32 %v4597_v27, %v13927_v13  ;;  %v4599_v19 = vpop.f32.mrb[123].mxu1 }
 0x4f4   : > { %v13936_v19 = vld [vmem:[#allocation111_spill] sm:$0xff] }
 0x4f5   : > { %13926 = vst [vmem:[#allocation88_spill] sm:$0xff] %v12533_v23  ;;  %v12537_v29 = vadd.f32 %v12142_v63, %v4598_v54  ;;  %5446 = vmatmul.mubr.bf16.gmra.mrb[228].mxu1 %v13929_v58 }
 0x4f6   : > { %5453 = vmatprep.mubr.bf16.mxu1 %v13932_v34  ;;  %v12543_v35 = vpop.f32.mrb[200].mxu0  ;;  %v4923_v34 = vrot.slane %v13939_v39, 2 }
 0x4f7   : > { %13928 = vst [vmem:[#allocation67_spill] sm:$0xff] %v12537_v29  ;;  %13933 = vst [vmem:[#allocation13_spill] sm:$0xff] %v12543_v35  ;;  %v7538_v55 = vpop.f32.mrb[201].mxu0  ;;  %v13941_v29 = vld [vmem:[#allocation59_spill] sm:$0xff] }
 0x4f8   : > { %v4602_v4 = vpop.f32.mrb[124].mxu1  ;;  %v12545_v16 = vpop.f32.mrb[202].mxu0  ;;  %v13940_v55 = vld [vmem:[#allocation63_spill] sm:$0xff] }
 0x4f9   : > { %13934 = vst [vmem:[#allocation90_spill] sm:$0xff] %v12545_v16  ;;  %v4603_v42 = vadd.f32 %v4602_v4, %v12113_v43  ;;  %v4604_v48 = vpop.f32.mrb[125].mxu1  ;;  %v7539_v49 = vpop.f32.mrb[203].mxu0  ;;  %v13942_v23 = vpack.c.bf16 %v13940_v55, %v13941_v29  ;;  %v13951_v55 = vld [vmem:[#allocation73_spill] sm:$0xff] }
 0x4fa   : > { %v4605_v27 = vpop.f32.mrb[126].mxu1  ;;  %v13944_v48 = vld [vmem:[#allocation44_spill] sm:$0xff]  ;;  %v13954_v16 = vld [vmem:[#allocation121_spill] sm:$0xff] }
 0x4fb   : > { %v12549_v63 = vadd.f32 %v12157_v25, %v4603_v42  ;;  %v4606_v13 = vadd.f32 %v4605_v27, %v12122_v11  ;;  %v4607_v54 = vpop.f32.mrb[127].mxu1  ;;  %v4882_v25 = vrot.slane %v13944_v48, 2  ;;  %v13946_v11 = vld [vmem:[#allocation106_spill] sm:$0xff] }
 0x4fd   : > { %13935 = vst [vmem:[#allocation91_spill] sm:$0xff] %v12549_v63  ;;  %v12553_v58 = vadd.f32 %v13936_v19, %v4606_v13  ;;  %5454 = vmatmul.mubr.bf16.gmra.mrb[232].mxu1 %v13938_v57  ;;  %v13947_v19 = vld [vmem:[#allocation148_spill] sm:$0xff] }
 0x4fe   : > { %5461 = vmatprep.mubr.bf16.mxu1 %v13942_v23  ;;  %v12560_v43 = vpop.f32.mrb[204].mxu0  ;;  %v13948_v57 = vrot.slane %v13947_v19, 2  ;;  %v4965_v23 = vsel %vm13950_vm6, %v4923_v34, %v4882_v25  ;;  %v13953_v63 = vld [vmem:[#allocation76_spill] sm:$0xff] }
 0x4ff   : > { %13937 = vst [vmem:[#allocation10_spill] sm:$0xff] %v12553_v58  ;;  %13943 = vst [vmem:[#allocation81_spill] sm:$0xff] %v12560_v43  ;;  %v7542_v4 = vpop.f32.mrb[205].mxu0 }
 0x500   : > { %v4610_v42 = vpop.f32.mrb[128].mxu1  ;;  %v12563_v49 = vpop.f32.mrb[206].mxu0  ;;  %v4924_v58 = vsel %vm13949_vm2, %v13948_v57, %v4923_v34  ;;  %v13957_v57 = vld [vmem:[#allocation40_spill] sm:$0xff] }
 0x501   : > { %13945 = vst [vmem:[#allocation77_spill] sm:$0xff] %v12563_v49  ;;  %v4611_v27 = vadd.f32 %v4610_v42, %v13946_v11  ;;  %v4612_v13 = vpop.f32.mrb[129].mxu1  ;;  %v7543_v54 = vpop.f32.mrb[207].mxu0  ;;  %v5088_v49 = vpack.c.bf16 %v4965_v23, %v4924_v58  ;;  %v13956_v11 = vld [vmem:[#allocation152_spill] sm:$0xff]  ;;  %v4883_v31 = vrot.slane %v13957_v57, 2 }
 0x502   : > { %v4613_v29 = vpop.f32.mrb[130].mxu1 }
 0x503   : > { %v12573_v4 = vadd.f32 %v13951_v55, %v4611_v27  ;;  %v4614_v43 = vadd.f32 %v4613_v29, %v13953_v63  ;;  %v4615_v14 = vpop.f32.mrb[131].mxu1  ;;  %v13958_v27 = vld [vmem:[#allocation116_spill] sm:$0xff] }
 0x504   : > { %v13959_v14 = vrot.slane %v13793_v10, 2 }
 0x505   : > { %13952 = vst [vmem:[#allocation92_spill] sm:$0xff] %v12573_v4  ;;  %v12577_v42 = vadd.f32 %v13954_v16, %v4614_v43  ;;  %5462 = vmatmul.mubr.bf16.gmra.mrb[236].mxu1 %v13956_v11  ;;  %v4964_v11 = vsel %vm13962_vm5, %v4882_v25, %v4883_v31  ;;  %v13965_v25 = vld [vmem:[#allocation125_spill] sm:$0xff] }
 0x506   : > { %5469 = vmatprep.mubr.bf16.mxu1 %v5088_v49  ;;  %v12580_v13 = vpop.f32.mrb[208].mxu0  ;;  %v4963_v16 = vsel %vm13960_vm14, %v4883_v31, %v13959_v14  ;;  %v13961_v49 = vld [vmem:[#allocation7_spill] sm:$0xff] }
 0x507   : > { %13955 = vst [vmem:[#allocation94_spill] sm:$0xff] %v12577_v42  ;;  %v7546_v54 = vpop.f32.mrb[209].mxu0 }
 0x508   : > { %v4618_v34 = vpop.f32.mrb[132].mxu1  ;;  %v12583_v35 = vpop.f32.mrb[210].mxu0  ;;  %v5090_v54 = vpack.c.bf16 %v4963_v16, %v4964_v11 }
 0x509   : > { %v4619_v55 = vadd.f32 %v4618_v34, %v13958_v27  ;;  %v4620_v4 = vpop.f32.mrb[133].mxu1  ;;  %v7547_v63 = vpop.f32.mrb[211].mxu0 }
 0x50a   : > { %v4621_v58 = vpop.f32.mrb[134].mxu1  ;;  %v13963_v4 = vld [vmem:[#allocation43_spill] sm:$0xff] }
 0x50b   : > { %v12591_v43 = vadd.f32 %v12204_v8, %v4619_v55  ;;  %v4622_v23 = vadd.f32 %v4621_v58, %v13961_v49  ;;  %v4623_v29 = vpop.f32.mrb[135].mxu1  ;;  %v13964_v8 = vld [vmem:[#allocation75_spill] sm:$0xff] }
 0x50d   : > { %v12597_v34 = vadd.f32 %v12207_v1, %v4622_v23  ;;  %5470 = vmatmul.mubr.bf16.gmra.mrb[240].mxu1 %v13963_v4  ;;  %v5007_v23 = vrot.slane %v13939_v39, 3  ;;  %v4966_v4 = vrot.slane %v13944_v48, 3 }
 0x50e   : > { %5477 = vmatprep.mubr.bf16.mxu1 %v5090_v54  ;;  %v12600_v27 = vpop.f32.mrb[212].mxu0  ;;  %v13967_v54 = vld [vmem:[#allocation52_spill] sm:$0xff] }
 0x50f   : > { %v7550_v63 = vpop.f32.mrb[213].mxu0  ;;  %v5049_v39 = vsel %vm13970_vm13, %v5007_v23, %v4966_v4 }
 0x510   : > { %v4626_v14 = vpop.f32.mrb[136].mxu1  ;;  %v12602_v42 = vpop.f32.mrb[214].mxu0 }
 0x511   : > { %v4627_v55 = vadd.f32 %v4626_v14, %v13964_v8  ;;  %v4628_v58 = vpop.f32.mrb[137].mxu1  ;;  %v7551_v49 = vpop.f32.mrb[215].mxu0 }
 0x512   : > { %v4629_v29 = vpop.f32.mrb[138].mxu1 }
 0x513   : > { %v12606_v31 = vadd.f32 %v12221_v51, %v4627_v55  ;;  %v4630_v1 = vadd.f32 %v4629_v29, %v13965_v25  ;;  %v4631_v16 = vpop.f32.mrb[139].mxu1  ;;  %v13968_v51 = vrot.slane %v13947_v19, 3 }
 0x514   : > { %v13971_v16 = vld [vmem:[#allocation127_spill] sm:$0xff] }
 0x515   : > { %v12611_v11 = vadd.f32 %v12228_v12, %v4630_v1  ;;  %5478 = vmatmul.mubr.bf16.gmra.mrb[244].mxu1 %v13967_v54  ;;  %v5008_v8 = vsel %vm13969_vm12, %v13968_v51, %v5007_v23  ;;  %v4967_v23 = vrot.slane %v13957_v57, 3 }
 0x516   : > { %v12615_v63 = vpop.f32.mrb[216].mxu0  ;;  %7576 = vmatprep.mubr.msk.bf16.mxu1 %vm7817_vm0, %v13266_v62  ;;  %v5089_v25 = vpack.c.bf16 %v5049_v39, %v5008_v8  ;;  %v13974_v8 = vrot.slane %v13793_v10, 3 }
 0x517   : > { %13966 = vst [vmem:[#allocation26_spill] sm:$0xff] %v12611_v11  ;;  %v7554_v14 = vpop.f32.mrb[217].mxu0  ;;  %v5048_v57 = vsel %vm13977_vm8, %v4966_v4, %v4967_v23 }
 0x518   : > { %v4634_v12 = vpop.f32.mrb[140].mxu1  ;;  %v12625_v55 = vpop.f32.mrb[218].mxu0  ;;  %v13972_v14 = vld [vmem:[#allocation139_spill] sm:$0xff] }
 0x519   : > { %v4635_v58 = vadd.f32 %v4634_v12, %v12210_v2  ;;  %v4636_v48 = vpop.f32.mrb[141].mxu1  ;;  %v7555_v49 = vpop.f32.mrb[219].mxu0 }
 0x51a   : > { %v4637_v29 = vpop.f32.mrb[142].mxu1 }
 0x51b   : > { %v12629_v1 = vadd.f32 %v12246_v22, %v4635_v58  ;;  %v4638_v19 = vadd.f32 %v4637_v29, %v13971_v16  ;;  %v4639_v54 = vpop.f32.mrb[143].mxu1  ;;  %v5047_v22 = vsel %vm13975_vm7, %v4967_v23, %v13974_v8  ;;  %v13976_v58 = vld [vmem:[#allocation131_spill] sm:$0xff] }
 0x51c   : > { %v5091_v16 = vpack.c.bf16 %v5047_v22, %v5048_v57  ;;  %v13980_v54 = vld [vmem:[#allocation138_spill] sm:$0xff] }
 0x51d   : > { %v12633_v51 = vadd.f32 %v13972_v14, %v4638_v19  ;;  %7577 = vmatmul.mubr.bf16.vlgmr.msra.gmra.mrb[248].mxu1 %v5089_v25  ;;  %v13978_v19 = vld [vmem:[#allocation79_spill] sm:$0xff] }
 0x51e   : > { %v12636_v11 = vpop.f32.mrb[220].mxu0  ;;  %7580 = vmatprep.mubr.msk.bf16.mxu1 %vm7817_vm0, %v13266_v62 }
 0x51f   : > { %13973 = vst [vmem:[#allocation85_spill] sm:$0xff] %v12633_v51  ;;  %v7558_v2 = vpop.f32.mrb[221].mxu0 }
 0x520   : > { %v4642_v39 = vpop.f32.mrb[144].mxu1  ;;  %v12644_v12 = vpop.f32.mrb[222].mxu0  ;;  %v13981_v2 = vld [vmem:[#allocation20_spill] sm:$0xff] }
 0x521   : > { %v4643_v48 = vadd.f32 %v4642_v39, %v13976_v58  ;;  %v4644_v49 = vpop.f32.mrb[145].mxu1  ;;  %v7559_v29 = vpop.f32.mrb[223].mxu0 }
 0x522   : > { %v4645_v25 = vpop.f32.mrb[146].mxu1 }
 0x523   : > { %v12650_v62 = vadd.f32 %v13978_v19, %v4643_v48  ;;  %v4646_v10 = vadd.f32 %v4645_v25, %v13980_v54  ;;  %v4647_v14 = vpop.f32.mrb[147].mxu1  ;;  %v13984_v48 = vld [vmem:[#allocation143_spill] sm:$0xff] }
 0x524   : > { %v13986_v25 = vld [vmem:[#allocation51_spill] sm:$0xff] }
 0x525   : > { %13979 = vst [vmem:[#allocation95_spill] sm:$0xff] %v12650_v62  ;;  %v12654_v8 = vadd.f32 %v13981_v2, %v4646_v10  ;;  %7581 = vmatmul.mubr.bf16.gmra.mrb[252].mxu1 %v5091_v16  ;;  %v13987_v10 = vld [vmem:[#allocation141_spill] sm:$0xff]  ;;  %v13989_v62 = vld [vmem:[#allocation23_spill] sm:$0xff] }
 0x526   : > { %v12656_v51 = vpop.f32.mrb[224].mxu0 }
 0x527   : > { %13982 = vst [vmem:[#allocation96_spill] sm:$0xff] %v12654_v8  ;;  %v7562_v39 = vpop.f32.mrb[225].mxu0 }
 0x528   : > { %v4650_v58 = vpop.f32.mrb[148].mxu1  ;;  %v12658_v49 = vpop.f32.mrb[226].mxu0 }
 0x529   : > { %v4651_v4 = vadd.f32 %v4650_v58, %v13983_v20  ;;  %v4652_v23 = vpop.f32.mrb[149].mxu1  ;;  %v7563_v22 = vpop.f32.mrb[227].mxu0 }
 0x52a   : > { %v4653_v29 = vpop.f32.mrb[150].mxu1 }
 0x52b   : > { %v12662_v57 = vadd.f32 %v13984_v48, %v4651_v4  ;;  %v4654_v19 = vadd.f32 %v4653_v29, %v13986_v25  ;;  %v4655_v54 = vpop.f32.mrb[151].mxu1  ;;  %v13990_v48 = vld [vmem:[#allocation144_spill] sm:$0xff] }
 0x52d   : > { %13985 = vst [vmem:[#allocation84_spill] sm:$0xff] %v12662_v57  ;;  %v12666_v14 = vadd.f32 %v13987_v10, %v4654_v19  ;;  %v13992_v57 = vld [vmem:[#allocation78_spill] sm:$0xff] }
 0x52e   : > { %v12668_v16 = vpop.f32.mrb[228].mxu0 }
 0x52f   : > { %13988 = vst [vmem:[#allocation98_spill] sm:$0xff] %v12666_v14  ;;  %v7566_v2 = vpop.f32.mrb[229].mxu0 }
 0x530   : > { %v4658_v39 = vpop.f32.mrb[152].mxu1  ;;  %v12670_v8 = vpop.f32.mrb[230].mxu0 }
 0x531   : > { %v4659_v58 = vadd.f32 %v4658_v39, %v13989_v62  ;;  %v4660_v20 = vpop.f32.mrb[153].mxu1  ;;  %v7567_v23 = vpop.f32.mrb[231].mxu0 }
 0x532   : > { %v4661_v22 = vpop.f32.mrb[154].mxu1 }
 0x533   : > { %v12674_v4 = vadd.f32 %v12320_v30, %v4659_v58  ;;  %v4662_v29 = vadd.f32 %v4661_v22, %v13990_v48  ;;  %v4663_v25 = vpop.f32.mrb[155].mxu1  ;;  %v13993_v58 = vld [vmem:[#allocation56_spill] sm:$0xff] }
 0x535   : > { %v12678_v19 = vadd.f32 %v12323_v15, %v4662_v29 }
 0x536   : > { %v12680_v54 = vpop.f32.mrb[232].mxu0 }
 0x537   : > { %13991 = vst [vmem:[#allocation89_spill] sm:$0xff] %v12678_v19  ;;  %v7570_v10 = vpop.f32.mrb[233].mxu0 }
 0x538   : > { %v4666_v2 = vpop.f32.mrb[156].mxu1  ;;  %v12682_v14 = vpop.f32.mrb[234].mxu0 }
 0x539   : > { %v4667_v62 = vadd.f32 %v4666_v2, %v13992_v57  ;;  %v4668_v39 = vpop.f32.mrb[157].mxu1  ;;  %v7571_v20 = vpop.f32.mrb[235].mxu0 }
 0x53a   : > { %v4669_v23 = vpop.f32.mrb[158].mxu1 }
 0x53b   : > { %v12686_v30 = vadd.f32 %v12337_v59, %v4667_v62  ;;  %v4670_v22 = vadd.f32 %v4669_v23, %v13993_v58  ;;  %v4671_v48 = vpop.f32.mrb[159].mxu1 }
 0x53d   : > { %v12690_v15 = vadd.f32 %v12340_v52, %v4670_v22 }
 0x53e   : > { %v12692_v29 = vpop.f32.mrb[236].mxu0 }
 0x53f   : > { %v7574_v25 = vpop.f32.mrb[237].mxu0 }
 0x540   : > { %v4674_v10 = vpop.f32.mrb[160].mxu1  ;;  %v12694_v19 = vpop.f32.mrb[238].mxu0 }
 0x541   : > { %v4675_v57 = vadd.f32 %v4674_v10, %v12326_v44  ;;  %v4676_v2 = vpop.f32.mrb[161].mxu1  ;;  %v7575_v39 = vpop.f32.mrb[239].mxu0  ;;  %v12708_v44 = vld [vmem:[%s12909_s5] ss:$0 sm:$0xff] }
 0x542   : > { %v4677_v20 = vpop.f32.mrb[162].mxu1 }
 0x543   : > { %v12698_v59 = vadd.f32 %v12356_v53, %v4675_v57  ;;  %v4678_v62 = vadd.f32 %v4677_v20, %v12331_v41  ;;  %v4679_v23 = vpop.f32.mrb[163].mxu1  ;;  %v13995_v20 = vld [vmem:[#allocation2_spill] sm:$0xff] }
 0x545   : > { %v12702_v52 = vadd.f32 %v12359_v3, %v4678_v62 }
 0x547   : > { %13994 = vst [vmem:[#allocation93_spill] sm:$0xff] %v12702_v52 }
 0x548   : > { %v5319_v58 = vpop.f32.mrb[164].mxu1 }
 0x549   : > { %v5521_v22 = vadd.f32 %v12375_v18, %v5319_v58  ;;  %v5321_v48 = vpop.f32.mrb[165].mxu1 }
 0x54a   : > { %v5322_v25 = vpop.f32.mrb[166].mxu1 }
 0x54b   : > { %v5687_v10 = vadd.f32 %v5521_v22, %v12346_v33  ;;  %v5524_v53 = vadd.f32 %v12378_v50, %v5322_v25  ;;  %v5324_v57 = vpop.f32.mrb[167].mxu1  ;;  %v13996_v33 = vld [vmem:[#allocation3_spill] sm:$0xff] }
 0x54d   : > { %v5736_v41 = vadd.f32 %v12708_v44, %v5687_v10  ;;  %v5688_v3 = vadd.f32 %v5524_v53, %v12352_v5 }
 0x54f   : > { %v5778_v2 = vmax.f32 %v5736_v41, 0.0  ;;  %v5737_v18 = vadd.f32 %v12708_v44, %v5688_v3 }
 0x550   : > { %v5327_v39 = vpop.f32.mrb[168].mxu1 }
 0x551   : > { %v5820_v62 = vadd.f32 %v5778_v2, %v13995_v20  ;;  %v5779_v23 = vmax.f32 %v5737_v18, 0.0  ;;  %v5529_v58 = vadd.f32 %v12394_v0, %v5327_v39  ;;  %v5329_v48 = vpop.f32.mrb[169].mxu1 }
 0x552   : > { %v5330_v52 = vpop.f32.mrb[170].mxu1 }
 0x553   : > { %v5821_v22 = vadd.f32 %v5779_v23, %v13996_v33  ;;  %v5689_v50 = vadd.f32 %v5529_v58, %v12365_v47  ;;  %v5532_v25 = vadd.f32 %v12397_v9, %v5330_v52  ;;  %v5332_v10 = vpop.f32.mrb[171].mxu1  ;;  %v5862_v5 = vmax.f32 %v5820_v62, 0.0  ;;  %v13997_v9 = vld [vmem:[#allocation4_spill] sm:$0xff]  ;;  %v13998_v62 = vld [vmem:[#allocation5_spill] sm:$0xff] }
 0x554   : > { %v13999_v10 = vld [vmem:[#allocation64_spill] sm:$0xff] }
 0x555   : > { %v5863_v53 = vmax.f32 %v5821_v22, 0.0  ;;  %v5738_v57 = vadd.f32 %v12708_v44, %v5689_v50  ;;  %v5690_v41 = vadd.f32 %v5532_v25, %v12371_v46 }
 0x557   : > { %v6688_v0 = vpack.c.bf16 %v5863_v53, %v5862_v5  ;;  %v5780_v3 = vmax.f32 %v5738_v57, 0.0  ;;  %v5739_v47 = vadd.f32 %v12708_v44, %v5690_v41 }
 0x558   : > { %v5335_v2 = vpop.f32.mrb[172].mxu1 }
 0x559   : > { %6689 = vst [vmem:[%s12727_s26] sm:$0xff] %v6688_v0   ;;  %v5822_v52 = vadd.f32 %v5780_v3, %v13997_v9  ;;  %v5781_v18 = vmax.f32 %v5739_v47, 0.0  ;;  %v5537_v39 = vadd.f32 %v12413_v61, %v5335_v2  ;;  %v5337_v46 = vpop.f32.mrb[173].mxu1  ;;  %v14000_v0 = vld [vmem:[#allocation6_spill] sm:$0xff]  ;;  %v14001_v9 = vld [vmem:[#allocation8_spill] sm:$0xff] }
 0x55a   : > { %v5338_v20 = vpop.f32.mrb[174].mxu1  ;;  %v14003_v46 = vld [vmem:[#allocation151_spill] sm:$0xff] }
 0x55b   : > { %v5823_v23 = vadd.f32 %v5781_v18, %v13998_v62  ;;  %v5691_v58 = vadd.f32 %v5537_v39, %v12384_v38  ;;  %v5540_v48 = vadd.f32 %v12416_v36, %v5338_v20  ;;  %v5340_v33 = vpop.f32.mrb[175].mxu1  ;;  %v5864_v22 = vmax.f32 %v5822_v52, 0.0  ;;  %v14002_v18 = vld [vmem:[#allocation48_spill] sm:$0xff] }
 0x55c   : > { %v14004_v33 = vld [vmem:[#allocation80_spill] sm:$0xff] }
 0x55d   : > { %v5865_v50 = vmax.f32 %v5823_v23, 0.0  ;;  %v5740_v25 = vadd.f32 %v12708_v44, %v5691_v58  ;;  %v5692_v5 = vadd.f32 %v5540_v48, %v13999_v10 }
 0x55f   : > { %v6693_v53 = vpack.c.bf16 %v5865_v50, %v5864_v22  ;;  %v5782_v57 = vmax.f32 %v5740_v25, 0.0  ;;  %v5741_v41 = vadd.f32 %v12708_v44, %v5692_v5  ;;  %v14005_v5 = vld [vmem:[#allocation9_spill] sm:$0xff] }
 0x560   : > { %v5343_v61 = vpop.f32.mrb[176].mxu1 }
 0x561   : > { %6790 = vst [vmem:[%s12727_s26 + $0x8] sm:$0xff] %v6693_v53   ;;  %v5824_v3 = vadd.f32 %v5782_v57, %v14000_v0  ;;  %v5783_v47 = vmax.f32 %v5741_v41, 0.0  ;;  %v5545_v38 = vadd.f32 %v12432_v7, %v5343_v61  ;;  %v5345_v36 = vpop.f32.mrb[177].mxu1 }
 0x562   : > { %v5346_v2 = vpop.f32.mrb[178].mxu1 }
 0x563   : > { %v5825_v52 = vadd.f32 %v5783_v47, %v14001_v9  ;;  %v5693_v39 = vadd.f32 %v5545_v38, %v14002_v18  ;;  %v5548_v20 = vadd.f32 %v14003_v46, %v5346_v2  ;;  %v5348_v62 = vpop.f32.mrb[179].mxu1  ;;  %v5866_v23 = vmax.f32 %v5824_v3, 0.0  ;;  %v14006_v3 = vld [vmem:[#allocation11_spill] sm:$0xff] }
 0x564   : > { %v14007_v38 = vld [vmem:[#allocation47_spill] sm:$0xff] }
 0x565   : > { %v5867_v58 = vmax.f32 %v5825_v52, 0.0  ;;  %v5742_v48 = vadd.f32 %v12708_v44, %v5693_v39  ;;  %v5694_v22 = vadd.f32 %v5548_v20, %v14004_v33  ;;  %v14008_v2 = vld [vmem:[#allocation39_spill] sm:$0xff]  ;;  %v14009_v20 = vld [vmem:[#allocation82_spill] sm:$0xff]  ;;  %v14010_v33 = vld [vmem:[#allocation12_spill] sm:$0xff] }
 0x567   : > { %v6698_v50 = vpack.c.bf16 %v5867_v58, %v5866_v23  ;;  %v5784_v25 = vmax.f32 %v5742_v48, 0.0  ;;  %v5743_v10 = vadd.f32 %v12708_v44, %v5694_v22 }
 0x568   : > { %v5351_v7 = vpop.f32.mrb[180].mxu1 }
 0x569   : > { %6791 = vst [vmem:[%s12727_s26 + $0x10] sm:$0xff] %v6698_v50   ;;  %v5826_v53 = vadd.f32 %v5784_v25, %v14005_v5  ;;  %v5785_v57 = vmax.f32 %v5743_v10, 0.0  ;;  %v5553_v41 = vadd.f32 %v12451_v6, %v5351_v7  ;;  %v5353_v61 = vpop.f32.mrb[181].mxu1  ;;  %v14011_v5 = vld [vmem:[#allocation15_spill] sm:$0xff] }
 0x56a   : > { %v5354_v0 = vpop.f32.mrb[182].mxu1 }
 0x56b   : > { %v5827_v47 = vadd.f32 %v5785_v57, %v14006_v3  ;;  %v5695_v36 = vadd.f32 %v5553_v41, %v14007_v38  ;;  %v5556_v9 = vadd.f32 %v14008_v2, %v5354_v0  ;;  %v5356_v52 = vpop.f32.mrb[183].mxu1  ;;  %v5868_v18 = vmax.f32 %v5826_v53, 0.0  ;;  %v14012_v57 = vld [vmem:[#allocation147_spill] sm:$0xff] }
 0x56d   : > { %v5869_v39 = vmax.f32 %v5827_v47, 0.0  ;;  %v5744_v46 = vadd.f32 %v12708_v44, %v5695_v36  ;;  %v5696_v62 = vadd.f32 %v5556_v9, %v14009_v20  ;;  %v14013_v36 = vld [vmem:[#allocation36_spill] sm:$0xff] }
 0x56f   : > { %v6703_v23 = vpack.c.bf16 %v5869_v39, %v5868_v18  ;;  %v5786_v58 = vmax.f32 %v5744_v46, 0.0  ;;  %v5745_v48 = vadd.f32 %v12708_v44, %v5696_v62  ;;  %v14014_v39 = vld [vmem:[#allocation16_spill] sm:$0xff] }
 0x570   : > { %v5359_v6 = vpop.f32.mrb[184].mxu1 }
 0x571   : > { %6792 = vst [vmem:[%s12727_s26 + $0x18] sm:$0xff] %v6703_v23   ;;  %v5828_v22 = vadd.f32 %v5786_v58, %v14010_v33  ;;  %v5787_v50 = vmax.f32 %v5745_v48, 0.0  ;;  %v5561_v25 = vadd.f32 %v12470_v26, %v5359_v6  ;;  %v5361_v10 = vpop.f32.mrb[185].mxu1  ;;  %v14015_v58 = vld [vmem:[#allocation18_spill] sm:$0xff] }
 0x572   : > { %v5362_v7 = vpop.f32.mrb[186].mxu1 }
 0x573   : > { %v5829_v53 = vadd.f32 %v5787_v50, %v14011_v5  ;;  %v5697_v41 = vadd.f32 %v5561_v25, %v14012_v57  ;;  %v5564_v61 = vadd.f32 %v12473_v28, %v5362_v7  ;;  %v5364_v0 = vpop.f32.mrb[187].mxu1  ;;  %v5870_v3 = vmax.f32 %v5828_v22, 0.0  ;;  %v14016_v7 = vld [vmem:[#allocation72_spill] sm:$0xff] }
 0x575   : > { %v5871_v47 = vmax.f32 %v5829_v53, 0.0  ;;  %v5746_v38 = vadd.f32 %v12708_v44, %v5697_v41  ;;  %v5698_v2 = vadd.f32 %v5564_v61, %v14013_v36  ;;  %v14017_v61 = vld [vmem:[#allocation19_spill] sm:$0xff] }
 0x577   : > { %v6708_v9 = vpack.c.bf16 %v5871_v47, %v5870_v3  ;;  %v5788_v52 = vmax.f32 %v5746_v38, 0.0  ;;  %v5747_v18 = vadd.f32 %v12708_v44, %v5698_v2  ;;  %v14018_v38 = vld [vmem:[#allocation21_spill] sm:$0xff] }
 0x578   : > { %v5367_v26 = vpop.f32.mrb[188].mxu1 }
 0x579   : > { %6793 = vst [vmem:[%s12727_s26 + $0x20] sm:$0xff] %v6708_v9   ;;  %v5830_v46 = vadd.f32 %v5788_v52, %v14014_v39  ;;  %v5789_v20 = vmax.f32 %v5747_v18, 0.0  ;;  %v5569_v62 = vadd.f32 %v12489_v40, %v5367_v26  ;;  %v5369_v28 = vpop.f32.mrb[189].mxu1 }
 0x57a   : > { %v5370_v23 = vpop.f32.mrb[190].mxu1 }
 0x57b   : > { %v5831_v48 = vadd.f32 %v5789_v20, %v14015_v58  ;;  %v5699_v6 = vadd.f32 %v5569_v62, %v12460_v24  ;;  %v5572_v33 = vadd.f32 %v12492_v45, %v5370_v23  ;;  %v5372_v22 = vpop.f32.mrb[191].mxu1  ;;  %v5872_v50 = vmax.f32 %v5830_v46, 0.0  ;;  %v14019_v46 = vld [vmem:[#allocation83_spill] sm:$0xff]  ;;  %v14020_v58 = vld [vmem:[#allocation22_spill] sm:$0xff] }
 0x57c   : > { %v14021_v22 = vld [vmem:[#allocation24_spill] sm:$0xff] }
 0x57d   : > { %v5873_v25 = vmax.f32 %v5831_v48, 0.0  ;;  %v5748_v10 = vadd.f32 %v12708_v44, %v5699_v6  ;;  %v5700_v5 = vadd.f32 %v5572_v33, %v14016_v7 }
 0x57f   : > { %v6713_v53 = vpack.c.bf16 %v5873_v25, %v5872_v50  ;;  %v5790_v57 = vmax.f32 %v5748_v10, 0.0  ;;  %v5749_v41 = vadd.f32 %v12708_v44, %v5700_v5  ;;  %v14022_v25 = vld [vmem:[#allocation86_spill] sm:$0xff] }
 0x580   : > { %v5375_v40 = vpop.f32.mrb[192].mxu1 }
 0x581   : > { %6794 = vst [vmem:[%s12727_s26 + $0x28] sm:$0xff] %v6713_v53   ;;  %v5832_v0 = vadd.f32 %v5790_v57, %v14017_v61  ;;  %v5791_v3 = vmax.f32 %v5749_v41, 0.0  ;;  %v5577_v24 = vadd.f32 %v12507_v56, %v5375_v40  ;;  %v5377_v45 = vpop.f32.mrb[193].mxu1 }
 0x582   : > { %v5378_v47 = vpop.f32.mrb[194].mxu1 }
 0x583   : > { %v5833_v36 = vadd.f32 %v5791_v3, %v14018_v38  ;;  %v5701_v2 = vadd.f32 %v5577_v24, %v12479_v32  ;;  %v5580_v9 = vadd.f32 %v12510_v21, %v5378_v47  ;;  %v5380_v52 = vpop.f32.mrb[195].mxu1  ;;  %v5874_v18 = vmax.f32 %v5832_v0, 0.0  ;;  %v14023_v24 = vld [vmem:[#allocation25_spill] sm:$0xff] }
 0x584   : > { %v14024_v38 = vld [vmem:[#allocation13_spill] sm:$0xff] }
 0x585   : > { %v5875_v26 = vmax.f32 %v5833_v36, 0.0  ;;  %v5750_v39 = vadd.f32 %v12708_v44, %v5701_v2  ;;  %v5702_v20 = vadd.f32 %v5580_v9, %v14019_v46  ;;  %v14025_v9 = vld [vmem:[#allocation27_spill] sm:$0xff] }
 0x587   : > { %v6718_v62 = vpack.c.bf16 %v5875_v26, %v5874_v18  ;;  %v5792_v28 = vmax.f32 %v5750_v39, 0.0  ;;  %v5751_v23 = vadd.f32 %v12708_v44, %v5702_v20  ;;  %v14026_v18 = vld [vmem:[#allocation68_spill] sm:$0xff]  ;;  %v14027_v39 = vld [vmem:[#allocation90_spill] sm:$0xff] }
 0x588   : > { %v5383_v56 = vpop.f32.mrb[196].mxu1 }
 0x589   : > { %6795 = vst [vmem:[%s12727_s26 + $0x30] sm:$0xff] %v6718_v62   ;;  %v5834_v48 = vadd.f32 %v5792_v28, %v14020_v58  ;;  %v5793_v6 = vmax.f32 %v5751_v23, 0.0  ;;  %v5585_v32 = vadd.f32 %v12527_v60, %v5383_v56  ;;  %v5385_v21 = vpop.f32.mrb[197].mxu1  ;;  %v14028_v23 = vld [vmem:[#allocation87_spill] sm:$0xff] }
 0x58a   : > { %v5386_v33 = vpop.f32.mrb[198].mxu1  ;;  %v14029_v21 = vld [vmem:[#allocation28_spill] sm:$0xff] }
 0x58b   : > { %v5835_v50 = vadd.f32 %v5793_v6, %v14021_v22  ;;  %v5703_v10 = vadd.f32 %v5585_v32, %v14022_v25  ;;  %v5588_v7 = vadd.f32 %v12529_v37, %v5386_v33  ;;  %v5388_v5 = vpop.f32.mrb[199].mxu1  ;;  %v5876_v53 = vmax.f32 %v5834_v48, 0.0 }
 0x58c   : > { %v14031_v5 = vld [vmem:[#allocation30_spill] sm:$0xff] }
 0x58d   : > { %v5877_v57 = vmax.f32 %v5835_v50, 0.0  ;;  %v5752_v41 = vadd.f32 %v12708_v44, %v5703_v10  ;;  %v5704_v40 = vadd.f32 %v5588_v7, %v12504_v17  ;;  %v14030_v50 = vld [vmem:[#allocation81_spill] sm:$0xff] }
 0x58f   : > { %v6723_v61 = vpack.c.bf16 %v5877_v57, %v5876_v53  ;;  %v5794_v0 = vmax.f32 %v5752_v41, 0.0  ;;  %v5753_v3 = vadd.f32 %v12708_v44, %v5704_v40  ;;  %v14032_v57 = vld [vmem:[#allocation88_spill] sm:$0xff]  ;;  %v14033_v40 = vld [vmem:[#allocation77_spill] sm:$0xff] }
 0x590   : > { %v5391_v60 = vpop.f32.mrb[200].mxu1 }
 0x591   : > { %6796 = vst [vmem:[%s12727_s26 + $0x38] sm:$0xff] %v6723_v61   ;;  %v5836_v45 = vadd.f32 %v5794_v0, %v14023_v24  ;;  %v5795_v47 = vmax.f32 %v5753_v3, 0.0  ;;  %v5593_v36 = vadd.f32 %v14024_v38, %v5391_v60  ;;  %v5393_v37 = vpop.f32.mrb[201].mxu1 }
 0x592   : > { %v5394_v2 = vpop.f32.mrb[202].mxu1 }
 0x593   : > { %v5837_v52 = vadd.f32 %v5795_v47, %v14025_v9  ;;  %v5705_v26 = vadd.f32 %v5593_v36, %v14026_v18  ;;  %v5596_v17 = vadd.f32 %v14027_v39, %v5394_v2  ;;  %v5396_v46 = vpop.f32.mrb[203].mxu1  ;;  %v5878_v20 = vmax.f32 %v5836_v45, 0.0  ;;  %v14034_v45 = vld [vmem:[#allocation67_spill] sm:$0xff] }
 0x594   : > { %v14035_v9 = vld [vmem:[#allocation31_spill] sm:$0xff]  ;;  %v14036_v46 = vld [vmem:[#allocation33_spill] sm:$0xff] }
 0x595   : > { %v5879_v62 = vmax.f32 %v5837_v52, 0.0  ;;  %v5754_v28 = vadd.f32 %v12708_v44, %v5705_v26  ;;  %v5706_v56 = vadd.f32 %v5596_v17, %v14028_v23 }
 0x597   : > { %v6728_v58 = vpack.c.bf16 %v5879_v62, %v5878_v20  ;;  %v5796_v48 = vmax.f32 %v5754_v28, 0.0  ;;  %v5755_v6 = vadd.f32 %v12708_v44, %v5706_v56  ;;  %v14037_v62 = vld [vmem:[#allocation91_spill] sm:$0xff] }
 0x598   : > { %v5399_v32 = vpop.f32.mrb[204].mxu1 }
 0x599   : > { %6797 = vst [vmem:[%s12727_s26 + $0x40] sm:$0xff] %v6728_v58   ;;  %v5838_v33 = vadd.f32 %v5796_v48, %v14029_v21  ;;  %v5797_v22 = vmax.f32 %v5755_v6, 0.0  ;;  %v5601_v25 = vadd.f32 %v14030_v50, %v5399_v32  ;;  %v5401_v10 = vpop.f32.mrb[205].mxu1  ;;  %v14038_v32 = vld [vmem:[#allocation10_spill] sm:$0xff] }
 0x59a   : > { %v5402_v7 = vpop.f32.mrb[206].mxu1 }
 0x59b   : > { %v5839_v53 = vadd.f32 %v5797_v22, %v14031_v5  ;;  %v5707_v41 = vadd.f32 %v5601_v25, %v14032_v57  ;;  %v5604_v61 = vadd.f32 %v14033_v40, %v5402_v7  ;;  %v5404_v0 = vpop.f32.mrb[207].mxu1  ;;  %v5880_v3 = vmax.f32 %v5838_v33, 0.0  ;;  %v14039_v25 = vld [vmem:[#allocation34_spill] sm:$0xff]  ;;  %v14040_v57 = vld [vmem:[#allocation37_spill] sm:$0xff]  ;;  %v14041_v40 = vld [vmem:[#allocation92_spill] sm:$0xff] }
 0x59d   : > { %v5881_v60 = vmax.f32 %v5839_v53, 0.0  ;;  %v5756_v24 = vadd.f32 %v12708_v44, %v5707_v41  ;;  %v5708_v47 = vadd.f32 %v5604_v61, %v14034_v45 }
 0x59f   : > { %v6733_v38 = vpack.c.bf16 %v5881_v60, %v5880_v3  ;;  %v5798_v36 = vmax.f32 %v5756_v24, 0.0  ;;  %v5757_v37 = vadd.f32 %v12708_v44, %v5708_v47  ;;  %v14042_v47 = vld [vmem:[#allocation94_spill] sm:$0xff] }
 0x5a0   : > { %v5407_v2 = vpop.f32.mrb[208].mxu1 }
 0x5a1   : > { %6798 = vst [vmem:[%s12727_s26 + $0x48] sm:$0xff] %v6733_v38   ;;  %v5840_v52 = vadd.f32 %v5798_v36, %v14035_v9  ;;  %v5799_v18 = vmax.f32 %v5757_v37, 0.0  ;;  %v5609_v26 = vadd.f32 %v12580_v13, %v5407_v2  ;;  %v5409_v39 = vpop.f32.mrb[209].mxu1  ;;  %v14043_v9 = vld [vmem:[#allocation38_spill] sm:$0xff] }
 0x5a2   : > { %v5410_v17 = vpop.f32.mrb[210].mxu1 }
 0x5a3   : > { %v5841_v20 = vadd.f32 %v5799_v18, %v14036_v46  ;;  %v5709_v28 = vadd.f32 %v5609_v26, %v14037_v62  ;;  %v5612_v23 = vadd.f32 %v12583_v35, %v5410_v17  ;;  %v5412_v56 = vpop.f32.mrb[211].mxu1  ;;  %v5882_v58 = vmax.f32 %v5840_v52, 0.0  ;;  %v14044_v17 = vld [vmem:[#allocation41_spill] sm:$0xff] }
 0x5a5   : > { %v5883_v48 = vmax.f32 %v5841_v20, 0.0  ;;  %v5758_v6 = vadd.f32 %v12708_v44, %v5709_v28  ;;  %v5710_v21 = vadd.f32 %v5612_v23, %v14038_v32 }
 0x5a7   : > { %v6738_v33 = vpack.c.bf16 %v5883_v48, %v5882_v58  ;;  %v5800_v22 = vmax.f32 %v5758_v6, 0.0  ;;  %v5759_v50 = vadd.f32 %v12708_v44, %v5710_v21 }
 0x5a8   : > { %v5415_v13 = vpop.f32.mrb[212].mxu1 }
 0x5a9   : > { %6799 = vst [vmem:[%s12727_s26 + $0x50] sm:$0xff] %v6738_v33   ;;  %v5842_v10 = vadd.f32 %v5800_v22, %v14039_v25  ;;  %v5801_v7 = vmax.f32 %v5759_v50, 0.0  ;;  %v5617_v5 = vadd.f32 %v12600_v27, %v5415_v13  ;;  %v5417_v35 = vpop.f32.mrb[213].mxu1  ;;  %v14045_v33 = vld [vmem:[#allocation42_spill] sm:$0xff]  ;;  %v14046_v25 = vld [vmem:[#allocation45_spill] sm:$0xff] }
 0x5aa   : > { %v5418_v53 = vpop.f32.mrb[214].mxu1 }
 0x5ab   : > { %v5843_v41 = vadd.f32 %v5801_v7, %v14040_v57  ;;  %v5711_v61 = vadd.f32 %v5617_v5, %v14041_v40  ;;  %v5620_v0 = vadd.f32 %v12602_v42, %v5418_v53  ;;  %v5420_v3 = vpop.f32.mrb[215].mxu1  ;;  %v5884_v60 = vmax.f32 %v5842_v10, 0.0 }
 0x5ad   : > { %v5885_v24 = vmax.f32 %v5843_v41, 0.0  ;;  %v5760_v45 = vadd.f32 %v12708_v44, %v5711_v61  ;;  %v5712_v38 = vadd.f32 %v5620_v0, %v14042_v47  ;;  %v14047_v41 = vld [vmem:[#allocation26_spill] sm:$0xff] }
 0x5af   : > { %v6743_v36 = vpack.c.bf16 %v5885_v24, %v5884_v60  ;;  %v5802_v37 = vmax.f32 %v5760_v45, 0.0  ;;  %v5761_v2 = vadd.f32 %v12708_v44, %v5712_v38  ;;  %v14048_v60 = vld [vmem:[#allocation46_spill] sm:$0xff]  ;;  %v14049_v38 = vld [vmem:[#allocation49_spill] sm:$0xff] }
 0x5b0   : > { %v5423_v27 = vpop.f32.mrb[216].mxu1 }
 0x5b1   : > { %6800 = vst [vmem:[%s12727_s26 + $0x58] sm:$0xff] %v6743_v36   ;;  %v5844_v52 = vadd.f32 %v5802_v37, %v14043_v9  ;;  %v5803_v18 = vmax.f32 %v5761_v2, 0.0  ;;  %v5625_v26 = vadd.f32 %v12615_v63, %v5423_v27  ;;  %v5425_v42 = vpop.f32.mrb[217].mxu1 }
 0x5b2   : > { %v5426_v39 = vpop.f32.mrb[218].mxu1 }
 0x5b3   : > { %v5845_v46 = vadd.f32 %v5803_v18, %v14044_v17  ;;  %v5713_v20 = vadd.f32 %v5625_v26, %v12591_v43  ;;  %v5628_v62 = vadd.f32 %v12625_v55, %v5426_v39  ;;  %v5428_v28 = vpop.f32.mrb[219].mxu1  ;;  %v5886_v23 = vmax.f32 %v5844_v52, 0.0  ;;  %v14050_v26 = vld [vmem:[#allocation85_spill] sm:$0xff] }
 0x5b5   : > { %v5887_v56 = vmax.f32 %v5845_v46, 0.0  ;;  %v5762_v58 = vadd.f32 %v12708_v44, %v5713_v20  ;;  %v5714_v48 = vadd.f32 %v5628_v62, %v12597_v34  ;;  %v14051_v20 = vld [vmem:[#allocation50_spill] sm:$0xff] }
 0x5b7   : > { %v6748_v6 = vpack.c.bf16 %v5887_v56, %v5886_v23  ;;  %v5804_v32 = vmax.f32 %v5762_v58, 0.0  ;;  %v5763_v21 = vadd.f32 %v12708_v44, %v5714_v48  ;;  %v14052_v56 = vld [vmem:[#allocation53_spill] sm:$0xff]  ;;  %v14053_v48 = vld [vmem:[#allocation95_spill] sm:$0xff] }
 0x5b8   : > { %v5431_v63 = vpop.f32.mrb[220].mxu1 }
 0x5b9   : > { %6801 = vst [vmem:[%s12727_s26 + $0x60] sm:$0xff] %v6748_v6   ;;  %v5846_v22 = vadd.f32 %v5804_v32, %v14045_v33  ;;  %v5805_v50 = vmax.f32 %v5763_v21, 0.0  ;;  %v5633_v43 = vadd.f32 %v12636_v11, %v5431_v63  ;;  %v5433_v55 = vpop.f32.mrb[221].mxu1 }
 0x5ba   : > { %v5434_v13 = vpop.f32.mrb[222].mxu1 }
 0x5bb   : > { %v5847_v10 = vadd.f32 %v5805_v50, %v14046_v25  ;;  %v5715_v7 = vadd.f32 %v5633_v43, %v12606_v31  ;;  %v5636_v34 = vadd.f32 %v12644_v12, %v5434_v13  ;;  %v5436_v5 = vpop.f32.mrb[223].mxu1  ;;  %v5888_v35 = vmax.f32 %v5846_v22, 0.0  ;;  %v14054_v50 = vld [vmem:[#allocation96_spill] sm:$0xff] }
 0x5bd   : > { %v5889_v53 = vmax.f32 %v5847_v10, 0.0  ;;  %v5764_v57 = vadd.f32 %v12708_v44, %v5715_v7  ;;  %v5716_v40 = vadd.f32 %v5636_v34, %v14047_v41  ;;  %v14055_v10 = vld [vmem:[#allocation54_spill] sm:$0xff]  ;;  %v14057_v41 = vld [vmem:[#allocation84_spill] sm:$0xff] }
 0x5bf   : > { %v6753_v61 = vpack.c.bf16 %v5889_v53, %v5888_v35  ;;  %v5806_v0 = vmax.f32 %v5764_v57, 0.0  ;;  %v5765_v3 = vadd.f32 %v12708_v44, %v5716_v40  ;;  %v14056_v53 = vld [vmem:[#allocation57_spill] sm:$0xff] }
 0x5c0   : > { %v5439_v11 = vpop.f32.mrb[224].mxu1 }
 0x5c1   : > { %6802 = vst [vmem:[%s12727_s26 + $0x68] sm:$0xff] %v6753_v61   ;;  %v5848_v24 = vadd.f32 %v5806_v0, %v14048_v60  ;;  %v5807_v45 = vmax.f32 %v5765_v3, 0.0  ;;  %v5641_v31 = vadd.f32 %v12656_v51, %v5439_v11  ;;  %v5441_v12 = vpop.f32.mrb[225].mxu1 }
 0x5c2   : > { %v5442_v47 = vpop.f32.mrb[226].mxu1 }
 0x5c3   : > { %v5849_v36 = vadd.f32 %v5807_v45, %v14049_v38  ;;  %v5717_v37 = vadd.f32 %v5641_v31, %v12629_v1  ;;  %v5644_v2 = vadd.f32 %v12658_v49, %v5442_v47  ;;  %v5444_v27 = vpop.f32.mrb[227].mxu1  ;;  %v5890_v9 = vmax.f32 %v5848_v24, 0.0  ;;  %v14058_v24 = vld [vmem:[#allocation98_spill] sm:$0xff] }
 0x5c4   : > { %v14059_v38 = vld [vmem:[#allocation58_spill] sm:$0xff] }
 0x5c5   : > { %v5891_v52 = vmax.f32 %v5849_v36, 0.0  ;;  %v5766_v18 = vadd.f32 %v12708_v44, %v5717_v37  ;;  %v5718_v42 = vadd.f32 %v5644_v2, %v14050_v26 }
 0x5c7   : > { %v6758_v39 = vpack.c.bf16 %v5891_v52, %v5890_v9  ;;  %v5808_v17 = vmax.f32 %v5766_v18, 0.0  ;;  %v5767_v46 = vadd.f32 %v12708_v44, %v5718_v42  ;;  %v14060_v9 = vld [vmem:[#allocation61_spill] sm:$0xff] }
 0x5c8   : > { %v5447_v51 = vpop.f32.mrb[228].mxu1 }
 0x5c9   : > { %6803 = vst [vmem:[%s12727_s26 + $0x70] sm:$0xff] %v6758_v39   ;;  %v5850_v62 = vadd.f32 %v5808_v17, %v14051_v20  ;;  %v5809_v28 = vmax.f32 %v5767_v46, 0.0  ;;  %v5649_v1 = vadd.f32 %v12668_v16, %v5447_v51  ;;  %v5449_v49 = vpop.f32.mrb[229].mxu1  ;;  %v14061_v51 = vld [vmem:[#allocation89_spill] sm:$0xff] }
 0x5ca   : > { %v5450_v23 = vpop.f32.mrb[230].mxu1  ;;  %v14062_v49 = vld [vmem:[#allocation62_spill] sm:$0xff] }
 0x5cb   : > { %v5851_v58 = vadd.f32 %v5809_v28, %v14052_v56  ;;  %v5719_v6 = vadd.f32 %v5649_v1, %v14053_v48  ;;  %v5652_v32 = vadd.f32 %v12670_v8, %v5450_v23  ;;  %v5452_v21 = vpop.f32.mrb[231].mxu1  ;;  %v5892_v63 = vmax.f32 %v5850_v62, 0.0 }
 0x5cd   : > { %v5893_v33 = vmax.f32 %v5851_v58, 0.0  ;;  %v5768_v22 = vadd.f32 %v12708_v44, %v5719_v6  ;;  %v5720_v43 = vadd.f32 %v5652_v32, %v14054_v50 }
 0x5cf   : > { %v6763_v55 = vpack.c.bf16 %v5893_v33, %v5892_v63  ;;  %v5810_v13 = vmax.f32 %v5768_v22, 0.0  ;;  %v5769_v25 = vadd.f32 %v12708_v44, %v5720_v43 }
 0x5d0   : > { %v5455_v16 = vpop.f32.mrb[232].mxu1 }
 0x5d1   : > { %6804 = vst [vmem:[%s12727_s26 + $0x78] sm:$0xff] %v6763_v55   ;;  %v5852_v7 = vadd.f32 %v5810_v13, %v14055_v10  ;;  %v5811_v34 = vmax.f32 %v5769_v25, 0.0  ;;  %v5657_v5 = vadd.f32 %v12680_v54, %v5455_v16  ;;  %v5457_v8 = vpop.f32.mrb[233].mxu1 }
 0x5d2   : > { %v5458_v35 = vpop.f32.mrb[234].mxu1 }
 0x5d3   : > { %v5853_v57 = vadd.f32 %v5811_v34, %v14056_v53  ;;  %v5721_v40 = vadd.f32 %v5657_v5, %v14057_v41  ;;  %v5660_v61 = vadd.f32 %v12682_v14, %v5458_v35  ;;  %v5460_v0 = vpop.f32.mrb[235].mxu1  ;;  %v5894_v3 = vmax.f32 %v5852_v7, 0.0  ;;  %v14064_v41 = vld [vmem:[#allocation66_spill] sm:$0xff] }
 0x5d5   : > { %v5895_v11 = vmax.f32 %v5853_v57, 0.0  ;;  %v5770_v60 = vadd.f32 %v12708_v44, %v5721_v40  ;;  %v5722_v45 = vadd.f32 %v5660_v61, %v14058_v24 }
 0x5d7   : > { %v6768_v31 = vpack.c.bf16 %v5895_v11, %v5894_v3  ;;  %v5812_v12 = vmax.f32 %v5770_v60, 0.0  ;;  %v5771_v47 = vadd.f32 %v12708_v44, %v5722_v45  ;;  %v14065_v60 = vld [vmem:[#allocation69_spill] sm:$0xff] }
 0x5d8   : > { %v5463_v54 = vpop.f32.mrb[236].mxu1 }
 0x5d9   : > { %6805 = vst [vmem:[%s12727_s26 + $0x80] sm:$0xff] %v6768_v31   ;;  %v5854_v36 = vadd.f32 %v5812_v12, %v14059_v38  ;;  %v5813_v37 = vmax.f32 %v5771_v47, 0.0  ;;  %v5665_v2 = vadd.f32 %v12692_v29, %v5463_v54  ;;  %v5465_v14 = vpop.f32.mrb[237].mxu1  ;;  %v14066_v54 = vld [vmem:[#allocation93_spill] sm:$0xff] }
 0x5da   : > { %v5466_v27 = vpop.f32.mrb[238].mxu1  ;;  %v14067_v14 = vld [vmem:[#allocation70_spill] sm:$0xff] }
 0x5db   : > { %v5855_v52 = vadd.f32 %v5813_v37, %v14060_v9  ;;  %v5723_v18 = vadd.f32 %v5665_v2, %v12674_v4  ;;  %v5668_v26 = vadd.f32 %v12694_v19, %v5466_v27  ;;  %v5468_v42 = vpop.f32.mrb[239].mxu1  ;;  %v5896_v39 = vmax.f32 %v5854_v36, 0.0  ;;  %v14063_v19 = vld [vmem:[#allocation65_spill] sm:$0xff] }
 0x5dd   : > { %v5897_v17 = vmax.f32 %v5855_v52, 0.0  ;;  %v5772_v46 = vadd.f32 %v12708_v44, %v5723_v18  ;;  %v5724_v20 = vadd.f32 %v5668_v26, %v14061_v51  ;;  %v14068_v52 = vld [vmem:[#allocation14_spill] sm:$0xff] }
 0x5df   : > { %v6773_v62 = vpack.c.bf16 %v5897_v17, %v5896_v39  ;;  %v5814_v28 = vmax.f32 %v5772_v46, 0.0  ;;  %v5773_v29 = vadd.f32 %v12708_v44, %v5724_v20 }
 0x5e0   : > { %v5471_v1 = vpop.f32.mrb[240].mxu1 }
 0x5e1   : > { %6806 = vst [vmem:[%s12727_s26 + $0x88] sm:$0xff] %v6773_v62   ;;  %v5856_v23 = vadd.f32 %v5814_v28, %v14062_v49  ;;  %v5815_v56 = vmax.f32 %v5773_v29, 0.0  ;;  %v5473_v4 = vpop.f32.mrb[241].mxu1 }
 0x5e2   : > { %v5474_v58 = vpop.f32.mrb[242].mxu1 }
 0x5e3   : > { %v5857_v48 = vadd.f32 %v5815_v56, %v14063_v19  ;;  %v5476_v6 = vpop.f32.mrb[243].mxu1  ;;  %v5898_v32 = vmax.f32 %v5856_v23, 0.0 }
 0x5e5   : > { %v5899_v21 = vmax.f32 %v5857_v48, 0.0 }
 0x5e7   : > { %v6778_v63 = vpack.c.bf16 %v5899_v21, %v5898_v32 }
 0x5e8   : > { %v5479_v33 = vpop.f32.mrb[244].mxu1 }
 0x5e9   : > { %6807 = vst [vmem:[%s12727_s26 + $0x90] sm:$0xff] %v6778_v63   ;;  %v5481_v22 = vpop.f32.mrb[245].mxu1 }
 0x5ea   : > { %v5482_v50 = vpop.f32.mrb[246].mxu1 }
 0x5eb   : > { %v5484_v43 = vpop.f32.mrb[247].mxu1 }
 0x5f0   : > { %v5672_v55 = vpop.f32.mrb[248].mxu1 }
 0x5f1   : > { %v5673_v13 = vadd.f32 %v5672_v55, %v5471_v1  ;;  %v7578_v25 = vpop.f32.mrb[249].mxu1 }
 0x5f2   : > { %v5675_v16 = vpop.f32.mrb[250].mxu1 }
 0x5f3   : > { %v5725_v10 = vadd.f32 %v5673_v13, %v12686_v30  ;;  %v5676_v7 = vadd.f32 %v5675_v16, %v5474_v58  ;;  %v7579_v34 = vpop.f32.mrb[251].mxu1 }
 0x5f5   : > { %v5774_v5 = vadd.f32 %v12708_v44, %v5725_v10  ;;  %v5726_v8 = vadd.f32 %v5676_v7, %v12690_v15 }
 0x5f7   : > { %v5816_v35 = vmax.f32 %v5774_v5, 0.0  ;;  %v5775_v53 = vadd.f32 %v12708_v44, %v5726_v8 }
 0x5f8   : > { %v5680_v57 = vpop.f32.mrb[252].mxu1 }
 0x5f9   : > { %v5858_v40 = vadd.f32 %v5816_v35, %v14064_v41  ;;  %v5817_v61 = vmax.f32 %v5775_v53, 0.0  ;;  %v5681_v0 = vadd.f32 %v5680_v57, %v5479_v33  ;;  %v7582_v3 = vpop.f32.mrb[253].mxu1 }
 0x5fa   : > { %v5683_v11 = vpop.f32.mrb[254].mxu1 }
 0x5fb   : > { %v5859_v24 = vadd.f32 %v5817_v61, %v14065_v60  ;;  %v5727_v30 = vadd.f32 %v5681_v0, %v12698_v59  ;;  %v5684_v45 = vadd.f32 %v5683_v11, %v5482_v50  ;;  %v7583_v31 = vpop.f32.mrb[255].mxu1  ;;  %v5900_v12 = vmax.f32 %v5858_v40, 0.0 }
 0x5fd   : > { %v5901_v15 = vmax.f32 %v5859_v24, 0.0  ;;  %v5776_v47 = vadd.f32 %v12708_v44, %v5727_v30  ;;  %v5728_v38 = vadd.f32 %v5684_v45, %v14066_v54 }
 0x5ff   : > { %v6783_v36 = vpack.c.bf16 %v5901_v15, %v5900_v12  ;;  %v5818_v37 = vmax.f32 %v5776_v47, 0.0  ;;  %v5777_v2 = vadd.f32 %v12708_v44, %v5728_v38 }
 0x601   : > { %6808 = vst [vmem:[%s12727_s26 + $0x98] sm:$0xff] %v6783_v36   ;;  %v5860_v27 = vadd.f32 %v5818_v37, %v14067_v14  ;;  %v5819_v9 = vmax.f32 %v5777_v2, 0.0 }
 0x603   : > { %v5861_v18 = vadd.f32 %v5819_v9, %v14068_v52  ;;  %v5902_v59 = vmax.f32 %v5860_v27, 0.0 }
 0x605   : > { %v5903_v26 = vmax.f32 %v5861_v18, 0.0 }
 0x607   : > { %v6788_v42 = vpack.c.bf16 %v5903_v26, %v5902_v59 }
 0x609   : > { %6809 = vst [vmem:[%s12727_s26 + $0xa0] sm:$0xff] %v6788_v42  }
 0x60a PF: > { %s16_s21 = sadd.s32 1, %s7813_s21  }
 0x60b   : > { %p13_p4 = scmp.ge.s32.totalorder %s16_s21, 4  }
 0x60d   :  { %15 = sbr.rel (!%p13_p4) target bundleno = 1 (0x1), region = 78 }

</bundles_post_ra>
